<compile_context>
chip_gen: v7x
topology: tpu7x:2x2x1
jax: 0.10.0
libtpu: 0.0.40
codegen_flags: <defaults>
</compile_context>

<pallas_src>
import functools

import jax
import jax.numpy as jnp
from jax import lax
from jax.experimental import pallas as pl
from jax.experimental.pallas import tpu as pltpu


# ----------------------------- conv + relu + pool -----------------------------

def conv_relu_pool_kernel(p_ref, w_ref, b_ref, o_ref):
    # p_ref: (9, N*784) im2col patches, column = n*784 + o*196 + s
    #        (o = 2a+b pool offset, s = 14*i + j pooled spatial position)
    # w_ref: (32, 9)  conv weights, k = 3*dh + dw
    # b_ref: (32, 1)  conv bias
    # o_ref: (N, 32, 196) pooled output (channel-major per image)
    # One MXU push covers the whole batch and all four pool offsets.
    y = jnp.dot(w_ref[...], p_ref[...], preferred_element_type=jnp.float32)
    y = jnp.maximum(y + b_ref[...], 0.0)                 # conv bias + ReLU
    n = o_ref.shape[0]
    for i in range(n):                                    # tiny static batch
        c = i * 784
        o_ref[i] = jnp.maximum(
            jnp.maximum(y[:, c:c + 196], y[:, c + 196:c + 392]),
            jnp.maximum(y[:, c + 392:c + 588], y[:, c + 588:c + 784]))


def conv_relu_pool(x_nchw, w_k, bias_k):
    # x_nchw: (N, 1, 28, 28) f32; w_k: (32, 9); bias_k: (32, 1)
    n = x_nchw.shape[0]
    xp = jnp.pad(x_nchw[:, 0], ((0, 0), (1, 1), (1, 1)))           # (N, 30, 30)
    # im2col: patches[3*dh+dw, n*784 + (2a+b)*196 + 14*i+j] = xp[n, 2i+a+dh, 2j+b+dw]
    rows = []
    for dh in range(3):
        for dw in range(3):
            offs = []
            for a in range(2):
                for b in range(2):
                    sl = xp[:, a + dh:a + dh + 28:2, b + dw:b + dw + 28:2]
                    offs.append(sl.reshape(n, 196))
            rows.append(jnp.stack(offs, axis=1).reshape(1, n * 784))
    patches = jnp.concatenate(rows, axis=0)                         # (9, N*784)

    out = pl.pallas_call(
        conv_relu_pool_kernel,
        out_shape=jax.ShapeDtypeStruct((n, 32, 196), jnp.float32),
        grid_spec=pltpu.PrefetchScalarGridSpec(
            num_scalar_prefetch=0,
            grid=(1,),                                    # whole batch per step
            in_specs=[
                pl.BlockSpec((9, n * 784), lambda i: (0, 0)),
                pl.BlockSpec((32, 9), lambda i: (0, 0)),
                pl.BlockSpec((32, 1), lambda i: (0, 0)),
            ],
            out_specs=pl.BlockSpec((n, 32, 196), lambda i: (0, 0, 0)),
        ),
        compiler_params=pltpu.CompilerParams(
            dimension_semantics=("arbitrary",)),
    )(patches, w_k, bias_k)
    # Channel-major flatten (matches torch Flatten of (N, 32, 14, 14)); the
    # reshape of contiguous trailing dims is free.
    return out.reshape(n, 32 * 196)


# --------------------------------- linear -------------------------------------

def _linear_kernel(x_ref, w_ref, s_ref, b_ref, o_ref, *, apply_relu):
    # x_ref: (M, K) f32 (resident)    w_ref: (K, block_n) int8 (streamed)
    # s_ref/b_ref: (1, block_n) f32   o_ref: (M, block_n) f32
    # int8 -> bf16 is exact (|q| <= 127); per-channel dequant scale is applied
    # to the f32 accumulation.
    acc = jnp.dot(x_ref[...].astype(jnp.bfloat16),
                  w_ref[...].astype(jnp.bfloat16),
                  preferred_element_type=jnp.float32)
    y = acc * s_ref[...] + b_ref[...]
    if apply_relu:
        y = jnp.maximum(y, 0.0)
    o_ref[...] = y


def linear(x, w_q, scale, bias, *, apply_relu, block_n):
    # x: (M, K) f32; w_q: (K, Npad) int8; scale/bias: (1, Npad) f32
    m, k_dim = x.shape
    n_pad = w_q.shape[1]
    assert n_pad % block_n == 0 and block_n % 128 == 0
    kernel = functools.partial(_linear_kernel, apply_relu=apply_relu)
    return pl.pallas_call(
        kernel,
        out_shape=jax.ShapeDtypeStruct((m, n_pad), jnp.float32),
        grid_spec=pltpu.PrefetchScalarGridSpec(
            num_scalar_prefetch=0,
            grid=(n_pad // block_n,),                 # output-column blocks
            in_specs=[
                pl.BlockSpec((m, k_dim), lambda j: (0, 0)),        # resident acts
                pl.BlockSpec((k_dim, block_n), lambda j: (0, j)),  # streamed int8 w
                pl.BlockSpec((1, block_n), lambda j: (0, j)),      # scale
                pl.BlockSpec((1, block_n), lambda j: (0, j)),      # bias
            ],
            out_specs=pl.BlockSpec((m, block_n), lambda j: (0, j)),
        ),
        compiler_params=pltpu.CompilerParams(
            # Independent output blocks -> v7x's 2 TensorCores split the grid.
            dimension_semantics=("parallel",),
            # Peak use ~8.3 MiB (layer-1 weight double-buffer); 32 MiB is safe
            # on all generations incl. v7x's 64 MiB VMEM.
            vmem_limit_bytes=32 * 1024 * 1024),
    )(x, w_q, scale, bias)


# ------------------------------ param preparation -----------------------------

def _quantize_per_channel(w_io):
    # w_io: (K, N) f32 -> int8 weights + per-output-channel f32 scale.
    absmax = jnp.max(jnp.abs(w_io), axis=0, keepdims=True)          # (1, N)
    scale = jnp.maximum(absmax, 1e-30) / 127.0
    q = jnp.clip(jnp.round(w_io / scale), -127.0, 127.0).astype(jnp.int8)
    return q, scale.astype(jnp.float32)


def _pad2(a, rows, cols):
    return jnp.pad(a, ((0, rows - a.shape[0]), (0, cols - a.shape[1])))


def prepare_params(params):
    """One-time re-layout: conv -> (32,9); linears -> padded (K, Npad) int8 + scales."""
    (cw, cb, w1, b1, w2, b2, w3, b3) = params
    out_dim = w3.shape[0]
    n3 = ((out_dim + 127) // 128) * 128
    # Transposed (K, N) layouts; N padded to 128-multiples (3136->3200,
    # 784->896, out->n3); K of layers 2/3 padded to match the previous layer's
    # padded output columns (which are exactly zero -> results unchanged).
    w1_io = _pad2(w1.T, 6272, 3200)
    w2_io = _pad2(w2.T, 3200, 896)
    w3_io = _pad2(w3.T, 896, n3)
    q1, s1 = _quantize_per_channel(w1_io)
    q2, s2 = _quantize_per_channel(w2_io)
    q3, s3 = _quantize_per_channel(w3_io)
    b1p = jnp.pad(b1, (0, 3200 - b1.shape[0])).reshape(1, -1)
    b2p = jnp.pad(b2, (0, 896 - b2.shape[0])).reshape(1, -1)
    b3p = jnp.pad(b3, (0, n3 - b3.shape[0])).reshape(1, -1)
    return (cw[:, 0].reshape(32, 9), cb.reshape(32, 1),
            q1, s1, b1p, q2, s2, b2p, q3, s3, b3p)


# ------------------------------ full network ----------------------------------

def network_forward(x, prep, *, out_dim):
    (cwk, cbk, q1, s1, b1, q2, s2, b2, q3, s3, b3) = prep
    h = conv_relu_pool(x, cwk, cbk)                            # (N, 6272)
    h = linear(h, q1, s1, b1, apply_relu=True, block_n=640)    # 6272 -> 3200
    h = linear(h, q2, s2, b2, apply_relu=True, block_n=128)    # 3200 -> 896
    h = linear(h, q3, s3, b3, apply_relu=False, block_n=128)   # 896  -> n3
    return h[:, :out_dim]


def reference_forward(x, params):
    (cw, cb, w1, b1, w2, b2, w3, b3) = params
    conv = lax.conv_general_dilated(
        x, cw, window_strides=(1, 1), padding=((1, 1), (1, 1)),
        dimension_numbers=("NCHW", "OIHW", "NCHW"),
        precision=lax.Precision.HIGHEST)
    conv = jnp.maximum(conv + cb[None, :, None, None], 0.0)
    pooled = lax.reduce_window(conv, -jnp.inf, lax.max,
                               (1, 1, 2, 2), (1, 1, 2, 2), "VALID")
    h = pooled.reshape(x.shape[0], -1)
    h = jnp.maximum(jnp.dot(h, w1.T, precision=lax.Precision.HIGHEST) + b1, 0.0)
    h = jnp.maximum(jnp.dot(h, w2.T, precision=lax.Precision.HIGHEST) + b2, 0.0)
    return jnp.dot(h, w3.T, precision=lax.Precision.HIGHEST) + b3


if __name__ == "__main__":
    batch = 2
    output_dim = 10

    key = jax.random.PRNGKey(0)
    keys = jax.random.split(key, 9)
    x = jax.random.normal(keys[0], (batch, 1, 28, 28), jnp.float32)

    def init(k, shape, fan_in):
        return (jax.random.normal(k, shape, jnp.float32) /
                jnp.sqrt(jnp.float32(fan_in)))

    # Parameters in PyTorch layout: conv (O, I, kH, kW), linear (out, in).
    cw = init(keys[1], (32, 1, 3, 3), 9.0)
    cb = init(keys[2], (32,), 9.0)
    w1 = init(keys[3], (3136, 6272), 6272.0)
    b1 = init(keys[4], (3136,), 6272.0)
    w2 = init(keys[5], (784, 3136), 3136.0)
    b2 = init(keys[6], (784,), 3136.0)
    w3 = init(keys[7], (output_dim, 784), 784.0)
    b3 = init(keys[8], (output_dim,), 784.0)
    params = (cw, cb, w1, b1, w2, b2, w3, b3)

    prep = prepare_params(params)
    fwd = jax.jit(functools.partial(network_forward, out_dim=output_dim))
    y = jax.block_until_ready(fwd(x, prep))

    y_ref = reference_forward(x, params)
    assert y.shape == (batch, output_dim)
    # Tolerance reflects int8 per-channel weights + bf16 activation matmuls vs
    # the f32 reference (expected |err| ~ 1e-2 on O(1) outputs).
    if not jnp.allclose(y, y_ref, rtol=6e-2, atol=6e-2):
        max_err = float(jnp.max(jnp.abs(y - y_ref)))
        raise AssertionError(
            f"Pallas output mismatch vs JAX reference (max |err|={max_err})")

    print("KERNEL_OK")
</pallas_src>

<mosaic_0001>
module attributes {stable_mosaic.version = 11 : i64} {
  func.func @conv_relu_pool_kernel(%arg0: i32, %arg1: memref<9x1568xf32, #tpu.memory_space<vmem>>, %arg2: memref<32x9xf32, #tpu.memory_space<vmem>>, %arg3: memref<32x1xf32, #tpu.memory_space<vmem>>, %arg4: memref<2x32x196xf32, #tpu.memory_space<vmem>>) attributes {dimension_semantics = [#tpu.dimension_semantics<arbitrary>], iteration_bounds = array<i64: 1>, scalar_prefetch = 0 : i64, scratch_operands = 0 : i64, tpu.core_type = #tpu.core_type<tc>, window_params = [{pipeline_mode = #tpu.pipeline_mode<synchronous>, transform_indices = @transform_0, window_bounds = array<i64: 9, 1568>}, {pipeline_mode = #tpu.pipeline_mode<synchronous>, transform_indices = @transform_1, window_bounds = array<i64: 32, 9>}, {pipeline_mode = #tpu.pipeline_mode<synchronous>, transform_indices = @transform_2, window_bounds = array<i64: 32, 1>}, {pipeline_mode = #tpu.pipeline_mode<synchronous>, transform_indices = @transform_3, window_bounds = array<i64: 2, 32, 196>}]} {
    %c0 = arith.constant 0 : index
    %c0_0 = arith.constant 0 : index
    %0 = vector.load %arg2[%c0, %c0_0] : memref<32x9xf32, #tpu.memory_space<vmem>>, vector<32x9xf32>
    %c0_1 = arith.constant 0 : index
    %c0_2 = arith.constant 0 : index
    %1 = vector.load %arg1[%c0_1, %c0_2] : memref<9x1568xf32, #tpu.memory_space<vmem>>, vector<9x1568xf32>
    %cst = arith.constant dense<0.000000e+00> : vector<32x1568xf32>
    %2 = tpu.matmul %0, %1, %cst {dimension_numbers = #tpu.dot_dimension_numbers<[1], [0], [0], [1], [0, 0, 1, 1], [], []>} : vector<32x9xf32>, vector<9x1568xf32>, vector<32x1568xf32> -> vector<32x1568xf32>
    %c0_3 = arith.constant 0 : index
    %c0_4 = arith.constant 0 : index
    %3 = vector.load %arg3[%c0_3, %c0_4] : memref<32x1xf32, #tpu.memory_space<vmem>>, vector<32x1xf32>
    %4 = vector.broadcast %3 : vector<32x1xf32> to vector<32x1568xf32>
    %5 = arith.addf %2, %4 : vector<32x1568xf32>
    %cst_5 = arith.constant 0.000000e+00 : f32
    %6 = vector.broadcast %cst_5 : f32 to vector<32x1568xf32>
    %7 = arith.maximumf %5, %6 : vector<32x1568xf32>
    %8 = vector.extract_strided_slice %7 {offsets = [0, 0], sizes = [32, 196], strides = [1, 1]} : vector<32x1568xf32> to vector<32x196xf32>
    %9 = vector.extract_strided_slice %7 {offsets = [0, 196], sizes = [32, 196], strides = [1, 1]} : vector<32x1568xf32> to vector<32x196xf32>
    %10 = arith.maximumf %8, %9 : vector<32x196xf32>
    %11 = vector.extract_strided_slice %7 {offsets = [0, 392], sizes = [32, 196], strides = [1, 1]} : vector<32x1568xf32> to vector<32x196xf32>
    %12 = vector.extract_strided_slice %7 {offsets = [0, 588], sizes = [32, 196], strides = [1, 1]} : vector<32x1568xf32> to vector<32x196xf32>
    %13 = arith.maximumf %11, %12 : vector<32x196xf32>
    %14 = arith.maximumf %10, %13 : vector<32x196xf32>
    %c0_6 = arith.constant 0 : index
    %c0_7 = arith.constant 0 : index
    %c0_8 = arith.constant 0 : index
    %15 = vector.load %arg4[%c0_6, %c0_7, %c0_8] : memref<2x32x196xf32, #tpu.memory_space<vmem>>, vector<1x32x196xf32>
    %16 = vector.shape_cast %15 : vector<1x32x196xf32> to vector<32x196xf32>
    %17 = vector.shape_cast %14 : vector<32x196xf32> to vector<1x32x196xf32>
    tpu.vector_store %arg4[%c0_6, %c0_7, %c0_8], %17 {strides = array<i32>} : memref<2x32x196xf32, #tpu.memory_space<vmem>>, vector<1x32x196xf32>,
    %18 = vector.extract_strided_slice %7 {offsets = [0, 784], sizes = [32, 196], strides = [1, 1]} : vector<32x1568xf32> to vector<32x196xf32>
    %19 = vector.extract_strided_slice %7 {offsets = [0, 980], sizes = [32, 196], strides = [1, 1]} : vector<32x1568xf32> to vector<32x196xf32>
    %20 = arith.maximumf %18, %19 : vector<32x196xf32>
    %21 = vector.extract_strided_slice %7 {offsets = [0, 1176], sizes = [32, 196], strides = [1, 1]} : vector<32x1568xf32> to vector<32x196xf32>
    %22 = vector.extract_strided_slice %7 {offsets = [0, 1372], sizes = [32, 196], strides = [1, 1]} : vector<32x1568xf32> to vector<32x196xf32>
    %23 = arith.maximumf %21, %22 : vector<32x196xf32>
    %24 = arith.maximumf %20, %23 : vector<32x196xf32>
    %c1 = arith.constant 1 : index
    %c0_9 = arith.constant 0 : index
    %c0_10 = arith.constant 0 : index
    %25 = vector.load %arg4[%c1, %c0_9, %c0_10] : memref<2x32x196xf32, #tpu.memory_space<vmem>>, vector<1x32x196xf32>
    %26 = vector.shape_cast %25 : vector<1x32x196xf32> to vector<32x196xf32>
    %27 = vector.shape_cast %24 : vector<32x196xf32> to vector<1x32x196xf32>
    tpu.vector_store %arg4[%c1, %c0_9, %c0_10], %27 {strides = array<i32>} : memref<2x32x196xf32, #tpu.memory_space<vmem>>, vector<1x32x196xf32>,
    return
  }
  func.func @transform_0(%arg0: i32) -> (i32, i32) {
    %c0_i32 = arith.constant 0 : i32
    %c0_i32_0 = arith.constant 0 : i32
    %c0_i32_1 = arith.constant 0 : i32
    return %c0_i32, %c0_i32_0 : i32, i32
  }
  func.func @transform_1(%arg0: i32) -> (i32, i32) {
    %c0_i32 = arith.constant 0 : i32
    %c0_i32_0 = arith.constant 0 : i32
    %c0_i32_1 = arith.constant 0 : i32
    return %c0_i32, %c0_i32_0 : i32, i32
  }
  func.func @transform_2(%arg0: i32) -> (i32, i32) {
    %c0_i32 = arith.constant 0 : i32
    %c0_i32_0 = arith.constant 0 : i32
    %c0_i32_1 = arith.constant 0 : i32
    return %c0_i32, %c0_i32_0 : i32, i32
  }
  func.func @transform_3(%arg0: i32) -> (i32, i32, i32) {
    %c0_i32 = arith.constant 0 : i32
    %c0_i32_0 = arith.constant 0 : i32
    %c0_i32_1 = arith.constant 0 : i32
    %c0_i32_2 = arith.constant 0 : i32
    return %c0_i32, %c0_i32_0, %c0_i32_1 : i32, i32, i32
  }
}

module attributes {stable_mosaic.version = 11 : i64} {
  func.func @_linear_kernel(%arg0: i32, %arg1: memref<2x6272xf32, #tpu.memory_space<vmem>>, %arg2: memref<6272x640xi8, #tpu.memory_space<vmem>>, %arg3: memref<1x640xf32, #tpu.memory_space<vmem>>, %arg4: memref<1x640xf32, #tpu.memory_space<vmem>>, %arg5: memref<2x640xf32, #tpu.memory_space<vmem>>) attributes {dimension_semantics = [#tpu.dimension_semantics<parallel>], iteration_bounds = array<i64: 5>, scalar_prefetch = 0 : i64, scratch_operands = 0 : i64, tpu.core_type = #tpu.core_type<tc>, window_params = [{pipeline_mode = #tpu.pipeline_mode<synchronous>, transform_indices = @transform_0, window_bounds = array<i64: 2, 6272>}, {transform_indices = @transform_1, window_bounds = array<i64: 6272, 640>}, {transform_indices = @transform_2, window_bounds = array<i64: 1, 640>}, {transform_indices = @transform_3, window_bounds = array<i64: 1, 640>}, {transform_indices = @transform_4, window_bounds = array<i64: 2, 640>}]} {
    %c0 = arith.constant 0 : index
    %c0_0 = arith.constant 0 : index
    %0 = vector.load %arg1[%c0, %c0_0] : memref<2x6272xf32, #tpu.memory_space<vmem>>, vector<2x6272xf32>
    %1 = arith.truncf %0 : vector<2x6272xf32> to vector<2x6272xbf16>
    %c0_1 = arith.constant 0 : index
    %c0_2 = arith.constant 0 : index
    %2 = vector.load %arg2[%c0_1, %c0_2] : memref<6272x640xi8, #tpu.memory_space<vmem>>, vector<6272x640xi8>
    %3 = arith.sitofp %2 : vector<6272x640xi8> to vector<6272x640xbf16>
    %cst = arith.constant dense<0.000000e+00> : vector<2x640xf32>
    %4 = tpu.matmul %1, %3, %cst {dimension_numbers = #tpu.dot_dimension_numbers<[1], [0], [0], [1], [0, 0, 1, 1], [], []>} : vector<2x6272xbf16>, vector<6272x640xbf16>, vector<2x640xf32> -> vector<2x640xf32>
    %c0_3 = arith.constant 0 : index
    %c0_4 = arith.constant 0 : index
    %5 = vector.load %arg3[%c0_3, %c0_4] : memref<1x640xf32, #tpu.memory_space<vmem>>, vector<1x640xf32>
    %6 = vector.broadcast %5 : vector<1x640xf32> to vector<2x640xf32>
    %7 = arith.mulf %4, %6 : vector<2x640xf32>
    %c0_5 = arith.constant 0 : index
    %c0_6 = arith.constant 0 : index
    %8 = vector.load %arg4[%c0_5, %c0_6] : memref<1x640xf32, #tpu.memory_space<vmem>>, vector<1x640xf32>
    %9 = vector.broadcast %8 : vector<1x640xf32> to vector<2x640xf32>
    %10 = arith.addf %7, %9 : vector<2x640xf32>
    %cst_7 = arith.constant 0.000000e+00 : f32
    %11 = vector.broadcast %cst_7 : f32 to vector<2x640xf32>
    %12 = arith.maximumf %10, %11 : vector<2x640xf32>
    %c0_8 = arith.constant 0 : index
    %c0_9 = arith.constant 0 : index
    %13 = vector.load %arg5[%c0_8, %c0_9] : memref<2x640xf32, #tpu.memory_space<vmem>>, vector<2x640xf32>
    tpu.vector_store %arg5[%c0_8, %c0_9], %12 {strides = array<i32>} : memref<2x640xf32, #tpu.memory_space<vmem>>, vector<2x640xf32>,
    return
  }
  func.func @transform_0(%arg0: i32) -> (i32, i32) {
    %c0_i32 = arith.constant 0 : i32
    %c0_i32_0 = arith.constant 0 : i32
    %c0_i32_1 = arith.constant 0 : i32
    return %c0_i32, %c0_i32_0 : i32, i32
  }
  func.func @transform_1(%arg0: i32) -> (i32, i32) {
    %c0_i32 = arith.constant 0 : i32
    %c0_i32_0 = arith.constant 0 : i32
    return %c0_i32, %arg0 : i32, i32
  }
  func.func @transform_2(%arg0: i32) -> (i32, i32) {
    %c0_i32 = arith.constant 0 : i32
    %c0_i32_0 = arith.constant 0 : i32
    return %c0_i32, %arg0 : i32, i32
  }
  func.func @transform_3(%arg0: i32) -> (i32, i32) {
    %c0_i32 = arith.constant 0 : i32
    %c0_i32_0 = arith.constant 0 : i32
    return %c0_i32, %arg0 : i32, i32
  }
  func.func @transform_4(%arg0: i32) -> (i32, i32) {
    %c0_i32 = arith.constant 0 : i32
    %c0_i32_0 = arith.constant 0 : i32
    return %c0_i32, %arg0 : i32, i32
  }
}

module attributes {stable_mosaic.version = 11 : i64} {
  func.func @_linear_kernel(%arg0: i32, %arg1: memref<2x3200xf32, #tpu.memory_space<vmem>>, %arg2: memref<3200x128xi8, #tpu.memory_space<vmem>>, %arg3: memref<1x128xf32, #tpu.memory_space<vmem>>, %arg4: memref<1x128xf32, #tpu.memory_space<vmem>>, %arg5: memref<2x128xf32, #tpu.memory_space<vmem>>) attributes {dimension_semantics = [#tpu.dimension_semantics<parallel>], iteration_bounds = array<i64: 7>, scalar_prefetch = 0 : i64, scratch_operands = 0 : i64, tpu.core_type = #tpu.core_type<tc>, window_params = [{pipeline_mode = #tpu.pipeline_mode<synchronous>, transform_indices = @transform_0, window_bounds = array<i64: 2, 3200>}, {transform_indices = @transform_1, window_bounds = array<i64: 3200, 128>}, {transform_indices = @transform_2, window_bounds = array<i64: 1, 128>}, {transform_indices = @transform_3, window_bounds = array<i64: 1, 128>}, {transform_indices = @transform_4, window_bounds = array<i64: 2, 128>}]} {
    %c0 = arith.constant 0 : index
    %c0_0 = arith.constant 0 : index
    %0 = vector.load %arg1[%c0, %c0_0] : memref<2x3200xf32, #tpu.memory_space<vmem>>, vector<2x3200xf32>
    %1 = arith.truncf %0 : vector<2x3200xf32> to vector<2x3200xbf16>
    %c0_1 = arith.constant 0 : index
    %c0_2 = arith.constant 0 : index
    %2 = vector.load %arg2[%c0_1, %c0_2] : memref<3200x128xi8, #tpu.memory_space<vmem>>, vector<3200x128xi8>
    %3 = arith.sitofp %2 : vector<3200x128xi8> to vector<3200x128xbf16>
    %cst = arith.constant dense<0.000000e+00> : vector<2x128xf32>
    %4 = tpu.matmul %1, %3, %cst {dimension_numbers = #tpu.dot_dimension_numbers<[1], [0], [0], [1], [0, 0, 1, 1], [], []>} : vector<2x3200xbf16>, vector<3200x128xbf16>, vector<2x128xf32> -> vector<2x128xf32>
    %c0_3 = arith.constant 0 : index
    %c0_4 = arith.constant 0 : index
    %5 = vector.load %arg3[%c0_3, %c0_4] : memref<1x128xf32, #tpu.memory_space<vmem>>, vector<1x128xf32>
    %6 = vector.broadcast %5 : vector<1x128xf32> to vector<2x128xf32>
    %7 = arith.mulf %4, %6 : vector<2x128xf32>
    %c0_5 = arith.constant 0 : index
    %c0_6 = arith.constant 0 : index
    %8 = vector.load %arg4[%c0_5, %c0_6] : memref<1x128xf32, #tpu.memory_space<vmem>>, vector<1x128xf32>
    %9 = vector.broadcast %8 : vector<1x128xf32> to vector<2x128xf32>
    %10 = arith.addf %7, %9 : vector<2x128xf32>
    %cst_7 = arith.constant 0.000000e+00 : f32
    %11 = vector.broadcast %cst_7 : f32 to vector<2x128xf32>
    %12 = arith.maximumf %10, %11 : vector<2x128xf32>
    %c0_8 = arith.constant 0 : index
    %c0_9 = arith.constant 0 : index
    %13 = vector.load %arg5[%c0_8, %c0_9] : memref<2x128xf32, #tpu.memory_space<vmem>>, vector<2x128xf32>
    tpu.vector_store %arg5[%c0_8, %c0_9], %12 {strides = array<i32>} : memref<2x128xf32, #tpu.memory_space<vmem>>, vector<2x128xf32>,
    return
  }
  func.func @transform_0(%arg0: i32) -> (i32, i32) {
    %c0_i32 = arith.constant 0 : i32
    %c0_i32_0 = arith.constant 0 : i32
    %c0_i32_1 = arith.constant 0 : i32
    return %c0_i32, %c0_i32_0 : i32, i32
  }
  func.func @transform_1(%arg0: i32) -> (i32, i32) {
    %c0_i32 = arith.constant 0 : i32
    %c0_i32_0 = arith.constant 0 : i32
    return %c0_i32, %arg0 : i32, i32
  }
  func.func @transform_2(%arg0: i32) -> (i32, i32) {
    %c0_i32 = arith.constant 0 : i32
    %c0_i32_0 = arith.constant 0 : i32
    return %c0_i32, %arg0 : i32, i32
  }
  func.func @transform_3(%arg0: i32) -> (i32, i32) {
    %c0_i32 = arith.constant 0 : i32
    %c0_i32_0 = arith.constant 0 : i32
    return %c0_i32, %arg0 : i32, i32
  }
  func.func @transform_4(%arg0: i32) -> (i32, i32) {
    %c0_i32 = arith.constant 0 : i32
    %c0_i32_0 = arith.constant 0 : i32
    return %c0_i32, %arg0 : i32, i32
  }
}

module attributes {stable_mosaic.version = 11 : i64} {
  func.func @_linear_kernel(%arg0: i32, %arg1: memref<2x896xf32, #tpu.memory_space<vmem>>, %arg2: memref<896x128xi8, #tpu.memory_space<vmem>>, %arg3: memref<1x128xf32, #tpu.memory_space<vmem>>, %arg4: memref<1x128xf32, #tpu.memory_space<vmem>>, %arg5: memref<2x128xf32, #tpu.memory_space<vmem>>) attributes {dimension_semantics = [#tpu.dimension_semantics<parallel>], iteration_bounds = array<i64: 1>, scalar_prefetch = 0 : i64, scratch_operands = 0 : i64, tpu.core_type = #tpu.core_type<tc>, window_params = [{pipeline_mode = #tpu.pipeline_mode<synchronous>, transform_indices = @transform_0, window_bounds = array<i64: 2, 896>}, {transform_indices = @transform_1, window_bounds = array<i64: 896, 128>}, {transform_indices = @transform_2, window_bounds = array<i64: 1, 128>}, {transform_indices = @transform_3, window_bounds = array<i64: 1, 128>}, {transform_indices = @transform_4, window_bounds = array<i64: 2, 128>}]} {
    %c0 = arith.constant 0 : index
    %c0_0 = arith.constant 0 : index
    %0 = vector.load %arg1[%c0, %c0_0] : memref<2x896xf32, #tpu.memory_space<vmem>>, vector<2x896xf32>
    %1 = arith.truncf %0 : vector<2x896xf32> to vector<2x896xbf16>
    %c0_1 = arith.constant 0 : index
    %c0_2 = arith.constant 0 : index
    %2 = vector.load %arg2[%c0_1, %c0_2] : memref<896x128xi8, #tpu.memory_space<vmem>>, vector<896x128xi8>
    %3 = arith.sitofp %2 : vector<896x128xi8> to vector<896x128xbf16>
    %cst = arith.constant dense<0.000000e+00> : vector<2x128xf32>
    %4 = tpu.matmul %1, %3, %cst {dimension_numbers = #tpu.dot_dimension_numbers<[1], [0], [0], [1], [0, 0, 1, 1], [], []>} : vector<2x896xbf16>, vector<896x128xbf16>, vector<2x128xf32> -> vector<2x128xf32>
    %c0_3 = arith.constant 0 : index
    %c0_4 = arith.constant 0 : index
    %5 = vector.load %arg3[%c0_3, %c0_4] : memref<1x128xf32, #tpu.memory_space<vmem>>, vector<1x128xf32>
    %6 = vector.broadcast %5 : vector<1x128xf32> to vector<2x128xf32>
    %7 = arith.mulf %4, %6 : vector<2x128xf32>
    %c0_5 = arith.constant 0 : index
    %c0_6 = arith.constant 0 : index
    %8 = vector.load %arg4[%c0_5, %c0_6] : memref<1x128xf32, #tpu.memory_space<vmem>>, vector<1x128xf32>
    %9 = vector.broadcast %8 : vector<1x128xf32> to vector<2x128xf32>
    %10 = arith.addf %7, %9 : vector<2x128xf32>
    %c0_7 = arith.constant 0 : index
    %c0_8 = arith.constant 0 : index
    %11 = vector.load %arg5[%c0_7, %c0_8] : memref<2x128xf32, #tpu.memory_space<vmem>>, vector<2x128xf32>
    tpu.vector_store %arg5[%c0_7, %c0_8], %10 {strides = array<i32>} : memref<2x128xf32, #tpu.memory_space<vmem>>, vector<2x128xf32>,
    return
  }
  func.func @transform_0(%arg0: i32) -> (i32, i32) {
    %c0_i32 = arith.constant 0 : i32
    %c0_i32_0 = arith.constant 0 : i32
    %c0_i32_1 = arith.constant 0 : i32
    return %c0_i32, %c0_i32_0 : i32, i32
  }
  func.func @transform_1(%arg0: i32) -> (i32, i32) {
    %c0_i32 = arith.constant 0 : i32
    %c0_i32_0 = arith.constant 0 : i32
    return %c0_i32, %arg0 : i32, i32
  }
  func.func @transform_2(%arg0: i32) -> (i32, i32) {
    %c0_i32 = arith.constant 0 : i32
    %c0_i32_0 = arith.constant 0 : i32
    return %c0_i32, %arg0 : i32, i32
  }
  func.func @transform_3(%arg0: i32) -> (i32, i32) {
    %c0_i32 = arith.constant 0 : i32
    %c0_i32_0 = arith.constant 0 : i32
    return %c0_i32, %arg0 : i32, i32
  }
  func.func @transform_4(%arg0: i32) -> (i32, i32) {
    %c0_i32 = arith.constant 0 : i32
    %c0_i32_0 = arith.constant 0 : i32
    return %c0_i32, %arg0 : i32, i32
  }
}

</mosaic_0001>

<bundles_post_ra>
// kernel: network_forward.4
= control target key start
LH: loop header
LB: loop body
LE: loop exit
PB: predicated region body
PF: predicated region fallthrough
CT: control target
= control target key end

     0   :  { %vm81_vm0 = vcmask 1040384   ;;  %vm1298_vm1 = vmmov 1   ;;  %v1299_v3 = vmov 0.0   ;;  %v1300_v7 = vmov 0   ;;  %s1303_s25 = smov 112   ;;  %s2042_s0 = inlined_call_operand.vmem [shape: f32[9,1568], index: 0, kind: input, shape index: {}]   ;;  %s2043_s1 = inlined_call_operand.vmem [shape: f32[32,9], index: 1, kind: input, shape index: {}]   ;;  %s2044_s2 = inlined_call_operand.vmem [shape: f32[32,1], index: 2, kind: input, shape index: {}]   ;;  %s2045_s3 = inlined_call_operand.vmem [shape: f32[2,32,196], index: 3, kind: output, shape index: {}]  }
   0x1   :  { %v19_v0 = vld [vmem:[%s2042_s0 + $0x8] sm:$0xff]  ;;  %v32_v1 = vld [vmem:[%s2042_s0 + $0x70] sm:$0x1]  ;;  %vm1330_vm2 = vmpackc.low %vm81_vm0, %vm1298_vm1  ;;  %185 = vmatprep.mubr.f32.mxu0 %v1299_v3  ;;  %203 = vmatprep.mubr.f32.mxu1 %v1299_v3  ;;  %vm68_vm3 = vcmask 72704   ;;  %vm828_vm4 = vcmask 490496   ;;  %vm937_vm5 = vcmask 982016  }
   0x2   :  { %v1246_v4 = vpack.c.bf16 %v32_v1, %v19_v0  ;;  %v18_v5 = vld [vmem:[%s2042_s0] sm:$0xff]  ;;  %v31_v6 = vld [vmem:[%s2042_s0 + $0x68] sm:$0x1]  ;;  %1297 = vset.pattern.permute.xlu1 %v1300_v7  ;;  %1296 = vset.pattern.permute.xlu0 %v1300_v7  ;;  %v1350_v10 = vld [vmem:[%s2043_s1 + $0x18] sm:$0xff]  ;;  %vm959_vm6 = vcmask 556032   ;;  %vm1155_vm7 = vcmask 916480  }
   0x3   :  { %v1249_v8 = vpack.c.bf16 %v31_v6, %v18_v5  ;;  %v1345_v9 = vld [vmem:[%s2043_s1] sm:$0xff]  ;;  %v21_v11 = vld [vmem:[%s2042_s0 + $0x18] sm:$0xff]  ;;  %v20_v14 = vld [vmem:[%s2042_s0 + $0x10] sm:$0xff] }
   0x4   :  { %v34_v12 = vld [vmem:[%s2042_s0 + $0x80] sm:$0x1]  ;;  %1248 = vmatprep.subr.msk.bf16.mxu0 %vm1330_vm2, %v1246_v4  ;;  %1288 = vmatprep.subr.msk.bf16.mxu1 %vm1330_vm2, %v1246_v4  ;;  %v33_v15 = vld [vmem:[%s2042_s0 + $0x78] sm:$0x1]  ;;  %v23_v16 = vld [vmem:[%s2042_s0 + $0x28] sm:$0xff] }
   0x5   :  { %v1252_v13 = vpack.c.bf16 %v34_v12, %v21_v11  ;;  %1251 = vmatpush1.bf16.msk.msra.mxu0 %vm1330_vm2, %v1249_v8  ;;  %1289 = vmatpush1.bf16.msk.msra.mxu1 %vm1330_vm2, %v1249_v8  ;;  %v1255_v17 = vpack.c.bf16 %v33_v15, %v20_v14  ;;  %v36_v18 = vld [vmem:[%s2042_s0 + $0x90] sm:$0x1]  ;;  %v22_v19 = vld [vmem:[%s2042_s0 + $0x20] sm:$0xff]  ;;  %v35_v20 = vld [vmem:[%s2042_s0 + $0x88] sm:$0x1] }
   0x6   :  { %v1258_v21 = vpack.c.bf16 %v36_v18, %v23_v16  ;;  %v1261_v22 = vpack.c.bf16 %v35_v20, %v22_v19  ;;  %v25_v23 = vld [vmem:[%s2042_s0 + $0x38] sm:$0xff]  ;;  %v38_v24 = vld [vmem:[%s2042_s0 + $0xa0] sm:$0x1]  ;;  %v24_v26 = vld [vmem:[%s2042_s0 + $0x30] sm:$0xff] }
   0x7   :  { %1254 = vmatprep.subr.msk.bf16.mxu1 %vm1330_vm2, %v1252_v13  ;;  %v1264_v25 = vpack.c.bf16 %v38_v24, %v25_v23  ;;  %v37_v27 = vld [vmem:[%s2042_s0 + $0x98] sm:$0x1]  ;;  %v27_v28 = vld [vmem:[%s2042_s0 + $0x48] sm:$0xff]  ;;  %v40_v29 = vld [vmem:[%s2042_s0 + $0xb0] sm:$0x1] }
   0x8   :  { %1183 = vmatmul.mubr.msk.f32.vlgmr.msra.gmra.mrb[0].mxu0 %vm68_vm3, %v1345_v9  ;;  %1186 = vmatmul.mubr.msk.f32.vlgmr.msra.gmra.mrb[0].mxu1 %vm68_vm3, %v1350_v10  ;;  %v1415_v30 = vld [vmem:[%s2043_s1 + $0x8] sm:$0xff]  ;;  %v1267_v31 = vpack.c.bf16 %v37_v27, %v24_v26  ;;  %v29_v32 = vld [vmem:[%s2042_s0 + $0x58] sm:$0xff]  ;;  %v42_v33 = vld [vmem:[%s2042_s0 + $0xc0] sm:$0x1]  ;;  %v1270_v34 = vpack.c.bf16 %v40_v29, %v27_v28 }
   0x9   :  { %1257 = vmatpush1.bf16.msk.msra.mxu1 %vm1330_vm2, %v1255_v17  ;;  %1260 = vmatprep.subr.msk.bf16.mxu0 %vm1330_vm2, %v1258_v21  ;;  %v1276_v35 = vpack.c.bf16 %v42_v33, %v29_v32  ;;  %v46_v36 = vld [vmem:[%s2044_s2 + $0x10] sm:$0xff]  ;;  %v26_v38 = vld [vmem:[%s2042_s0 + $0x40] sm:$0xff]  ;;  %v39_v39 = vld [vmem:[%s2042_s0 + $0xa8] sm:$0x1] }
   0xa   :  { %1263 = vmatpush1.bf16.msk.msra.mxu0 %vm1330_vm2, %v1261_v22  ;;  %191 = vmatprep.mubr.f32.mxu0 %v1299_v3  ;;  %v1442_v37 = vld [vmem:[%s2043_s1 + $0x10] sm:$0xff]  ;;  %v30_v40 = vld [vmem:[%s2042_s0 + $0x60] sm:$0xff]  ;;  %v43_v41 = vld [vmem:[%s2042_s0 + $0xc8] sm:$0x1]  ;;  %v1273_v44 = vpack.c.bf16 %v39_v39, %v26_v38 }
   0xb   :  { %274 = vmatprep.mubr.f32.mxu1 %v1299_v3  ;;  %1266 = vmatprep.subr.msk.bf16.mxu1 %vm1330_vm2, %v1264_v25  ;;  %v44_v42 = vld [vmem:[%s2044_s2] sm:$0xff]  ;;  %v47_v43 = vld [vmem:[%s2044_s2 + $0x18] sm:$0xff]  ;;  %v1282_v45 = vpack.c.bf16 %v43_v41, %v30_v40  ;;  %v45_v46 = vld [vmem:[%s2044_s2 + $0x8] sm:$0xff]  ;;  %s1302_s2 = smov 120  }
   0xc   :  { %1184 = vmatmul.mubr.msk.f32.gmra.mrb[2].mxu0 %vm68_vm3, %v1415_v30  ;;  %1189 = vmatmul.mubr.msk.f32.vlgmr.msra.gmra.mrb[2].mxu1 %vm68_vm3, %v1345_v9  ;;  %v28_v47 = vld [vmem:[%s2042_s0 + $0x50] sm:$0xff]  ;;  %v41_v48 = vld [vmem:[%s2042_s0 + $0xb8] sm:$0x1]  ;;  %s1301_s0 = smov 60  }
   0xd   :  { %1269 = vmatpush1.bf16.msk.msra.mxu1 %vm1330_vm2, %v1267_v31  ;;  %197 = vmatprep.mubr.f32.mxu0 %v1299_v3  ;;  %v1279_v49 = vpack.c.bf16 %v41_v48, %v28_v47 }
   0xe   :  { %280 = vmatprep.mubr.f32.mxu1 %v1299_v3  ;;  %1272 = vmatprep.subr.msk.bf16.mxu0 %vm1330_vm2, %v1270_v34 }
   0xf   :  { %1278 = vmatprep.subr.msk.bf16.mxu1 %vm1330_vm2, %v1276_v35  ;;  %60 = vperm.xlu1 %1297, %v46_v36  }
  0x10   :  { %1185 = vmatmul.mubr.msk.f32.gmra.mrb[4].mxu0 %vm68_vm3, %v1442_v37  ;;  %1190 = vmatmul.mubr.msk.f32.gmra.mrb[4].mxu1 %vm68_vm3, %v1415_v30 }
  0x11   :  { %286 = vmatprep.mubr.f32.mxu1 %v1299_v3  ;;  %363 = vmatprep.mubr.f32.mxu0 %v1299_v3 }
  0x12   :  { %50 = vperm.xlu0 %1296, %v44_v42  }
  0x13   :  { %65 = vperm.xlu1 %1297, %v47_v43  }
  0x14   :  { %1191 = vmatmul.mubr.msk.f32.gmra.mrb[6].mxu1 %vm68_vm3, %v1442_v37  ;;  %1195 = vmatmul.mubr.msk.f32.vlgmr.msra.gmra.mrb[6].mxu0 %vm68_vm3, %v1345_v9 }
  0x15   :  { %1275 = vmatpush1.bf16.msk.msra.mxu0 %vm1330_vm2, %v1273_v44  ;;  %292 = vmatprep.mubr.f32.mxu1 %v1299_v3 }
  0x16   :  { %369 = vmatprep.mubr.f32.mxu0 %v1299_v3  ;;  %1284 = vmatprep.subr.msk.bf16.mxu0 %vm1330_vm2, %v1282_v45 }
  0x17   :  { %55 = vperm.xlu0 %1296, %v45_v46  }
  0x18   :  { %1192 = vmatmul.mubr.msk.f32.gmra.mrb[8].mxu1 %vm68_vm3, %v1350_v10  ;;  %1196 = vmatmul.mubr.msk.f32.gmra.mrb[8].mxu0 %vm68_vm3, %v1415_v30 }
  0x19   :  { %375 = vmatprep.mubr.f32.mxu0 %v1299_v3  ;;  %452 = vmatprep.mubr.f32.mxu1 %v1299_v3 }
  0x1c   :  { %1197 = vmatmul.mubr.msk.f32.gmra.mrb[10].mxu0 %vm68_vm3, %v1442_v37  ;;  %1201 = vmatmul.mubr.msk.f32.vlgmr.msra.gmra.mrb[10].mxu1 %vm68_vm3, %v1345_v9 }
  0x1d   :  { %1281 = vmatpush1.bf16.msk.msra.mxu1 %vm1330_vm2, %v1279_v49  ;;  %381 = vmatprep.mubr.f32.mxu0 %v1299_v3 }
  0x1e   :  { %458 = vmatprep.mubr.f32.mxu1 %v1299_v3 }
  0x20   :  { %1198 = vmatmul.mubr.msk.f32.gmra.mrb[12].mxu0 %vm68_vm3, %v1350_v10  ;;  %1202 = vmatmul.mubr.msk.f32.gmra.mrb[12].mxu1 %vm68_vm3, %v1415_v30 }
  0x21   :  { %464 = vmatprep.mubr.f32.mxu1 %v1299_v3  ;;  %541 = vmatprep.mubr.f32.mxu0 %v1299_v3 }
  0x24   :  { %1203 = vmatmul.mubr.msk.f32.gmra.mrb[14].mxu1 %vm68_vm3, %v1442_v37  ;;  %1207 = vmatmul.mubr.msk.f32.vlgmr.msra.gmra.mrb[14].mxu0 %vm68_vm3, %v1345_v9 }
  0x25   :  { %1287 = vmatpush3.bf16.msk.msra.mxu0 %vm1330_vm2, %v1282_v45  ;;  %470 = vmatprep.mubr.f32.mxu1 %v1299_v3 }
  0x26   :  { %547 = vmatprep.mubr.f32.mxu0 %v1299_v3 }
  0x28   :  { %1204 = vmatmul.mubr.msk.f32.gmra.mrb[16].mxu1 %vm68_vm3, %v1350_v10  ;;  %1208 = vmatmul.mubr.msk.f32.gmra.mrb[16].mxu0 %vm68_vm3, %v1415_v30 }
  0x29   :  { %553 = vmatprep.mubr.f32.mxu0 %v1299_v3  ;;  %630 = vmatprep.mubr.f32.mxu1 %v1299_v3 }
  0x2c   :  { %1209 = vmatmul.mubr.msk.f32.gmra.mrb[18].mxu0 %vm68_vm3, %v1442_v37  ;;  %1213 = vmatmul.mubr.msk.f32.vlgmr.msra.gmra.mrb[18].mxu1 %vm68_vm3, %v1345_v9 }
  0x2d   :  { %559 = vmatprep.mubr.f32.mxu0 %v1299_v3  ;;  %636 = vmatprep.mubr.f32.mxu1 %v1299_v3 }
  0x30   :  { %1210 = vmatmul.mubr.msk.f32.gmra.mrb[20].mxu0 %vm68_vm3, %v1350_v10  ;;  %1214 = vmatmul.mubr.msk.f32.gmra.mrb[20].mxu1 %vm68_vm3, %v1415_v30 }
  0x31   :  { %642 = vmatprep.mubr.f32.mxu1 %v1299_v3  ;;  %1240 = vmatprep.mubr.msk.f32.mxu0 %vm68_vm3, %v1345_v9 }
  0x34   :  { %1215 = vmatmul.mubr.msk.f32.gmra.mrb[22].mxu1 %vm68_vm3, %v1442_v37  ;;  %1241 = vmatmul.mubr.msk.f32.vlgmr.msra.gmra.mrb[22].mxu0 %vm68_vm3, %v1415_v30 }
  0x35   :  { %648 = vmatprep.mubr.f32.mxu1 %v1299_v3  ;;  %1243 = vmatprep.mubr.msk.f32.mxu0 %vm68_vm3, %v1442_v37 }
  0x38   :  { %1216 = vmatmul.mubr.msk.f32.gmra.mrb[24].mxu1 %vm68_vm3, %v1350_v10  ;;  %1244 = vmatmul.mubr.msk.f32.gmra.mrb[24].mxu0 %vm68_vm3, %v1350_v10 }
  0x8e   :  { %v1647_v38 = vpop.permute.xlu1 %60 }
  0x91   :  { %v1614_v18 = vpop.permute.xlu0 %50 }
  0x96   :  { %v1632_v29 = vpop.permute.xlu0 %55 }
  0xdb   :  { %v1550_v50 = vpop.f32.mrb[0].mxu1  ;;  %v1552_v51 = vpop.f32.mrb[0].mxu0 }
  0xdc   :  { %v1554_v52 = vpop.f32.mrb[1].mxu1  ;;  %v1556_v53 = vpop.f32.mrb[1].mxu0 }
  0xdf   :  { %v1558_v54 = vpop.f32.mrb[2].mxu1  ;;  %v1560_v55 = vpop.f32.mrb[2].mxu0 }
  0xe0   :  { %v1562_v56 = vpop.f32.mrb[3].mxu1  ;;  %v1564_v57 = vpop.f32.mrb[3].mxu0 }
  0xe3   :  { %v1566_v58 = vpop.f32.mrb[4].mxu1  ;;  %v1568_v59 = vpop.f32.mrb[4].mxu0 }
  0xe4   :  { %v1570_v60 = vpop.f32.mrb[5].mxu1  ;;  %v1572_v61 = vpop.f32.mrb[5].mxu0 }
  0xe7   :  { %v1574_v62 = vpop.f32.mrb[6].mxu1  ;;  %v1576_v63 = vpop.f32.mrb[6].mxu0 }
  0xe8   :  { %v1578_v0 = vpop.f32.mrb[7].mxu1  ;;  %v1580_v1 = vpop.f32.mrb[7].mxu0 }
  0xeb   :  { %v1582_v2 = vpop.f32.mrb[8].mxu1  ;;  %v1584_v3 = vpop.f32.mrb[8].mxu0 }
  0xec   :  { %v1586_v4 = vpop.f32.mrb[9].mxu1  ;;  %v1588_v5 = vpop.f32.mrb[9].mxu0 }
  0xef   :  { %v1590_v6 = vpop.f32.mrb[10].mxu1  ;;  %v1592_v7 = vpop.f32.mrb[10].mxu0 }
  0xf0   :  { %v1594_v8 = vpop.f32.mrb[11].mxu1  ;;  %v1596_v9 = vpop.f32.mrb[11].mxu0 }
  0xf3   :  { %v1598_v10 = vpop.f32.mrb[12].mxu1  ;;  %v1600_v11 = vpop.f32.mrb[12].mxu0 }
  0xf4   :  { %v1602_v12 = vpop.f32.mrb[13].mxu1  ;;  %v1604_v13 = vpop.f32.mrb[13].mxu0 }
  0xf7   :  { %v1606_v14 = vpop.f32.mrb[14].mxu1  ;;  %v1608_v15 = vpop.f32.mrb[14].mxu0 }
  0xf8   :  { %v1610_v16 = vpop.f32.mrb[15].mxu1  ;;  %v1612_v17 = vpop.f32.mrb[15].mxu0 }
  0xfb   :  { %v1616_v19 = vpop.f32.mrb[16].mxu1  ;;  %v1618_v20 = vpop.f32.mrb[16].mxu0 }
  0xfc   :  { %v1620_v21 = vpop.f32.mrb[17].mxu1  ;;  %v1622_v22 = vpop.f32.mrb[17].mxu0 }
  0xff   :  { %v632_v23 = vpop.f32.mrb[18].mxu1  ;;  %v1624_v24 = vpop.f32.mrb[18].mxu0 }
 0x100   :  { %v1627_v25 = vadd.f32 %v632_v23, %v1614_v18  ;;  %v634_v26 = vpop.f32.mrb[19].mxu1  ;;  %v1629_v27 = vpop.f32.mrb[19].mxu0 }
 0x101   :  { %v635_v28 = vadd.f32 %v634_v26, %v1614_v18 }
 0x102   :  { %v750_v30 = vmax.f32 %v1627_v25, 0.0 }
 0x103   :  { %v751_v31 = vmax.f32 %v635_v28, 0.0  ;;  %v638_v32 = vpop.f32.mrb[20].mxu1  ;;  %v1635_v33 = vpop.f32.mrb[20].mxu0 }
 0x104   :  { %v1638_v34 = vadd.f32 %v638_v32, %v1632_v29  ;;  %v640_v35 = vpop.f32.mrb[21].mxu1  ;;  %1039 = vrot.lane.b32.xlu0 %v750_v30, %s1301_s0  ;;  %v1643_v36 = vpop.f32.mrb[21].mxu0 }
 0x105   :  { %v641_v37 = vadd.f32 %v640_v35, %v1632_v29  ;;  %1041 = vrot.lane.b32.xlu1 %v751_v31, %s1301_s0  ;;  %v1665_v35 = vpop.permute.xlu1 %65 }
 0x106   :  { %v763_v39 = vmax.f32 %v1638_v34, 0.0 }
 0x107   :  { %v764_v40 = vmax.f32 %v641_v37, 0.0  ;;  %v1242_v41 = vpop.f32.mrb[22].mxu0  ;;  %v644_v42 = vpop.f32.mrb[22].mxu1 }
 0x108   :  { %v727_v43 = vadd.f32 %v1242_v41, %v1632_v29  ;;  %v1652_v44 = vadd.f32 %v644_v42, %v1647_v38  ;;  %v721_v45 = vpop.f32.mrb[23].mxu0  ;;  %v646_v46 = vpop.f32.mrb[23].mxu1 }
 0x109   :  { %1045 = vrot.lane.b32.xlu1 %v763_v39, %s1301_s0  ;;  %1047 = vrot.lane.b32.xlu0 %v764_v40, %s1301_s0  ;;  %v722_v49 = vadd.f32 %v721_v45, %v1614_v18  ;;  %v647_v23 = vadd.f32 %v646_v46, %v1647_v38 }
 0x10a   :  { %v765_v47 = vmax.f32 %v727_v43, 0.0  ;;  %v776_v48 = vmax.f32 %v1652_v44, 0.0 }
 0x10b   :  { %v650_v26 = vpop.f32.mrb[24].mxu1  ;;  %v1245_v28 = vpop.f32.mrb[24].mxu0  ;;  %v752_v37 = vmax.f32 %v722_v49, 0.0  ;;  %v777_v40 = vmax.f32 %v647_v23, 0.0  ;;  %v1682_v49 = vadd.f32 %v1576_v63, %v1614_v18  ;;  %v368_v23 = vadd.f32 %v1580_v1, %v1614_v18 }
 0x10c   :  { %v652_v31 = vpop.f32.mrb[25].mxu1  ;;  %v731_v32 = vpop.f32.mrb[25].mxu0  ;;  %v1668_v41 = vadd.f32 %v650_v26, %v1665_v35  ;;  %v737_v45 = vadd.f32 %v1245_v28, %v1665_v35  ;;  %v1695_v63 = vadd.f32 %v1590_v6, %v1614_v18 }
 0x10d   :  { %1051 = vrot.lane.b32.xlu0 %v776_v48, %s1301_s0  ;;  %1049 = vrot.lane.b32.xlu1 %v765_v47, %s1301_s0  ;;  %v732_v42 = vadd.f32 %v731_v32, %v1647_v38  ;;  %v653_v46 = vadd.f32 %v652_v31, %v1665_v35  ;;  %v744_v28 = vmax.f32 %v1682_v49, 0.0  ;;  %v745_v31 = vmax.f32 %v368_v23, 0.0 }
 0x10e   :  { %v789_v43 = vmax.f32 %v1668_v41, 0.0  ;;  %v791_v26 = vmax.f32 %v737_v45, 0.0  ;;  %v1717_v45 = vadd.f32 %v1592_v7, %v1647_v38  ;;  %v1729_v23 = vadd.f32 %v1600_v11, %v1665_v35 }
 0x10f   :  { %v778_v47 = vmax.f32 %v732_v42, 0.0  ;;  %v790_v32 = vmax.f32 %v653_v46, 0.0  ;;  %v2050_v42 = vmax.f32 %v1695_v63, 0.0  ;;  %v1733_v7 = vadd.f32 %v1606_v14, %v1647_v38 }
 0x110   :  { %v1745_v11 = vadd.f32 %v1616_v19, %v1665_v35  ;;  %v1755_v14 = vadd.f32 %v1594_v8, %v1614_v18 }
 0x111   :  { %1053 = vrot.lane.b32.xlu1 %v777_v40, %s1301_s0  ;;  %1043 = vrot.lane.b32.xlu0 %v752_v37, %s1301_s0  ;;  %v1691_v37 = vadd.f32 %v1584_v3, %v1632_v29  ;;  %v374_v40 = vadd.f32 %v1588_v5, %v1632_v29  ;;  %v1707_v3 = vadd.f32 %v1598_v10, %v1632_v29  ;;  %v770_v10 = vmax.f32 %v1717_v45, 0.0 }
 0x112   :  { %v380_v5 = vadd.f32 %v1596_v9, %v1647_v38  ;;  %v783_v9 = vmax.f32 %v1729_v23, 0.0  ;;  %v747_v19 = vmax.f32 %v1755_v14, 0.0 }
 0x113   :  { %v757_v1 = vmax.f32 %v1691_v37, 0.0  ;;  %v758_v6 = vmax.f32 %v374_v40, 0.0  ;;  %v759_v46 = vmax.f32 %v1707_v3, 0.0  ;;  %v2046_v40 = vmax.f32 %v1745_v11, 0.0 }
 0x115   :  { %1057 = vrot.lane.b32.xlu1 %v789_v43, %s1301_s0  ;;  %1055 = vrot.lane.b32.xlu0 %v778_v47, %s1301_s0  ;;  %v771_v47 = vmax.f32 %v380_v5, 0.0  ;;  %v546_v5 = vadd.f32 %v1612_v17, %v1614_v18  ;;  %v1786_v17 = vadd.f32 %v1610_v16, %v1647_v38  ;;  %v558_v16 = vadd.f32 %v1629_v27, %v1647_v38 }
 0x117   :  { %v2054_v14 = vmax.f32 %v1786_v17, 0.0 }
 0x119   :  { %1061 = vrot.lane.b32.xlu1 %v791_v26, %s1301_s0  ;;  %1059 = vrot.lane.b32.xlu0 %v790_v32, %s1301_s0  ;;  %v386_v26 = vadd.f32 %v1604_v13, %v1665_v35  ;;  %v2048_v32 = vmax.f32 %v1733_v7, 0.0  ;;  %v544_v13 = vadd.f32 %v1608_v15, %v1614_v18 }
 0x11b   :  { %v748_v8 = vmax.f32 %v544_v13, 0.0 }
 0x11d   :  { %867 = vrot.lane.b32.xlu1 %v745_v31, %s1301_s0  ;;  %865 = vrot.lane.b32.xlu0 %v744_v28, %s1301_s0  ;;  %v784_v31 = vmax.f32 %v386_v26, 0.0  ;;  %v550_v26 = vadd.f32 %v1618_v20, %v1632_v29  ;;  %v2049_v20 = vmax.f32 %v1786_v17, 0.0 }
 0x121   :  { %871 = vrot.lane.b32.xlu1 %v757_v1, %s1301_s0  ;;  %869 = vrot.lane.b32.xlu0 %v2050_v42, %s1301_s0 }
 0x125   :  { %875 = vrot.lane.b32.xlu1 %v759_v46, %s1301_s0  ;;  %873 = vrot.lane.b32.xlu0 %v758_v6, %s1301_s0  ;;  %v1767_v6 = vadd.f32 %v1602_v12, %v1632_v29  ;;  %v552_v12 = vadd.f32 %v1622_v22, %v1632_v29  ;;  %v1795_v22 = vadd.f32 %v1620_v21, %v1665_v35 }
 0x126   :  { %v564_v21 = vadd.f32 %v1643_v36, %v1665_v35 }
 0x127   :  { %v760_v15 = vmax.f32 %v1767_v6, 0.0  ;;  %v762_v13 = vmax.f32 %v552_v12, 0.0  ;;  %v562_v12 = vadd.f32 %v1635_v33, %v1665_v35  ;;  %v2053_v6 = vmax.f32 %v1695_v63, 0.0 }
 0x128   :  { %v2056_v17 = vmax.f32 %v1795_v22, 0.0 }
 0x129   :  { %879 = vrot.lane.b32.xlu1 %v771_v47, %s1301_s0  ;;  %877 = vrot.lane.b32.xlu0 %v770_v10, %s1301_s0  ;;  %v749_v47 = vmax.f32 %v546_v5, 0.0  ;;  %v787_v27 = vmax.f32 %v562_v12, 0.0 }
 0x12d   :  { %883 = vrot.lane.b32.xlu1 %v783_v9, %s1301_s0  ;;  %881 = vrot.lane.b32.xlu0 %v2048_v32, %s1301_s0 }
 0x131   :  { %887 = vrot.lane.b32.xlu1 %v2046_v40, %s1301_s0  ;;  %885 = vrot.lane.b32.xlu0 %v784_v31, %s1301_s0  ;;  %v761_v31 = vmax.f32 %v550_v26, 0.0  ;;  %v775_v26 = vmax.f32 %v558_v16, 0.0 }
 0x135   :  { %981 = vrot.lane.b32.xlu1 %v748_v8, %s1301_s0  ;;  %979 = vrot.lane.b32.xlu0 %v747_v19, %s1301_s0  ;;  %v556_v8 = vadd.f32 %v1624_v24, %v1647_v38  ;;  %v2047_v24 = vmax.f32 %v1795_v22, 0.0 }
 0x137   :  { %v774_v5 = vmax.f32 %v556_v8, 0.0 }
 0x139   :  { %985 = vrot.lane.b32.xlu1 %v760_v15, %s1301_s0  ;;  %983 = vrot.lane.b32.xlu0 %v749_v47, %s1301_s0 }
 0x13d   :  { %989 = vrot.lane.b32.xlu1 %v762_v13, %s1301_s0  ;;  %987 = vrot.lane.b32.xlu0 %v761_v31, %s1301_s0  ;;  %v788_v31 = vmax.f32 %v564_v21, 0.0 }
 0x141   :  { %993 = vrot.lane.b32.xlu1 %v774_v5, %s1301_s0  ;;  %991 = vrot.lane.b32.xlu0 %v2049_v20, %s1301_s0 }
 0x145   :  { %997 = vrot.lane.b32.xlu1 %v2047_v24, %s1301_s0  ;;  %995 = vrot.lane.b32.xlu0 %v775_v26, %s1301_s0 }
 0x149   :  { %1001 = vrot.lane.b32.xlu1 %v788_v31, %s1301_s0  ;;  %999 = vrot.lane.b32.xlu0 %v787_v27, %s1301_s0 }
 0x176   :  { %v1040_v8 = vpop.permute.xlu0 %1039 }
 0x177   :  { %v1042_v5 = vpop.permute.xlu1 %1041 }
 0x178   :  { %v1063_v33 = vsel %vm828_vm4, %v1040_v8, %v1042_v5 }
 0x179   :  { %v1079_v16 = vmax.f32 %v749_v47, %v1063_v33 }
 0x17b   :  { %v1046_v40 = vpop.permute.xlu1 %1045  ;;  %v1048_v36 = vpop.permute.xlu0 %1047  ;;  %1095 = vrot.lane.b32.xlu0 %v1079_v16, %s1302_s2 }
 0x17c   :  { %v1065_v24 = vsel %vm828_vm4, %v1046_v40, %v1048_v36 }
 0x17d   :  { %v1081_v32 = vmax.f32 %v762_v13, %v1065_v24 }
 0x17f   :  { %v1052_v12 = vpop.permute.xlu0 %1051  ;;  %v1050_v21 = vpop.permute.xlu1 %1049  ;;  %1099 = vrot.lane.b32.xlu0 %v1081_v32, %s1302_s2 }
 0x180   :  { %v1066_v27 = vsel %vm828_vm4, %v1048_v36, %v1050_v21 }
 0x181   :  { %v1082_v20 = vmax.f32 %v763_v39, %v1066_v27 }
 0x183   :  { %v1054_v42 = vpop.permute.xlu1 %1053  ;;  %v1044_v8 = vpop.permute.xlu0 %1043  ;;  %1101 = vrot.lane.b32.xlu1 %v1082_v20, %s1302_s2 }
 0x184   :  { %v1067_v47 = vsel %vm828_vm4, %v1052_v12, %v1054_v42  ;;  %v1064_v33 = vsel %vm828_vm4, %v1042_v5, %v1044_v8  ;;  %v277_v5 = vadd.f32 %v1558_v54, %v1614_v18  ;;  %v279_v12 = vadd.f32 %v1562_v56, %v1614_v18 }
 0x185   :  { %v1083_v16 = vmax.f32 %v775_v26, %v1067_v47  ;;  %v1080_v40 = vmax.f32 %v750_v30, %v1064_v33  ;;  %v1836_v30 = vadd.f32 %v1556_v53, %v1614_v18  ;;  %v1849_v53 = vadd.f32 %v1564_v57, %v1632_v29 }
 0x186   :  { %v743_v41 = vmax.f32 %v279_v12, 0.0  ;;  %v285_v56 = vadd.f32 %v1570_v60, %v1632_v29  ;;  %v1866_v33 = vadd.f32 %v1572_v61, %v1647_v38  ;;  %v1874_v60 = vadd.f32 %v1554_v52, %v1665_v35 }
 0x187   :  { %v1058_v13 = vpop.permute.xlu1 %1057  ;;  %v1056_v24 = vpop.permute.xlu0 %1055  ;;  %1097 = vrot.lane.b32.xlu1 %v1080_v40, %s1302_s2  ;;  %1103 = vrot.lane.b32.xlu0 %v1083_v16, %s1302_s2  ;;  %v295_v52 = vadd.f32 %v1582_v2, %v1665_v35 }
 0x188   :  { %v1068_v34 = vsel %vm828_vm4, %v1054_v42, %v1056_v24  ;;  %v742_v42 = vmax.f32 %v277_v5, 0.0  ;;  %v756_v47 = vmax.f32 %v285_v56, 0.0  ;;  %v767_v16 = vmax.f32 %v1866_v33, 0.0 }
 0x189   :  { %v1084_v39 = vmax.f32 %v776_v48, %v1068_v34  ;;  %v741_v48 = vmax.f32 %v1836_v30, 0.0 }
 0x18b   :  { %v1062_v32 = vpop.permute.xlu1 %1061  ;;  %v1060_v20 = vpop.permute.xlu0 %1059  ;;  %1105 = vrot.lane.b32.xlu1 %v1084_v39, %s1302_s2  ;;  %v297_v39 = vadd.f32 %v1586_v4, %v1665_v35 }
 0x18c   :  { %v1069_v26 = vsel %vm828_vm4, %v1058_v13, %v1060_v20  ;;  %v1070_v25 = vsel %vm828_vm4, %v1060_v20, %v1062_v32  ;;  %v291_v13 = vadd.f32 %v1578_v0, %v1647_v38  ;;  %v781_v0 = vmax.f32 %v295_v52, 0.0 }
 0x18d   :  { %v1085_v36 = vmax.f32 %v788_v31, %v1069_v26  ;;  %v1086_v44 = vmax.f32 %v789_v43, %v1070_v25  ;;  %v754_v43 = vmax.f32 %v1849_v53, 0.0  ;;  %v283_v31 = vadd.f32 %v1566_v58, %v1632_v29 }
 0x18e   :  { %v289_v58 = vadd.f32 %v1574_v62, %v1647_v38  ;;  %v780_v62 = vmax.f32 %v1874_v60, 0.0  ;;  %v769_v34 = vmax.f32 %v291_v13, 0.0  ;;  %v782_v26 = vmax.f32 %v297_v39, 0.0 }
 0x18f   :  { %1109 = vrot.lane.b32.xlu1 %v1086_v44, %s1302_s2  ;;  %1107 = vrot.lane.b32.xlu0 %v1085_v36, %s1302_s2  ;;  %v868_v21 = vpop.permute.xlu1 %867  ;;  %v866_v54 = vpop.permute.xlu0 %865  ;;  %v755_v8 = vmax.f32 %v283_v31, 0.0 }
 0x190   :  { %v768_v40 = vmax.f32 %v289_v58, 0.0  ;;  %v889_v25 = vsel %vm828_vm4, %v866_v54, %v868_v21 }
 0x191   :  { %v905_v2 = vmax.f32 %v743_v41, %v889_v25 }
 0x193   :  { %806 = vrot.lane.b32.xlu1 %v742_v42, %s1301_s0  ;;  %804 = vrot.lane.b32.xlu0 %v741_v48, %s1301_s0  ;;  %v872_v27 = vpop.permute.xlu1 %871  ;;  %v870_v57 = vpop.permute.xlu0 %869 }
 0x194   :  { %v890_v5 = vsel %vm828_vm4, %v868_v21, %v870_v57 }
 0x195   :  { %v906_v4 = vmax.f32 %v744_v28, %v890_v5 }
 0x197   :  { %810 = vrot.lane.b32.xlu1 %v754_v43, %s1301_s0  ;;  %808 = vrot.lane.b32.xlu0 %v743_v41, %s1301_s0  ;;  %v876_v24 = vpop.permute.xlu1 %875  ;;  %v874_v61 = vpop.permute.xlu0 %873 }
 0x198   :  { %v891_v42 = vsel %vm828_vm4, %v872_v27, %v874_v61  ;;  %v892_v12 = vsel %vm828_vm4, %v874_v61, %v876_v24 }
 0x199   :  { %v907_v54 = vmax.f32 %v756_v47, %v891_v42  ;;  %v908_v21 = vmax.f32 %v757_v1, %v892_v12 }
 0x19b   :  { %814 = vrot.lane.b32.xlu1 %v756_v47, %s1301_s0  ;;  %812 = vrot.lane.b32.xlu0 %v755_v8, %s1301_s0  ;;  %v880_v32 = vpop.permute.xlu1 %879  ;;  %v878_v20 = vpop.permute.xlu0 %877 }
 0x19c   :  { %v893_v31 = vsel %vm828_vm4, %v878_v20, %v880_v32 }
 0x19d   :  { %v909_v56 = vmax.f32 %v769_v34, %v893_v31 }
 0x19f   :  { %818 = vrot.lane.b32.xlu1 %v768_v40, %s1301_s0  ;;  %816 = vrot.lane.b32.xlu0 %v767_v16, %s1301_s0  ;;  %v884_v36 = vpop.permute.xlu1 %883  ;;  %v882_v44 = vpop.permute.xlu0 %881 }
 0x1a0   :  { %v894_v41 = vsel %vm828_vm4, %v880_v32, %v882_v44 }
 0x1a1   :  { %v910_v27 = vmax.f32 %v770_v10, %v894_v41 }
 0x1a3   :  { %822 = vrot.lane.b32.xlu1 %v780_v62, %s1301_s0  ;;  %820 = vrot.lane.b32.xlu0 %v769_v34, %s1301_s0  ;;  %v888_v49 = vpop.permute.xlu1 %887  ;;  %v886_v28 = vpop.permute.xlu0 %885 }
 0x1a4   :  { %v895_v57 = vsel %vm828_vm4, %v884_v36, %v886_v28  ;;  %v896_v8 = vsel %vm828_vm4, %v886_v28, %v888_v49  ;;  %v2055_v49 = vmax.f32 %v1733_v7, 0.0  ;;  %v2057_v7 = vmax.f32 %v1745_v11, 0.0 }
 0x1a5   :  { %v911_v37 = vmax.f32 %v782_v26, %v895_v57  ;;  %v912_v1 = vmax.f32 %v783_v9, %v896_v8 }
 0x1a7   :  { %826 = vrot.lane.b32.xlu1 %v782_v26, %s1301_s0  ;;  %824 = vrot.lane.b32.xlu0 %v781_v0, %s1301_s0  ;;  %v980_v47 = vpop.permute.xlu0 %979  ;;  %v982_v58 = vpop.permute.xlu1 %981 }
 0x1ab   :  { %923 = vrot.lane.b32.xlu1 %v906_v4, %s1302_s2  ;;  %921 = vrot.lane.b32.xlu0 %v905_v2, %s1302_s2  ;;  %v984_v45 = vpop.permute.xlu0 %983  ;;  %v986_v10 = vpop.permute.xlu1 %985  ;;  %v1003_v4 = vsel %vm828_vm4, %v980_v47, %v982_v58 }
 0x1ac   :  { %v1004_v26 = vsel %vm828_vm4, %v982_v58, %v984_v45 }
 0x1ad   :  { %v1020_v12 = vmax.f32 %v747_v19, %v1004_v26 }
 0x1af   :  { %927 = vrot.lane.b32.xlu1 %v908_v21, %s1302_s2  ;;  %925 = vrot.lane.b32.xlu0 %v907_v54, %s1302_s2  ;;  %v988_v40 = vpop.permute.xlu0 %987  ;;  %v990_v13 = vpop.permute.xlu1 %989 }
 0x1b0   :  { %v1006_v20 = vsel %vm828_vm4, %v988_v40, %v990_v13  ;;  %v1005_v9 = vsel %vm828_vm4, %v986_v10, %v988_v40 }
 0x1b1   :  { %v1022_v0 = vmax.f32 %v760_v15, %v1006_v20  ;;  %v1021_v25 = vmax.f32 %v759_v46, %v1005_v9  ;;  %v1019_v15 = vmax.f32 %v2053_v6, %v1003_v4 }
 0x1b3   :  { %931 = vrot.lane.b32.xlu1 %v910_v27, %s1302_s2  ;;  %929 = vrot.lane.b32.xlu0 %v909_v56, %s1302_s2  ;;  %v992_v24 = vpop.permute.xlu0 %991  ;;  %v994_v61 = vpop.permute.xlu1 %993 }
 0x1b4   :  { %v1007_v54 = vsel %vm828_vm4, %v992_v24, %v994_v61 }
 0x1b5   :  { %v1023_v63 = vmax.f32 %v2055_v49, %v1007_v54 }
 0x1b7   :  { %935 = vrot.lane.b32.xlu1 %v912_v1, %s1302_s2  ;;  %933 = vrot.lane.b32.xlu0 %v911_v37, %s1302_s2  ;;  %v996_v34 = vpop.permute.xlu0 %995  ;;  %v998_v52 = vpop.permute.xlu1 %997 }
 0x1b8   :  { %v1008_v3 = vsel %vm828_vm4, %v994_v61, %v996_v34 }
 0x1b9   :  { %v1024_v19 = vmax.f32 %v2054_v14, %v1008_v3 }
 0x1bb   :  { %v1000_v39 = vpop.permute.xlu0 %999  ;;  %v1002_v23 = vpop.permute.xlu1 %1001 }
 0x1bc   :  { %v1010_v28 = vsel %vm828_vm4, %v1000_v39, %v1002_v23  ;;  %v1009_v57 = vsel %vm828_vm4, %v998_v52, %v1000_v39 }
 0x1bd   :  { %v1026_v47 = vmax.f32 %v2056_v17, %v1010_v28  ;;  %v1025_v58 = vmax.f32 %v2057_v7, %v1009_v57 }
 0x1ed   :  { %v1096_v32 = vpop.permute.xlu0 %1095 }
 0x1f1   :  { %v1100_v5 = vpop.permute.xlu0 %1099 }
 0x1f5   :  { %v1102_v2 = vpop.permute.xlu1 %1101 }
 0x1f6   :  { %v1112_v36 = vsel %vm937_vm5, %v1100_v5, %v1102_v2  ;;  %v1126_v44 = vmax.f32 %v1022_v0, %v1102_v2  ;;  %v188_v0 = vadd.f32 %v1552_v51, %v1614_v18 }
 0x1f7   :  { %v1125_v42 = vmax.f32 %v1021_v25, %v1112_v36  ;;  %v194_v36 = vadd.f32 %v1560_v55, %v1632_v29 }
 0x1f8   :  { %1145 = vrot.lane.b32.xlu1 %v1126_v44, %s1303_s25  ;;  %v740_v4 = vmax.f32 %v188_v0, 0.0 }
 0x1f9   :  { %v1098_v46 = vpop.permute.xlu1 %1097  ;;  %1143 = vrot.lane.b32.xlu0 %v1125_v42, %s1303_s25  ;;  %v1104_v56 = vpop.permute.xlu0 %1103  ;;  %v753_v54 = vmax.f32 %v194_v36, 0.0 }
 0x1fa   :  { %v1111_v21 = vsel %vm937_vm5, %v1096_v32, %v1098_v46  ;;  %v1124_v31 = vmax.f32 %v1020_v12, %v1098_v46  ;;  %v200_v46 = vadd.f32 %v1568_v59, %v1647_v38 }
 0x1fb   :  { %v1123_v41 = vmax.f32 %v1019_v15, %v1111_v21 }
 0x1fc   :  { %1141 = vrot.lane.b32.xlu1 %v1124_v31, %s1303_s25 }
 0x1fd   :  { %v1106_v27 = vpop.permute.xlu1 %1105  ;;  %1139 = vrot.lane.b32.xlu0 %v1123_v41, %s1303_s25  ;;  %v206_v41 = vadd.f32 %v1550_v50, %v1665_v35 }
 0x1fe   :  { %v1113_v8 = vsel %vm937_vm5, %v1104_v56, %v1106_v27  ;;  %v1128_v37 = vmax.f32 %v1024_v19, %v1106_v27 }
 0x1ff   :  { %v1127_v1 = vmax.f32 %v1023_v63, %v1113_v8 }
 0x200   :  { %1149 = vrot.lane.b32.xlu1 %v1128_v37, %s1303_s25 }
 0x201   :  { %v1110_v45 = vpop.permute.xlu1 %1109  ;;  %v1108_v10 = vpop.permute.xlu0 %1107  ;;  %1147 = vrot.lane.b32.xlu0 %v1127_v1, %s1303_s25 }
 0x202   :  { %v1130_v40 = vmax.f32 %v1026_v47, %v1110_v45  ;;  %v1114_v13 = vsel %vm937_vm5, %v1108_v10, %v1110_v45 }
 0x203   :  { %v1129_v24 = vmax.f32 %v1025_v58, %v1114_v13 }
 0x204   :  { %1153 = vrot.lane.b32.xlu1 %v1130_v40, %s1303_s25 }
 0x205   :  { %v807_v61 = vpop.permute.xlu1 %806  ;;  %1151 = vrot.lane.b32.xlu0 %v1129_v24, %s1303_s25  ;;  %v805_v22 = vpop.permute.xlu0 %804 }
 0x206   :  { %v829_v2 = vsel %vm828_vm4, %v805_v22, %v807_v61 }
 0x207   :  { %v845_v42 = vmax.f32 %v740_v4, %v829_v2 }
 0x209   :  { %v811_v34 = vpop.permute.xlu1 %810  ;;  %v809_v52 = vpop.permute.xlu0 %808 }
 0x20a   :  { %v830_v26 = vsel %vm828_vm4, %v807_v61, %v809_v52 }
 0x20b   :  { %v846_v44 = vmax.f32 %v741_v48, %v830_v26 }
 0x20d   :  { %v815_v39 = vpop.permute.xlu1 %814  ;;  %v813_v32 = vpop.permute.xlu0 %812 }
 0x20e   :  { %v832_v12 = vsel %vm828_vm4, %v813_v32, %v815_v39  ;;  %v831_v51 = vsel %vm828_vm4, %v811_v34, %v813_v32 }
 0x20f   :  { %v848_v55 = vmax.f32 %v754_v43, %v832_v12  ;;  %v847_v29 = vmax.f32 %v753_v54, %v831_v51  ;;  %v766_v43 = vmax.f32 %v200_v46, 0.0 }
 0x211   :  { %v819_v11 = vpop.permute.xlu1 %818  ;;  %v817_v20 = vpop.permute.xlu0 %816 }
 0x212   :  { %v833_v59 = vsel %vm828_vm4, %v817_v20, %v819_v11 }
 0x213   :  { %v849_v49 = vmax.f32 %v766_v43, %v833_v59 }
 0x215   :  { %v823_v23 = vpop.permute.xlu1 %822  ;;  %v821_v9 = vpop.permute.xlu0 %820 }
 0x216   :  { %v834_v30 = vsel %vm828_vm4, %v819_v11, %v821_v9 }
 0x217   :  { %v850_v19 = vmax.f32 %v767_v16, %v834_v30  ;;  %v779_v16 = vmax.f32 %v206_v41, 0.0 }
 0x219   :  { %v827_v25 = vpop.permute.xlu1 %826  ;;  %v825_v5 = vpop.permute.xlu0 %824 }
 0x21a   :  { %v836_v63 = vsel %vm828_vm4, %v825_v5, %v827_v25  ;;  %v835_v50 = vsel %vm828_vm4, %v823_v23, %v825_v5 }
 0x21b   :  { %v852_v57 = vmax.f32 %v780_v62, %v836_v63  ;;  %v851_v8 = vmax.f32 %v779_v16, %v835_v50 }
 0x21d   :  { %v924_v6 = vpop.permute.xlu1 %923  ;;  %v922_v15 = vpop.permute.xlu0 %921 }
 0x21e   :  { %v951_v18 = vmax.f32 %v846_v44, %v924_v6  ;;  %v938_v3 = vsel %vm937_vm5, %v922_v15, %v924_v6 }
 0x21f   :  { %v950_v21 = vmax.f32 %v845_v42, %v938_v3 }
 0x220   :  { %960 = vst.msk [vmem:[%s2045_s3 + $0x8] sm:$0xff] %vm959_vm6, %v951_v18 }
 0x221   :  { %958 = vst [vmem:[%s2045_s3] sm:$0xff] %v950_v21  ;;  %v928_v48 = vpop.permute.xlu1 %927  ;;  %v926_v31 = vpop.permute.xlu0 %925 }
 0x222   :  { %v953_v38 = vmax.f32 %v848_v55, %v928_v48  ;;  %v939_v53 = vsel %vm937_vm5, %v926_v31, %v928_v48 }
 0x223   :  { %v952_v14 = vmax.f32 %v847_v29, %v939_v53 }
 0x224   :  { %962 = vst.msk [vmem:[%s2045_s3 + $0x18] sm:$0xff] %vm959_vm6, %v953_v38 }
 0x225   :  { %961 = vst [vmem:[%s2045_s3 + $0x10] sm:$0xff] %v952_v14  ;;  %v932_v28 = vpop.permute.xlu1 %931  ;;  %v930_v56 = vpop.permute.xlu0 %929 }
 0x226   :  { %v955_v35 = vmax.f32 %v850_v19, %v932_v28  ;;  %v940_v33 = vsel %vm937_vm5, %v930_v56, %v932_v28 }
 0x227   :  { %v954_v27 = vmax.f32 %v849_v49, %v940_v33 }
 0x228   :  { %964 = vst.msk [vmem:[%s2045_s3 + $0x28] sm:$0xff] %vm959_vm6, %v955_v35 }
 0x229   :  { %963 = vst [vmem:[%s2045_s3 + $0x20] sm:$0xff] %v954_v27  ;;  %v936_v37 = vpop.permute.xlu1 %935  ;;  %v934_v1 = vpop.permute.xlu0 %933 }
 0x22a   :  { %v957_v17 = vmax.f32 %v852_v57, %v936_v37  ;;  %v941_v47 = vsel %vm937_vm5, %v934_v1, %v936_v37 }
 0x22b   :  { %v956_v7 = vmax.f32 %v851_v8, %v941_v47 }
 0x22c   :  { %966 = vst.msk [vmem:[%s2045_s3 + $0x38] sm:$0xff] %vm959_vm6, %v957_v17 }
 0x22d   :  { %965 = vst [vmem:[%s2045_s3 + $0x30] sm:$0xff] %v956_v7 }
 0x26a   :  { %v1146_v60 = vpop.permute.xlu1 %1145 }
 0x26b   :  { %1225 = vst.msk [vmem:[%s2045_s3 + $0x58] sm:$0xff] %vm959_vm6, %v1146_v60  ;;  %v1144_v62 = vpop.permute.xlu0 %1143 }
 0x26c   :  { %v1157_v58 = vsel %vm1155_vm7, %v1144_v62, %v1146_v60 }
 0x26d   :  { %1224 = vst [vmem:[%s2045_s3 + $0x50] sm:$0xff] %v1157_v58 }
 0x26e   :  { %v1142_v45 = vpop.permute.xlu1 %1141 }
 0x26f   :  { %1223 = vst.msk [vmem:[%s2045_s3 + $0x48] sm:$0xff] %vm959_vm6, %v1142_v45  ;;  %v1140_v10 = vpop.permute.xlu0 %1139 }
 0x270   :  { %v1156_v40 = vsel %vm1155_vm7, %v1140_v10, %v1142_v45 }
 0x271   :  { %1222 = vst [vmem:[%s2045_s3 + $0x40] sm:$0xff] %v1156_v40 }
 0x272   :  { %v1150_v13 = vpop.permute.xlu1 %1149 }
 0x273   :  { %1227 = vst.msk [vmem:[%s2045_s3 + $0x68] sm:$0xff] %vm959_vm6, %v1150_v13  ;;  %v1148_v24 = vpop.permute.xlu0 %1147 }
 0x274   :  { %v1158_v61 = vsel %vm1155_vm7, %v1148_v24, %v1150_v13 }
 0x275   :  { %1226 = vst [vmem:[%s2045_s3 + $0x60] sm:$0xff] %v1158_v61 }
 0x276   :  { %v1154_v22 = vpop.permute.xlu1 %1153 }
 0x277   :  { %1229 = vst.msk [vmem:[%s2045_s3 + $0x78] sm:$0xff] %vm959_vm6, %v1154_v22  ;;  %v1152_v34 = vpop.permute.xlu0 %1151 }
 0x278   :  { %v1159_v52 = vsel %vm1155_vm7, %v1152_v34, %v1154_v22 }
 0x279   :  { %1228 = vst [vmem:[%s2045_s3 + $0x70] sm:$0xff] %v1159_v52 }

// kernel: network_forward.6
= control target key start
LH: loop header
LB: loop body
LE: loop exit
PB: predicated region body
PF: predicated region fallthrough
CT: control target
= control target key end

     0   :  { %s2135_s15 = smov 0   ;;  %s2137_s16 = smov 0   ;;  %s2608_s0 = inlined_call_operand.vmem [shape: f32[2,3200], index: 0, kind: input, shape index: {}]   ;;  %s2609_s1 = inlined_call_operand.vmem [shape: s8[3200,896], index: 1, kind: input, shape index: {}]   ;;  %s2610_s2 = inlined_call_operand.vmem [shape: f32[1,896], index: 2, kind: input, shape index: {}]   ;;  %s2611_s3 = inlined_call_operand.vmem [shape: f32[1,896], index: 3, kind: input, shape index: {}]   ;;  %s2612_s4 = inlined_call_operand.vmem [shape: f32[2,896], index: 4, kind: output, shape index: {}]  }
   0x1   :  { %s2139_s17 = smov 0  }
   0x2 LB: > { %s1743_s18 = sadd.s32 4294967295, %s2105_s17   ;;  %s2152_s19 = sadd.s32 1, %s2105_s17   ;;  %s2105_s17 = sphi %s2139_s17, %s2615_s17   ;;  %s2101_s16 = sphi %s2137_s16, %s2614_s16   ;;  %s2097_s15 = sphi %s2135_s15, %s2613_s15  }
   0x3   : > { %s39_s20 = ssub.s32 %s2105_s17, %s2152_s19  ;;  %s42_s21 = sadd.s32 1, %s2101_s16 }
   0x4   : > { %p40_p0 = scmp.eq.s32.totalorder %s39_s20, 0  ;;  %p49_p1 = scmp.ne.s32.totalorder %s2101_s16, %s2097_s15 }
   0x5   : > { %p50_p2 = scmp.eq.s32.totalorder %s2105_s17, 0  ;;  %p1746_p4 = scmp.ge.s32.totalorder %s2105_s17, 7 }
   0x6   : > { %s2161_s22 = scalar_select %p40_p0, %s2101_s16, %s42_s21  }
   0x7   : > { %p51_p3 = por %p50_p2, %p49_p1  ;;  %156 = sbr.rel (%p1746_p4) target bundleno = 69 (0x45), region = 20 }
   0xe   : > { %159 = sbr.rel (!%p51_p3) target bundleno = 69 (0x45), region = 24  ;;  %s161_s23 = sand.u32 (%p51_p3), 1, %s2101_s16  }
   0xf   : > { %s1747_s24 = sshll.u32 (%p51_p3), %s2105_s17, 3  ;;  %s2048_s25 = smul.u32 (%p51_p3), 800, %s161_s23 }
  0x10   : > { %s2169_s28 = scalar_lea.vmem (%p51_p3), %s2609_s1, %s1747_s24 }
  0x11   : > { %v391_v0 = vld [vmem:[%s2169_s28] sm:$0xff] (%p51_p3)  ;;  %v393_v1 = vld [vmem:[%s2169_s28 + $0x38] sm:$0xff] (%p51_p3)  ;;  %v395_v2 = vld [vmem:[%s2169_s28 + $0x70] sm:$0xff] (%p51_p3)  ;;  %s2177_s29 = scalar_lea.vmem (%p51_p3), [#allocation2], %s2048_s25 }
  0x12   : > { %v397_v3 = vld [vmem:[%s2169_s28 + $0xa8] sm:$0xff] (%p51_p3)  ;;  %v399_v4 = vld [vmem:[%s2169_s28 + $0xe0] sm:$0xff] (%p51_p3)  ;;  %v401_v5 = vld [vmem:[%s2169_s28 + $0x118] sm:$0xff] (%p51_p3)  ;;  %392 = vst [vmem:[%s2177_s29] sm:$0xff] (%p51_p3), %v391_v0 }
  0x13   : > { %394 = vst [vmem:[%s2177_s29 + $0x8] sm:$0xff] (%p51_p3), %v393_v1  ;;  %396 = vst [vmem:[%s2177_s29 + $0x10] sm:$0xff] (%p51_p3), %v395_v2  ;;  %v403_v6 = vld [vmem:[%s2169_s28 + $0x150] sm:$0xff] (%p51_p3)  ;;  %v405_v7 = vld [vmem:[%s2169_s28 + $0x188] sm:$0xff] (%p51_p3) }
  0x14   : > { %398 = vst [vmem:[%s2177_s29 + $0x18] sm:$0xff] (%p51_p3), %v397_v3  ;;  %400 = vst [vmem:[%s2177_s29 + $0x20] sm:$0xff] (%p51_p3), %v399_v4  ;;  %v407_v8 = vld [vmem:[%s2169_s28 + $0x1c0] sm:$0xff] (%p51_p3)  ;;  %v409_v9 = vld [vmem:[%s2169_s28 + $0x1f8] sm:$0xff] (%p51_p3) }
  0x15   : > { %402 = vst [vmem:[%s2177_s29 + $0x28] sm:$0xff] %v401_v5  ;;  %404 = vst [vmem:[%s2177_s29 + $0x30] sm:$0xff] %v403_v6  ;;  %v411_v10 = vld [vmem:[%s2169_s28 + $0x230] sm:$0xff]  ;;  %v413_v11 = vld [vmem:[%s2169_s28 + $0x268] sm:$0xff] }
  0x16   : > { %406 = vst [vmem:[%s2177_s29 + $0x38] sm:$0xff] %v405_v7  ;;  %408 = vst [vmem:[%s2177_s29 + $0x40] sm:$0xff] %v407_v8  ;;  %v415_v12 = vld [vmem:[%s2169_s28 + $0x2a0] sm:$0xff]  ;;  %v417_v13 = vld [vmem:[%s2169_s28 + $0x2d8] sm:$0xff] }
  0x17   : > { %410 = vst [vmem:[%s2177_s29 + $0x48] sm:$0xff] %v409_v9  ;;  %412 = vst [vmem:[%s2177_s29 + $0x50] sm:$0xff] %v411_v10  ;;  %v419_v14 = vld [vmem:[%s2169_s28 + $0x310] sm:$0xff]  ;;  %v421_v15 = vld [vmem:[%s2169_s28 + $0x348] sm:$0xff] }
  0x18   : > { %414 = vst [vmem:[%s2177_s29 + $0x58] sm:$0xff] %v413_v11  ;;  %416 = vst [vmem:[%s2177_s29 + $0x60] sm:$0xff] %v415_v12  ;;  %v423_v16 = vld [vmem:[%s2169_s28 + $0x380] sm:$0xff]  ;;  %v425_v17 = vld [vmem:[%s2169_s28 + $0x3b8] sm:$0xff] }
  0x19   : > { %418 = vst [vmem:[%s2177_s29 + $0x68] sm:$0xff] %v417_v13  ;;  %420 = vst [vmem:[%s2177_s29 + $0x70] sm:$0xff] %v419_v14  ;;  %v427_v18 = vld [vmem:[%s2169_s28 + $0x3f0] sm:$0xff]  ;;  %v429_v19 = vld [vmem:[%s2169_s28 + $0x428] sm:$0xff] }
  0x1a   : > { %422 = vst [vmem:[%s2177_s29 + $0x78] sm:$0xff] %v421_v15  ;;  %424 = vst [vmem:[%s2177_s29 + $0x80] sm:$0xff] %v423_v16  ;;  %v431_v20 = vld [vmem:[%s2169_s28 + $0x460] sm:$0xff]  ;;  %v433_v21 = vld [vmem:[%s2169_s28 + $0x498] sm:$0xff] }
  0x1b   : > { %426 = vst [vmem:[%s2177_s29 + $0x88] sm:$0xff] %v425_v17  ;;  %428 = vst [vmem:[%s2177_s29 + $0x90] sm:$0xff] %v427_v18  ;;  %v435_v22 = vld [vmem:[%s2169_s28 + $0x4d0] sm:$0xff]  ;;  %v437_v23 = vld [vmem:[%s2169_s28 + $0x508] sm:$0xff] }
  0x1c   : > { %430 = vst [vmem:[%s2177_s29 + $0x98] sm:$0xff] %v429_v19  ;;  %432 = vst [vmem:[%s2177_s29 + $0xa0] sm:$0xff] %v431_v20  ;;  %v439_v24 = vld [vmem:[%s2169_s28 + $0x540] sm:$0xff]  ;;  %v441_v25 = vld [vmem:[%s2169_s28 + $0x578] sm:$0xff] }
  0x1d   : > { %434 = vst [vmem:[%s2177_s29 + $0xa8] sm:$0xff] %v433_v21  ;;  %436 = vst [vmem:[%s2177_s29 + $0xb0] sm:$0xff] %v435_v22  ;;  %v443_v26 = vld [vmem:[%s2169_s28 + $0x5b0] sm:$0xff]  ;;  %v445_v27 = vld [vmem:[%s2169_s28 + $0x5e8] sm:$0xff] }
  0x1e   : > { %438 = vst [vmem:[%s2177_s29 + $0xb8] sm:$0xff] %v437_v23  ;;  %440 = vst [vmem:[%s2177_s29 + $0xc0] sm:$0xff] %v439_v24  ;;  %v447_v28 = vld [vmem:[%s2169_s28 + $0x620] sm:$0xff]  ;;  %v449_v29 = vld [vmem:[%s2169_s28 + $0x658] sm:$0xff] }
  0x1f   : > { %442 = vst [vmem:[%s2177_s29 + $0xc8] sm:$0xff] %v441_v25  ;;  %444 = vst [vmem:[%s2177_s29 + $0xd0] sm:$0xff] %v443_v26  ;;  %v451_v30 = vld [vmem:[%s2169_s28 + $0x690] sm:$0xff]  ;;  %v453_v31 = vld [vmem:[%s2169_s28 + $0x6c8] sm:$0xff] }
  0x20   : > { %446 = vst [vmem:[%s2177_s29 + $0xd8] sm:$0xff] %v445_v27  ;;  %448 = vst [vmem:[%s2177_s29 + $0xe0] sm:$0xff] %v447_v28  ;;  %v455_v32 = vld [vmem:[%s2169_s28 + $0x700] sm:$0xff]  ;;  %v457_v33 = vld [vmem:[%s2169_s28 + $0x738] sm:$0xff] }
  0x21   : > { %450 = vst [vmem:[%s2177_s29 + $0xe8] sm:$0xff] %v449_v29  ;;  %452 = vst [vmem:[%s2177_s29 + $0xf0] sm:$0xff] %v451_v30  ;;  %v459_v34 = vld [vmem:[%s2169_s28 + $0x770] sm:$0xff]  ;;  %v461_v35 = vld [vmem:[%s2169_s28 + $0x7a8] sm:$0xff] }
  0x22   : > { %454 = vst [vmem:[%s2177_s29 + $0xf8] sm:$0xff] %v453_v31  ;;  %456 = vst [vmem:[%s2177_s29 + $0x100] sm:$0xff] %v455_v32  ;;  %v463_v36 = vld [vmem:[%s2169_s28 + $0x7e0] sm:$0xff]  ;;  %v465_v37 = vld [vmem:[%s2169_s28 + $0x818] sm:$0xff] }
  0x23   : > { %458 = vst [vmem:[%s2177_s29 + $0x108] sm:$0xff] %v457_v33  ;;  %460 = vst [vmem:[%s2177_s29 + $0x110] sm:$0xff] %v459_v34  ;;  %v467_v38 = vld [vmem:[%s2169_s28 + $0x850] sm:$0xff]  ;;  %v469_v39 = vld [vmem:[%s2169_s28 + $0x888] sm:$0xff] }
  0x24   : > { %462 = vst [vmem:[%s2177_s29 + $0x118] sm:$0xff] %v461_v35  ;;  %464 = vst [vmem:[%s2177_s29 + $0x120] sm:$0xff] %v463_v36  ;;  %v471_v40 = vld [vmem:[%s2169_s28 + $0x8c0] sm:$0xff]  ;;  %v473_v41 = vld [vmem:[%s2169_s28 + $0x8f8] sm:$0xff] }
  0x25   : > { %466 = vst [vmem:[%s2177_s29 + $0x128] sm:$0xff] %v465_v37  ;;  %468 = vst [vmem:[%s2177_s29 + $0x130] sm:$0xff] %v467_v38  ;;  %v475_v42 = vld [vmem:[%s2169_s28 + $0x930] sm:$0xff]  ;;  %v477_v43 = vld [vmem:[%s2169_s28 + $0x968] sm:$0xff] }
  0x26   : > { %470 = vst [vmem:[%s2177_s29 + $0x138] sm:$0xff] %v469_v39  ;;  %472 = vst [vmem:[%s2177_s29 + $0x140] sm:$0xff] %v471_v40  ;;  %v479_v44 = vld [vmem:[%s2169_s28 + $0x9a0] sm:$0xff]  ;;  %v481_v45 = vld [vmem:[%s2169_s28 + $0x9d8] sm:$0xff] }
  0x27   : > { %474 = vst [vmem:[%s2177_s29 + $0x148] sm:$0xff] %v473_v41  ;;  %476 = vst [vmem:[%s2177_s29 + $0x150] sm:$0xff] %v475_v42  ;;  %v483_v46 = vld [vmem:[%s2169_s28 + $0xa10] sm:$0xff]  ;;  %v485_v47 = vld [vmem:[%s2169_s28 + $0xa48] sm:$0xff] }
  0x28   : > { %478 = vst [vmem:[%s2177_s29 + $0x158] sm:$0xff] %v477_v43  ;;  %480 = vst [vmem:[%s2177_s29 + $0x160] sm:$0xff] %v479_v44  ;;  %v487_v48 = vld [vmem:[%s2169_s28 + $0xa80] sm:$0xff]  ;;  %v489_v49 = vld [vmem:[%s2169_s28 + $0xab8] sm:$0xff] }
  0x29   : > { %482 = vst [vmem:[%s2177_s29 + $0x168] sm:$0xff] %v481_v45  ;;  %484 = vst [vmem:[%s2177_s29 + $0x170] sm:$0xff] %v483_v46  ;;  %v491_v50 = vld [vmem:[%s2169_s28 + $0xaf0] sm:$0xff]  ;;  %v493_v51 = vld [vmem:[%s2169_s28 + $0xb28] sm:$0xff] }
  0x2a   : > { %486 = vst [vmem:[%s2177_s29 + $0x178] sm:$0xff] %v485_v47  ;;  %488 = vst [vmem:[%s2177_s29 + $0x180] sm:$0xff] %v487_v48  ;;  %v495_v52 = vld [vmem:[%s2169_s28 + $0xb60] sm:$0xff]  ;;  %v497_v53 = vld [vmem:[%s2169_s28 + $0xb98] sm:$0xff] }
  0x2b   : > { %490 = vst [vmem:[%s2177_s29 + $0x188] sm:$0xff] %v489_v49  ;;  %492 = vst [vmem:[%s2177_s29 + $0x190] sm:$0xff] %v491_v50  ;;  %v499_v54 = vld [vmem:[%s2169_s28 + $0xbd0] sm:$0xff]  ;;  %v501_v55 = vld [vmem:[%s2169_s28 + $0xc08] sm:$0xff] }
  0x2c   : > { %494 = vst [vmem:[%s2177_s29 + $0x198] sm:$0xff] %v493_v51  ;;  %496 = vst [vmem:[%s2177_s29 + $0x1a0] sm:$0xff] %v495_v52  ;;  %v503_v56 = vld [vmem:[%s2169_s28 + $0xc40] sm:$0xff]  ;;  %v505_v57 = vld [vmem:[%s2169_s28 + $0xc78] sm:$0xff] }
  0x2d   : > { %498 = vst [vmem:[%s2177_s29 + $0x1a8] sm:$0xff] %v497_v53  ;;  %500 = vst [vmem:[%s2177_s29 + $0x1b0] sm:$0xff] %v499_v54  ;;  %v507_v58 = vld [vmem:[%s2169_s28 + $0xcb0] sm:$0xff]  ;;  %v509_v59 = vld [vmem:[%s2169_s28 + $0xce8] sm:$0xff] }
  0x2e   : > { %502 = vst [vmem:[%s2177_s29 + $0x1b8] sm:$0xff] %v501_v55  ;;  %504 = vst [vmem:[%s2177_s29 + $0x1c0] sm:$0xff] %v503_v56  ;;  %v511_v60 = vld [vmem:[%s2169_s28 + $0xd20] sm:$0xff]  ;;  %v513_v61 = vld [vmem:[%s2169_s28 + $0xd58] sm:$0xff] }
  0x2f   : > { %506 = vst [vmem:[%s2177_s29 + $0x1c8] sm:$0xff] %v505_v57  ;;  %508 = vst [vmem:[%s2177_s29 + $0x1d0] sm:$0xff] %v507_v58  ;;  %v515_v62 = vld [vmem:[%s2169_s28 + $0xd90] sm:$0xff]  ;;  %v517_v63 = vld [vmem:[%s2169_s28 + $0xdc8] sm:$0xff] }
  0x30   : > { %510 = vst [vmem:[%s2177_s29 + $0x1d8] sm:$0xff] %v509_v59  ;;  %512 = vst [vmem:[%s2177_s29 + $0x1e0] sm:$0xff] %v511_v60  ;;  %v519_v0 = vld [vmem:[%s2169_s28 + $0xe00] sm:$0xff]  ;;  %v521_v1 = vld [vmem:[%s2169_s28 + $0xe38] sm:$0xff] }
  0x31   : > { %514 = vst [vmem:[%s2177_s29 + $0x1e8] sm:$0xff] %v513_v61  ;;  %516 = vst [vmem:[%s2177_s29 + $0x1f0] sm:$0xff] %v515_v62  ;;  %v523_v2 = vld [vmem:[%s2169_s28 + $0xe70] sm:$0xff]  ;;  %v525_v3 = vld [vmem:[%s2169_s28 + $0xea8] sm:$0xff] }
  0x32   : > { %518 = vst [vmem:[%s2177_s29 + $0x1f8] sm:$0xff] %v517_v63  ;;  %520 = vst [vmem:[%s2177_s29 + $0x200] sm:$0xff] %v519_v0  ;;  %v527_v4 = vld [vmem:[%s2169_s28 + $0xee0] sm:$0xff]  ;;  %v529_v5 = vld [vmem:[%s2169_s28 + $0xf18] sm:$0xff] }
  0x33   : > { %522 = vst [vmem:[%s2177_s29 + $0x208] sm:$0xff] %v521_v1  ;;  %524 = vst [vmem:[%s2177_s29 + $0x210] sm:$0xff] %v523_v2  ;;  %v531_v6 = vld [vmem:[%s2169_s28 + $0xf50] sm:$0xff]  ;;  %v533_v7 = vld [vmem:[%s2169_s28 + $0xf88] sm:$0xff] }
  0x34   : > { %526 = vst [vmem:[%s2177_s29 + $0x218] sm:$0xff] %v525_v3  ;;  %528 = vst [vmem:[%s2177_s29 + $0x220] sm:$0xff] %v527_v4  ;;  %v535_v8 = vld [vmem:[%s2169_s28 + $0xfc0] sm:$0xff]  ;;  %v537_v9 = vld [vmem:[%s2169_s28 + $0xff8] sm:$0xff] }
  0x35   : > { %530 = vst [vmem:[%s2177_s29 + $0x228] sm:$0xff] %v529_v5  ;;  %532 = vst [vmem:[%s2177_s29 + $0x230] sm:$0xff] %v531_v6  ;;  %v539_v10 = vld [vmem:[%s2169_s28 + $0x1030] sm:$0xff]  ;;  %v541_v11 = vld [vmem:[%s2169_s28 + $0x1068] sm:$0xff] }
  0x36   : > { %534 = vst [vmem:[%s2177_s29 + $0x238] sm:$0xff] %v533_v7  ;;  %536 = vst [vmem:[%s2177_s29 + $0x240] sm:$0xff] %v535_v8  ;;  %v543_v12 = vld [vmem:[%s2169_s28 + $0x10a0] sm:$0xff]  ;;  %v545_v13 = vld [vmem:[%s2169_s28 + $0x10d8] sm:$0xff] }
  0x37   : > { %538 = vst [vmem:[%s2177_s29 + $0x248] sm:$0xff] %v537_v9  ;;  %540 = vst [vmem:[%s2177_s29 + $0x250] sm:$0xff] %v539_v10  ;;  %v547_v14 = vld [vmem:[%s2169_s28 + $0x1110] sm:$0xff]  ;;  %v549_v15 = vld [vmem:[%s2169_s28 + $0x1148] sm:$0xff] }
  0x38   : > { %542 = vst [vmem:[%s2177_s29 + $0x258] sm:$0xff] %v541_v11  ;;  %544 = vst [vmem:[%s2177_s29 + $0x260] sm:$0xff] %v543_v12  ;;  %v551_v16 = vld [vmem:[%s2169_s28 + $0x1180] sm:$0xff]  ;;  %v553_v17 = vld [vmem:[%s2169_s28 + $0x11b8] sm:$0xff] }
  0x39   : > { %546 = vst [vmem:[%s2177_s29 + $0x268] sm:$0xff] %v545_v13  ;;  %548 = vst [vmem:[%s2177_s29 + $0x270] sm:$0xff] %v547_v14  ;;  %v555_v18 = vld [vmem:[%s2169_s28 + $0x11f0] sm:$0xff]  ;;  %v557_v19 = vld [vmem:[%s2169_s28 + $0x1228] sm:$0xff] }
  0x3a   : > { %550 = vst [vmem:[%s2177_s29 + $0x278] sm:$0xff] %v549_v15  ;;  %552 = vst [vmem:[%s2177_s29 + $0x280] sm:$0xff] %v551_v16  ;;  %v559_v20 = vld [vmem:[%s2169_s28 + $0x1260] sm:$0xff]  ;;  %v561_v21 = vld [vmem:[%s2169_s28 + $0x1298] sm:$0xff] }
  0x3b   : > { %554 = vst [vmem:[%s2177_s29 + $0x288] sm:$0xff] %v553_v17  ;;  %556 = vst [vmem:[%s2177_s29 + $0x290] sm:$0xff] %v555_v18  ;;  %v563_v22 = vld [vmem:[%s2169_s28 + $0x12d0] sm:$0xff]  ;;  %v565_v23 = vld [vmem:[%s2169_s28 + $0x1308] sm:$0xff] }
  0x3c   : > { %558 = vst [vmem:[%s2177_s29 + $0x298] sm:$0xff] %v557_v19  ;;  %560 = vst [vmem:[%s2177_s29 + $0x2a0] sm:$0xff] %v559_v20  ;;  %v567_v24 = vld [vmem:[%s2169_s28 + $0x1340] sm:$0xff]  ;;  %v569_v25 = vld [vmem:[%s2169_s28 + $0x1378] sm:$0xff] }
  0x3d   : > { %562 = vst [vmem:[%s2177_s29 + $0x2a8] sm:$0xff] %v561_v21  ;;  %564 = vst [vmem:[%s2177_s29 + $0x2b0] sm:$0xff] %v563_v22  ;;  %v571_v26 = vld [vmem:[%s2169_s28 + $0x13b0] sm:$0xff]  ;;  %v573_v27 = vld [vmem:[%s2169_s28 + $0x13e8] sm:$0xff] }
  0x3e   : > { %566 = vst [vmem:[%s2177_s29 + $0x2b8] sm:$0xff] %v565_v23  ;;  %568 = vst [vmem:[%s2177_s29 + $0x2c0] sm:$0xff] %v567_v24  ;;  %v575_v28 = vld [vmem:[%s2169_s28 + $0x1420] sm:$0xff]  ;;  %v577_v29 = vld [vmem:[%s2169_s28 + $0x1458] sm:$0xff] }
  0x3f   : > { %570 = vst [vmem:[%s2177_s29 + $0x2c8] sm:$0xff] %v569_v25  ;;  %572 = vst [vmem:[%s2177_s29 + $0x2d0] sm:$0xff] %v571_v26  ;;  %v579_v30 = vld [vmem:[%s2169_s28 + $0x1490] sm:$0xff]  ;;  %v581_v31 = vld [vmem:[%s2169_s28 + $0x14c8] sm:$0xff] }
  0x40   : > { %574 = vst [vmem:[%s2177_s29 + $0x2d8] sm:$0xff] %v573_v27  ;;  %576 = vst [vmem:[%s2177_s29 + $0x2e0] sm:$0xff] %v575_v28  ;;  %v583_v32 = vld [vmem:[%s2169_s28 + $0x1500] sm:$0xff]  ;;  %v585_v33 = vld [vmem:[%s2169_s28 + $0x1538] sm:$0xff] }
  0x41   : > { %578 = vst [vmem:[%s2177_s29 + $0x2e8] sm:$0xff] %v577_v29  ;;  %580 = vst [vmem:[%s2177_s29 + $0x2f0] sm:$0xff] %v579_v30  ;;  %v587_v34 = vld [vmem:[%s2169_s28 + $0x1570] sm:$0xff]  ;;  %v589_v35 = vld [vmem:[%s2169_s28 + $0x15a8] sm:$0xff] }
  0x42   : > { %582 = vst [vmem:[%s2177_s29 + $0x2f8] sm:$0xff] %v581_v31  ;;  %584 = vst [vmem:[%s2177_s29 + $0x300] sm:$0xff] %v583_v32 }
  0x43   : > { %586 = vst [vmem:[%s2177_s29 + $0x308] sm:$0xff] %v585_v33  ;;  %588 = vst [vmem:[%s2177_s29 + $0x310] sm:$0xff] %v587_v34 }
  0x44   : > { %590 = vst [vmem:[%s2177_s29 + $0x318] sm:$0xff] %v589_v35 }
  0x45 PF: > { %p1748_p5 = scmp.ge.s32.totalorder %s2105_s17, 1  ;;  %p607_p6 = scmp.lt.s32.totalorder %s2105_s17, 8 }
  0x47   : > { %p608_p7 = pnand %p1748_p5, %p607_p6 }
  0x48   : > { %s614_s30 = sand.u32 (!%p608_p7), 1, %s2097_s15   ;;  %v2107_v39 = vmov (!%p608_p7), 1983009808   ;;  %v673_v41 = vlaneseq (!%p608_p7)  ;;  %v655_v53 = vld [vmem:[%s2608_s0] sm:$0xff] (!%p608_p7)  ;;  %v656_v22 = vld [vmem:[%s2608_s0 + $0x8] sm:$0xff] (!%p608_p7)  ;;  %vm2109_vm0 = vmmov (!%p608_p7), 0  }
  0x49   : > { %611 = sbr.rel (%p608_p7) target bundleno = 526 (0x20e), region = 70  ;;  %v671_v40 = vunpack.c.l.s4 (!%p608_p7), %v2107_v39  ;;  %v669_v60 = vcombine.high (!%p608_p7), %v655_v53, %v655_v53  ;;  %v686_v29 = vcombine.high (!%p608_p7), %v656_v22, %v656_v22  ;;  %p644_p8 = scmp.lt.s32.totalorder (!%p608_p7), %s1743_s18, 6 }
  0x4a   : > { %s2049_s5 = smul.u32 (!%p608_p7), 800, %s614_s30  ;;  %v674_v59 = vshrl.u32 (!%p608_p7), %v673_v41, 7 }
  0x4b   : > { %v672_v58 = vunpack.c.0.s8 (!%p608_p7), %v671_v40 }
  0x4c   : > { %s2376_s6 = scalar_lea.vmem (!%p608_p7), [#allocation2], %s2049_s5 }
  0x4d   : > { %v832_v36 = vld [vmem:[%s2376_s6 + $0x20] sm:$0xff] (!%p608_p7)  ;;  %v833_v49 = vld [vmem:[%s2376_s6 + $0x28] sm:$0xff] (!%p608_p7)  ;;  %v2389_v1 = vsub.s32 (!%p608_p7), %v672_v58, %v674_v59  ;;  %v834_v2 = vld [vmem:[%s2376_s6 + $0x30] sm:$0xff] (!%p608_p7) }
  0x4e   : > { %v840_v37 = vld [vmem:[%s2376_s6 + $0x60] sm:$0xff] (!%p608_p7)  ;;  %v936_v42 = vunpack.c.l.s8.bf16 (!%p608_p7), %v832_v36  ;;  %v937_v43 = vunpack.c.h.s8.bf16 (!%p608_p7), %v832_v36  ;;  %v841_v50 = vld [vmem:[%s2376_s6 + $0x68] sm:$0xff] (!%p608_p7)  ;;  %v938_v54 = vunpack.c.l.s8.bf16 (!%p608_p7), %v833_v49  ;;  %v939_v63 = vunpack.c.h.s8.bf16 (!%p608_p7), %v833_v49  ;;  %v842_v3 = vld [vmem:[%s2376_s6 + $0x70] sm:$0xff] (!%p608_p7) }
  0x4f   : > { %v828_v38 = vld [vmem:[%s2376_s6] sm:$0xff] (!%p608_p7)  ;;  %v952_v44 = vunpack.c.l.s8.bf16 (!%p608_p7), %v840_v37  ;;  %v953_v45 = vunpack.c.h.s8.bf16 (!%p608_p7), %v840_v37  ;;  %v954_v55 = vunpack.c.l.s8.bf16 (!%p608_p7), %v841_v50  ;;  %v829_v56 = vld [vmem:[%s2376_s6 + $0x8] sm:$0xff] (!%p608_p7)  ;;  %v955_v0 = vunpack.c.h.s8.bf16 (!%p608_p7), %v841_v50  ;;  %v830_v10 = vld [vmem:[%s2376_s6 + $0x10] sm:$0xff] (!%p608_p7) }
  0x50   : > { %v836_v46 = vld [vmem:[%s2376_s6 + $0x40] sm:$0xff]  ;;  %v928_v47 = vunpack.c.l.s8.bf16 %v828_v38  ;;  %1755 = vmatprep.subr.bf16.mxu0 %v936_v42  ;;  %v929_v51 = vunpack.c.h.s8.bf16 %v828_v38  ;;  %v837_v57 = vld [vmem:[%s2376_s6 + $0x48] sm:$0xff]  ;;  %v930_v61 = vunpack.c.l.s8.bf16 %v829_v56  ;;  %v2394_v4 = vrot.slane %v655_v53, %v2389_v1  ;;  %v838_v11 = vld [vmem:[%s2376_s6 + $0x50] sm:$0xff]  ;;  %s2617_s18 = smov (!%p644_p8, %s1743_s18), 6 }
  0x51   : > { %v944_v48 = vunpack.c.l.s8.bf16 %v836_v46  ;;  %1777 = vmatprep.subr.bf16.mxu1 %v952_v44  ;;  %v945_v52 = vunpack.c.h.s8.bf16 %v836_v46  ;;  %v946_v62 = vunpack.c.l.s8.bf16 %v837_v57  ;;  %v2397_v5 = vrot.slane %v669_v60, %v2389_v1  ;;  %v835_v20 = vld [vmem:[%s2376_s6 + $0x38] sm:$0xff]  ;;  %v848_v34 = vld [vmem:[%s2376_s6 + $0xa0] sm:$0xff]  ;;  %v857_v53 = vld [vmem:[%s2376_s6 + $0xe8] sm:$0xff]  ;;  %s646_s28 = scalar_lea.vmem %s2610_s2, %s2617_s18  ;;  %s649_s5 = scalar_lea.vmem %s2611_s3, %s2617_s18 }
  0x52   : > { %1756 = vmatpush3.bf16.msra.mxu0 %v928_v47  ;;  %v931_v6 = vunpack.c.h.s8.bf16 %v829_v56  ;;  %v947_v7 = vunpack.c.h.s8.bf16 %v837_v57  ;;  %v940_v8 = vunpack.c.l.s8.bf16 %v834_v2  ;;  %v956_v9 = vunpack.c.l.s8.bf16 %v842_v3  ;;  %v843_v21 = vld [vmem:[%s2376_s6 + $0x78] sm:$0xff]  ;;  %v856_v35 = vld [vmem:[%s2376_s6 + $0xe0] sm:$0xff]  ;;  %v845_v59 = vld [vmem:[%s2376_s6 + $0x88] sm:$0xff] }
  0x53   : > { %1778 = vmatpush3.bf16.msra.mxu1 %v944_v48  ;;  %1757 = vmatprep.subr.bf16.mxu0 %v937_v43  ;;  %v684_v12 = vcombine.high %v2394_v4, %v2394_v4  ;;  %v685_v13 = vcombine.high %v2397_v5, %v2397_v5  ;;  %v932_v16 = vunpack.c.l.s8.bf16 %v830_v10  ;;  %v948_v17 = vunpack.c.l.s8.bf16 %v838_v11  ;;  %v831_v27 = vld [vmem:[%s2376_s6 + $0x18] sm:$0xff]  ;;  %v844_v41 = vld [vmem:[%s2376_s6 + $0x80] sm:$0xff] }
  0x54   : > { %1779 = vmatprep.subr.bf16.mxu1 %v953_v45  ;;  %v941_v18 = vunpack.c.h.s8.bf16 %v834_v2  ;;  %v957_v19 = vunpack.c.h.s8.bf16 %v842_v3  ;;  %v933_v23 = vunpack.c.h.s8.bf16 %v830_v10  ;;  %v949_v24 = vunpack.c.h.s8.bf16 %v838_v11  ;;  %v839_v28 = vld [vmem:[%s2376_s6 + $0x58] sm:$0xff]  ;;  %v852_v43 = vld [vmem:[%s2376_s6 + $0xc0] sm:$0xff]  ;;  %v850_v3 = vld [vmem:[%s2376_s6 + $0xb0] sm:$0xff] }
  0x55   : > { %v804_v14 = vpack.c.bf16 %v684_v12, %v684_v12  ;;  %v806_v15 = vpack.c.bf16 %v685_v13, %v685_v13  ;;  %v942_v25 = vunpack.c.l.s8.bf16 %v835_v20  ;;  %v958_v26 = vunpack.c.l.s8.bf16 %v843_v21  ;;  %v854_v10 = vld [vmem:[%s2376_s6 + $0xd0] sm:$0xff] }
  0x56   : > { %1758 = vmatpush3.bf16.msra.mxu0 %v929_v51  ;;  %v934_v30 = vunpack.c.l.s8.bf16 %v831_v27  ;;  %v950_v31 = vunpack.c.l.s8.bf16 %v839_v28  ;;  %v943_v32 = vunpack.c.h.s8.bf16 %v835_v20  ;;  %v959_v33 = vunpack.c.h.s8.bf16 %v843_v21  ;;  %v847_v21 = vld [vmem:[%s2376_s6 + $0x98] sm:$0xff] }
  0x57   : > { %1780 = vmatpush3.bf16.msra.mxu1 %v945_v52  ;;  %1759 = vmatprep.subr.bf16.mxu0 %v938_v54  ;;  %v2415_v36 = vrot.slane %v656_v22, %v2389_v1  ;;  %v2418_v37 = vrot.slane %v686_v29, %v2389_v1  ;;  %v935_v38 = vunpack.c.h.s8.bf16 %v831_v27  ;;  %v951_v39 = vunpack.c.h.s8.bf16 %v839_v28  ;;  %v849_v52 = vld [vmem:[%s2376_s6 + $0xa8] sm:$0xff]  ;;  %v864_v29 = vld [vmem:[%s2376_s6 + $0x120] sm:$0xff] }
  0x58   : > { %1781 = vmatprep.subr.bf16.mxu1 %v954_v55  ;;  %1160 = vmatprep.mubr.bf16.mxu0 %v804_v14  ;;  %v968_v40 = vunpack.c.l.s8.bf16 %v848_v34  ;;  %v984_v42 = vunpack.c.l.s8.bf16 %v856_v35  ;;  %v803_v46 = vpack.c.bf16 %v2394_v4, %v2394_v4  ;;  %v805_v47 = vpack.c.bf16 %v2397_v5, %v2397_v5  ;;  %v858_v4 = vld [vmem:[%s2376_s6 + $0xf0] sm:$0xff] }
  0x59   : > { %1200 = vmatprep.mubr.bf16.mxu1 %v806_v15  ;;  %v701_v44 = vcombine.high %v2415_v36, %v2415_v36  ;;  %v702_v45 = vcombine.high %v2418_v37, %v2418_v37  ;;  %v960_v48 = vunpack.c.l.s8.bf16 %v844_v41  ;;  %v976_v49 = vunpack.c.l.s8.bf16 %v852_v43  ;;  %v851_v15 = vld [vmem:[%s2376_s6 + $0xb8] sm:$0xff] }
  0x5a   : > { %1760 = vmatpush3.bf16.msra.mxu0 %v930_v61  ;;  %v969_v50 = vunpack.c.h.s8.bf16 %v848_v34  ;;  %v985_v51 = vunpack.c.h.s8.bf16 %v856_v35  ;;  %v961_v56 = vunpack.c.h.s8.bf16 %v844_v41  ;;  %v977_v57 = vunpack.c.h.s8.bf16 %v852_v43  ;;  %v853_v61 = vld [vmem:[%s2376_s6 + $0xc8] sm:$0xff] }
  0x5b   : > { %1782 = vmatpush3.bf16.msra.mxu1 %v946_v62  ;;  %1761 = vmatprep.subr.bf16.mxu0 %v939_v63  ;;  %v808_v54 = vpack.c.bf16 %v701_v44, %v701_v44  ;;  %v810_v55 = vpack.c.bf16 %v702_v45, %v702_v45  ;;  %v970_v58 = vunpack.c.l.s8.bf16 %v849_v52  ;;  %v986_v60 = vunpack.c.l.s8.bf16 %v857_v53 }
  0x5c   : > { %1783 = vmatprep.subr.bf16.mxu1 %v955_v0  ;;  %v962_v62 = vunpack.c.l.s8.bf16 %v845_v59  ;;  %v978_v63 = vunpack.c.l.s8.bf16 %v853_v61  ;;  %v971_v0 = vunpack.c.h.s8.bf16 %v849_v52  ;;  %v987_v2 = vunpack.c.h.s8.bf16 %v857_v53 }
  0x5d   : > { %v963_v5 = vunpack.c.h.s8.bf16 %v845_v59  ;;  %v980_v12 = vunpack.c.l.s8.bf16 %v854_v10  ;;  %v973_v13 = vunpack.c.h.s8.bf16 %v850_v3  ;;  %v989_v14 = vunpack.c.h.s8.bf16 %v858_v4 }
  0x5e   : > { %1762 = vmatpush3.bf16.msra.mxu0 %v931_v6  ;;  %v979_v6 = vunpack.c.h.s8.bf16 %v853_v61  ;;  %v974_v20 = vunpack.c.l.s8.bf16 %v851_v15  ;;  %v975_v27 = vunpack.c.h.s8.bf16 %v851_v15  ;;  %v1000_v35 = vunpack.c.l.s8.bf16 %v864_v29  ;;  %v866_v61 = vld [vmem:[%s2376_s6 + $0x130] sm:$0xff] }
  0x5f   : > { %1784 = vmatpush3.bf16.msra.mxu1 %v947_v7  ;;  %1763 = vmatprep.subr.bf16.mxu0 %v940_v8  ;;  %v972_v7 = vunpack.c.l.s8.bf16 %v850_v3  ;;  %v846_v8 = vld [vmem:[%s2376_s6 + $0x90] sm:$0xff]  ;;  %v807_v43 = vpack.c.bf16 %v2415_v36, %v2415_v36  ;;  %v809_v44 = vpack.c.bf16 %v2418_v37, %v2418_v37 }
  0x60   : > { %1785 = vmatprep.subr.bf16.mxu1 %v956_v9  ;;  %v988_v9 = vunpack.c.l.s8.bf16 %v858_v4  ;;  %v964_v11 = vunpack.c.l.s8.bf16 %v846_v8  ;;  %v862_v3 = vld [vmem:[%s2376_s6 + $0x110] sm:$0xff] }
  0x62   : > { %1764 = vmatpush3.bf16.msra.mxu0 %v932_v16  ;;  %v859_v16 = vld [vmem:[%s2376_s6 + $0xf8] sm:$0xff] }
  0x63   : > { %1786 = vmatpush3.bf16.msra.mxu1 %v948_v17  ;;  %1765 = vmatprep.subr.bf16.mxu0 %v941_v18  ;;  %v657_v17 = vld [vmem:[%s2608_s0 + $0x10] sm:$0xff]  ;;  %v965_v18 = vunpack.c.h.s8.bf16 %v846_v8  ;;  %v990_v22 = vunpack.c.l.s8.bf16 %v859_v16  ;;  %v991_v28 = vunpack.c.h.s8.bf16 %v859_v16  ;;  %v1005_v8 = vunpack.c.h.s8.bf16 %v866_v61  ;;  %v863_v16 = vld [vmem:[%s2376_s6 + $0x118] sm:$0xff] }
  0x64   : > { %1787 = vmatprep.subr.bf16.mxu1 %v957_v19  ;;  %v981_v19 = vunpack.c.h.s8.bf16 %v854_v10  ;;  %v867_v10 = vld [vmem:[%s2376_s6 + $0x138] sm:$0xff] }
  0x65   : > { %v1006_v15 = vunpack.c.l.s8.bf16 %v867_v10 }
  0x66   : > { %1766 = vmatpush3.bf16.msra.mxu0 %v933_v23  ;;  %v855_v23 = vld [vmem:[%s2376_s6 + $0xd8] sm:$0xff] }
  0x67   : > { %1788 = vmatpush3.bf16.msra.mxu1 %v949_v24  ;;  %1767 = vmatprep.subr.bf16.mxu0 %v942_v25  ;;  %v703_v24 = vcombine.high %v657_v17, %v657_v17  ;;  %v966_v25 = vunpack.c.l.s8.bf16 %v847_v21  ;;  %v983_v34 = vunpack.c.h.s8.bf16 %v855_v23 }
  0x68   : > { %1789 = vmatprep.subr.bf16.mxu1 %v958_v26  ;;  %v982_v26 = vunpack.c.l.s8.bf16 %v855_v23 }
  0x6a   : > { %1768 = vmatpush3.bf16.msra.mxu0 %v934_v30  ;;  %v872_v30 = vld [vmem:[%s2376_s6 + $0x160] sm:$0xff] }
  0x6b   : > { %1790 = vmatpush3.bf16.msra.mxu1 %v950_v31  ;;  %1769 = vmatprep.subr.bf16.mxu0 %v943_v32  ;;  %v2448_v31 = vrot.slane %v657_v17, %v2389_v1  ;;  %v2451_v32 = vrot.slane %v703_v24, %v2389_v1  ;;  %v880_v24 = vld [vmem:[%s2376_s6 + $0x1a0] sm:$0xff] }
  0x6c   : > { %1791 = vmatprep.subr.bf16.mxu1 %v959_v33  ;;  %v967_v33 = vunpack.c.h.s8.bf16 %v847_v21 }
  0x6d   : > { %v718_v41 = vcombine.high %v2448_v31, %v2448_v31 }
  0x6e   : > { %1770 = vmatpush3.bf16.msra.mxu0 %v935_v38  ;;  %v860_v38 = vld [vmem:[%s2376_s6 + $0x100] sm:$0xff] }
  0x6f   : > { %1792 = vmatpush3.bf16.msra.mxu1 %v951_v39  ;;  %1799 = vmatprep.subr.bf16.mxu0 %v968_v40  ;;  %v1016_v39 = vunpack.c.l.s8.bf16 %v872_v30  ;;  %v868_v40 = vld [vmem:[%s2376_s6 + $0x140] sm:$0xff]  ;;  %v992_v45 = vunpack.c.l.s8.bf16 %v860_v38  ;;  %v993_v36 = vunpack.c.h.s8.bf16 %v860_v38 }
  0x70   : > { %1821 = vmatprep.subr.bf16.mxu1 %v984_v42  ;;  %v719_v42 = vcombine.high %v2451_v32, %v2451_v32  ;;  %v1009_v37 = vunpack.c.h.s8.bf16 %v868_v40 }
  0x71   : > { %1161 = vmatmul.mubr.bf16.vlgmr.msra.gmra.mrb[0].mxu0 %v803_v46  ;;  %v1008_v46 = vunpack.c.l.s8.bf16 %v868_v40  ;;  %v811_v40 = vpack.c.bf16 %v2448_v31, %v2448_v31 }
  0x72   : > { %1201 = vmatmul.mubr.bf16.vlgmr.msra.gmra.mrb[0].mxu1 %v805_v47  ;;  %1800 = vmatpush3.bf16.msra.mxu0 %v960_v48  ;;  %v1001_v47 = vunpack.c.h.s8.bf16 %v864_v29  ;;  %v1017_v48 = vunpack.c.h.s8.bf16 %v872_v30  ;;  %v814_v52 = vpack.c.bf16 %v719_v42, %v719_v42  ;;  %v1032_v30 = vunpack.c.l.s8.bf16 %v880_v24 }
  0x73   : > { %1822 = vmatpush3.bf16.msra.mxu1 %v976_v49  ;;  %1801 = vmatprep.subr.bf16.mxu0 %v969_v50  ;;  %v865_v49 = vld [vmem:[%s2376_s6 + $0x128] sm:$0xff] }
  0x74   : > { %1823 = vmatprep.subr.bf16.mxu1 %v985_v51  ;;  %1240 = vmatprep.mubr.bf16.mxu0 %v808_v54  ;;  %v873_v50 = vld [vmem:[%s2376_s6 + $0x168] sm:$0xff]  ;;  %v812_v51 = vpack.c.bf16 %v718_v41, %v718_v41  ;;  %v1002_v53 = vunpack.c.l.s8.bf16 %v865_v49  ;;  %v1003_v59 = vunpack.c.h.s8.bf16 %v865_v49  ;;  %v813_v41 = vpack.c.bf16 %v2451_v32, %v2451_v32 }
  0x75   : > { %1280 = vmatprep.mubr.bf16.mxu1 %v810_v55  ;;  %v861_v54 = vld [vmem:[%s2376_s6 + $0x108] sm:$0xff]  ;;  %v1018_v55 = vunpack.c.l.s8.bf16 %v873_v50 }
  0x76   : > { %1802 = vmatpush3.bf16.msra.mxu0 %v961_v56  ;;  %v869_v56 = vld [vmem:[%s2376_s6 + $0x148] sm:$0xff] }
  0x77   : > { %1824 = vmatpush3.bf16.msra.mxu1 %v977_v57  ;;  %1803 = vmatprep.subr.bf16.mxu0 %v970_v58  ;;  %v994_v57 = vunpack.c.l.s8.bf16 %v861_v54  ;;  %v1010_v58 = vunpack.c.l.s8.bf16 %v869_v56 }
  0x78   : > { %1825 = vmatprep.subr.bf16.mxu1 %v986_v60  ;;  %v1019_v60 = vunpack.c.h.s8.bf16 %v873_v50 }
  0x7a   : > { %1804 = vmatpush3.bf16.msra.mxu0 %v962_v62  ;;  %v874_v62 = vld [vmem:[%s2376_s6 + $0x170] sm:$0xff] }
  0x7b   : > { %1826 = vmatpush3.bf16.msra.mxu1 %v978_v63  ;;  %1805 = vmatprep.subr.bf16.mxu0 %v971_v0  ;;  %v995_v63 = vunpack.c.h.s8.bf16 %v861_v54  ;;  %v1011_v0 = vunpack.c.h.s8.bf16 %v869_v56  ;;  %v1020_v4 = vunpack.c.l.s8.bf16 %v874_v62  ;;  %v882_v56 = vld [vmem:[%s2376_s6 + $0x1b0] sm:$0xff] }
  0x7c   : > { %1827 = vmatprep.subr.bf16.mxu1 %v987_v2  ;;  %v1004_v2 = vunpack.c.l.s8.bf16 %v866_v61  ;;  %v878_v61 = vld [vmem:[%s2376_s6 + $0x190] sm:$0xff] }
  0x7e   : > { %1806 = vmatpush3.bf16.msra.mxu0 %v963_v5  ;;  %v870_v5 = vld [vmem:[%s2376_s6 + $0x150] sm:$0xff] }
  0x7f   : > { %1828 = vmatpush3.bf16.msra.mxu1 %v979_v6  ;;  %1807 = vmatprep.subr.bf16.mxu0 %v972_v7  ;;  %v996_v6 = vunpack.c.l.s8.bf16 %v862_v3  ;;  %v1012_v7 = vunpack.c.l.s8.bf16 %v870_v5 }
  0x80   : > { %1829 = vmatprep.subr.bf16.mxu1 %v988_v9  ;;  %v1021_v9 = vunpack.c.h.s8.bf16 %v874_v62 }
  0x82   : > { %1808 = vmatpush3.bf16.msra.mxu0 %v964_v11  ;;  %v875_v11 = vld [vmem:[%s2376_s6 + $0x178] sm:$0xff] }
  0x83   : > { %1830 = vmatpush3.bf16.msra.mxu1 %v980_v12  ;;  %1809 = vmatprep.subr.bf16.mxu0 %v973_v13  ;;  %v658_v12 = vld [vmem:[%s2608_s0 + $0x18] sm:$0xff]  ;;  %v997_v13 = vunpack.c.h.s8.bf16 %v862_v3  ;;  %v1022_v17 = vunpack.c.l.s8.bf16 %v875_v11  ;;  %v1023_v23 = vunpack.c.h.s8.bf16 %v875_v11  ;;  %v1037_v3 = vunpack.c.h.s8.bf16 %v882_v56 }
  0x84   : > { %1831 = vmatprep.subr.bf16.mxu1 %v989_v14  ;;  %v1013_v14 = vunpack.c.h.s8.bf16 %v870_v5  ;;  %v883_v5 = vld [vmem:[%s2376_s6 + $0x1b8] sm:$0xff] }
  0x85   : > { %v879_v11 = vld [vmem:[%s2376_s6 + $0x198] sm:$0xff] }
  0x86   : > { %1810 = vmatpush3.bf16.msra.mxu0 %v965_v18  ;;  %v871_v18 = vld [vmem:[%s2376_s6 + $0x158] sm:$0xff] }
  0x87   : > { %1832 = vmatpush3.bf16.msra.mxu1 %v981_v19  ;;  %1811 = vmatprep.subr.bf16.mxu0 %v974_v20  ;;  %v720_v19 = vcombine.high %v658_v12, %v658_v12  ;;  %v998_v20 = vunpack.c.l.s8.bf16 %v863_v16  ;;  %v1014_v21 = vunpack.c.l.s8.bf16 %v871_v18  ;;  %v1015_v29 = vunpack.c.h.s8.bf16 %v871_v18 }
  0x88   : > { %1833 = vmatprep.subr.bf16.mxu1 %v990_v22  ;;  %v1007_v22 = vunpack.c.h.s8.bf16 %v867_v10  ;;  %v1038_v10 = vunpack.c.l.s8.bf16 %v883_v5 }
  0x8a   : > { %1812 = vmatpush3.bf16.msra.mxu0 %v966_v25  ;;  %v888_v25 = vld [vmem:[%s2376_s6 + $0x1e0] sm:$0xff] }
  0x8b   : > { %1834 = vmatpush3.bf16.msra.mxu1 %v982_v26  ;;  %1813 = vmatprep.subr.bf16.mxu0 %v975_v27  ;;  %v2481_v26 = vrot.slane %v658_v12, %v2389_v1  ;;  %v2484_v27 = vrot.slane %v720_v19, %v2389_v1  ;;  %v896_v19 = vld [vmem:[%s2376_s6 + $0x220] sm:$0xff] }
  0x8c   : > { %1835 = vmatprep.subr.bf16.mxu1 %v991_v28  ;;  %v999_v28 = vunpack.c.h.s8.bf16 %v863_v16 }
  0x8d   : > { %v735_v38 = vcombine.high %v2481_v26, %v2481_v26 }
  0x8e   : > { %1814 = vmatpush3.bf16.msra.mxu0 %v967_v33  ;;  %v876_v33 = vld [vmem:[%s2376_s6 + $0x180] sm:$0xff] }
  0x8f   : > { %1836 = vmatpush3.bf16.msra.mxu1 %v983_v34  ;;  %1843 = vmatprep.subr.bf16.mxu0 %v1000_v35  ;;  %v1048_v34 = vunpack.c.l.s8.bf16 %v888_v25  ;;  %v884_v35 = vld [vmem:[%s2376_s6 + $0x1c0] sm:$0xff]  ;;  %v1024_v42 = vunpack.c.l.s8.bf16 %v876_v33  ;;  %v1025_v31 = vunpack.c.h.s8.bf16 %v876_v33 }
  0x90   : > { %1865 = vmatprep.subr.bf16.mxu1 %v1016_v39  ;;  %v736_v39 = vcombine.high %v2484_v27, %v2484_v27  ;;  %v1041_v32 = vunpack.c.h.s8.bf16 %v884_v35 }
  0x91   : > { %1241 = vmatmul.mubr.bf16.vlgmr.msra.gmra.mrb[4].mxu0 %v807_v43  ;;  %v1040_v43 = vunpack.c.l.s8.bf16 %v884_v35  ;;  %v815_v35 = vpack.c.bf16 %v2481_v26, %v2481_v26 }
  0x92   : > { %1281 = vmatmul.mubr.bf16.vlgmr.msra.gmra.mrb[4].mxu1 %v809_v44  ;;  %1844 = vmatpush3.bf16.msra.mxu0 %v992_v45  ;;  %v1033_v44 = vunpack.c.h.s8.bf16 %v880_v24  ;;  %v1049_v45 = vunpack.c.h.s8.bf16 %v888_v25  ;;  %v818_v49 = vpack.c.bf16 %v736_v39, %v736_v39  ;;  %v1064_v25 = vunpack.c.l.s8.bf16 %v896_v19 }
  0x93   : > { %1866 = vmatpush3.bf16.msra.mxu1 %v1008_v46  ;;  %1845 = vmatprep.subr.bf16.mxu0 %v1001_v47  ;;  %v881_v46 = vld [vmem:[%s2376_s6 + $0x1a8] sm:$0xff] }
  0x94   : > { %1867 = vmatprep.subr.bf16.mxu1 %v1017_v48  ;;  %1320 = vmatprep.mubr.bf16.mxu0 %v812_v51  ;;  %v889_v47 = vld [vmem:[%s2376_s6 + $0x1e8] sm:$0xff]  ;;  %v816_v48 = vpack.c.bf16 %v735_v38, %v735_v38  ;;  %v1034_v50 = vunpack.c.l.s8.bf16 %v881_v46  ;;  %v1035_v54 = vunpack.c.h.s8.bf16 %v881_v46  ;;  %v817_v38 = vpack.c.bf16 %v2484_v27, %v2484_v27 }
  0x95   : > { %1360 = vmatprep.mubr.bf16.mxu1 %v814_v52  ;;  %v877_v51 = vld [vmem:[%s2376_s6 + $0x188] sm:$0xff]  ;;  %v1050_v52 = vunpack.c.l.s8.bf16 %v889_v47 }
  0x96   : > { %1846 = vmatpush3.bf16.msra.mxu0 %v993_v36  ;;  %v885_v36 = vld [vmem:[%s2376_s6 + $0x1c8] sm:$0xff] }
  0x97   : > { %1868 = vmatpush3.bf16.msra.mxu1 %v1009_v37  ;;  %1847 = vmatprep.subr.bf16.mxu0 %v1002_v53  ;;  %v1026_v37 = vunpack.c.l.s8.bf16 %v877_v51  ;;  %v1042_v53 = vunpack.c.l.s8.bf16 %v885_v36 }
  0x98   : > { %1869 = vmatprep.subr.bf16.mxu1 %v1018_v55  ;;  %v1051_v55 = vunpack.c.h.s8.bf16 %v889_v47 }
  0x9a   : > { %1848 = vmatpush3.bf16.msra.mxu0 %v994_v57  ;;  %v890_v57 = vld [vmem:[%s2376_s6 + $0x1f0] sm:$0xff] }
  0x9b   : > { %1870 = vmatpush3.bf16.msra.mxu1 %v1010_v58  ;;  %1849 = vmatprep.subr.bf16.mxu0 %v1003_v59  ;;  %v1027_v58 = vunpack.c.h.s8.bf16 %v877_v51  ;;  %v1043_v59 = vunpack.c.h.s8.bf16 %v885_v36  ;;  %v1052_v62 = vunpack.c.l.s8.bf16 %v890_v57  ;;  %v898_v36 = vld [vmem:[%s2376_s6 + $0x230] sm:$0xff] }
  0x9c   : > { %1871 = vmatprep.subr.bf16.mxu1 %v1019_v60  ;;  %v1036_v60 = vunpack.c.l.s8.bf16 %v882_v56  ;;  %v894_v56 = vld [vmem:[%s2376_s6 + $0x210] sm:$0xff] }
  0x9e   : > { %1850 = vmatpush3.bf16.msra.mxu0 %v995_v63  ;;  %v886_v63 = vld [vmem:[%s2376_s6 + $0x1d0] sm:$0xff] }
  0x9f   : > { %1872 = vmatpush3.bf16.msra.mxu1 %v1011_v0  ;;  %1851 = vmatprep.subr.bf16.mxu0 %v1004_v2  ;;  %v1028_v0 = vunpack.c.l.s8.bf16 %v878_v61  ;;  %v1044_v2 = vunpack.c.l.s8.bf16 %v886_v63 }
  0xa0   : > { %1873 = vmatprep.subr.bf16.mxu1 %v1020_v4  ;;  %v1053_v4 = vunpack.c.h.s8.bf16 %v890_v57 }
  0xa2   : > { %1852 = vmatpush3.bf16.msra.mxu0 %v996_v6  ;;  %v891_v6 = vld [vmem:[%s2376_s6 + $0x1f8] sm:$0xff] }
  0xa3   : > { %1874 = vmatpush3.bf16.msra.mxu1 %v1012_v7  ;;  %1853 = vmatprep.subr.bf16.mxu0 %v1005_v8  ;;  %v659_v7 = vld [vmem:[%s2608_s0 + $0x20] sm:$0xff]  ;;  %v1029_v8 = vunpack.c.h.s8.bf16 %v878_v61  ;;  %v1054_v12 = vunpack.c.l.s8.bf16 %v891_v6  ;;  %v1055_v18 = vunpack.c.h.s8.bf16 %v891_v6  ;;  %v1069_v61 = vunpack.c.h.s8.bf16 %v898_v36  ;;  %v895_v6 = vld [vmem:[%s2376_s6 + $0x218] sm:$0xff] }
  0xa4   : > { %1875 = vmatprep.subr.bf16.mxu1 %v1021_v9  ;;  %v1045_v9 = vunpack.c.h.s8.bf16 %v886_v63  ;;  %v899_v63 = vld [vmem:[%s2376_s6 + $0x238] sm:$0xff] }
  0xa6   : > { %1854 = vmatpush3.bf16.msra.mxu0 %v997_v13  ;;  %v887_v13 = vld [vmem:[%s2376_s6 + $0x1d8] sm:$0xff] }
  0xa7   : > { %1876 = vmatpush3.bf16.msra.mxu1 %v1013_v14  ;;  %1855 = vmatprep.subr.bf16.mxu0 %v1006_v15  ;;  %v737_v14 = vcombine.high %v659_v7, %v659_v7  ;;  %v1030_v15 = vunpack.c.l.s8.bf16 %v879_v11  ;;  %v1046_v16 = vunpack.c.l.s8.bf16 %v887_v13  ;;  %v1047_v24 = vunpack.c.h.s8.bf16 %v887_v13 }
  0xa8   : > { %1877 = vmatprep.subr.bf16.mxu1 %v1022_v17  ;;  %v1039_v17 = vunpack.c.h.s8.bf16 %v883_v5  ;;  %v1070_v5 = vunpack.c.l.s8.bf16 %v899_v63 }
  0xaa   : > { %1856 = vmatpush3.bf16.msra.mxu0 %v998_v20  ;;  %v904_v20 = vld [vmem:[%s2376_s6 + $0x260] sm:$0xff] }
  0xab   : > { %1878 = vmatpush3.bf16.msra.mxu1 %v1014_v21  ;;  %1857 = vmatprep.subr.bf16.mxu0 %v1007_v22  ;;  %v2514_v21 = vrot.slane %v659_v7, %v2389_v1  ;;  %v2517_v22 = vrot.slane %v737_v14, %v2389_v1  ;;  %v912_v14 = vld [vmem:[%s2376_s6 + $0x2a0] sm:$0xff] }
  0xac   : > { %1879 = vmatprep.subr.bf16.mxu1 %v1023_v23  ;;  %v1031_v23 = vunpack.c.h.s8.bf16 %v879_v11 }
  0xad   : > { %v752_v33 = vcombine.high %v2514_v21, %v2514_v21 }
  0xae   : > { %1858 = vmatpush3.bf16.msra.mxu0 %v999_v28  ;;  %v892_v28 = vld [vmem:[%s2376_s6 + $0x200] sm:$0xff] }
  0xaf   : > { %1880 = vmatpush3.bf16.msra.mxu1 %v1015_v29  ;;  %1887 = vmatprep.subr.bf16.mxu0 %v1032_v30  ;;  %v1080_v29 = vunpack.c.l.s8.bf16 %v904_v20  ;;  %v900_v30 = vld [vmem:[%s2376_s6 + $0x240] sm:$0xff]  ;;  %v1056_v39 = vunpack.c.l.s8.bf16 %v892_v28  ;;  %v1057_v26 = vunpack.c.h.s8.bf16 %v892_v28 }
  0xb0   : > { %1909 = vmatprep.subr.bf16.mxu1 %v1048_v34  ;;  %v753_v34 = vcombine.high %v2517_v22, %v2517_v22  ;;  %v1073_v27 = vunpack.c.h.s8.bf16 %v900_v30 }
  0xb1   : > { %1321 = vmatmul.mubr.bf16.vlgmr.msra.gmra.mrb[8].mxu0 %v811_v40  ;;  %v1072_v40 = vunpack.c.l.s8.bf16 %v900_v30  ;;  %v821_v30 = vpack.c.bf16 %v2517_v22, %v2517_v22 }
  0xb2   : > { %1361 = vmatmul.mubr.bf16.vlgmr.msra.gmra.mrb[8].mxu1 %v813_v41  ;;  %1888 = vmatpush3.bf16.msra.mxu0 %v1024_v42  ;;  %v1065_v41 = vunpack.c.h.s8.bf16 %v896_v19  ;;  %v1081_v42 = vunpack.c.h.s8.bf16 %v904_v20  ;;  %v822_v46 = vpack.c.bf16 %v753_v34, %v753_v34  ;;  %v1096_v20 = vunpack.c.l.s8.bf16 %v912_v14 }
  0xb3   : > { %1910 = vmatpush3.bf16.msra.mxu1 %v1040_v43  ;;  %1889 = vmatprep.subr.bf16.mxu0 %v1033_v44  ;;  %v897_v43 = vld [vmem:[%s2376_s6 + $0x228] sm:$0xff] }
  0xb4   : > { %1911 = vmatprep.subr.bf16.mxu1 %v1049_v45  ;;  %1400 = vmatprep.mubr.bf16.mxu0 %v816_v48  ;;  %v905_v44 = vld [vmem:[%s2376_s6 + $0x268] sm:$0xff]  ;;  %v820_v45 = vpack.c.bf16 %v752_v33, %v752_v33  ;;  %v1066_v47 = vunpack.c.l.s8.bf16 %v897_v43  ;;  %v1067_v51 = vunpack.c.h.s8.bf16 %v897_v43 }
  0xb5   : > { %1440 = vmatprep.mubr.bf16.mxu1 %v818_v49  ;;  %v893_v48 = vld [vmem:[%s2376_s6 + $0x208] sm:$0xff]  ;;  %v1082_v49 = vunpack.c.l.s8.bf16 %v905_v44 }
  0xb6   : > { %1890 = vmatpush3.bf16.msra.mxu0 %v1025_v31  ;;  %v901_v31 = vld [vmem:[%s2376_s6 + $0x248] sm:$0xff] }
  0xb7   : > { %1912 = vmatpush3.bf16.msra.mxu1 %v1041_v32  ;;  %1891 = vmatprep.subr.bf16.mxu0 %v1034_v50  ;;  %v1058_v32 = vunpack.c.l.s8.bf16 %v893_v48  ;;  %v1074_v50 = vunpack.c.l.s8.bf16 %v901_v31 }
  0xb8   : > { %1913 = vmatprep.subr.bf16.mxu1 %v1050_v52  ;;  %v1083_v52 = vunpack.c.h.s8.bf16 %v905_v44  ;;  %v909_v44 = vld [vmem:[%s2376_s6 + $0x288] sm:$0xff] }
  0xba   : > { %1892 = vmatpush3.bf16.msra.mxu0 %v1026_v37  ;;  %v906_v37 = vld [vmem:[%s2376_s6 + $0x270] sm:$0xff] }
  0xbb   : > { %1914 = vmatpush3.bf16.msra.mxu1 %v1042_v53  ;;  %1893 = vmatprep.subr.bf16.mxu0 %v1035_v54  ;;  %v1059_v53 = vunpack.c.h.s8.bf16 %v893_v48  ;;  %v1075_v54 = vunpack.c.h.s8.bf16 %v901_v31  ;;  %v1084_v57 = vunpack.c.l.s8.bf16 %v906_v37  ;;  %v922_v31 = vld [vmem:[%s2376_s6 + $0x2f0] sm:$0xff] }
  0xbc   : > { %1915 = vmatprep.subr.bf16.mxu1 %v1051_v55  ;;  %v1068_v55 = vunpack.c.l.s8.bf16 %v898_v36  ;;  %v1116_v36 = vunpack.c.l.s8.bf16 %v922_v31 }
  0xbe   : > { %1894 = vmatpush3.bf16.msra.mxu0 %v1027_v58  ;;  %v902_v58 = vld [vmem:[%s2376_s6 + $0x250] sm:$0xff] }
  0xbf   : > { %1916 = vmatpush3.bf16.msra.mxu1 %v1043_v59  ;;  %1895 = vmatprep.subr.bf16.mxu0 %v1036_v60  ;;  %v1060_v59 = vunpack.c.l.s8.bf16 %v894_v56  ;;  %v1076_v60 = vunpack.c.l.s8.bf16 %v902_v58 }
  0xc0   : > { %1917 = vmatprep.subr.bf16.mxu1 %v1052_v62  ;;  %v1085_v62 = vunpack.c.h.s8.bf16 %v906_v37  ;;  %v918_v37 = vld [vmem:[%s2376_s6 + $0x2d0] sm:$0xff] }
  0xc2   : > { %1896 = vmatpush3.bf16.msra.mxu0 %v1028_v0  ;;  %v907_v0 = vld [vmem:[%s2376_s6 + $0x278] sm:$0xff] }
  0xc3   : > { %1918 = vmatpush3.bf16.msra.mxu1 %v1044_v2  ;;  %1897 = vmatprep.subr.bf16.mxu0 %v1037_v3  ;;  %v660_v2 = vld [vmem:[%s2608_s0 + $0x28] sm:$0xff]  ;;  %v1061_v3 = vunpack.c.h.s8.bf16 %v894_v56  ;;  %v1086_v7 = vunpack.c.l.s8.bf16 %v907_v0  ;;  %v1087_v13 = vunpack.c.h.s8.bf16 %v907_v0  ;;  %v1117_v56 = vunpack.c.h.s8.bf16 %v922_v31  ;;  %v919_v0 = vld [vmem:[%s2376_s6 + $0x2d8] sm:$0xff] }
  0xc4   : > { %1919 = vmatprep.subr.bf16.mxu1 %v1053_v4  ;;  %v1077_v4 = vunpack.c.h.s8.bf16 %v902_v58  ;;  %v923_v58 = vld [vmem:[%s2376_s6 + $0x2f8] sm:$0xff] }
  0xc6   : > { %1898 = vmatpush3.bf16.msra.mxu0 %v1029_v8  ;;  %v903_v8 = vld [vmem:[%s2376_s6 + $0x258] sm:$0xff] }
  0xc7   : > { %1920 = vmatpush3.bf16.msra.mxu1 %v1045_v9  ;;  %1899 = vmatprep.subr.bf16.mxu0 %v1038_v10  ;;  %v754_v9 = vcombine.high %v660_v2, %v660_v2  ;;  %v1062_v10 = vunpack.c.l.s8.bf16 %v895_v6  ;;  %v1078_v11 = vunpack.c.l.s8.bf16 %v903_v8  ;;  %v1079_v19 = vunpack.c.h.s8.bf16 %v903_v8  ;;  %v924_v8 = vld [vmem:[%s2376_s6 + $0x300] sm:$0xff] }
  0xc8   : > { %1921 = vmatprep.subr.bf16.mxu1 %v1054_v12  ;;  %v1071_v12 = vunpack.c.h.s8.bf16 %v899_v63  ;;  %v1118_v63 = vunpack.c.l.s8.bf16 %v923_v58 }
  0xca   : > { %1900 = vmatpush3.bf16.msra.mxu0 %v1030_v15  ;;  %v920_v15 = vld [vmem:[%s2376_s6 + $0x2e0] sm:$0xff] }
  0xcb   : > { %1922 = vmatpush3.bf16.msra.mxu1 %v1046_v16  ;;  %1901 = vmatprep.subr.bf16.mxu0 %v1039_v17  ;;  %v2547_v16 = vrot.slane %v660_v2, %v2389_v1  ;;  %v2550_v17 = vrot.slane %v754_v9, %v2389_v1  ;;  %v819_v1 = vpack.c.bf16 %v2514_v21, %v2514_v21 }
  0xcc   : > { %1923 = vmatprep.subr.bf16.mxu1 %v1055_v18  ;;  %v1063_v18 = vunpack.c.h.s8.bf16 %v895_v6 }
  0xcd   : > { %v769_v28 = vcombine.high %v2547_v16, %v2547_v16  ;;  %v823_v9 = vpack.c.bf16 %v2547_v16, %v2547_v16 }
  0xce   : > { %1902 = vmatpush3.bf16.msra.mxu0 %v1031_v23  ;;  %v908_v23 = vld [vmem:[%s2376_s6 + $0x280] sm:$0xff] }
  0xcf   : > { %1924 = vmatpush3.bf16.msra.mxu1 %v1047_v24  ;;  %1931 = vmatprep.subr.bf16.mxu0 %v1064_v25  ;;  %v1112_v24 = vunpack.c.l.s8.bf16 %v920_v15  ;;  %v916_v25 = vld [vmem:[%s2376_s6 + $0x2c0] sm:$0xff]  ;;  %v1088_v33 = vunpack.c.l.s8.bf16 %v908_v23  ;;  %v1089_v21 = vunpack.c.h.s8.bf16 %v908_v23 }
  0xd0   : > { %1953 = vmatprep.subr.bf16.mxu1 %v1080_v29  ;;  %v770_v29 = vcombine.high %v2550_v17, %v2550_v17  ;;  %v1104_v34 = vunpack.c.l.s8.bf16 %v916_v25  ;;  %v1105_v22 = vunpack.c.h.s8.bf16 %v916_v25  ;;  %v1750_v25 = vld.sshfl [vmem:[%s2608_s0 + $0x30] sm:$0x3 pattern:$0x76325410] }
  0xd1   : > { %1401 = vmatmul.mubr.bf16.vlgmr.msra.gmra.mrb[12].mxu0 %v815_v35  ;;  %v1097_v35 = vunpack.c.h.s8.bf16 %v912_v14  ;;  %v925_v14 = vld [vmem:[%s2376_s6 + $0x308] sm:$0xff] }
  0xd2   : > { %1441 = vmatmul.mubr.bf16.vlgmr.msra.gmra.mrb[12].mxu1 %v817_v38  ;;  %1932 = vmatpush3.bf16.msra.mxu0 %v1056_v39  ;;  %v1113_v38 = vunpack.c.h.s8.bf16 %v920_v15  ;;  %v913_v39 = vld [vmem:[%s2376_s6 + $0x2a8] sm:$0xff]  ;;  %v1122_v15 = vunpack.c.l.s8.bf16 %v925_v14  ;;  %v1123_v16 = vunpack.c.h.s8.bf16 %v925_v14 }
  0xd3   : > { %1954 = vmatpush3.bf16.msra.mxu1 %v1072_v40  ;;  %1933 = vmatprep.subr.bf16.mxu0 %v1065_v41  ;;  %v921_v40 = vld [vmem:[%s2376_s6 + $0x2e8] sm:$0xff]  ;;  %v824_v41 = vpack.c.bf16 %v769_v28, %v769_v28  ;;  %v1098_v43 = vunpack.c.l.s8.bf16 %v913_v39  ;;  %v827_v28 = vpack.c.bf16 %v1750_v25, %v1750_v25 }
  0xd4   : > { %1955 = vmatprep.subr.bf16.mxu1 %v1081_v42  ;;  %1480 = vmatprep.mubr.bf16.mxu0 %v820_v45  ;;  %v826_v42 = vpack.c.bf16 %v770_v29, %v770_v29  ;;  %v1114_v45 = vunpack.c.l.s8.bf16 %v921_v40  ;;  %v1115_v48 = vunpack.c.h.s8.bf16 %v921_v40 }
  0xd5   : > { %1520 = vmatprep.mubr.bf16.mxu1 %v822_v46  ;;  %v917_v46 = vld [vmem:[%s2376_s6 + $0x2c8] sm:$0xff] }
  0xd6   : > { %1934 = vmatpush3.bf16.msra.mxu0 %v1057_v26  ;;  %v1090_v26 = vunpack.c.l.s8.bf16 %v909_v44 }
  0xd7   : > { %1956 = vmatpush3.bf16.msra.mxu1 %v1073_v27  ;;  %1935 = vmatprep.subr.bf16.mxu0 %v1066_v47  ;;  %v1106_v27 = vunpack.c.l.s8.bf16 %v917_v46  ;;  %v1099_v47 = vunpack.c.h.s8.bf16 %v913_v39 }
  0xd8   : > { %1957 = vmatprep.subr.bf16.mxu1 %v1082_v49  ;;  %v914_v49 = vld [vmem:[%s2376_s6 + $0x2b0] sm:$0xff] }
  0xda   : > { %1936 = vmatpush3.bf16.msra.mxu0 %v1058_v32  ;;  %v1091_v32 = vunpack.c.h.s8.bf16 %v909_v44 }
  0xdb   : > { %1958 = vmatpush3.bf16.msra.mxu1 %v1074_v50  ;;  %1937 = vmatprep.subr.bf16.mxu0 %v1067_v51  ;;  %v1107_v50 = vunpack.c.h.s8.bf16 %v917_v46  ;;  %v1100_v51 = vunpack.c.l.s8.bf16 %v914_v49 }
  0xdc   : > { %1959 = vmatprep.subr.bf16.mxu1 %v1083_v52  ;;  %v910_v52 = vld [vmem:[%s2376_s6 + $0x290] sm:$0xff] }
  0xde   : > { %1938 = vmatpush3.bf16.msra.mxu0 %v1059_v53  ;;  %v1092_v53 = vunpack.c.l.s8.bf16 %v910_v52 }
  0xdf   : > { %1960 = vmatpush3.bf16.msra.mxu1 %v1075_v54  ;;  %1939 = vmatprep.subr.bf16.mxu0 %v1068_v55  ;;  %v1108_v54 = vunpack.c.l.s8.bf16 %v918_v37  ;;  %v1101_v55 = vunpack.c.h.s8.bf16 %v914_v49 }
  0xe0   : > { %1961 = vmatprep.subr.bf16.mxu1 %v1084_v57  ;;  %v915_v57 = vld [vmem:[%s2376_s6 + $0x2b8] sm:$0xff] }
  0xe2   : > { %1940 = vmatpush3.bf16.msra.mxu0 %v1060_v59  ;;  %v1093_v59 = vunpack.c.h.s8.bf16 %v910_v52 }
  0xe3   : > { %1962 = vmatpush3.bf16.msra.mxu1 %v1076_v60  ;;  %1941 = vmatprep.subr.bf16.mxu0 %v1069_v61  ;;  %v1109_v60 = vunpack.c.h.s8.bf16 %v918_v37  ;;  %v1102_v61 = vunpack.c.l.s8.bf16 %v915_v57 }
  0xe4   : > { %1963 = vmatprep.subr.bf16.mxu1 %v1085_v62  ;;  %v911_v62 = vld [vmem:[%s2376_s6 + $0x298] sm:$0xff] }
  0xe5   : > { %v1094_v2 = vunpack.c.l.s8.bf16 %v911_v62  ;;  %v1095_v6 = vunpack.c.h.s8.bf16 %v911_v62 }
  0xe6   : > { %1942 = vmatpush3.bf16.msra.mxu0 %v1061_v3  ;;  %v1110_v3 = vunpack.c.l.s8.bf16 %v919_v0 }
  0xe7   : > { %1964 = vmatpush3.bf16.msra.mxu1 %v1077_v4  ;;  %1943 = vmatprep.subr.bf16.mxu0 %v1070_v5  ;;  %v1103_v4 = vunpack.c.h.s8.bf16 %v915_v57  ;;  %v1119_v5 = vunpack.c.h.s8.bf16 %v923_v58 }
  0xe8   : > { %1965 = vmatprep.subr.bf16.mxu1 %v1086_v7  ;;  %v1111_v7 = vunpack.c.h.s8.bf16 %v919_v0 }
  0xea   : > { %1944 = vmatpush3.bf16.msra.mxu0 %v1062_v10  ;;  %v825_v10 = vpack.c.bf16 %v2550_v17, %v2550_v17  ;;  %v926_v17 = vld [vmem:[%s2376_s6 + $0x310] sm:$0xff] }
  0xeb   : > { %1966 = vmatpush3.bf16.msra.mxu1 %v1078_v11  ;;  %1945 = vmatprep.subr.bf16.mxu0 %v1071_v12  ;;  %v1120_v11 = vunpack.c.l.s8.bf16 %v924_v8  ;;  %v2108_v12 = vmov 0.0  }
  0xec   : > { %1967 = vmatprep.subr.bf16.mxu1 %v1087_v13  ;;  %v1121_v13 = vunpack.c.h.s8.bf16 %v924_v8 }
  0xee   : > { %1946 = vmatpush3.bf16.msra.mxu0 %v1063_v18  ;;  %v1124_v18 = vunpack.c.l.s8.bf16 %v926_v17 }
  0xef   : > { %1968 = vmatpush3.bf16.msra.mxu1 %v1079_v19  ;;  %1975 = vmatprep.subr.bf16.mxu0 %v1096_v20  ;;  %v1125_v19 = vunpack.c.h.s8.bf16 %v926_v17  ;;  %v927_v20 = vld [vmem:[%s2376_s6 + $0x318] sm:$0xff]  ;;  %s1749_s6 = sshll.u32 %s2617_s18, 1 }
  0xf0   : > { %1997 = vmatprep.subr.bf16.mxu1 %v1112_v24  ;;  %v1126_v23 = vunpack.c.l.s8.bf16 %v927_v20  ;;  %v1127_v24 = vunpack.c.h.s8.bf16 %v927_v20  ;;  %s653_s8 = scalar_lea.vmem %s2612_s4, %s1749_s6 }
  0xf1   : > { %1481 = vmatmul.mubr.bf16.vlgmr.msra.gmra.mrb[16].mxu0 %v819_v1 }
  0xf2   : > { %1521 = vmatmul.mubr.bf16.vlgmr.msra.gmra.mrb[16].mxu1 %v821_v30  ;;  %1976 = vmatpush3.bf16.msra.mxu0 %v1088_v33 }
  0xf3   : > { %1998 = vmatpush3.bf16.msra.mxu1 %v1104_v34  ;;  %1977 = vmatprep.subr.bf16.mxu0 %v1097_v35 }
  0xf4   : > { %1999 = vmatprep.subr.bf16.mxu1 %v1113_v38  ;;  %1560 = vmatprep.mubr.bf16.mxu0 %v824_v41 }
  0xf5   : > { %1600 = vmatprep.mubr.bf16.mxu1 %v826_v42 }
  0xf6   : > { %1978 = vmatpush3.bf16.msra.mxu0 %v1089_v21 }
  0xf7   : > { %2000 = vmatpush3.bf16.msra.mxu1 %v1105_v22  ;;  %1979 = vmatprep.subr.bf16.mxu0 %v1098_v43 }
  0xf8   : > { %2001 = vmatprep.subr.bf16.mxu1 %v1114_v45 }
  0xfa   : > { %1980 = vmatpush3.bf16.msra.mxu0 %v1090_v26 }
  0xfb   : > { %2002 = vmatpush3.bf16.msra.mxu1 %v1106_v27  ;;  %1981 = vmatprep.subr.bf16.mxu0 %v1099_v47 }
  0xfc   : > { %2003 = vmatprep.subr.bf16.mxu1 %v1115_v48 }
  0xfe   : > { %1982 = vmatpush3.bf16.msra.mxu0 %v1091_v32 }
  0xff   : > { %2004 = vmatpush3.bf16.msra.mxu1 %v1107_v50  ;;  %1983 = vmatprep.subr.bf16.mxu0 %v1100_v51 }
 0x100   : > { %2005 = vmatprep.subr.bf16.mxu1 %v1116_v36 }
 0x102   : > { %1984 = vmatpush3.bf16.msra.mxu0 %v1092_v53 }
 0x103   : > { %2006 = vmatpush3.bf16.msra.mxu1 %v1108_v54  ;;  %1985 = vmatprep.subr.bf16.mxu0 %v1101_v55 }
 0x104   : > { %2007 = vmatprep.subr.bf16.mxu1 %v1117_v56 }
 0x106   : > { %1986 = vmatpush3.bf16.msra.mxu0 %v1093_v59 }
 0x107   : > { %2008 = vmatpush3.bf16.msra.mxu1 %v1109_v60  ;;  %1987 = vmatprep.subr.bf16.mxu0 %v1102_v61 }
 0x108   : > { %2009 = vmatprep.subr.bf16.mxu1 %v1118_v63 }
 0x10a   : > { %1988 = vmatpush3.bf16.msra.mxu0 %v1094_v2 }
 0x10b   : > { %2010 = vmatpush3.bf16.msra.mxu1 %v1110_v3  ;;  %1989 = vmatprep.subr.bf16.mxu0 %v1103_v4 }
 0x10c   : > { %2011 = vmatprep.subr.bf16.mxu1 %v1119_v5 }
 0x10e   : > { %1990 = vmatpush3.bf16.msra.mxu0 %v1095_v6 }
 0x10f   : > { %2012 = vmatpush3.bf16.msra.mxu1 %v1111_v7  ;;  %2028 = vmatprep.subr.bf16.mxu0 %v2108_v12 }
 0x111   : > { %1561 = vmatmul.mubr.bf16.vlgmr.msra.gmra.mrb[20].mxu0 %v823_v9 }
 0x112   : > { %1601 = vmatmul.mubr.bf16.vlgmr.msra.gmra.mrb[20].mxu1 %v825_v10  ;;  %2029 = vmatpush3.bf16.msra.mxu0 %v1120_v11 }
 0x113   : > { %2044 = vmatprep.mubr.msk.bf16.mxu0 %vm2109_vm0, %v2108_v12  ;;  %2030 = vmatprep.subr.bf16.mxu0 %v2108_v12 }
 0x116   : > { %2031 = vmatpush3.bf16.msra.mxu0 %v1121_v13 }
 0x117   : > { %2032 = vmatprep.subr.bf16.mxu0 %v2108_v12 }
 0x11a   : > { %2033 = vmatpush3.bf16.msra.mxu0 %v1122_v15 }
 0x11b   : > { %2034 = vmatprep.subr.bf16.mxu0 %v2108_v12 }
 0x11e   : > { %2035 = vmatpush3.bf16.msra.mxu0 %v1123_v16 }
 0x11f   : > { %2036 = vmatprep.subr.bf16.mxu0 %v2108_v12 }
 0x122   : > { %2037 = vmatpush3.bf16.msra.mxu0 %v1124_v18 }
 0x123   : > { %2038 = vmatprep.subr.bf16.mxu0 %v2108_v12 }
 0x126   : > { %2039 = vmatpush3.bf16.msra.mxu0 %v1125_v19 }
 0x127   : > { %2040 = vmatprep.subr.bf16.mxu0 %v2108_v12 }
 0x12a   : > { %2041 = vmatpush3.bf16.msra.mxu0 %v1126_v23 }
 0x12b   : > { %2042 = vmatprep.subr.bf16.mxu0 %v2108_v12 }
 0x12e   : > { %2043 = vmatpush3.bf16.msra.mxu0 %v1127_v24 }
 0x131   : > { %2045 = vmatmul.mubr.bf16.vlgmr.msra.gmra.mrb[24].mxu0 %v827_v28 }
 0x144   : > { %v1771_v29 = vpop.f32.mrb[0].mxu0 }
 0x145   : > { %v1793_v1 = vpop.f32.mrb[0].mxu1  ;;  %v1772_v30 = vpop.f32.mrb[1].mxu0 }
 0x146   : > { %v1794_v33 = vpop.f32.mrb[1].mxu1  ;;  %v1773_v34 = vadd.f32 %v1772_v30, %v1771_v29  ;;  %v1774_v38 = vpop.f32.mrb[2].mxu0 }
 0x147   : > { %v1795_v35 = vadd.f32 %v1794_v33, %v1793_v1  ;;  %v1796_v39 = vpop.f32.mrb[2].mxu1  ;;  %v1775_v40 = vpop.f32.mrb[3].mxu0 }
 0x148   : > { %v1797_v41 = vpop.f32.mrb[3].mxu1  ;;  %v1751_v40 = vld [vmem:[%s646_s28] ss:$0 sm:$0xff] }
 0x149   : > { %v1203_v42 = vadd.f32 %v1795_v35, %v1773_v34 }
 0x164   : > { %v1815_v21 = vpop.f32.mrb[4].mxu0 }
 0x165   : > { %v1837_v22 = vpop.f32.mrb[4].mxu1  ;;  %v1816_v43 = vpop.f32.mrb[5].mxu0 }
 0x166   : > { %v1838_v44 = vpop.f32.mrb[5].mxu1  ;;  %v1817_v45 = vadd.f32 %v1816_v43, %v1815_v21  ;;  %v1818_v46 = vpop.f32.mrb[6].mxu0  ;;  %v1752_v21 = vld [vmem:[%s649_s5] ss:$0 sm:$0xff] }
 0x167   : > { %v1839_v26 = vadd.f32 %v1838_v44, %v1837_v22  ;;  %v1840_v27 = vpop.f32.mrb[6].mxu1  ;;  %v1819_v47 = vpop.f32.mrb[7].mxu0 }
 0x168   : > { %v1841_v48 = vpop.f32.mrb[7].mxu1  ;;  %v1243_v49 = vadd.f32 %v1817_v45, %v1203_v42 }
 0x16a   : > { %v1283_v31 = vadd.f32 %v1839_v26, %v1243_v49 }
 0x184   : > { %v1859_v32 = vpop.f32.mrb[8].mxu0 }
 0x185   : > { %v1881_v50 = vpop.f32.mrb[8].mxu1  ;;  %v1860_v51 = vpop.f32.mrb[9].mxu0 }
 0x186   : > { %v1882_v52 = vpop.f32.mrb[9].mxu1  ;;  %v1861_v36 = vadd.f32 %v1860_v51, %v1859_v32  ;;  %v1862_v37 = vpop.f32.mrb[10].mxu0 }
 0x187   : > { %v1883_v53 = vadd.f32 %v1882_v52, %v1881_v50  ;;  %v1884_v54 = vpop.f32.mrb[10].mxu1  ;;  %v1863_v55 = vpop.f32.mrb[11].mxu0 }
 0x188   : > { %v1885_v56 = vpop.f32.mrb[11].mxu1  ;;  %v1323_v57 = vadd.f32 %v1861_v36, %v1283_v31 }
 0x18a   : > { %v1363_v58 = vadd.f32 %v1883_v53, %v1323_v57 }
 0x1a4   : > { %v1903_v59 = vpop.f32.mrb[12].mxu0 }
 0x1a5   : > { %v1925_v60 = vpop.f32.mrb[12].mxu1  ;;  %v1904_v61 = vpop.f32.mrb[13].mxu0 }
 0x1a6   : > { %v1926_v62 = vpop.f32.mrb[13].mxu1  ;;  %v1905_v63 = vadd.f32 %v1904_v61, %v1903_v59  ;;  %v1906_v0 = vpop.f32.mrb[14].mxu0 }
 0x1a7   : > { %v1927_v2 = vadd.f32 %v1926_v62, %v1925_v60  ;;  %v1928_v3 = vpop.f32.mrb[14].mxu1  ;;  %v1907_v4 = vpop.f32.mrb[15].mxu0 }
 0x1a8   : > { %v1929_v5 = vpop.f32.mrb[15].mxu1  ;;  %v1403_v6 = vadd.f32 %v1905_v63, %v1363_v58 }
 0x1aa   : > { %v1443_v7 = vadd.f32 %v1927_v2, %v1403_v6 }
 0x1c4   : > { %v1947_v8 = vpop.f32.mrb[16].mxu0 }
 0x1c5   : > { %v1969_v9 = vpop.f32.mrb[16].mxu1  ;;  %v1948_v10 = vpop.f32.mrb[17].mxu0 }
 0x1c6   : > { %v1970_v11 = vpop.f32.mrb[17].mxu1  ;;  %v1949_v12 = vadd.f32 %v1948_v10, %v1947_v8  ;;  %v1950_v13 = vpop.f32.mrb[18].mxu0 }
 0x1c7   : > { %v1971_v14 = vadd.f32 %v1970_v11, %v1969_v9  ;;  %v1972_v15 = vpop.f32.mrb[18].mxu1  ;;  %v1951_v16 = vpop.f32.mrb[19].mxu0 }
 0x1c8   : > { %v1973_v17 = vpop.f32.mrb[19].mxu1  ;;  %v1483_v18 = vadd.f32 %v1949_v12, %v1443_v7 }
 0x1ca   : > { %v1523_v19 = vadd.f32 %v1971_v14, %v1483_v18 }
 0x1e4   : > { %v1991_v20 = vpop.f32.mrb[20].mxu0 }
 0x1e5   : > { %v2013_v23 = vpop.f32.mrb[20].mxu1  ;;  %v1992_v24 = vpop.f32.mrb[21].mxu0 }
 0x1e6   : > { %v2014_v25 = vpop.f32.mrb[21].mxu1  ;;  %v1993_v28 = vadd.f32 %v1992_v24, %v1991_v20  ;;  %v1994_v29 = vpop.f32.mrb[22].mxu0 }
 0x1e7   : > { %v2015_v1 = vadd.f32 %v2014_v25, %v2013_v23  ;;  %v2016_v30 = vpop.f32.mrb[22].mxu1  ;;  %v1995_v33 = vpop.f32.mrb[23].mxu0 }
 0x1e8   : > { %v2017_v34 = vpop.f32.mrb[23].mxu1  ;;  %v1563_v35 = vadd.f32 %v1993_v28, %v1523_v19 }
 0x1ea   : > { %v1603_v38 = vadd.f32 %v2015_v1, %v1563_v35 }
 0x204   : > { %v1642_v39 = vpop.f32.mrb[24].mxu0 }
 0x205   : > { %v1643_v41 = vadd.f32 %v1642_v39, %v1603_v38  ;;  %v2046_v42 = vpop.f32.mrb[25].mxu0 }
 0x206   : > { %v1645_v22 = vpop.f32.mrb[26].mxu0 }
 0x207   : > { %v1655_v43 = vmul.f32 %v1751_v40, %v1643_v41  ;;  %v2047_v44 = vpop.f32.mrb[27].mxu0 }
 0x209   : > { %v1663_v45 = vadd.f32 %v1752_v21, %v1655_v43 }
 0x20b   : > { %v1664_v46 = vmax.f32 %v1663_v45, 0.0 }
 0x20d   : > { %1665 = vst [vmem:[%s653_s8] sm:$0x3] %v1664_v46 }
 0x20e PF: > { %p11_p9 = scmp.ge.s32.totalorder %s2152_s19, 9   ;;  %s2613_s15 = smov %s2101_s16 }
 0x20f   : > { %s2614_s16 = smov %s2161_s22  ;;  %s2615_s17 = smov %s2152_s19 }
 0x210   :  { %13 = sbr.rel (!%p11_p9) target bundleno = 2 (0x2), region = 115 }

// kernel: network_forward.7
= control target key start
LH: loop header
LB: loop body
LE: loop exit
PB: predicated region body
PF: predicated region fallthrough
CT: control target
= control target key end

     0   :  { %v27_v18 = vlaneseq  ;;  %v472_v24 = vmov 1983009808   ;;  %s635_s0 = inlined_call_operand.vmem [shape: f32[2,896], index: 0, kind: input, shape index: {}]   ;;  %s636_s1 = inlined_call_operand.vmem [shape: s8[896,128], index: 1, kind: input, shape index: {}]   ;;  %s637_s2 = inlined_call_operand.vmem [shape: f32[1,128], index: 2, kind: input, shape index: {}]   ;;  %s638_s3 = inlined_call_operand.vmem [shape: f32[1,128], index: 3, kind: input, shape index: {}]   ;;  %s639_s4 = inlined_call_operand.hbm [shape: f32[2,128], index: 4, kind: output, shape index: {}]  }
   0x1   :  { %v74_v0 = vld [vmem:[%s636_s1 + $0x20] sm:$0xff]  ;;  %v75_v10 = vld [vmem:[%s636_s1 + $0x28] sm:$0xff]  ;;  %v25_v25 = vunpack.c.l.s4 %v472_v24  ;;  %v76_v27 = vld [vmem:[%s636_s1 + $0x30] sm:$0xff] }
   0x2   :  { %v82_v1 = vld [vmem:[%s636_s1 + $0x60] sm:$0xff]  ;;  %v106_v3 = vunpack.c.l.s8.bf16 %v74_v0  ;;  %v107_v4 = vunpack.c.h.s8.bf16 %v74_v0  ;;  %v83_v11 = vld [vmem:[%s636_s1 + $0x68] sm:$0xff]  ;;  %v108_v14 = vunpack.c.l.s8.bf16 %v75_v10  ;;  %v109_v22 = vunpack.c.h.s8.bf16 %v75_v10  ;;  %v84_v28 = vld [vmem:[%s636_s1 + $0x70] sm:$0xff] }
   0x3   :  { %v70_v2 = vld [vmem:[%s636_s1] sm:$0xff]  ;;  %v122_v5 = vunpack.c.l.s8.bf16 %v82_v1  ;;  %v123_v6 = vunpack.c.h.s8.bf16 %v82_v1  ;;  %v124_v15 = vunpack.c.l.s8.bf16 %v83_v11  ;;  %v71_v16 = vld [vmem:[%s636_s1 + $0x8] sm:$0xff]  ;;  %v125_v23 = vunpack.c.h.s8.bf16 %v83_v11 }
   0x4   :  { %v78_v7 = vld [vmem:[%s636_s1 + $0x40] sm:$0xff]  ;;  %v98_v8 = vunpack.c.l.s8.bf16 %v70_v2  ;;  %347 = vmatprep.subr.bf16.mxu0 %v106_v3  ;;  %v99_v12 = vunpack.c.h.s8.bf16 %v70_v2  ;;  %v79_v17 = vld [vmem:[%s636_s1 + $0x48] sm:$0xff]  ;;  %v100_v19 = vunpack.c.l.s8.bf16 %v71_v16  ;;  %v28_v26 = vshrl.u32 %v27_v18, 7 }
   0x5   :  { %v114_v9 = vunpack.c.l.s8.bf16 %v78_v7  ;;  %369 = vmatprep.subr.bf16.mxu1 %v122_v5  ;;  %v115_v13 = vunpack.c.h.s8.bf16 %v78_v7  ;;  %v116_v20 = vunpack.c.l.s8.bf16 %v79_v17  ;;  %v19_v21 = vld [vmem:[%s635_s0] sm:$0xff] }
   0x6   :  { %348 = vmatpush3.bf16.msra.mxu0 %v98_v8 }
   0x7   :  { %370 = vmatpush3.bf16.msra.mxu1 %v114_v9  ;;  %349 = vmatprep.subr.bf16.mxu0 %v107_v4 }
   0x8   :  { %371 = vmatprep.subr.bf16.mxu1 %v123_v6 }
   0xa   :  { %350 = vmatpush3.bf16.msra.mxu0 %v99_v12 }
   0xb   :  { %372 = vmatpush3.bf16.msra.mxu1 %v115_v13  ;;  %351 = vmatprep.subr.bf16.mxu0 %v108_v14 }
   0xc   :  { %373 = vmatprep.subr.bf16.mxu1 %v124_v15 }
   0xd   :  { %9 = vsyncpa [#allocation3], 0  ;;  %v26_v29 = vunpack.c.0.s8 %v25_v25  ;;  %v23_v30 = vcombine.high %v19_v21, %v19_v21  ;;  %v101_v31 = vunpack.c.h.s8.bf16 %v71_v16  ;;  %v117_v32 = vunpack.c.h.s8.bf16 %v79_v17  ;;  %v72_v35 = vld [vmem:[%s636_s1 + $0x10] sm:$0xff]  ;;  %v77_v46 = vld [vmem:[%s636_s1 + $0x38] sm:$0xff]  ;;  %s475_s25 = smov [#allocation2]  }
   0xe   :  { %352 = vmatpush3.bf16.msra.mxu0 %v100_v19  ;;  %v110_v33 = vunpack.c.l.s8.bf16 %v76_v27  ;;  %v126_v34 = vunpack.c.l.s8.bf16 %v84_v28  ;;  %v80_v36 = vld [vmem:[%s636_s1 + $0x50] sm:$0xff]  ;;  %v102_v40 = vunpack.c.l.s8.bf16 %v72_v35  ;;  %v111_v42 = vunpack.c.h.s8.bf16 %v76_v27  ;;  %v85_v47 = vld [vmem:[%s636_s1 + $0x78] sm:$0xff]  ;;  %v559_v56 = vld [vmem:[%s635_s0 + $0x8] sm:$0x3f]  ;;  %s337_s26 = sshll.u32 %s475_s25, 4  ;;  %s338_s26 = int_to_ptr.vmem [resolvable:$true] %s337_s26 }
   0xf   :  { %374 = vmatpush3.bf16.msra.mxu1 %v116_v20  ;;  %353 = vmatprep.subr.bf16.mxu0 %v109_v22  ;;  %v540_v37 = vsub.s32 %v26_v29, %v28_v26  ;;  %v118_v41 = vunpack.c.l.s8.bf16 %v80_v36  ;;  %v127_v43 = vunpack.c.h.s8.bf16 %v84_v28  ;;  %v103_v50 = vunpack.c.h.s8.bf16 %v72_v35  ;;  %v73_v54 = vld [vmem:[%s636_s1 + $0x18] sm:$0xff]  ;;  %v90_v61 = vld [vmem:[%s636_s1 + $0xa0] sm:$0xff]  ;;  %v91_v11 = vld [vmem:[%s636_s1 + $0xa8] sm:$0xff]  ;;  %s448_s0 = scalar_lea.vmem %s338_s26, 32  ;;  %p453_p1 = scmp.lt.s32.totalorder %s338_s26, %s338_s26 }
  0x10   :  { %375 = vmatprep.subr.bf16.mxu1 %v125_v23  ;;  %v119_v51 = vunpack.c.h.s8.bf16 %v80_v36  ;;  %v112_v52 = vunpack.c.l.s8.bf16 %v77_v46  ;;  %v128_v53 = vunpack.c.l.s8.bf16 %v85_v47  ;;  %v81_v55 = vld [vmem:[%s636_s1 + $0x58] sm:$0xff]  ;;  %v104_v57 = vunpack.c.l.s8.bf16 %v73_v54  ;;  %v86_v2 = vld [vmem:[%s636_s1 + $0x80] sm:$0xff]  ;;  %v87_v16 = vld [vmem:[%s636_s1 + $0x88] sm:$0xff]  ;;  %p449_p0 = scmp.ne.s32.totalorder %s338_s26, %s448_s0  ;;  %p454_p2 = scmp.lt.s32.totalorder %s448_s0, %s448_s0 }
  0x11   :  { %v30_v38 = vrot.slane %v19_v21, %v540_v37  ;;  %v37_v39 = vrot.slane %v23_v30, %v540_v37  ;;  %v120_v58 = vunpack.c.l.s8.bf16 %v81_v55  ;;  %v113_v59 = vunpack.c.h.s8.bf16 %v77_v46  ;;  %v94_v3 = vld [vmem:[%s636_s1 + $0xc0] sm:$0xff]  ;;  %v95_v17 = vld [vmem:[%s636_s1 + $0xc8] sm:$0xff]  ;;  %v92_v21 = vld [vmem:[%s636_s1 + $0xb0] sm:$0xff] }
  0x12   :  { %354 = vmatpush3.bf16.msra.mxu0 %v101_v31  ;;  %v129_v60 = vunpack.c.h.s8.bf16 %v85_v47  ;;  %v566_v62 = vrot.slane %v559_v56, %v540_v37  ;;  %v105_v63 = vunpack.c.h.s8.bf16 %v73_v54  ;;  %v121_v0 = vunpack.c.h.s8.bf16 %v81_v55  ;;  %v88_v25 = vld [vmem:[%s636_s1 + $0x90] sm:$0xff]  ;;  %v93_v30 = vld [vmem:[%s636_s1 + $0xb8] sm:$0xff]  ;;  %p455_p3 = por %p454_p2, %p453_p1 }
  0x13   :  { %376 = vmatpush3.bf16.msra.mxu1 %v117_v32  ;;  %355 = vmatprep.subr.bf16.mxu0 %v110_v33  ;;  %v38_v44 = vcombine.high %v30_v38, %v30_v38  ;;  %v39_v45 = vcombine.high %v37_v39, %v37_v39  ;;  %v138_v1 = vunpack.c.l.s8.bf16 %v90_v61  ;;  %v63_v5 = vpack.c.bf16 %v30_v38, %v30_v38  ;;  %v96_v26 = vld [vmem:[%s636_s1 + $0xd0] sm:$0xff]  ;;  %v97_v35 = vld [vmem:[%s636_s1 + $0xd8] sm:$0xff] }
  0x14   :  { %377 = vmatprep.subr.bf16.mxu1 %v126_v34  ;;  %v55_v4 = vcombine.high %v566_v62, %v566_v62  ;;  %v65_v6 = vpack.c.bf16 %v37_v39, %v37_v39  ;;  %v130_v7 = vunpack.c.l.s8.bf16 %v86_v2  ;;  %v146_v8 = vunpack.c.l.s8.bf16 %v94_v3  ;;  %v89_v34 = vld [vmem:[%s636_s1 + $0x98] sm:$0xff]  ;;  %p456_p4 = pnand %p455_p3, %p449_p0 }
  0x15   :  { %v64_v48 = vpack.c.bf16 %v38_v44, %v38_v44  ;;  %v66_v49 = vpack.c.bf16 %v39_v45, %v39_v45  ;;  %v473_v9 = vmov 0.0   ;;  %v139_v10 = vunpack.c.h.s8.bf16 %v90_v61 }
  0x16   :  { %356 = vmatpush3.bf16.msra.mxu0 %v102_v40  ;;  %v68_v12 = vpack.c.bf16 %v55_v4, %v55_v4  ;;  %v131_v13 = vunpack.c.h.s8.bf16 %v86_v2  ;;  %v147_v14 = vunpack.c.h.s8.bf16 %v94_v3  ;;  %v140_v15 = vunpack.c.l.s8.bf16 %v91_v11  ;;  %v345_v2 = vld [vmem:[%s637_s2] ss:$0 sm:$0xff] }
  0x17   :  { %378 = vmatpush3.bf16.msra.mxu1 %v118_v41  ;;  %357 = vmatprep.subr.bf16.mxu0 %v111_v42  ;;  %vm474_vm0 = vmmov 0   ;;  %v132_v18 = vunpack.c.l.s8.bf16 %v87_v16  ;;  %v148_v19 = vunpack.c.l.s8.bf16 %v95_v17  ;;  %v141_v20 = vunpack.c.h.s8.bf16 %v91_v11  ;;  %v346_v4 = vld [vmem:[%s638_s3] ss:$0 sm:$0xff] }
  0x18   :  { %379 = vmatprep.subr.bf16.mxu1 %v127_v43  ;;  %186 = vmatprep.mubr.bf16.mxu0 %v64_v48  ;;  %v133_v22 = vunpack.c.h.s8.bf16 %v87_v16  ;;  %v149_v23 = vunpack.c.h.s8.bf16 %v95_v17  ;;  %v142_v24 = vunpack.c.l.s8.bf16 %v92_v21  ;;  %v134_v27 = vunpack.c.l.s8.bf16 %v88_v25 }
  0x19   :  { %226 = vmatprep.mubr.bf16.mxu1 %v66_v49  ;;  %v150_v28 = vunpack.c.l.s8.bf16 %v96_v26  ;;  %v143_v29 = vunpack.c.h.s8.bf16 %v92_v21  ;;  %v135_v31 = vunpack.c.h.s8.bf16 %v88_v25  ;;  %v151_v32 = vunpack.c.h.s8.bf16 %v96_v26 }
  0x1a   :  { %358 = vmatpush3.bf16.msra.mxu0 %v103_v50  ;;  %v144_v33 = vunpack.c.l.s8.bf16 %v93_v30  ;;  %v40_v36 = vcombine.high %v559_v56, %v559_v56  ;;  %v136_v38 = vunpack.c.l.s8.bf16 %v89_v34  ;;  %v152_v39 = vunpack.c.l.s8.bf16 %v97_v35 }
  0x1b   :  { %380 = vmatpush3.bf16.msra.mxu1 %v119_v51  ;;  %359 = vmatprep.subr.bf16.mxu0 %v112_v52  ;;  %v145_v40 = vunpack.c.h.s8.bf16 %v93_v30  ;;  %v137_v42 = vunpack.c.h.s8.bf16 %v89_v34  ;;  %v153_v43 = vunpack.c.h.s8.bf16 %v97_v35  ;;  %v67_v44 = vpack.c.bf16 %v566_v62, %v566_v62 }
  0x1c   :  { %381 = vmatprep.subr.bf16.mxu1 %v128_v53  ;;  %v54_v41 = vrot.slane %v40_v36, %v540_v37 }
  0x1e   :  { %360 = vmatpush3.bf16.msra.mxu0 %v104_v57  ;;  %v69_v45 = vpack.c.bf16 %v54_v41, %v54_v41 }
  0x1f   :  { %382 = vmatpush3.bf16.msra.mxu1 %v120_v58  ;;  %361 = vmatprep.subr.bf16.mxu0 %v113_v59 }
  0x20   :  { %383 = vmatprep.subr.bf16.mxu1 %v129_v60 }
  0x22   :  { %362 = vmatpush3.bf16.msra.mxu0 %v105_v63 }
  0x23   :  { %384 = vmatpush3.bf16.msra.mxu1 %v121_v0  ;;  %391 = vmatprep.subr.bf16.mxu0 %v138_v1 }
  0x24   :  { %422 = vmatprep.subr.bf16.mxu1 %v473_v9 }
  0x25   :  { %187 = vmatmul.mubr.bf16.vlgmr.msra.gmra.mrb[0].mxu0 %v63_v5 }
  0x26   :  { %227 = vmatmul.mubr.bf16.vlgmr.msra.gmra.mrb[0].mxu1 %v65_v6  ;;  %392 = vmatpush3.bf16.msra.mxu0 %v130_v7 }
  0x27   :  { %423 = vmatpush3.bf16.msra.mxu1 %v146_v8  ;;  %393 = vmatprep.subr.bf16.mxu0 %v139_v10 }
  0x28   :  { %424 = vmatprep.subr.bf16.mxu1 %v473_v9  ;;  %266 = vmatprep.mubr.bf16.mxu0 %v68_v12 }
  0x29   :  { %438 = vmatprep.mubr.msk.bf16.mxu1 %vm474_vm0, %v473_v9 }
  0x2a   :  { %394 = vmatpush3.bf16.msra.mxu0 %v131_v13 }
  0x2b   :  { %425 = vmatpush3.bf16.msra.mxu1 %v147_v14  ;;  %395 = vmatprep.subr.bf16.mxu0 %v140_v15 }
  0x2c   :  { %426 = vmatprep.subr.bf16.mxu1 %v473_v9 }
  0x2e   :  { %396 = vmatpush3.bf16.msra.mxu0 %v132_v18 }
  0x2f   :  { %427 = vmatpush3.bf16.msra.mxu1 %v148_v19  ;;  %397 = vmatprep.subr.bf16.mxu0 %v141_v20 }
  0x30   :  { %428 = vmatprep.subr.bf16.mxu1 %v473_v9 }
  0x32   :  { %398 = vmatpush3.bf16.msra.mxu0 %v133_v22 }
  0x33   :  { %429 = vmatpush3.bf16.msra.mxu1 %v149_v23  ;;  %399 = vmatprep.subr.bf16.mxu0 %v142_v24 }
  0x34   :  { %430 = vmatprep.subr.bf16.mxu1 %v473_v9 }
  0x36   :  { %400 = vmatpush3.bf16.msra.mxu0 %v134_v27 }
  0x37   :  { %431 = vmatpush3.bf16.msra.mxu1 %v150_v28  ;;  %401 = vmatprep.subr.bf16.mxu0 %v143_v29 }
  0x38   :  { %432 = vmatprep.subr.bf16.mxu1 %v473_v9 }
  0x3a   :  { %402 = vmatpush3.bf16.msra.mxu0 %v135_v31 }
  0x3b   :  { %433 = vmatpush3.bf16.msra.mxu1 %v151_v32  ;;  %403 = vmatprep.subr.bf16.mxu0 %v144_v33 }
  0x3c   :  { %434 = vmatprep.subr.bf16.mxu1 %v473_v9 }
  0x3e   :  { %404 = vmatpush3.bf16.msra.mxu0 %v136_v38 }
  0x3f   :  { %435 = vmatpush3.bf16.msra.mxu1 %v152_v39  ;;  %405 = vmatprep.subr.bf16.mxu0 %v145_v40 }
  0x40   :  { %436 = vmatprep.subr.bf16.mxu1 %v473_v9 }
  0x42   :  { %406 = vmatpush3.bf16.msra.mxu0 %v137_v42 }
  0x43   :  { %437 = vmatpush3.bf16.msra.mxu1 %v153_v43 }
  0x45   :  { %267 = vmatmul.mubr.bf16.vlgmr.msra.gmra.mrb[4].mxu0 %v67_v44 }
  0x46   :  { %439 = vmatmul.mubr.bf16.vlgmr.msra.gmra.mrb[4].mxu1 %v69_v45 }
  0xf8   :  { %v363_v46 = vpop.f32.mrb[0].mxu0 }
  0xf9   :  { %v385_v47 = vpop.f32.mrb[0].mxu1  ;;  %v364_v48 = vpop.f32.mrb[1].mxu0 }
  0xfa   :  { %v386_v49 = vpop.f32.mrb[1].mxu1  ;;  %v365_v37 = vadd.f32 %v364_v48, %v363_v46  ;;  %v366_v51 = vpop.f32.mrb[2].mxu0 }
  0xfb   :  { %v387_v50 = vadd.f32 %v386_v49, %v385_v47  ;;  %v388_v52 = vpop.f32.mrb[2].mxu1  ;;  %v367_v53 = vpop.f32.mrb[3].mxu0 }
  0xfc   :  { %v389_v54 = vpop.f32.mrb[3].mxu1 }
  0xfd   :  { %v229_v55 = vadd.f32 %v387_v50, %v365_v37 }
 0x118   :  { %v407_v56 = vpop.f32.mrb[4].mxu0 }
 0x119   :  { %v308_v57 = vpop.f32.mrb[4].mxu1  ;;  %v408_v58 = vpop.f32.mrb[5].mxu0 }
 0x11a   :  { %v440_v59 = vpop.f32.mrb[5].mxu1  ;;  %v409_v60 = vadd.f32 %v408_v58, %v407_v56  ;;  %v410_v61 = vpop.f32.mrb[6].mxu0 }
 0x11b   :  { %v311_v62 = vpop.f32.mrb[6].mxu1  ;;  %v411_v63 = vpop.f32.mrb[7].mxu0 }
 0x11c   :  { %v441_v0 = vpop.f32.mrb[7].mxu1  ;;  %v269_v1 = vadd.f32 %v409_v60, %v229_v55 }
 0x11e   :  { %v309_v3 = vadd.f32 %v308_v57, %v269_v1 }
 0x120   :  { %v321_v5 = vmul.f32 %v345_v2, %v309_v3 }
 0x122   :  { %v329_v6 = vadd.f32 %v346_v4, %v321_v5 }
 0x124   :  { %330 = vst [vmem:[#allocation2] sm:$0x3] %v329_v6 }
 0x125   :  { %459 = shalt.err (!%p456_p4)
}
 0x126   :  { %s460_s28 = scalar_lea.hbm %s639_s4, 32 }
 0x127   :  { %p461_p5 = scmp.ne.s32.totalorder %s639_s4, %s460_s28  ;;  %p464_p6 = scmp.lt.u32.totalorder %s460_s28, %s639_s4 }
 0x129   :  { %p466_p7 = pnand %p464_p6, %p461_p5 }
 0x12b   :  { %469 = shalt.err (!%p466_p7)
}
 0x12c   :  { %340 = dma.vmem_to_hbm [thread:$0]  %s338_s26, 32, %s639_s4, [#allocation3]  }
 0x12d   :  { %470 = dma.done.wait [#allocation3], 32  }
 0x12e   :  { %471 = vsyncadd [#allocation3], 4294967264 }
 0x12f   :  { %344 = vsyncpa [#allocation3], 1 }

// kernel: network_forward.5
= control target key start
LH: loop header
LB: loop body
LE: loop exit
PB: predicated region body
PF: predicated region fallthrough
CT: control target
= control target key end

     0   :  { %9 = vsyncpa [#allocation3], 0  ;;  %s9576_s0 = inlined_call_operand.vmem [shape: f32[2,6272], index: 0, kind: input, shape index: {}]   ;;  %s9577_s1 = inlined_call_operand.hbm [shape: s8[6272,3200], index: 1, kind: input, shape index: {}]   ;;  %s9578_s2 = inlined_call_operand.hbm [shape: f32[1,3200], index: 2, kind: input, shape index: {}]   ;;  %s9579_s3 = inlined_call_operand.hbm [shape: f32[1,3200], index: 3, kind: input, shape index: {}]   ;;  %s9580_s4 = inlined_call_operand.vmem [shape: f32[2,3200], index: 4, kind: output, shape index: {}]  }
   0x1   :  { %11 = vsyncpa [#allocation3 + $0x1], 0 }
   0x2   :  { %12 = vsyncpa [#allocation5], 0 }
   0x3   :  { %14 = vsyncpa [#allocation5 + $0x1], 0  ;;  %s7838_s15 = smov 0   ;;  %s7840_s16 = smov 0  }
   0x4   :  { %s7842_s17 = smov 0   ;;  %s7844_s18 = smov 0  }
   0x5 LB: > { %s7857_s19 = sadd.s32 4294967295, %s7801_s18   ;;  %s7860_s20 = sadd.s32 1, %s7801_s18   ;;  %s7801_s18 = sphi %s7844_s18, %s9606_s18   ;;  %s7797_s17 = sphi %s7842_s17, %s9605_s17   ;;  %s7793_s16 = sphi %s7840_s16, %s9604_s16   ;;  %s7789_s15 = sphi %s7838_s15, %s9603_s15  }
   0x6   : > { %s45_s21 = ssub.s32 %s7801_s18, %s7860_s20  ;;  %s48_s22 = sadd.s32 1, %s7797_s17 }
   0x7   : > { %p46_p0 = scmp.eq.s32.totalorder %s45_s21, 0  ;;  %p55_p1 = scmp.ne.s32.totalorder %s7797_s17, %s7793_s16 }
   0x8   : > { %p56_p2 = scmp.eq.s32.totalorder %s7801_s18, 0  ;;  %p61_p3 = scmp.ne.s32.totalorder %s7793_s16, %s7789_s15 }
   0x9   : > { %s7870_s23 = scalar_select %p46_p0, %s7797_s17, %s48_s22  }
   0xa   : > { %p57_p4 = por %p56_p2, %p55_p1  ;;  %p62_p5 = scmp.eq.s32.totalorder %s7857_s19, 0 }
   0xb   : > { %p7619_p6 = scmp.lt.s32.totalorder %s7801_s18, 5  ;;  %s7879_s25 = sand.u32 1, %s7797_s17  }
   0xc   : > { %p7874_p7 = por %p62_p5, %p61_p3  ;;  %s7598_s26 = smul.u32 7840, %s7879_s25 }
   0xd   : > { %p7882_p8 = pnand %p7619_p6, %p57_p4  ;;  %s187_s28 = sand.u32 1, %s7801_s18  }
   0xe   : > { %s9587_s24 = scalar_select %p7874_p7, 1, 0 }
   0xf   : > { %s9588_s27 = scalar_select %p7882_p8, 1, 0 }
  0x10   : > { %s170_s29 = scalar_lea.vmem [#allocation2], %s7598_s26  ;;  %s7599_s5 = smul.u32 5, %s7879_s25 }
  0x11   : > { %s177_s30 = sshll.u32 %s170_s29, 4  ;;  %s6847_s6 = smul.u32 80, %s7801_s18  ;;  %s7887_s30 = int_to_ptr.vmem [resolvable:$true] %s177_s30 }
  0x12   : > { %p6840_p9 = scmp.ge.s32.totalorder %s7801_s18, 1  ;;  %p223_p10 = scmp.lt.s32.totalorder %s7801_s18, 6 }
  0x13   : > { %s7898_s9 = scalar_lea.hbm %s9578_s2, %s6847_s6  ;;  %s191_s10 = scalar_lea.vmem [#allocation4], %s7599_s5 }
  0x14   : > { %s199_s11 = sshll.u32 %s191_s10, 4  ;;  %p7904_p11 = pnand %p6840_p9, %p223_p10  ;;  %s7902_s11 = int_to_ptr.vmem [resolvable:$true] %s199_s11 }
  0x15   : > { %s7908_s13 = scalar_lea.sflag [#allocation5], %s187_s28  ;;  %s7673_s14 = scalar_lea.hbm %s7898_s9, 80 }
  0x16   : > { %s9589_s12 = scalar_select %p7904_p11, 1, 0 }
  0x17   : > { %p7674_p12 = scmp.ne.s32.totalorder %s7898_s9, %s7673_s14  ;;  %p7914_p13 = pneg %p7882_p8 }
  0x18   : > { %s7678_s26 = scalar_lea.hbm %s9578_s2, 400  ;;  %p7679_p2 = scmp.lt.u32.totalorder %s7898_s9, %s9578_s2 }
  0x19   : > { %p7676_p0 = pnand %p7914_p13, %p7674_p12  ;;  %p7680_p3 = scmp.lt.u32.totalorder %s7678_s26, %s7673_s14 }
  0x1a   : > { %p7682_p5 = scmp.lt.u32.totalorder %s7673_s14, %s7898_s9 }
  0x1b   : > { %p7677_p1 = pneg %p7676_p0  ;;  %p7681_p4 = por %p7680_p3, %p7679_p2 }
  0x1d   : > { %p7683_p6 = por %p7682_p5, %p7681_p4 }
  0x1f   : > { %p7684_p9 = pnand %p7683_p6, %p7677_p1 }
  0x21   : > { %7687 = shalt.err (!%p7684_p9)
}
  0x22   : > { %s7688_s28 = scalar_lea.vmem %s7902_s11, 80  ;;  %s7803_s8 = smov [#allocation4]  }
  0x23   : > { %p7689_p10 = scmp.ne.s32.totalorder %s7902_s11, %s7688_s28  ;;  %s7693_s10 = sshll.u32 %s7803_s8, 4  ;;  %s7694_s10 = int_to_ptr.vmem [resolvable:$false] %s7693_s10 }
  0x24   : > { %s7695_s21 = scalar_lea.vmem %s7694_s10, 160  ;;  %p7696_p7 = scmp.lt.s32.totalorder %s7902_s11, %s7694_s10 }
  0x25   : > { %p7691_p12 = pnand %p7689_p10, %p7914_p13  ;;  %p7697_p11 = scmp.lt.s32.totalorder %s7695_s21, %s7688_s28 }
  0x27   : > { %p7692_p0 = pneg %p7691_p12  ;;  %p7698_p2 = por %p7697_p11, %p7696_p7 }
  0x29   : > { %p7699_p3 = pnand %p7698_p2, %p7692_p0 }
  0x2b   : > { %7702 = shalt.err (!%p7699_p3)
}
  0x2c   : > { %7615 = dma.hbm_to_vmem [thread:$0]  (!%p7882_p8), %s7898_s9, 80, %s7902_s11, %s7908_s13  }
  0x2d   : > { %s6846_s14 = smul.u32 640, %s7801_s18  ;;  %s167_s7 = scalar_lea.sflag [#allocation3], %s7879_s25 }
  0x2e   : > { %s7708_s9 = scalar_lea.hbm %s9577_s1, 627200 }
  0x2f   : > { %s7942_s29 = scalar_lea.hbm %s9577_s1, %s6846_s14 }
  0x30   : > { %s7703_s28 = scalar_lea.hbm %s7942_s29, 125440  ;;  %p7709_p4 = scmp.lt.u32.totalorder %s7942_s29, %s9577_s1 }
  0x31   : > { %p7704_p7 = scmp.ne.s32.totalorder %s7942_s29, %s7703_s28  ;;  %p7710_p5 = scmp.lt.u32.totalorder %s7708_s9, %s7703_s28 }
  0x32   : > { %p7712_p9 = scmp.lt.u32.totalorder %s7703_s28, %s7942_s29 }
  0x33   : > { %p7706_p11 = pnand %p7704_p7, %p7914_p13  ;;  %p7711_p6 = por %p7710_p5, %p7709_p4 }
  0x35   : > { %p7707_p1 = pneg %p7706_p11  ;;  %p7713_p10 = por %p7712_p9, %p7711_p6 }
  0x37   : > { %p7714_p12 = pnand %p7713_p10, %p7707_p1 }
  0x39   : > { %7717 = shalt.err (!%p7714_p12)
}
  0x3a   : > { %s7718_s14 = scalar_lea.vmem %s7887_s30, 125440  ;;  %s7804_s22 = smov [#allocation2]  }
  0x3b   : > { %p7719_p0 = scmp.ne.s32.totalorder %s7887_s30, %s7718_s14  ;;  %s7723_s26 = sshll.u32 %s7804_s22, 4  ;;  %s7724_s26 = int_to_ptr.vmem [resolvable:$false] %s7723_s26 }
  0x3c   : > { %s7725_s8 = scalar_lea.vmem %s7724_s26, 250880  ;;  %p7726_p7 = scmp.lt.s32.totalorder %s7887_s30, %s7724_s26 }
  0x3d   : > { %p7721_p2 = pnand %p7719_p0, %p7914_p13  ;;  %p7727_p11 = scmp.lt.s32.totalorder %s7725_s8, %s7718_s14 }
  0x3f   : > { %p7722_p3 = pneg %p7721_p2  ;;  %p7728_p4 = por %p7727_p11, %p7726_p7 }
  0x41   : > { %p7729_p5 = pnand %p7728_p4, %p7722_p3 }
  0x43   : > { %7732 = shalt.err (!%p7729_p5)
}
  0x44   : > { %s7805_s28 = smov 3200   ;;  %s7806_s10 = smov 640  }
  0x45   : > { %s7807_s9 = smov 40   ;;  %s7973_s14 = scalar_lea.hbm %s9579_s3, %s6847_s6 }
  0x46   : > { %7612 = dma.hbm_to_vmem [thread:$0]  (!%p7882_p8), %s7942_s29, 125440, %s7887_s30, %s167_s7, %s7805_s28, %s7806_s10, %s7807_s9  }
  0x47   : > { %s210_s22 = scalar_lea.vmem [#allocation6], %s7599_s5  ;;  %s7733_s8 = scalar_lea.hbm %s7973_s14, 80 }
  0x48   : > { %s218_s26 = sshll.u32 %s210_s22, 4  ;;  %p7734_p1 = scmp.ne.s32.totalorder %s7973_s14, %s7733_s8  ;;  %s219_s26 = int_to_ptr.vmem [resolvable:$true] %s218_s26 }
  0x49   : > { %s7738_s29 = scalar_lea.hbm %s9579_s3, 400  ;;  %p7739_p10 = scmp.lt.u32.totalorder %s7973_s14, %s9579_s3 }
  0x4a   : > { %p7736_p6 = pnand %p7734_p1, %p7914_p13  ;;  %p7740_p12 = scmp.lt.u32.totalorder %s7738_s29, %s7733_s8 }
  0x4b   : > { %p7742_p2 = scmp.lt.u32.totalorder %s7733_s8, %s7973_s14 }
  0x4c   : > { %p7737_p9 = pneg %p7736_p6  ;;  %p7741_p0 = por %p7740_p12, %p7739_p10 }
  0x4e   : > { %p7743_p3 = por %p7742_p2, %p7741_p0 }
  0x50   : > { %p7744_p7 = pnand %p7743_p3, %p7737_p9 }
  0x52   : > { %7747 = shalt.err (!%p7744_p7)
}
  0x53   : > { %s7748_s25 = scalar_lea.vmem %s219_s26, 80  ;;  %s7808_s5 = smov [#allocation6]  }
  0x54   : > { %p7749_p11 = scmp.ne.s32.totalorder %s219_s26, %s7748_s25  ;;  %s7753_s28 = sshll.u32 %s7808_s5, 4  ;;  %s7754_s28 = int_to_ptr.vmem [resolvable:$false] %s7753_s28 }
  0x55   : > { %s7755_s10 = scalar_lea.vmem %s7754_s28, 160  ;;  %p7756_p1 = scmp.lt.s32.totalorder %s219_s26, %s7754_s28 }
  0x56   : > { %p7751_p4 = pnand %p7749_p11, %p7914_p13  ;;  %p7757_p6 = scmp.lt.s32.totalorder %s7755_s10, %s7748_s25 }
  0x58   : > { %p7752_p5 = pneg %p7751_p4  ;;  %p7758_p8 = por %p7757_p6, %p7756_p1 }
  0x5a   : > { %p7759_p10 = pnand %p7758_p8, %p7752_p5 }
  0x5c   : > { %7762 = shalt.err (!%p7759_p10)
}
  0x5d   : > { %p9591_p12 = scmp.ne.s32.totalorder %s9588_s27, 0  ;;  %p9592_p9 = scmp.ne.s32.totalorder %s9589_s12, 0 }
  0x5f   : > { %7618 = dma.hbm_to_vmem [thread:$0]  (!%p9591_p12), %s7973_s14, 80, %s219_s26, %s7908_s13  }
  0x60   : > { %227 = sbr.rel (%p9592_p9) target bundleno = 2320 (0x910), region = 36 }
  0x67   : > { %s7998_s15 = sand.u32 1, %s7793_s16   ;;  %p9593_p8 = scmp.ne.s32.totalorder %s9587_s24, 0 }
  0x68   : > { %s7601_s9 = smul.u32 7840, %s7998_s15  ;;  %s230_s11 = scalar_lea.sflag [#allocation3], %s7998_s15 }
  0x6a   : > { %s8002_s21 = scalar_lea.vmem [#allocation2], %s7601_s9 }
  0x6b   : > { %7780 = dma.done.wait (%p9593_p8), %s230_s11, 125440  }
  0x6c   : > { %7782 = vsyncadd (%p9593_p8), %s230_s11, 4294841856  ;;  %s238_s27 = sand.u32 1, %s7857_s19   ;;  %s7602_s12 = smul.u32 5, %s7998_s15 }
  0x6d   : > { %s239_s13 = scalar_lea.sflag [#allocation5], %s238_s27 }
  0x6e   : > { %s8012_s14 = scalar_lea.vmem [#allocation4], %s7602_s12 }
  0x6f   : > { %7784 = dma.done.wait (%p9593_p8), %s239_s13, 160  }
  0x70   : > { %7786 = vsyncadd (%p9593_p8), %s239_s13, 4294967136  ;;  %v632_v0 = vld [vmem:[%s8002_s21 + $0x8] sm:$0xff]  ;;  %v634_v1 = vld [vmem:[%s8002_s21 + $0x18] sm:$0xff]  ;;  %v7809_v18 = vmov 1983009808   ;;  %v326_v20 = vlaneseq  ;;  %s9411_s25 = scalar_lea.vmem [#allocation6], %s7602_s12 }
  0x71   : > { %v631_v2 = vld [vmem:[%s8002_s21] sm:$0xff]  ;;  %v1612_v3 = vunpack.c.l.s8.bf16 %v632_v0  ;;  %v1617_v4 = vunpack.c.h.s8.bf16 %v632_v0  ;;  %v1614_v5 = vunpack.c.l.s8.bf16 %v634_v1  ;;  %v1619_v6 = vunpack.c.h.s8.bf16 %v634_v1  ;;  %v633_v7 = vld [vmem:[%s8002_s21 + $0x10] sm:$0xff]  ;;  %v636_v16 = vld [vmem:[%s8002_s21 + $0x28] sm:$0xff]  ;;  %s289_s5 = smul.u32 5, %s7857_s19 }
  0x72   : > { %v1611_v8 = vunpack.c.l.s8.bf16 %v631_v2  ;;  %v1613_v9 = vunpack.c.l.s8.bf16 %v633_v7  ;;  %v637_v10 = vld [vmem:[%s8002_s21 + $0x30] sm:$0xff]  ;;  %v639_v11 = vld [vmem:[%s8002_s21 + $0x40] sm:$0xff]  ;;  %v1616_v12 = vunpack.c.h.s8.bf16 %v631_v2  ;;  %v1618_v13 = vunpack.c.h.s8.bf16 %v633_v7  ;;  %v638_v17 = vld [vmem:[%s8002_s21 + $0x38] sm:$0xff] }
  0x73   : > { %3571 = vmatprep.subr.bf16.mxu0 %v1612_v3  ;;  %4596 = vmatprep.subr.bf16.mxu1 %v1614_v5  ;;  %v1622_v14 = vunpack.c.l.s8.bf16 %v637_v10  ;;  %v1624_v15 = vunpack.c.l.s8.bf16 %v639_v11  ;;  %v324_v19 = vunpack.c.l.s4 %v7809_v18  ;;  %v1621_v21 = vunpack.c.l.s8.bf16 %v636_v16  ;;  %v642_v27 = vld [vmem:[%s8002_s21 + $0x58] sm:$0xff]  ;;  %v644_v28 = vld [vmem:[%s8002_s21 + $0x68] sm:$0xff]  ;;  %v641_v33 = vld [vmem:[%s8002_s21 + $0x50] sm:$0xff]  ;;  %p9421_p13 = scmp.lt.s32.totalorder %s289_s5, 24 }
  0x74   : > { %3572 = vmatpush1.bf16.msra.mxu0 %v1611_v8  ;;  %4597 = vmatpush1.bf16.msra.mxu1 %v1613_v9  ;;  %v1623_v22 = vunpack.c.l.s8.bf16 %v638_v17  ;;  %v1627_v23 = vunpack.c.h.s8.bf16 %v637_v10  ;;  %v1629_v24 = vunpack.c.h.s8.bf16 %v639_v11  ;;  %v8026_v26 = vshrl.u32 %v326_v20, 7  ;;  %v643_v34 = vld [vmem:[%s8002_s21 + $0x60] sm:$0xff]  ;;  %v649_v43 = vld [vmem:[%s8002_s21 + $0x90] sm:$0xff]  ;;  %v646_v49 = vld [vmem:[%s8002_s21 + $0x78] sm:$0xff] }
  0x75   : > { %3573 = vmatprep.subr.bf16.mxu0 %v1617_v4  ;;  %4598 = vmatprep.subr.bf16.mxu1 %v1619_v6  ;;  %v325_v25 = vunpack.c.0.s8 %v324_v19  ;;  %v1626_v29 = vunpack.c.h.s8.bf16 %v636_v16  ;;  %v1628_v30 = vunpack.c.h.s8.bf16 %v638_v17  ;;  %v1632_v31 = vunpack.c.l.s8.bf16 %v642_v27  ;;  %v8038_v36 = vld [vmem:[%s9576_s0] sm:$0xff]  ;;  %v648_v50 = vld [vmem:[%s8002_s21 + $0x88] sm:$0xff]  ;;  %v654_v57 = vld [vmem:[%s8002_s21 + $0xb8] sm:$0xff]  ;;  %s9608_s5 = smov (!%p9421_p13, %s289_s5), 24 }
  0x76   : > { %v1634_v32 = vunpack.c.l.s8.bf16 %v644_v28  ;;  %v1631_v37 = vunpack.c.l.s8.bf16 %v641_v33  ;;  %v1633_v38 = vunpack.c.l.s8.bf16 %v643_v34  ;;  %v1637_v39 = vunpack.c.h.s8.bf16 %v642_v27  ;;  %v647_v42 = vld [vmem:[%s8002_s21 + $0x80] sm:$0xff]  ;;  %v652_v56 = vld [vmem:[%s8002_s21 + $0xa8] sm:$0xff]  ;;  %v653_v63 = vld [vmem:[%s8002_s21 + $0xb0] sm:$0xff]  ;;  %s6841_s19 = sshll.u32 %s9608_s5, 1 }
  0x77   : > { %v8033_v35 = vsub.s32 %v325_v25, %v8026_v26  ;;  %v1639_v40 = vunpack.c.h.s8.bf16 %v644_v28  ;;  %v1636_v45 = vunpack.c.h.s8.bf16 %v641_v33  ;;  %v1638_v46 = vunpack.c.h.s8.bf16 %v643_v34  ;;  %v651_v62 = vld [vmem:[%s8002_s21 + $0xa0] sm:$0xff]  ;;  %v657_v4 = vld [vmem:[%s8002_s21 + $0xd0] sm:$0xff]  ;;  %v656_v10 = vld [vmem:[%s8002_s21 + $0xc8] sm:$0xff]  ;;  %s9441_s10 = scalar_lea.vmem %s9580_s4, %s6841_s19 }
  0x78   : > { %3574 = vmatpush1.bf16.msra.mxu0 %v1616_v12  ;;  %4599 = vmatpush1.bf16.msra.mxu1 %v1618_v13  ;;  %v1642_v47 = vunpack.c.l.s8.bf16 %v647_v42  ;;  %v1644_v48 = vunpack.c.l.s8.bf16 %v649_v43  ;;  %v1641_v52 = vunpack.c.l.s8.bf16 %v646_v49  ;;  %v1643_v53 = vunpack.c.l.s8.bf16 %v648_v50  ;;  %v659_v5 = vld [vmem:[%s8002_s21 + $0xe0] sm:$0xff]  ;;  %v658_v11 = vld [vmem:[%s8002_s21 + $0xd8] sm:$0xff]  ;;  %v664_v17 = vld [vmem:[%s8002_s21 + $0x108] sm:$0xff] }
  0x79   : > { %3575 = vmatprep.subr.bf16.mxu0 %v1622_v14  ;;  %4600 = vmatprep.subr.bf16.mxu1 %v1624_v15  ;;  %v8042_v41 = vrot.slane %v8038_v36, %v8033_v35  ;;  %v1647_v54 = vunpack.c.h.s8.bf16 %v647_v42  ;;  %v1649_v55 = vunpack.c.h.s8.bf16 %v649_v43  ;;  %v1646_v58 = vunpack.c.h.s8.bf16 %v646_v49  ;;  %v662_v16 = vld [vmem:[%s8002_s21 + $0xf8] sm:$0xff] }
  0x7a   : > { %v1648_v59 = vunpack.c.h.s8.bf16 %v648_v50  ;;  %v1652_v60 = vunpack.c.l.s8.bf16 %v652_v56  ;;  %v1654_v61 = vunpack.c.l.s8.bf16 %v654_v57  ;;  %v1651_v0 = vunpack.c.l.s8.bf16 %v651_v62 }
  0x7b   : > { %v337_v44 = vcombine.high %v8042_v41, %v8042_v41  ;;  %v1653_v1 = vunpack.c.l.s8.bf16 %v653_v63  ;;  %v1657_v2 = vunpack.c.h.s8.bf16 %v652_v56  ;;  %v1659_v3 = vunpack.c.h.s8.bf16 %v654_v57 }
  0x7c   : > { %3576 = vmatpush1.bf16.msra.mxu0 %v1621_v21  ;;  %4601 = vmatpush1.bf16.msra.mxu1 %v1623_v22  ;;  %v1656_v6 = vunpack.c.h.s8.bf16 %v651_v62  ;;  %v1658_v7 = vunpack.c.h.s8.bf16 %v653_v63  ;;  %v1662_v8 = vunpack.c.l.s8.bf16 %v657_v4  ;;  %v1664_v9 = vunpack.c.l.s8.bf16 %v659_v5  ;;  %v661_v22 = vld [vmem:[%s8002_s21 + $0xf0] sm:$0xff] }
  0x7d   : > { %3577 = vmatprep.subr.bf16.mxu0 %v1627_v23  ;;  %4602 = vmatprep.subr.bf16.mxu1 %v1629_v24  ;;  %v8050_v51 = vpack.c.bf16 %v337_v44, %v337_v44  ;;  %v1661_v12 = vunpack.c.l.s8.bf16 %v656_v10  ;;  %v1663_v13 = vunpack.c.l.s8.bf16 %v658_v11  ;;  %v1667_v14 = vunpack.c.h.s8.bf16 %v657_v4  ;;  %v663_v23 = vld [vmem:[%s8002_s21 + $0x100] sm:$0xff] }
  0x7e   : > { %v1669_v15 = vunpack.c.h.s8.bf16 %v659_v5  ;;  %v1666_v18 = vunpack.c.h.s8.bf16 %v656_v10  ;;  %v1668_v19 = vunpack.c.h.s8.bf16 %v658_v11  ;;  %v1672_v20 = vunpack.c.l.s8.bf16 %v662_v16 }
  0x7f   : > { %3603 = vmatprep.mubr.bf16.mxu0 %v8050_v51  ;;  %4628 = vmatprep.mubr.bf16.mxu1 %v8050_v51  ;;  %v1674_v21 = vunpack.c.l.s8.bf16 %v664_v17  ;;  %v1671_v24 = vunpack.c.l.s8.bf16 %v661_v22  ;;  %v1673_v25 = vunpack.c.l.s8.bf16 %v663_v23  ;;  %v1677_v27 = vunpack.c.h.s8.bf16 %v662_v16 }
  0x80   : > { %3578 = vmatpush1.bf16.msra.mxu0 %v1626_v29  ;;  %4603 = vmatpush1.bf16.msra.mxu1 %v1628_v30  ;;  %v1679_v28 = vunpack.c.h.s8.bf16 %v664_v17  ;;  %v667_v29 = vld [vmem:[%s8002_s21 + $0x120] sm:$0xff]  ;;  %v669_v30 = vld [vmem:[%s8002_s21 + $0x130] sm:$0xff]  ;;  %vm7812_vm0 = vmmov 0  }
  0x81   : > { %3579 = vmatprep.subr.bf16.mxu0 %v1632_v31  ;;  %4604 = vmatprep.subr.bf16.mxu1 %v1634_v32  ;;  %v1676_v31 = vunpack.c.h.s8.bf16 %v661_v22  ;;  %v1678_v32 = vunpack.c.h.s8.bf16 %v663_v23  ;;  %v1682_v33 = vunpack.c.l.s8.bf16 %v667_v29  ;;  %v1684_v34 = vunpack.c.l.s8.bf16 %v669_v30 }
  0x82   : > { %v1687_v43 = vunpack.c.h.s8.bf16 %v667_v29  ;;  %v1689_v44 = vunpack.c.h.s8.bf16 %v669_v30 }
  0x84   : > { %3580 = vmatpush1.bf16.msra.mxu0 %v1631_v37  ;;  %4605 = vmatpush1.bf16.msra.mxu1 %v1633_v38  ;;  %v666_v37 = vld [vmem:[%s8002_s21 + $0x118] sm:$0xff]  ;;  %v668_v38 = vld [vmem:[%s8002_s21 + $0x128] sm:$0xff] }
  0x85   : > { %3581 = vmatprep.subr.bf16.mxu0 %v1637_v39  ;;  %4606 = vmatprep.subr.bf16.mxu1 %v1639_v40  ;;  %v322_v39 = vcombine.high %v8038_v36, %v8038_v36  ;;  %v1681_v40 = vunpack.c.l.s8.bf16 %v666_v37  ;;  %v1683_v42 = vunpack.c.l.s8.bf16 %v668_v38  ;;  %v1688_v49 = vunpack.c.h.s8.bf16 %v668_v38 }
  0x88   : > { %3582 = vmatpush1.bf16.msra.mxu0 %v1636_v45  ;;  %4607 = vmatpush1.bf16.msra.mxu1 %v1638_v46  ;;  %v672_v45 = vld [vmem:[%s8002_s21 + $0x148] sm:$0xff]  ;;  %v674_v46 = vld [vmem:[%s8002_s21 + $0x158] sm:$0xff] }
  0x89   : > { %3583 = vmatprep.subr.bf16.mxu0 %v1642_v47  ;;  %4608 = vmatprep.subr.bf16.mxu1 %v1644_v48  ;;  %v8075_v47 = vrot.slane %v322_v39, %v8033_v35  ;;  %v1686_v48 = vunpack.c.h.s8.bf16 %v666_v37  ;;  %v1692_v36 = vunpack.c.l.s8.bf16 %v672_v45  ;;  %v1694_v50 = vunpack.c.l.s8.bf16 %v674_v46 }
  0x8c   : > { %3584 = vmatpush1.bf16.msra.mxu0 %v1641_v52  ;;  %4609 = vmatpush1.bf16.msra.mxu1 %v1643_v53  ;;  %v671_v52 = vld [vmem:[%s8002_s21 + $0x140] sm:$0xff]  ;;  %v673_v53 = vld [vmem:[%s8002_s21 + $0x150] sm:$0xff] }
  0x8d   : > { %3585 = vmatprep.subr.bf16.mxu0 %v1647_v54  ;;  %4610 = vmatprep.subr.bf16.mxu1 %v1649_v55  ;;  %v338_v54 = vcombine.high %v8075_v47, %v8075_v47  ;;  %v8083_v55 = vpack.c.bf16 %v8042_v41, %v8042_v41  ;;  %v1691_v56 = vunpack.c.l.s8.bf16 %v671_v52  ;;  %v1693_v57 = vunpack.c.l.s8.bf16 %v673_v53 }
  0x8e   : > { %v1696_v41 = vunpack.c.h.s8.bf16 %v671_v52  ;;  %v1698_v63 = vunpack.c.h.s8.bf16 %v673_v53 }
  0x8f   : > { %v8087_v62 = vpack.c.bf16 %v338_v54, %v338_v54 }
  0x90   : > { %3586 = vmatpush1.bf16.msra.mxu0 %v1646_v58  ;;  %4611 = vmatpush1.bf16.msra.mxu1 %v1648_v59  ;;  %v1697_v58 = vunpack.c.h.s8.bf16 %v672_v45  ;;  %v1699_v59 = vunpack.c.h.s8.bf16 %v674_v46 }
  0x91   : > { %3587 = vmatprep.subr.bf16.mxu0 %v1652_v60  ;;  %4612 = vmatprep.subr.bf16.mxu1 %v1654_v61  ;;  %v677_v60 = vld [vmem:[%s8002_s21 + $0x170] sm:$0xff]  ;;  %v679_v61 = vld [vmem:[%s8002_s21 + $0x180] sm:$0xff] }
  0x94   : > { %3588 = vmatpush1.bf16.msra.mxu0 %v1651_v0  ;;  %4613 = vmatpush1.bf16.msra.mxu1 %v1653_v1  ;;  %v1702_v0 = vunpack.c.l.s8.bf16 %v677_v60  ;;  %v1704_v1 = vunpack.c.l.s8.bf16 %v679_v61 }
  0x95   : > { %3589 = vmatprep.subr.bf16.mxu0 %v1657_v2  ;;  %4614 = vmatprep.subr.bf16.mxu1 %v1659_v3  ;;  %v676_v2 = vld [vmem:[%s8002_s21 + $0x168] sm:$0xff]  ;;  %v678_v3 = vld [vmem:[%s8002_s21 + $0x178] sm:$0xff] }
  0x96   : > { %v1701_v4 = vunpack.c.l.s8.bf16 %v676_v2  ;;  %v1703_v5 = vunpack.c.l.s8.bf16 %v678_v3  ;;  %v1706_v10 = vunpack.c.h.s8.bf16 %v676_v2  ;;  %v1708_v11 = vunpack.c.h.s8.bf16 %v678_v3 }
  0x98   : > { %3590 = vmatpush1.bf16.msra.mxu0 %v1656_v6  ;;  %4615 = vmatpush1.bf16.msra.mxu1 %v1658_v7  ;;  %v1707_v6 = vunpack.c.h.s8.bf16 %v677_v60  ;;  %v1709_v7 = vunpack.c.h.s8.bf16 %v679_v61 }
  0x99   : > { %3591 = vmatprep.subr.bf16.mxu0 %v1662_v8  ;;  %4616 = vmatprep.subr.bf16.mxu1 %v1664_v9  ;;  %v682_v8 = vld [vmem:[%s8002_s21 + $0x198] sm:$0xff]  ;;  %v684_v9 = vld [vmem:[%s8002_s21 + $0x1a8] sm:$0xff] }
  0x9c   : > { %3592 = vmatpush1.bf16.msra.mxu0 %v1661_v12  ;;  %4617 = vmatpush1.bf16.msra.mxu1 %v1663_v13  ;;  %v1712_v12 = vunpack.c.l.s8.bf16 %v682_v8  ;;  %v1714_v13 = vunpack.c.l.s8.bf16 %v684_v9 }
  0x9d   : > { %3593 = vmatprep.subr.bf16.mxu0 %v1667_v14  ;;  %4618 = vmatprep.subr.bf16.mxu1 %v1669_v15  ;;  %v681_v14 = vld [vmem:[%s8002_s21 + $0x190] sm:$0xff]  ;;  %v683_v15 = vld [vmem:[%s8002_s21 + $0x1a0] sm:$0xff] }
  0x9e   : > { %v1711_v16 = vunpack.c.l.s8.bf16 %v681_v14  ;;  %v1713_v17 = vunpack.c.l.s8.bf16 %v683_v15  ;;  %v1716_v22 = vunpack.c.h.s8.bf16 %v681_v14  ;;  %v1718_v23 = vunpack.c.h.s8.bf16 %v683_v15 }
  0xa0   : > { %3594 = vmatpush1.bf16.msra.mxu0 %v1666_v18  ;;  %4619 = vmatpush1.bf16.msra.mxu1 %v1668_v19  ;;  %v1717_v18 = vunpack.c.h.s8.bf16 %v682_v8  ;;  %v1719_v19 = vunpack.c.h.s8.bf16 %v684_v9 }
  0xa1   : > { %3595 = vmatprep.subr.bf16.mxu0 %v1672_v20  ;;  %4620 = vmatprep.subr.bf16.mxu1 %v1674_v21  ;;  %v687_v20 = vld [vmem:[%s8002_s21 + $0x1c0] sm:$0xff]  ;;  %v689_v21 = vld [vmem:[%s8002_s21 + $0x1d0] sm:$0xff] }
  0xa4   : > { %3596 = vmatpush1.bf16.msra.mxu0 %v1671_v24  ;;  %4621 = vmatpush1.bf16.msra.mxu1 %v1673_v25  ;;  %v1722_v24 = vunpack.c.l.s8.bf16 %v687_v20  ;;  %v1724_v25 = vunpack.c.l.s8.bf16 %v689_v21 }
  0xa5   : > { %3597 = vmatprep.subr.bf16.mxu0 %v1677_v27  ;;  %4622 = vmatprep.subr.bf16.mxu1 %v1679_v28  ;;  %v686_v27 = vld [vmem:[%s8002_s21 + $0x1b8] sm:$0xff]  ;;  %v688_v28 = vld [vmem:[%s8002_s21 + $0x1c8] sm:$0xff] }
  0xa6   : > { %v1721_v29 = vunpack.c.l.s8.bf16 %v686_v27  ;;  %v1723_v30 = vunpack.c.l.s8.bf16 %v688_v28  ;;  %v1726_v37 = vunpack.c.h.s8.bf16 %v686_v27  ;;  %v1728_v38 = vunpack.c.h.s8.bf16 %v688_v28 }
  0xa8   : > { %3598 = vmatpush1.bf16.msra.mxu0 %v1676_v31  ;;  %4623 = vmatpush1.bf16.msra.mxu1 %v1678_v32  ;;  %v1727_v31 = vunpack.c.h.s8.bf16 %v687_v20  ;;  %v1729_v32 = vunpack.c.h.s8.bf16 %v689_v21 }
  0xa9   : > { %3599 = vmatprep.subr.bf16.mxu0 %v1682_v33  ;;  %4624 = vmatprep.subr.bf16.mxu1 %v1684_v34  ;;  %v692_v33 = vld [vmem:[%s8002_s21 + $0x1e8] sm:$0xff]  ;;  %v694_v34 = vld [vmem:[%s8002_s21 + $0x1f8] sm:$0xff] }
  0xaa   : > { %v1732_v39 = vunpack.c.l.s8.bf16 %v692_v33  ;;  %v1737_v46 = vunpack.c.h.s8.bf16 %v692_v33 }
  0xac   : > { %3600 = vmatpush1.bf16.msra.mxu0 %v1681_v40  ;;  %4625 = vmatpush1.bf16.msra.mxu1 %v1683_v42  ;;  %v1734_v40 = vunpack.c.l.s8.bf16 %v694_v34  ;;  %v691_v42 = vld [vmem:[%s8002_s21 + $0x1e0] sm:$0xff] }
  0xad   : > { %3601 = vmatprep.subr.bf16.mxu0 %v1687_v43  ;;  %4626 = vmatprep.subr.bf16.mxu1 %v1689_v44  ;;  %v693_v43 = vld [vmem:[%s8002_s21 + $0x1f0] sm:$0xff]  ;;  %v1731_v44 = vunpack.c.l.s8.bf16 %v691_v42 }
  0xae   : > { %v1733_v45 = vunpack.c.l.s8.bf16 %v693_v43  ;;  %v1738_v52 = vunpack.c.h.s8.bf16 %v693_v43  ;;  %v719_v43 = vld [vmem:[%s8002_s21 + $0x2c0] sm:$0xff] }
  0xb0   : > { %3602 = vmatpush1.bf16.msra.mxu0 %v1686_v48  ;;  %4627 = vmatpush1.bf16.msra.mxu1 %v1688_v49  ;;  %v1739_v48 = vunpack.c.h.s8.bf16 %v694_v34  ;;  %v697_v49 = vld [vmem:[%s8002_s21 + $0x210] sm:$0xff]  ;;  %v8136_v34 = vpack.c.bf16 %v8075_v47, %v8075_v47 }
  0xb1   : > { %3612 = vmatprep.subr.bf16.mxu0 %v1692_v36  ;;  %4637 = vmatprep.subr.bf16.mxu1 %v1694_v50  ;;  %v699_v36 = vld [vmem:[%s8002_s21 + $0x220] sm:$0xff]  ;;  %v1736_v50 = vunpack.c.h.s8.bf16 %v691_v42  ;;  %v1742_v53 = vunpack.c.l.s8.bf16 %v697_v49  ;;  %v1747_v60 = vunpack.c.h.s8.bf16 %v697_v49  ;;  %v717_v42 = vld [vmem:[%s8002_s21 + $0x2b0] sm:$0xff]  ;;  %v716_v49 = vld [vmem:[%s8002_s21 + $0x2a8] sm:$0xff] }
  0xb2   : > { %v1744_v54 = vunpack.c.l.s8.bf16 %v699_v36  ;;  %v1749_v61 = vunpack.c.h.s8.bf16 %v699_v36  ;;  %v718_v36 = vld [vmem:[%s8002_s21 + $0x2b8] sm:$0xff] }
  0xb3   : > { %3604 = vmatmul.mubr.bf16.vlgmr.msra.gmra.mrb[0].mxu0 %v8083_v55  ;;  %4629 = vmatmul.mubr.bf16.vlgmr.msra.gmra.mrb[0].mxu1 %v8083_v55 }
  0xb4   : > { %3613 = vmatpush1.bf16.msra.mxu0 %v1691_v56  ;;  %4638 = vmatpush1.bf16.msra.mxu1 %v1693_v57  ;;  %v696_v56 = vld [vmem:[%s8002_s21 + $0x208] sm:$0xff]  ;;  %v698_v57 = vld [vmem:[%s8002_s21 + $0x218] sm:$0xff] }
  0xb5   : > { %3614 = vmatprep.subr.bf16.mxu0 %v1697_v58  ;;  %4639 = vmatprep.subr.bf16.mxu1 %v1699_v59  ;;  %v1741_v58 = vunpack.c.l.s8.bf16 %v696_v56  ;;  %v1743_v59 = vunpack.c.l.s8.bf16 %v698_v57 }
  0xb6   : > { %3644 = vmatprep.mubr.bf16.mxu0 %v8087_v62  ;;  %4669 = vmatprep.mubr.bf16.mxu1 %v8087_v62 }
  0xb8   : > { %3615 = vmatpush1.bf16.msra.mxu0 %v1696_v41  ;;  %4640 = vmatpush1.bf16.msra.mxu1 %v1698_v63  ;;  %v702_v41 = vld [vmem:[%s8002_s21 + $0x238] sm:$0xff]  ;;  %v704_v63 = vld [vmem:[%s8002_s21 + $0x248] sm:$0xff] }
  0xb9   : > { %3616 = vmatprep.subr.bf16.mxu0 %v1702_v0  ;;  %4641 = vmatprep.subr.bf16.mxu1 %v1704_v1  ;;  %v1746_v0 = vunpack.c.h.s8.bf16 %v696_v56  ;;  %v1748_v1 = vunpack.c.h.s8.bf16 %v698_v57  ;;  %v1752_v2 = vunpack.c.l.s8.bf16 %v702_v41  ;;  %v1754_v3 = vunpack.c.l.s8.bf16 %v704_v63  ;;  %v722_v56 = vld [vmem:[%s8002_s21 + $0x2d8] sm:$0xff]  ;;  %v724_v57 = vld [vmem:[%s8002_s21 + $0x2e8] sm:$0xff] }
  0xba   : > { %v1757_v8 = vunpack.c.h.s8.bf16 %v702_v41  ;;  %v1759_v9 = vunpack.c.h.s8.bf16 %v704_v63  ;;  %v721_v41 = vld [vmem:[%s8002_s21 + $0x2d0] sm:$0xff]  ;;  %v723_v63 = vld [vmem:[%s8002_s21 + $0x2e0] sm:$0xff] }
  0xbc   : > { %3617 = vmatpush1.bf16.msra.mxu0 %v1701_v4  ;;  %4642 = vmatpush1.bf16.msra.mxu1 %v1703_v5  ;;  %v701_v4 = vld [vmem:[%s8002_s21 + $0x230] sm:$0xff]  ;;  %v703_v5 = vld [vmem:[%s8002_s21 + $0x240] sm:$0xff] }
  0xbd   : > { %3618 = vmatprep.subr.bf16.mxu0 %v1707_v6  ;;  %4643 = vmatprep.subr.bf16.mxu1 %v1709_v7  ;;  %v1751_v6 = vunpack.c.l.s8.bf16 %v701_v4  ;;  %v1753_v7 = vunpack.c.l.s8.bf16 %v703_v5 }
  0xc0   : > { %3619 = vmatpush1.bf16.msra.mxu0 %v1706_v10  ;;  %4644 = vmatpush1.bf16.msra.mxu1 %v1708_v11  ;;  %v707_v10 = vld [vmem:[%s8002_s21 + $0x260] sm:$0xff]  ;;  %v709_v11 = vld [vmem:[%s8002_s21 + $0x270] sm:$0xff] }
  0xc1   : > { %3620 = vmatprep.subr.bf16.mxu0 %v1712_v12  ;;  %4645 = vmatprep.subr.bf16.mxu1 %v1714_v13  ;;  %v1756_v12 = vunpack.c.h.s8.bf16 %v701_v4  ;;  %v1758_v13 = vunpack.c.h.s8.bf16 %v703_v5  ;;  %v1762_v14 = vunpack.c.l.s8.bf16 %v707_v10  ;;  %v1764_v15 = vunpack.c.l.s8.bf16 %v709_v11  ;;  %v727_v4 = vld [vmem:[%s8002_s21 + $0x300] sm:$0xff]  ;;  %v729_v5 = vld [vmem:[%s8002_s21 + $0x310] sm:$0xff] }
  0xc2   : > { %v1767_v21 = vunpack.c.h.s8.bf16 %v707_v10  ;;  %v726_v10 = vld [vmem:[%s8002_s21 + $0x2f8] sm:$0xff] }
  0xc4   : > { %3621 = vmatpush1.bf16.msra.mxu0 %v1711_v16  ;;  %4646 = vmatpush1.bf16.msra.mxu1 %v1713_v17  ;;  %v706_v16 = vld [vmem:[%s8002_s21 + $0x258] sm:$0xff]  ;;  %v708_v17 = vld [vmem:[%s8002_s21 + $0x268] sm:$0xff] }
  0xc5   : > { %3622 = vmatprep.subr.bf16.mxu0 %v1717_v18  ;;  %4647 = vmatprep.subr.bf16.mxu1 %v1719_v19  ;;  %v8122_v18 = vld [vmem:[%s9576_s0 + $0x8] sm:$0xff]  ;;  %v1761_v19 = vunpack.c.l.s8.bf16 %v706_v16  ;;  %v1763_v20 = vunpack.c.l.s8.bf16 %v708_v17  ;;  %v1766_v27 = vunpack.c.h.s8.bf16 %v706_v16  ;;  %v1768_v28 = vunpack.c.h.s8.bf16 %v708_v17  ;;  %v734_v17 = vld [vmem:[%s8002_s21 + $0x338] sm:$0xff] }
  0xc6   : > { %v732_v16 = vld [vmem:[%s8002_s21 + $0x328] sm:$0xff] }
  0xc8   : > { %3623 = vmatpush1.bf16.msra.mxu0 %v1716_v22  ;;  %4648 = vmatpush1.bf16.msra.mxu1 %v1718_v23  ;;  %v1769_v22 = vunpack.c.h.s8.bf16 %v709_v11  ;;  %v712_v23 = vld [vmem:[%s8002_s21 + $0x288] sm:$0xff] }
  0xc9   : > { %3624 = vmatprep.subr.bf16.mxu0 %v1722_v24  ;;  %4649 = vmatprep.subr.bf16.mxu1 %v1724_v25  ;;  %v714_v24 = vld [vmem:[%s8002_s21 + $0x298] sm:$0xff]  ;;  %v8128_v25 = vrot.slane %v8122_v18, %v8033_v35  ;;  %v728_v11 = vld [vmem:[%s8002_s21 + $0x308] sm:$0xff] }
  0xcb   : > { %v354_v33 = vcombine.high %v8128_v25, %v8128_v25 }
  0xcc   : > { %3625 = vmatpush1.bf16.msra.mxu0 %v1721_v29  ;;  %4650 = vmatpush1.bf16.msra.mxu1 %v1723_v30  ;;  %v1772_v29 = vunpack.c.l.s8.bf16 %v712_v23  ;;  %v1774_v30 = vunpack.c.l.s8.bf16 %v714_v24 }
  0xcd   : > { %3626 = vmatprep.subr.bf16.mxu0 %v1727_v31  ;;  %4651 = vmatprep.subr.bf16.mxu1 %v1729_v32  ;;  %v711_v31 = vld [vmem:[%s8002_s21 + $0x280] sm:$0xff]  ;;  %v713_v32 = vld [vmem:[%s8002_s21 + $0x290] sm:$0xff] }
  0xce   : > { %v1776_v47 = vunpack.c.h.s8.bf16 %v711_v31 }
  0xd0   : > { %3627 = vmatpush1.bf16.msra.mxu0 %v1726_v37  ;;  %4652 = vmatpush1.bf16.msra.mxu1 %v1728_v38  ;;  %v1771_v37 = vunpack.c.l.s8.bf16 %v711_v31  ;;  %v1773_v38 = vunpack.c.l.s8.bf16 %v713_v32  ;;  %v737_v31 = vld [vmem:[%s8002_s21 + $0x350] sm:$0xff] }
  0xd1   : > { %3628 = vmatprep.subr.bf16.mxu0 %v1732_v39  ;;  %4653 = vmatprep.subr.bf16.mxu1 %v1734_v40  ;;  %v1777_v39 = vunpack.c.h.s8.bf16 %v712_v23  ;;  %v1779_v40 = vunpack.c.h.s8.bf16 %v714_v24  ;;  %v731_v23 = vld [vmem:[%s8002_s21 + $0x320] sm:$0xff]  ;;  %v733_v24 = vld [vmem:[%s8002_s21 + $0x330] sm:$0xff] }
  0xd4   : > { %3629 = vmatpush1.bf16.msra.mxu0 %v1731_v44  ;;  %4654 = vmatpush1.bf16.msra.mxu1 %v1733_v45  ;;  %v8140_v44 = vpack.c.bf16 %v354_v33, %v354_v33  ;;  %v1778_v45 = vunpack.c.h.s8.bf16 %v713_v32  ;;  %v739_v32 = vld [vmem:[%s8002_s21 + $0x360] sm:$0xff]  ;;  %v1816_v33 = vunpack.c.h.s8.bf16 %v731_v23 }
  0xd5   : > { %3630 = vmatprep.subr.bf16.mxu0 %v1737_v46  ;;  %4655 = vmatprep.subr.bf16.mxu1 %v1739_v48  ;;  %v1782_v46 = vunpack.c.l.s8.bf16 %v717_v42  ;;  %v1784_v48 = vunpack.c.l.s8.bf16 %v719_v43 }
  0xd8   : > { %3631 = vmatpush1.bf16.msra.mxu0 %v1736_v50  ;;  %4656 = vmatpush1.bf16.msra.mxu1 %v1738_v52  ;;  %v1781_v50 = vunpack.c.l.s8.bf16 %v716_v49  ;;  %v1783_v52 = vunpack.c.l.s8.bf16 %v718_v36 }
  0xd9   : > { %3632 = vmatprep.subr.bf16.mxu0 %v1742_v53  ;;  %4657 = vmatprep.subr.bf16.mxu1 %v1744_v54  ;;  %v1787_v53 = vunpack.c.h.s8.bf16 %v717_v42  ;;  %v1789_v54 = vunpack.c.h.s8.bf16 %v719_v43  ;;  %v738_v42 = vld [vmem:[%s8002_s21 + $0x358] sm:$0xff] }
  0xdc   : > { %3633 = vmatpush1.bf16.msra.mxu0 %v1741_v58  ;;  %4658 = vmatpush1.bf16.msra.mxu1 %v1743_v59  ;;  %v1786_v58 = vunpack.c.h.s8.bf16 %v716_v49  ;;  %v1788_v59 = vunpack.c.h.s8.bf16 %v718_v36  ;;  %v744_v49 = vld [vmem:[%s8002_s21 + $0x388] sm:$0xff] }
  0xdd   : > { %3634 = vmatprep.subr.bf16.mxu0 %v1747_v60  ;;  %4659 = vmatprep.subr.bf16.mxu1 %v1749_v61  ;;  %v1792_v60 = vunpack.c.l.s8.bf16 %v722_v56  ;;  %v1794_v61 = vunpack.c.l.s8.bf16 %v724_v57 }
  0xe0   : > { %3635 = vmatpush1.bf16.msra.mxu0 %v1746_v0  ;;  %4660 = vmatpush1.bf16.msra.mxu1 %v1748_v1  ;;  %v1791_v0 = vunpack.c.l.s8.bf16 %v721_v41  ;;  %v1793_v1 = vunpack.c.l.s8.bf16 %v723_v63 }
  0xe1   : > { %3636 = vmatprep.subr.bf16.mxu0 %v1752_v2  ;;  %4661 = vmatprep.subr.bf16.mxu1 %v1754_v3  ;;  %v1797_v2 = vunpack.c.h.s8.bf16 %v722_v56  ;;  %v1799_v3 = vunpack.c.h.s8.bf16 %v724_v57  ;;  %v743_v56 = vld [vmem:[%s8002_s21 + $0x380] sm:$0xff] }
  0xe4   : > { %3637 = vmatpush1.bf16.msra.mxu0 %v1751_v6  ;;  %4662 = vmatpush1.bf16.msra.mxu1 %v1753_v7  ;;  %v1796_v6 = vunpack.c.h.s8.bf16 %v721_v41  ;;  %v1798_v7 = vunpack.c.h.s8.bf16 %v723_v63  ;;  %v749_v41 = vld [vmem:[%s8002_s21 + $0x3b0] sm:$0xff] }
  0xe5   : > { %3638 = vmatprep.subr.bf16.mxu0 %v1757_v8  ;;  %4663 = vmatprep.subr.bf16.mxu1 %v1759_v9  ;;  %v1802_v8 = vunpack.c.l.s8.bf16 %v727_v4  ;;  %v1804_v9 = vunpack.c.l.s8.bf16 %v729_v5 }
  0xe8   : > { %3639 = vmatpush1.bf16.msra.mxu0 %v1756_v12  ;;  %4664 = vmatpush1.bf16.msra.mxu1 %v1758_v13  ;;  %v1801_v12 = vunpack.c.l.s8.bf16 %v726_v10  ;;  %v1803_v13 = vunpack.c.l.s8.bf16 %v728_v11 }
  0xe9   : > { %3640 = vmatprep.subr.bf16.mxu0 %v1762_v14  ;;  %4665 = vmatprep.subr.bf16.mxu1 %v1764_v15  ;;  %v1807_v14 = vunpack.c.h.s8.bf16 %v727_v4  ;;  %v1809_v15 = vunpack.c.h.s8.bf16 %v729_v5  ;;  %v748_v4 = vld [vmem:[%s8002_s21 + $0x3a8] sm:$0xff]  ;;  %v339_v5 = vcombine.high %v8122_v18, %v8122_v18 }
  0xec   : > { %3641 = vmatpush1.bf16.msra.mxu0 %v1761_v19  ;;  %4666 = vmatpush1.bf16.msra.mxu1 %v1763_v20  ;;  %v1806_v19 = vunpack.c.h.s8.bf16 %v726_v10  ;;  %v1808_v20 = vunpack.c.h.s8.bf16 %v728_v11  ;;  %v752_v10 = vld [vmem:[%s8002_s21 + $0x3c8] sm:$0xff]  ;;  %v754_v11 = vld [vmem:[%s8002_s21 + $0x3d8] sm:$0xff] }
  0xed   : > { %3642 = vmatprep.subr.bf16.mxu0 %v1767_v21  ;;  %4667 = vmatprep.subr.bf16.mxu1 %v1769_v22  ;;  %v1812_v21 = vunpack.c.l.s8.bf16 %v732_v16  ;;  %v1814_v22 = vunpack.c.l.s8.bf16 %v734_v17  ;;  %v1852_v18 = vunpack.c.l.s8.bf16 %v752_v10 }
  0xf0   : > { %3643 = vmatpush1.bf16.msra.mxu0 %v1766_v27  ;;  %4668 = vmatpush1.bf16.msra.mxu1 %v1768_v28  ;;  %v1811_v27 = vunpack.c.l.s8.bf16 %v731_v23  ;;  %v1813_v28 = vunpack.c.l.s8.bf16 %v733_v24  ;;  %v1857_v23 = vunpack.c.h.s8.bf16 %v752_v10 }
  0xf1   : > { %3653 = vmatprep.subr.bf16.mxu0 %v1772_v29  ;;  %4678 = vmatprep.subr.bf16.mxu1 %v1774_v30  ;;  %v1817_v29 = vunpack.c.h.s8.bf16 %v732_v16  ;;  %v1819_v30 = vunpack.c.h.s8.bf16 %v734_v17  ;;  %v751_v16 = vld [vmem:[%s8002_s21 + $0x3c0] sm:$0xff]  ;;  %v753_v17 = vld [vmem:[%s8002_s21 + $0x3d0] sm:$0xff] }
  0xf3   : > { %3645 = vmatmul.mubr.bf16.vlgmr.msra.gmra.mrb[0].mxu0 %v8136_v34  ;;  %4670 = vmatmul.mubr.bf16.vlgmr.msra.gmra.mrb[0].mxu1 %v8136_v34 }
  0xf4   : > { %3654 = vmatpush1.bf16.msra.mxu0 %v1771_v37  ;;  %4679 = vmatpush1.bf16.msra.mxu1 %v1773_v38  ;;  %v1818_v37 = vunpack.c.h.s8.bf16 %v733_v24  ;;  %v1822_v38 = vunpack.c.l.s8.bf16 %v737_v31  ;;  %v1859_v24 = vunpack.c.h.s8.bf16 %v754_v11 }
  0xf5   : > { %3655 = vmatprep.subr.bf16.mxu0 %v1777_v39  ;;  %4680 = vmatprep.subr.bf16.mxu1 %v1779_v40  ;;  %v1824_v39 = vunpack.c.l.s8.bf16 %v739_v32  ;;  %v736_v40 = vld [vmem:[%s8002_s21 + $0x348] sm:$0xff] }
  0xf6   : > { %3685 = vmatprep.mubr.bf16.mxu0 %v8140_v44  ;;  %4710 = vmatprep.mubr.bf16.mxu1 %v8140_v44  ;;  %v1821_v43 = vunpack.c.l.s8.bf16 %v736_v40  ;;  %v1826_v36 = vunpack.c.h.s8.bf16 %v736_v40 }
  0xf8   : > { %3656 = vmatpush1.bf16.msra.mxu0 %v1776_v47  ;;  %4681 = vmatpush1.bf16.msra.mxu1 %v1778_v45  ;;  %v1823_v47 = vunpack.c.l.s8.bf16 %v738_v42  ;;  %v1827_v45 = vunpack.c.h.s8.bf16 %v737_v31 }
  0xf9   : > { %3657 = vmatprep.subr.bf16.mxu0 %v1782_v46  ;;  %4682 = vmatprep.subr.bf16.mxu1 %v1784_v48  ;;  %v1829_v46 = vunpack.c.h.s8.bf16 %v739_v32  ;;  %v742_v48 = vld [vmem:[%s8002_s21 + $0x378] sm:$0xff] }
  0xfc   : > { %3658 = vmatpush1.bf16.msra.mxu0 %v1781_v50  ;;  %4683 = vmatpush1.bf16.msra.mxu1 %v1783_v52  ;;  %v1828_v50 = vunpack.c.h.s8.bf16 %v738_v42  ;;  %v1832_v52 = vunpack.c.l.s8.bf16 %v742_v48 }
  0xfd   : > { %3659 = vmatprep.subr.bf16.mxu0 %v1787_v53  ;;  %4684 = vmatprep.subr.bf16.mxu1 %v1789_v54  ;;  %v1834_v53 = vunpack.c.l.s8.bf16 %v744_v49  ;;  %v741_v54 = vld [vmem:[%s8002_s21 + $0x370] sm:$0xff] }
  0xfe   : > { %v1831_v57 = vunpack.c.l.s8.bf16 %v741_v54  ;;  %v1836_v63 = vunpack.c.h.s8.bf16 %v741_v54 }
 0x100   : > { %3660 = vmatpush1.bf16.msra.mxu0 %v1786_v58  ;;  %4685 = vmatpush1.bf16.msra.mxu1 %v1788_v59  ;;  %v1833_v58 = vunpack.c.l.s8.bf16 %v743_v56  ;;  %v1837_v59 = vunpack.c.h.s8.bf16 %v742_v48 }
 0x101   : > { %3661 = vmatprep.subr.bf16.mxu0 %v1792_v60  ;;  %4686 = vmatprep.subr.bf16.mxu1 %v1794_v61  ;;  %v1839_v60 = vunpack.c.h.s8.bf16 %v744_v49  ;;  %v747_v61 = vld [vmem:[%s8002_s21 + $0x3a0] sm:$0xff] }
 0x104   : > { %3662 = vmatpush1.bf16.msra.mxu0 %v1791_v0  ;;  %4687 = vmatpush1.bf16.msra.mxu1 %v1793_v1  ;;  %v1838_v0 = vunpack.c.h.s8.bf16 %v743_v56  ;;  %v1842_v1 = vunpack.c.l.s8.bf16 %v747_v61 }
 0x105   : > { %3663 = vmatprep.subr.bf16.mxu0 %v1797_v2  ;;  %4688 = vmatprep.subr.bf16.mxu1 %v1799_v3  ;;  %v1844_v2 = vunpack.c.l.s8.bf16 %v749_v41  ;;  %v746_v3 = vld [vmem:[%s8002_s21 + $0x398] sm:$0xff] }
 0x108   : > { %3664 = vmatpush1.bf16.msra.mxu0 %v1796_v6  ;;  %4689 = vmatpush1.bf16.msra.mxu1 %v1798_v7  ;;  %v1841_v6 = vunpack.c.l.s8.bf16 %v746_v3  ;;  %v1843_v7 = vunpack.c.l.s8.bf16 %v748_v4 }
 0x109   : > { %3665 = vmatprep.subr.bf16.mxu0 %v1802_v8  ;;  %4690 = vmatprep.subr.bf16.mxu1 %v1804_v9  ;;  %v1847_v8 = vunpack.c.h.s8.bf16 %v747_v61  ;;  %v1849_v9 = vunpack.c.h.s8.bf16 %v749_v41 }
 0x10c   : > { %3666 = vmatpush1.bf16.msra.mxu0 %v1801_v12  ;;  %4691 = vmatpush1.bf16.msra.mxu1 %v1803_v13  ;;  %v8177_v12 = vrot.slane %v339_v5, %v8033_v35  ;;  %v1846_v13 = vunpack.c.h.s8.bf16 %v746_v3  ;;  %v772_v5 = vld [vmem:[%s8002_s21 + $0x468] sm:$0xff] }
 0x10d   : > { %3667 = vmatprep.subr.bf16.mxu0 %v1807_v14  ;;  %4692 = vmatprep.subr.bf16.mxu1 %v1809_v15  ;;  %v1848_v14 = vunpack.c.h.s8.bf16 %v748_v4  ;;  %v1854_v15 = vunpack.c.l.s8.bf16 %v754_v11  ;;  %v771_v11 = vld [vmem:[%s8002_s21 + $0x460] sm:$0xff] }
 0x110   : > { %3668 = vmatpush1.bf16.msra.mxu0 %v1806_v19  ;;  %4693 = vmatpush1.bf16.msra.mxu1 %v1808_v20  ;;  %v355_v19 = vcombine.high %v8177_v12, %v8177_v12  ;;  %v8185_v20 = vpack.c.bf16 %v8128_v25, %v8128_v25  ;;  %v1856_v25 = vunpack.c.h.s8.bf16 %v751_v16 }
 0x111   : > { %3669 = vmatprep.subr.bf16.mxu0 %v1812_v21  ;;  %4694 = vmatprep.subr.bf16.mxu1 %v1814_v22  ;;  %v1851_v21 = vunpack.c.l.s8.bf16 %v751_v16  ;;  %v1853_v22 = vunpack.c.l.s8.bf16 %v753_v17 }
 0x114   : > { %3670 = vmatpush1.bf16.msra.mxu0 %v1811_v27  ;;  %4695 = vmatpush1.bf16.msra.mxu1 %v1813_v28  ;;  %v757_v27 = vld [vmem:[%s8002_s21 + $0x3f0] sm:$0xff]  ;;  %v759_v28 = vld [vmem:[%s8002_s21 + $0x400] sm:$0xff] }
 0x115   : > { %3671 = vmatprep.subr.bf16.mxu0 %v1817_v29  ;;  %4696 = vmatprep.subr.bf16.mxu1 %v1819_v30  ;;  %v8189_v29 = vpack.c.bf16 %v355_v19, %v355_v19  ;;  %v1858_v30 = vunpack.c.h.s8.bf16 %v753_v17  ;;  %v1862_v31 = vunpack.c.l.s8.bf16 %v757_v27  ;;  %v1864_v32 = vunpack.c.l.s8.bf16 %v759_v28  ;;  %v777_v17 = vld [vmem:[%s8002_s21 + $0x490] sm:$0xff]  ;;  %v779_v19 = vld [vmem:[%s8002_s21 + $0x4a0] sm:$0xff] }
 0x116   : > { %v1867_v40 = vunpack.c.h.s8.bf16 %v757_v27  ;;  %v1869_v42 = vunpack.c.h.s8.bf16 %v759_v28  ;;  %v776_v27 = vld [vmem:[%s8002_s21 + $0x488] sm:$0xff]  ;;  %v778_v28 = vld [vmem:[%s8002_s21 + $0x498] sm:$0xff] }
 0x118   : > { %3672 = vmatpush1.bf16.msra.mxu0 %v1816_v33  ;;  %4697 = vmatpush1.bf16.msra.mxu1 %v1818_v37  ;;  %v756_v33 = vld [vmem:[%s8002_s21 + $0x3e8] sm:$0xff]  ;;  %v758_v37 = vld [vmem:[%s8002_s21 + $0x3f8] sm:$0xff] }
 0x119   : > { %3673 = vmatprep.subr.bf16.mxu0 %v1822_v38  ;;  %4698 = vmatprep.subr.bf16.mxu1 %v1824_v39  ;;  %v1861_v38 = vunpack.c.l.s8.bf16 %v756_v33  ;;  %v1863_v39 = vunpack.c.l.s8.bf16 %v758_v37 }
 0x11c   : > { %3674 = vmatpush1.bf16.msra.mxu0 %v1821_v43  ;;  %4699 = vmatpush1.bf16.msra.mxu1 %v1823_v47  ;;  %v762_v43 = vld [vmem:[%s8002_s21 + $0x418] sm:$0xff]  ;;  %v764_v47 = vld [vmem:[%s8002_s21 + $0x428] sm:$0xff] }
 0x11d   : > { %3675 = vmatprep.subr.bf16.mxu0 %v1827_v45  ;;  %4700 = vmatprep.subr.bf16.mxu1 %v1829_v46  ;;  %v1866_v45 = vunpack.c.h.s8.bf16 %v756_v33  ;;  %v1868_v46 = vunpack.c.h.s8.bf16 %v758_v37  ;;  %v1872_v48 = vunpack.c.l.s8.bf16 %v762_v43  ;;  %v1874_v49 = vunpack.c.l.s8.bf16 %v764_v47  ;;  %v782_v33 = vld [vmem:[%s8002_s21 + $0x4b8] sm:$0xff]  ;;  %v784_v37 = vld [vmem:[%s8002_s21 + $0x4c8] sm:$0xff] }
 0x11e   : > { %v1877_v54 = vunpack.c.h.s8.bf16 %v762_v43  ;;  %v1879_v56 = vunpack.c.h.s8.bf16 %v764_v47  ;;  %v781_v43 = vld [vmem:[%s8002_s21 + $0x4b0] sm:$0xff]  ;;  %v783_v47 = vld [vmem:[%s8002_s21 + $0x4c0] sm:$0xff] }
 0x120   : > { %3676 = vmatpush1.bf16.msra.mxu0 %v1826_v36  ;;  %4701 = vmatpush1.bf16.msra.mxu1 %v1828_v50  ;;  %v761_v36 = vld [vmem:[%s8002_s21 + $0x410] sm:$0xff]  ;;  %v763_v50 = vld [vmem:[%s8002_s21 + $0x420] sm:$0xff] }
 0x121   : > { %3677 = vmatprep.subr.bf16.mxu0 %v1832_v52  ;;  %4702 = vmatprep.subr.bf16.mxu1 %v1834_v53  ;;  %v1871_v52 = vunpack.c.l.s8.bf16 %v761_v36  ;;  %v1873_v53 = vunpack.c.l.s8.bf16 %v763_v50 }
 0x124   : > { %3678 = vmatpush1.bf16.msra.mxu0 %v1831_v57  ;;  %4703 = vmatpush1.bf16.msra.mxu1 %v1833_v58  ;;  %v767_v57 = vld [vmem:[%s8002_s21 + $0x440] sm:$0xff]  ;;  %v769_v58 = vld [vmem:[%s8002_s21 + $0x450] sm:$0xff] }
 0x125   : > { %3679 = vmatprep.subr.bf16.mxu0 %v1837_v59  ;;  %4704 = vmatprep.subr.bf16.mxu1 %v1839_v60  ;;  %v1876_v59 = vunpack.c.h.s8.bf16 %v761_v36  ;;  %v1878_v60 = vunpack.c.h.s8.bf16 %v763_v50  ;;  %v1882_v61 = vunpack.c.l.s8.bf16 %v767_v57  ;;  %v1884_v41 = vunpack.c.l.s8.bf16 %v769_v58  ;;  %v787_v36 = vld [vmem:[%s8002_s21 + $0x4e0] sm:$0xff]  ;;  %v789_v50 = vld [vmem:[%s8002_s21 + $0x4f0] sm:$0xff] }
 0x126   : > { %v1887_v3 = vunpack.c.h.s8.bf16 %v767_v57  ;;  %v1889_v4 = vunpack.c.h.s8.bf16 %v769_v58  ;;  %v786_v57 = vld [vmem:[%s8002_s21 + $0x4d8] sm:$0xff]  ;;  %v788_v58 = vld [vmem:[%s8002_s21 + $0x4e8] sm:$0xff] }
 0x128   : > { %3680 = vmatpush1.bf16.msra.mxu0 %v1836_v63  ;;  %4705 = vmatpush1.bf16.msra.mxu1 %v1838_v0  ;;  %v766_v63 = vld [vmem:[%s8002_s21 + $0x438] sm:$0xff]  ;;  %v768_v0 = vld [vmem:[%s8002_s21 + $0x448] sm:$0xff] }
 0x129   : > { %3681 = vmatprep.subr.bf16.mxu0 %v1842_v1  ;;  %4706 = vmatprep.subr.bf16.mxu1 %v1844_v2  ;;  %v1881_v1 = vunpack.c.l.s8.bf16 %v766_v63  ;;  %v1883_v2 = vunpack.c.l.s8.bf16 %v768_v0 }
 0x12c   : > { %3682 = vmatpush1.bf16.msra.mxu0 %v1841_v6  ;;  %4707 = vmatpush1.bf16.msra.mxu1 %v1843_v7  ;;  %v774_v6 = vld [vmem:[%s8002_s21 + $0x478] sm:$0xff]  ;;  %v1886_v7 = vunpack.c.h.s8.bf16 %v766_v63  ;;  %v1929_v63 = vunpack.c.h.s8.bf16 %v789_v50 }
 0x12d   : > { %3683 = vmatprep.subr.bf16.mxu0 %v1847_v8  ;;  %4708 = vmatprep.subr.bf16.mxu1 %v1849_v9  ;;  %v1888_v8 = vunpack.c.h.s8.bf16 %v768_v0  ;;  %v1892_v9 = vunpack.c.l.s8.bf16 %v772_v5  ;;  %v1894_v10 = vunpack.c.l.s8.bf16 %v774_v6  ;;  %v1899_v16 = vunpack.c.h.s8.bf16 %v774_v6  ;;  %v792_v0 = vld [vmem:[%s8002_s21 + $0x508] sm:$0xff] }
 0x130   : > { %3684 = vmatpush1.bf16.msra.mxu0 %v1846_v13  ;;  %4709 = vmatpush1.bf16.msra.mxu1 %v1848_v14  ;;  %v773_v13 = vld [vmem:[%s8002_s21 + $0x470] sm:$0xff]  ;;  %v1891_v14 = vunpack.c.l.s8.bf16 %v771_v11 }
 0x131   : > { %3694 = vmatprep.subr.bf16.mxu0 %v1852_v18  ;;  %4719 = vmatprep.subr.bf16.mxu1 %v1854_v15  ;;  %v1893_v18 = vunpack.c.l.s8.bf16 %v773_v13  ;;  %v1897_v15 = vunpack.c.h.s8.bf16 %v772_v5  ;;  %v1932_v5 = vunpack.c.l.s8.bf16 %v792_v0 }
 0x133   : > { %3686 = vmatmul.mubr.bf16.vlgmr.msra.gmra.mrb[0].mxu0 %v8185_v20  ;;  %4711 = vmatmul.mubr.bf16.vlgmr.msra.gmra.mrb[0].mxu1 %v8185_v20 }
 0x134   : > { %3695 = vmatpush1.bf16.msra.mxu0 %v1851_v21  ;;  %4720 = vmatpush1.bf16.msra.mxu1 %v1853_v22  ;;  %v1896_v21 = vunpack.c.h.s8.bf16 %v771_v11  ;;  %v1898_v22 = vunpack.c.h.s8.bf16 %v773_v13 }
 0x135   : > { %3696 = vmatprep.subr.bf16.mxu0 %v1857_v23  ;;  %4721 = vmatprep.subr.bf16.mxu1 %v1859_v24  ;;  %v1902_v23 = vunpack.c.l.s8.bf16 %v777_v17  ;;  %v1904_v24 = vunpack.c.l.s8.bf16 %v779_v19 }
 0x136   : > { %3726 = vmatprep.mubr.bf16.mxu0 %v8189_v29  ;;  %4751 = vmatprep.mubr.bf16.mxu1 %v8189_v29 }
 0x138   : > { %3697 = vmatpush1.bf16.msra.mxu0 %v1856_v25  ;;  %4722 = vmatpush1.bf16.msra.mxu1 %v1858_v30  ;;  %v1901_v25 = vunpack.c.l.s8.bf16 %v776_v27  ;;  %v1903_v30 = vunpack.c.l.s8.bf16 %v778_v28 }
 0x139   : > { %3698 = vmatprep.subr.bf16.mxu0 %v1862_v31  ;;  %4723 = vmatprep.subr.bf16.mxu1 %v1864_v32  ;;  %v1907_v31 = vunpack.c.h.s8.bf16 %v777_v17  ;;  %v1909_v32 = vunpack.c.h.s8.bf16 %v779_v19 }
 0x13c   : > { %3699 = vmatpush1.bf16.msra.mxu0 %v1861_v38  ;;  %4724 = vmatpush1.bf16.msra.mxu1 %v1863_v39  ;;  %v1906_v38 = vunpack.c.h.s8.bf16 %v776_v27  ;;  %v1908_v39 = vunpack.c.h.s8.bf16 %v778_v28 }
 0x13d   : > { %3700 = vmatprep.subr.bf16.mxu0 %v1867_v40  ;;  %4725 = vmatprep.subr.bf16.mxu1 %v1869_v42  ;;  %v1912_v40 = vunpack.c.l.s8.bf16 %v782_v33  ;;  %v1914_v42 = vunpack.c.l.s8.bf16 %v784_v37 }
 0x140   : > { %3701 = vmatpush1.bf16.msra.mxu0 %v1866_v45  ;;  %4726 = vmatpush1.bf16.msra.mxu1 %v1868_v46  ;;  %v1911_v45 = vunpack.c.l.s8.bf16 %v781_v43  ;;  %v1913_v46 = vunpack.c.l.s8.bf16 %v783_v47 }
 0x141   : > { %3702 = vmatprep.subr.bf16.mxu0 %v1872_v48  ;;  %4727 = vmatprep.subr.bf16.mxu1 %v1874_v49  ;;  %v1917_v48 = vunpack.c.h.s8.bf16 %v782_v33  ;;  %v1919_v49 = vunpack.c.h.s8.bf16 %v784_v37 }
 0x144   : > { %3703 = vmatpush1.bf16.msra.mxu0 %v1871_v52  ;;  %4728 = vmatpush1.bf16.msra.mxu1 %v1873_v53  ;;  %v1916_v52 = vunpack.c.h.s8.bf16 %v781_v43  ;;  %v1918_v53 = vunpack.c.h.s8.bf16 %v783_v47 }
 0x145   : > { %3704 = vmatprep.subr.bf16.mxu0 %v1877_v54  ;;  %4729 = vmatprep.subr.bf16.mxu1 %v1879_v56  ;;  %v1922_v54 = vunpack.c.l.s8.bf16 %v787_v36  ;;  %v1924_v56 = vunpack.c.l.s8.bf16 %v789_v50 }
 0x148   : > { %3705 = vmatpush1.bf16.msra.mxu0 %v1876_v59  ;;  %4730 = vmatpush1.bf16.msra.mxu1 %v1878_v60  ;;  %v8224_v59 = vld [vmem:[%s9576_s0 + $0x10] sm:$0xff]  ;;  %v1921_v60 = vunpack.c.l.s8.bf16 %v786_v57 }
 0x149   : > { %3706 = vmatprep.subr.bf16.mxu0 %v1882_v61  ;;  %4731 = vmatprep.subr.bf16.mxu1 %v1884_v41  ;;  %v1923_v61 = vunpack.c.l.s8.bf16 %v788_v58  ;;  %v1927_v41 = vunpack.c.h.s8.bf16 %v787_v36 }
 0x14c   : > { %3707 = vmatpush1.bf16.msra.mxu0 %v1881_v1  ;;  %4732 = vmatpush1.bf16.msra.mxu1 %v1883_v2  ;;  %v794_v1 = vld [vmem:[%s8002_s21 + $0x518] sm:$0xff]  ;;  %v8230_v2 = vrot.slane %v8224_v59, %v8033_v35 }
 0x14d   : > { %3708 = vmatprep.subr.bf16.mxu0 %v1887_v3  ;;  %4733 = vmatprep.subr.bf16.mxu1 %v1889_v4  ;;  %v1926_v3 = vunpack.c.h.s8.bf16 %v786_v57  ;;  %v1928_v4 = vunpack.c.h.s8.bf16 %v788_v58  ;;  %v1934_v6 = vunpack.c.l.s8.bf16 %v794_v1 }
 0x150   : > { %3709 = vmatpush1.bf16.msra.mxu0 %v1886_v7  ;;  %4734 = vmatpush1.bf16.msra.mxu1 %v1888_v8  ;;  %v791_v7 = vld [vmem:[%s8002_s21 + $0x500] sm:$0xff]  ;;  %v793_v8 = vld [vmem:[%s8002_s21 + $0x510] sm:$0xff] }
 0x151   : > { %3710 = vmatprep.subr.bf16.mxu0 %v1892_v9  ;;  %4735 = vmatprep.subr.bf16.mxu1 %v1894_v10  ;;  %v371_v9 = vcombine.high %v8230_v2, %v8230_v2  ;;  %v8238_v10 = vpack.c.bf16 %v8177_v12, %v8177_v12  ;;  %v1931_v11 = vunpack.c.l.s8.bf16 %v791_v7  ;;  %v1933_v13 = vunpack.c.l.s8.bf16 %v793_v8 }
 0x152   : > { %v1936_v12 = vunpack.c.h.s8.bf16 %v791_v7  ;;  %v1938_v19 = vunpack.c.h.s8.bf16 %v793_v8 }
 0x153   : > { %v8242_v17 = vpack.c.bf16 %v371_v9, %v371_v9 }
 0x154   : > { %3711 = vmatpush1.bf16.msra.mxu0 %v1891_v14  ;;  %4736 = vmatpush1.bf16.msra.mxu1 %v1893_v18  ;;  %v1937_v14 = vunpack.c.h.s8.bf16 %v792_v0  ;;  %v1939_v18 = vunpack.c.h.s8.bf16 %v794_v1 }
 0x155   : > { %3712 = vmatprep.subr.bf16.mxu0 %v1897_v15  ;;  %4737 = vmatprep.subr.bf16.mxu1 %v1899_v16  ;;  %v797_v15 = vld [vmem:[%s8002_s21 + $0x530] sm:$0xff]  ;;  %v799_v16 = vld [vmem:[%s8002_s21 + $0x540] sm:$0xff] }
 0x158   : > { %3713 = vmatpush1.bf16.msra.mxu0 %v1896_v21  ;;  %4738 = vmatpush1.bf16.msra.mxu1 %v1898_v22  ;;  %v1942_v21 = vunpack.c.l.s8.bf16 %v797_v15  ;;  %v1944_v22 = vunpack.c.l.s8.bf16 %v799_v16 }
 0x159   : > { %3714 = vmatprep.subr.bf16.mxu0 %v1902_v23  ;;  %4739 = vmatprep.subr.bf16.mxu1 %v1904_v24  ;;  %v796_v23 = vld [vmem:[%s8002_s21 + $0x528] sm:$0xff]  ;;  %v798_v24 = vld [vmem:[%s8002_s21 + $0x538] sm:$0xff] }
 0x15a   : > { %v1941_v27 = vunpack.c.l.s8.bf16 %v796_v23  ;;  %v1943_v28 = vunpack.c.l.s8.bf16 %v798_v24  ;;  %v1946_v33 = vunpack.c.h.s8.bf16 %v796_v23  ;;  %v1948_v37 = vunpack.c.h.s8.bf16 %v798_v24 }
 0x15c   : > { %3715 = vmatpush1.bf16.msra.mxu0 %v1901_v25  ;;  %4740 = vmatpush1.bf16.msra.mxu1 %v1903_v30  ;;  %v1947_v25 = vunpack.c.h.s8.bf16 %v797_v15  ;;  %v1949_v30 = vunpack.c.h.s8.bf16 %v799_v16 }
 0x15d   : > { %3716 = vmatprep.subr.bf16.mxu0 %v1907_v31  ;;  %4741 = vmatprep.subr.bf16.mxu1 %v1909_v32  ;;  %v802_v31 = vld [vmem:[%s8002_s21 + $0x558] sm:$0xff]  ;;  %v804_v32 = vld [vmem:[%s8002_s21 + $0x568] sm:$0xff] }
 0x160   : > { %3717 = vmatpush1.bf16.msra.mxu0 %v1906_v38  ;;  %4742 = vmatpush1.bf16.msra.mxu1 %v1908_v39  ;;  %v1952_v38 = vunpack.c.l.s8.bf16 %v802_v31  ;;  %v1954_v39 = vunpack.c.l.s8.bf16 %v804_v32 }
 0x161   : > { %3718 = vmatprep.subr.bf16.mxu0 %v1912_v40  ;;  %4743 = vmatprep.subr.bf16.mxu1 %v1914_v42  ;;  %v801_v40 = vld [vmem:[%s8002_s21 + $0x550] sm:$0xff]  ;;  %v803_v42 = vld [vmem:[%s8002_s21 + $0x560] sm:$0xff] }
 0x162   : > { %v1951_v43 = vunpack.c.l.s8.bf16 %v801_v40  ;;  %v1953_v47 = vunpack.c.l.s8.bf16 %v803_v42  ;;  %v1956_v36 = vunpack.c.h.s8.bf16 %v801_v40  ;;  %v1958_v50 = vunpack.c.h.s8.bf16 %v803_v42 }
 0x164   : > { %3719 = vmatpush1.bf16.msra.mxu0 %v1911_v45  ;;  %4744 = vmatpush1.bf16.msra.mxu1 %v1913_v46  ;;  %v1957_v45 = vunpack.c.h.s8.bf16 %v802_v31  ;;  %v1959_v46 = vunpack.c.h.s8.bf16 %v804_v32 }
 0x165   : > { %3720 = vmatprep.subr.bf16.mxu0 %v1917_v48  ;;  %4745 = vmatprep.subr.bf16.mxu1 %v1919_v49  ;;  %v807_v48 = vld [vmem:[%s8002_s21 + $0x580] sm:$0xff]  ;;  %v809_v49 = vld [vmem:[%s8002_s21 + $0x590] sm:$0xff] }
 0x168   : > { %3721 = vmatpush1.bf16.msra.mxu0 %v1916_v52  ;;  %4746 = vmatpush1.bf16.msra.mxu1 %v1918_v53  ;;  %v1962_v52 = vunpack.c.l.s8.bf16 %v807_v48  ;;  %v1964_v53 = vunpack.c.l.s8.bf16 %v809_v49 }
 0x169   : > { %3722 = vmatprep.subr.bf16.mxu0 %v1922_v54  ;;  %4747 = vmatprep.subr.bf16.mxu1 %v1924_v56  ;;  %v806_v54 = vld [vmem:[%s8002_s21 + $0x578] sm:$0xff]  ;;  %v808_v56 = vld [vmem:[%s8002_s21 + $0x588] sm:$0xff] }
 0x16a   : > { %v1961_v57 = vunpack.c.l.s8.bf16 %v806_v54  ;;  %v1963_v58 = vunpack.c.l.s8.bf16 %v808_v56  ;;  %v1966_v0 = vunpack.c.h.s8.bf16 %v806_v54  ;;  %v1968_v1 = vunpack.c.h.s8.bf16 %v808_v56 }
 0x16c   : > { %3723 = vmatpush1.bf16.msra.mxu0 %v1921_v60  ;;  %4748 = vmatpush1.bf16.msra.mxu1 %v1923_v61  ;;  %v1967_v60 = vunpack.c.h.s8.bf16 %v807_v48  ;;  %v1969_v61 = vunpack.c.h.s8.bf16 %v809_v49 }
 0x16d   : > { %3724 = vmatprep.subr.bf16.mxu0 %v1927_v41  ;;  %4749 = vmatprep.subr.bf16.mxu1 %v1929_v63  ;;  %v812_v41 = vld [vmem:[%s8002_s21 + $0x5a8] sm:$0xff]  ;;  %v814_v63 = vld [vmem:[%s8002_s21 + $0x5b8] sm:$0xff] }
 0x16e   : > { %v1977_v9 = vunpack.c.h.s8.bf16 %v812_v41 }
 0x170   : > { %3725 = vmatpush1.bf16.msra.mxu0 %v1926_v3  ;;  %4750 = vmatpush1.bf16.msra.mxu1 %v1928_v4  ;;  %v1972_v3 = vunpack.c.l.s8.bf16 %v812_v41  ;;  %v1974_v4 = vunpack.c.l.s8.bf16 %v814_v63 }
 0x171   : > { %3735 = vmatprep.subr.bf16.mxu0 %v1932_v5  ;;  %4760 = vmatprep.subr.bf16.mxu1 %v1934_v6  ;;  %v811_v5 = vld [vmem:[%s8002_s21 + $0x5a0] sm:$0xff]  ;;  %v813_v6 = vld [vmem:[%s8002_s21 + $0x5b0] sm:$0xff] }
 0x172   : > { %v1971_v7 = vunpack.c.l.s8.bf16 %v811_v5  ;;  %v1973_v8 = vunpack.c.l.s8.bf16 %v813_v6  ;;  %v1978_v15 = vunpack.c.h.s8.bf16 %v813_v6  ;;  %v8287_v6 = vpack.c.bf16 %v8230_v2, %v8230_v2 }
 0x173   : > { %3727 = vmatmul.mubr.bf16.vlgmr.msra.gmra.mrb[0].mxu0 %v8238_v10  ;;  %4752 = vmatmul.mubr.bf16.vlgmr.msra.gmra.mrb[0].mxu1 %v8238_v10 }
 0x174   : > { %3736 = vmatpush1.bf16.msra.mxu0 %v1931_v11  ;;  %4761 = vmatpush1.bf16.msra.mxu1 %v1933_v13  ;;  %v1979_v11 = vunpack.c.h.s8.bf16 %v814_v63  ;;  %v817_v13 = vld [vmem:[%s8002_s21 + $0x5d0] sm:$0xff] }
 0x175   : > { %3737 = vmatprep.subr.bf16.mxu0 %v1937_v14  ;;  %4762 = vmatprep.subr.bf16.mxu1 %v1939_v18  ;;  %v819_v14 = vld [vmem:[%s8002_s21 + $0x5e0] sm:$0xff]  ;;  %v1976_v18 = vunpack.c.h.s8.bf16 %v811_v5  ;;  %v1982_v16 = vunpack.c.l.s8.bf16 %v817_v13  ;;  %v1987_v24 = vunpack.c.h.s8.bf16 %v817_v13  ;;  %v837_v13 = vld [vmem:[%s8002_s21 + $0x670] sm:$0xff] }
 0x176   : > { %3767 = vmatprep.mubr.bf16.mxu0 %v8242_v17  ;;  %4792 = vmatprep.mubr.bf16.mxu1 %v8242_v17 }
 0x178   : > { %3738 = vmatpush1.bf16.msra.mxu0 %v1936_v12  ;;  %4763 = vmatpush1.bf16.msra.mxu1 %v1938_v19  ;;  %v1984_v12 = vunpack.c.l.s8.bf16 %v819_v14  ;;  %v816_v19 = vld [vmem:[%s8002_s21 + $0x5c8] sm:$0xff] }
 0x179   : > { %3739 = vmatprep.subr.bf16.mxu0 %v1942_v21  ;;  %4764 = vmatprep.subr.bf16.mxu1 %v1944_v22  ;;  %v818_v21 = vld [vmem:[%s8002_s21 + $0x5d8] sm:$0xff]  ;;  %v1981_v22 = vunpack.c.l.s8.bf16 %v816_v19 }
 0x17a   : > { %v1983_v23 = vunpack.c.l.s8.bf16 %v818_v21  ;;  %v1988_v31 = vunpack.c.h.s8.bf16 %v818_v21  ;;  %v838_v21 = vld [vmem:[%s8002_s21 + $0x678] sm:$0xff] }
 0x17c   : > { %3740 = vmatpush1.bf16.msra.mxu0 %v1941_v27  ;;  %4765 = vmatpush1.bf16.msra.mxu1 %v1943_v28  ;;  %v1989_v27 = vunpack.c.h.s8.bf16 %v819_v14  ;;  %v822_v28 = vld [vmem:[%s8002_s21 + $0x5f8] sm:$0xff]  ;;  %v839_v14 = vld [vmem:[%s8002_s21 + $0x680] sm:$0xff] }
 0x17d   : > { %3741 = vmatprep.subr.bf16.mxu0 %v1947_v25  ;;  %4766 = vmatprep.subr.bf16.mxu1 %v1949_v30  ;;  %v824_v25 = vld [vmem:[%s8002_s21 + $0x608] sm:$0xff]  ;;  %v1986_v30 = vunpack.c.h.s8.bf16 %v816_v19  ;;  %v1992_v32 = vunpack.c.l.s8.bf16 %v822_v28  ;;  %v1997_v42 = vunpack.c.h.s8.bf16 %v822_v28  ;;  %v842_v28 = vld [vmem:[%s8002_s21 + $0x698] sm:$0xff] }
 0x17e   : > { %v836_v19 = vld [vmem:[%s8002_s21 + $0x668] sm:$0xff] }
 0x180   : > { %3742 = vmatpush1.bf16.msra.mxu0 %v1946_v33  ;;  %4767 = vmatpush1.bf16.msra.mxu1 %v1948_v37  ;;  %v1994_v33 = vunpack.c.l.s8.bf16 %v824_v25  ;;  %v821_v37 = vld [vmem:[%s8002_s21 + $0x5f0] sm:$0xff] }
 0x181   : > { %3743 = vmatprep.subr.bf16.mxu0 %v1952_v38  ;;  %4768 = vmatprep.subr.bf16.mxu1 %v1954_v39  ;;  %v823_v38 = vld [vmem:[%s8002_s21 + $0x600] sm:$0xff]  ;;  %v1991_v39 = vunpack.c.l.s8.bf16 %v821_v37 }
 0x182   : > { %v1993_v40 = vunpack.c.l.s8.bf16 %v823_v38  ;;  %v1998_v48 = vunpack.c.h.s8.bf16 %v823_v38  ;;  %v843_v38 = vld [vmem:[%s8002_s21 + $0x6a0] sm:$0xff] }
 0x184   : > { %3744 = vmatpush1.bf16.msra.mxu0 %v1951_v43  ;;  %4769 = vmatpush1.bf16.msra.mxu1 %v1953_v47  ;;  %v1999_v43 = vunpack.c.h.s8.bf16 %v824_v25  ;;  %v827_v47 = vld [vmem:[%s8002_s21 + $0x620] sm:$0xff]  ;;  %v844_v25 = vld [vmem:[%s8002_s21 + $0x6a8] sm:$0xff] }
 0x185   : > { %3745 = vmatprep.subr.bf16.mxu0 %v1957_v45  ;;  %4770 = vmatprep.subr.bf16.mxu1 %v1959_v46  ;;  %v829_v45 = vld [vmem:[%s8002_s21 + $0x630] sm:$0xff]  ;;  %v1996_v46 = vunpack.c.h.s8.bf16 %v821_v37  ;;  %v2002_v49 = vunpack.c.l.s8.bf16 %v827_v47 }
 0x186   : > { %v841_v37 = vld [vmem:[%s8002_s21 + $0x690] sm:$0xff] }
 0x188   : > { %3746 = vmatpush1.bf16.msra.mxu0 %v1956_v36  ;;  %4771 = vmatpush1.bf16.msra.mxu1 %v1958_v50  ;;  %v2004_v36 = vunpack.c.l.s8.bf16 %v829_v45  ;;  %v826_v50 = vld [vmem:[%s8002_s21 + $0x618] sm:$0xff] }
 0x189   : > { %3747 = vmatprep.subr.bf16.mxu0 %v1962_v52  ;;  %4772 = vmatprep.subr.bf16.mxu1 %v1964_v53  ;;  %v828_v52 = vld [vmem:[%s8002_s21 + $0x628] sm:$0xff]  ;;  %v356_v53 = vcombine.high %v8224_v59, %v8224_v59  ;;  %v2001_v54 = vunpack.c.l.s8.bf16 %v826_v50  ;;  %v2006_v63 = vunpack.c.h.s8.bf16 %v826_v50  ;;  %v846_v50 = vld [vmem:[%s8002_s21 + $0x6b8] sm:$0xff] }
 0x18a   : > { %v2003_v56 = vunpack.c.l.s8.bf16 %v828_v52 }
 0x18b   : > { %v8279_v41 = vrot.slane %v356_v53, %v8033_v35  ;;  %v2041_v53 = vunpack.c.l.s8.bf16 %v846_v50 }
 0x18c   : > { %3748 = vmatpush1.bf16.msra.mxu0 %v1961_v57  ;;  %4773 = vmatpush1.bf16.msra.mxu1 %v1963_v58  ;;  %v2007_v57 = vunpack.c.h.s8.bf16 %v827_v47  ;;  %v2009_v58 = vunpack.c.h.s8.bf16 %v829_v45  ;;  %v847_v47 = vld [vmem:[%s8002_s21 + $0x6c0] sm:$0xff]  ;;  %v849_v45 = vld [vmem:[%s8002_s21 + $0x6d0] sm:$0xff] }
 0x18d   : > { %3749 = vmatprep.subr.bf16.mxu0 %v1967_v60  ;;  %4774 = vmatprep.subr.bf16.mxu1 %v1969_v61  ;;  %v832_v60 = vld [vmem:[%s8002_s21 + $0x648] sm:$0xff]  ;;  %v834_v61 = vld [vmem:[%s8002_s21 + $0x658] sm:$0xff]  ;;  %v372_v5 = vcombine.high %v8279_v41, %v8279_v41 }
 0x18e   : > { %v2012_v59 = vunpack.c.l.s8.bf16 %v832_v60 }
 0x190   : > { %3750 = vmatpush1.bf16.msra.mxu0 %v1966_v0  ;;  %4775 = vmatpush1.bf16.msra.mxu1 %v1968_v1  ;;  %v2008_v0 = vunpack.c.h.s8.bf16 %v828_v52  ;;  %v2014_v1 = vunpack.c.l.s8.bf16 %v834_v61  ;;  %v848_v52 = vld [vmem:[%s8002_s21 + $0x6c8] sm:$0xff] }
 0x191   : > { %3751 = vmatprep.subr.bf16.mxu0 %v1972_v3  ;;  %4776 = vmatprep.subr.bf16.mxu1 %v1974_v4  ;;  %v831_v3 = vld [vmem:[%s8002_s21 + $0x640] sm:$0xff]  ;;  %v833_v4 = vld [vmem:[%s8002_s21 + $0x650] sm:$0xff] }
 0x192   : > { %v2016_v2 = vunpack.c.h.s8.bf16 %v831_v3 }
 0x194   : > { %3752 = vmatpush1.bf16.msra.mxu0 %v1971_v7  ;;  %4777 = vmatpush1.bf16.msra.mxu1 %v1973_v8  ;;  %v2011_v7 = vunpack.c.l.s8.bf16 %v831_v3  ;;  %v2013_v8 = vunpack.c.l.s8.bf16 %v833_v4  ;;  %v853_v3 = vld [vmem:[%s8002_s21 + $0x6f0] sm:$0xff] }
 0x195   : > { %3753 = vmatprep.subr.bf16.mxu0 %v1977_v9  ;;  %4778 = vmatprep.subr.bf16.mxu1 %v1979_v11  ;;  %v2017_v9 = vunpack.c.h.s8.bf16 %v832_v60  ;;  %v2019_v11 = vunpack.c.h.s8.bf16 %v834_v61  ;;  %v854_v60 = vld [vmem:[%s8002_s21 + $0x6f8] sm:$0xff]  ;;  %v2046_v61 = vunpack.c.h.s8.bf16 %v846_v50 }
 0x196   : > { %v8326_v50 = vld [vmem:[%s9576_s0 + $0x18] sm:$0xff] }
 0x198   : > { %3754 = vmatpush1.bf16.msra.mxu0 %v1976_v18  ;;  %4779 = vmatpush1.bf16.msra.mxu1 %v1978_v15  ;;  %v8291_v18 = vpack.c.bf16 %v372_v5, %v372_v5  ;;  %v2018_v15 = vunpack.c.h.s8.bf16 %v833_v4  ;;  %v2053_v5 = vunpack.c.l.s8.bf16 %v853_v3 }
 0x199   : > { %3755 = vmatprep.subr.bf16.mxu0 %v1982_v16  ;;  %4780 = vmatprep.subr.bf16.mxu1 %v1984_v12  ;;  %v2022_v16 = vunpack.c.l.s8.bf16 %v837_v13  ;;  %v2024_v12 = vunpack.c.l.s8.bf16 %v839_v14 }
 0x19c   : > { %3756 = vmatpush1.bf16.msra.mxu0 %v1981_v22  ;;  %4781 = vmatpush1.bf16.msra.mxu1 %v1983_v23  ;;  %v2021_v22 = vunpack.c.l.s8.bf16 %v836_v19  ;;  %v2023_v23 = vunpack.c.l.s8.bf16 %v838_v21 }
 0x19d   : > { %3757 = vmatprep.subr.bf16.mxu0 %v1987_v24  ;;  %4782 = vmatprep.subr.bf16.mxu1 %v1989_v27  ;;  %v2027_v24 = vunpack.c.h.s8.bf16 %v837_v13  ;;  %v2029_v27 = vunpack.c.h.s8.bf16 %v839_v14  ;;  %v2058_v14 = vunpack.c.h.s8.bf16 %v853_v3  ;;  %v873_v3 = vld [vmem:[%s8002_s21 + $0x790] sm:$0xff] }
 0x1a0   : > { %3758 = vmatpush1.bf16.msra.mxu0 %v1986_v30  ;;  %4783 = vmatpush1.bf16.msra.mxu1 %v1988_v31  ;;  %v2026_v30 = vunpack.c.h.s8.bf16 %v836_v19  ;;  %v2028_v31 = vunpack.c.h.s8.bf16 %v838_v21 }
 0x1a1   : > { %3759 = vmatprep.subr.bf16.mxu0 %v1992_v32  ;;  %4784 = vmatprep.subr.bf16.mxu1 %v1994_v33  ;;  %v2032_v32 = vunpack.c.l.s8.bf16 %v842_v28  ;;  %v2034_v33 = vunpack.c.l.s8.bf16 %v844_v25 }
 0x1a4   : > { %3760 = vmatpush1.bf16.msra.mxu0 %v1991_v39  ;;  %4785 = vmatpush1.bf16.msra.mxu1 %v1993_v40  ;;  %v2031_v39 = vunpack.c.l.s8.bf16 %v841_v37  ;;  %v2033_v40 = vunpack.c.l.s8.bf16 %v843_v38 }
 0x1a5   : > { %3761 = vmatprep.subr.bf16.mxu0 %v1997_v42  ;;  %4786 = vmatprep.subr.bf16.mxu1 %v1999_v43  ;;  %v2037_v42 = vunpack.c.h.s8.bf16 %v842_v28  ;;  %v2039_v43 = vunpack.c.h.s8.bf16 %v844_v25 }
 0x1a8   : > { %3762 = vmatpush1.bf16.msra.mxu0 %v1996_v46  ;;  %4787 = vmatpush1.bf16.msra.mxu1 %v1998_v48  ;;  %v2036_v46 = vunpack.c.h.s8.bf16 %v841_v37  ;;  %v2038_v48 = vunpack.c.h.s8.bf16 %v843_v38 }
 0x1a9   : > { %3763 = vmatprep.subr.bf16.mxu0 %v2002_v49  ;;  %4788 = vmatprep.subr.bf16.mxu1 %v2004_v36  ;;  %v2042_v49 = vunpack.c.l.s8.bf16 %v847_v47  ;;  %v2044_v36 = vunpack.c.l.s8.bf16 %v849_v45 }
 0x1ac   : > { %3764 = vmatpush1.bf16.msra.mxu0 %v2001_v54  ;;  %4789 = vmatpush1.bf16.msra.mxu1 %v2003_v56  ;;  %v2043_v54 = vunpack.c.l.s8.bf16 %v848_v52  ;;  %v2047_v56 = vunpack.c.h.s8.bf16 %v847_v47 }
 0x1ad   : > { %3765 = vmatprep.subr.bf16.mxu0 %v2007_v57  ;;  %4790 = vmatprep.subr.bf16.mxu1 %v2009_v58  ;;  %v2049_v57 = vunpack.c.h.s8.bf16 %v849_v45  ;;  %v852_v58 = vld [vmem:[%s8002_s21 + $0x6e8] sm:$0xff] }
 0x1b0   : > { %3766 = vmatpush1.bf16.msra.mxu0 %v2006_v63  ;;  %4791 = vmatpush1.bf16.msra.mxu1 %v2008_v0  ;;  %v2048_v63 = vunpack.c.h.s8.bf16 %v848_v52  ;;  %v2052_v0 = vunpack.c.l.s8.bf16 %v852_v58 }
 0x1b1   : > { %3776 = vmatprep.subr.bf16.mxu0 %v2012_v59  ;;  %4801 = vmatprep.subr.bf16.mxu1 %v2014_v1  ;;  %v2054_v59 = vunpack.c.l.s8.bf16 %v854_v60  ;;  %v851_v1 = vld [vmem:[%s8002_s21 + $0x6e0] sm:$0xff] }
 0x1b2   : > { %v2051_v4 = vunpack.c.l.s8.bf16 %v851_v1  ;;  %v2056_v13 = vunpack.c.h.s8.bf16 %v851_v1  ;;  %v871_v1 = vld [vmem:[%s8002_s21 + $0x780] sm:$0xff] }
 0x1b3   : > { %3768 = vmatmul.mubr.bf16.vlgmr.msra.gmra.mrb[0].mxu0 %v8287_v6  ;;  %4793 = vmatmul.mubr.bf16.vlgmr.msra.gmra.mrb[0].mxu1 %v8287_v6 }
 0x1b4   : > { %3777 = vmatpush1.bf16.msra.mxu0 %v2011_v7  ;;  %4802 = vmatpush1.bf16.msra.mxu1 %v2013_v8  ;;  %v2057_v7 = vunpack.c.h.s8.bf16 %v852_v58  ;;  %v2059_v8 = vunpack.c.h.s8.bf16 %v854_v60  ;;  %v874_v58 = vld [vmem:[%s8002_s21 + $0x798] sm:$0xff]  ;;  %v8332_v60 = vrot.slane %v8326_v50, %v8033_v35 }
 0x1b5   : > { %3778 = vmatprep.subr.bf16.mxu0 %v2017_v9  ;;  %4803 = vmatprep.subr.bf16.mxu1 %v2019_v11  ;;  %v857_v9 = vld [vmem:[%s8002_s21 + $0x710] sm:$0xff]  ;;  %v859_v11 = vld [vmem:[%s8002_s21 + $0x720] sm:$0xff] }
 0x1b6   : > { %3808 = vmatprep.mubr.bf16.mxu0 %v8291_v18  ;;  %4833 = vmatprep.mubr.bf16.mxu1 %v8291_v18 }
 0x1b8   : > { %3779 = vmatpush1.bf16.msra.mxu0 %v2016_v2  ;;  %4804 = vmatpush1.bf16.msra.mxu1 %v2018_v15  ;;  %v2062_v2 = vunpack.c.l.s8.bf16 %v857_v9  ;;  %v2064_v15 = vunpack.c.l.s8.bf16 %v859_v11 }
 0x1b9   : > { %3780 = vmatprep.subr.bf16.mxu0 %v2022_v16  ;;  %4805 = vmatprep.subr.bf16.mxu1 %v2024_v12  ;;  %v856_v16 = vld [vmem:[%s8002_s21 + $0x708] sm:$0xff]  ;;  %v858_v12 = vld [vmem:[%s8002_s21 + $0x718] sm:$0xff] }
 0x1ba   : > { %v2061_v19 = vunpack.c.l.s8.bf16 %v856_v16  ;;  %v2063_v21 = vunpack.c.l.s8.bf16 %v858_v12  ;;  %v2066_v28 = vunpack.c.h.s8.bf16 %v856_v16  ;;  %v2068_v25 = vunpack.c.h.s8.bf16 %v858_v12 }
 0x1bc   : > { %3781 = vmatpush1.bf16.msra.mxu0 %v2021_v22  ;;  %4806 = vmatpush1.bf16.msra.mxu1 %v2023_v23  ;;  %v2067_v22 = vunpack.c.h.s8.bf16 %v857_v9  ;;  %v2069_v23 = vunpack.c.h.s8.bf16 %v859_v11  ;;  %v2099_v11 = vunpack.c.h.s8.bf16 %v874_v58 }
 0x1bd   : > { %3782 = vmatprep.subr.bf16.mxu0 %v2027_v24  ;;  %4807 = vmatprep.subr.bf16.mxu1 %v2029_v27  ;;  %v862_v24 = vld [vmem:[%s8002_s21 + $0x738] sm:$0xff]  ;;  %v864_v27 = vld [vmem:[%s8002_s21 + $0x748] sm:$0xff] }
 0x1c0   : > { %3783 = vmatpush1.bf16.msra.mxu0 %v2026_v30  ;;  %4808 = vmatpush1.bf16.msra.mxu1 %v2028_v31  ;;  %v2072_v30 = vunpack.c.l.s8.bf16 %v862_v24  ;;  %v2074_v31 = vunpack.c.l.s8.bf16 %v864_v27 }
 0x1c1   : > { %3784 = vmatprep.subr.bf16.mxu0 %v2032_v32  ;;  %4809 = vmatprep.subr.bf16.mxu1 %v2034_v33  ;;  %v861_v32 = vld [vmem:[%s8002_s21 + $0x730] sm:$0xff]  ;;  %v863_v33 = vld [vmem:[%s8002_s21 + $0x740] sm:$0xff] }
 0x1c2   : > { %v2071_v37 = vunpack.c.l.s8.bf16 %v861_v32  ;;  %v2073_v38 = vunpack.c.l.s8.bf16 %v863_v33  ;;  %v2076_v47 = vunpack.c.h.s8.bf16 %v861_v32  ;;  %v2078_v45 = vunpack.c.h.s8.bf16 %v863_v33 }
 0x1c4   : > { %3785 = vmatpush1.bf16.msra.mxu0 %v2031_v39  ;;  %4810 = vmatpush1.bf16.msra.mxu1 %v2033_v40  ;;  %v2077_v39 = vunpack.c.h.s8.bf16 %v862_v24  ;;  %v2079_v40 = vunpack.c.h.s8.bf16 %v864_v27 }
 0x1c5   : > { %3786 = vmatprep.subr.bf16.mxu0 %v2037_v42  ;;  %4811 = vmatprep.subr.bf16.mxu1 %v2039_v43  ;;  %v867_v42 = vld [vmem:[%s8002_s21 + $0x760] sm:$0xff]  ;;  %v869_v43 = vld [vmem:[%s8002_s21 + $0x770] sm:$0xff] }
 0x1c8   : > { %3787 = vmatpush1.bf16.msra.mxu0 %v2036_v46  ;;  %4812 = vmatpush1.bf16.msra.mxu1 %v2038_v48  ;;  %v2082_v46 = vunpack.c.l.s8.bf16 %v867_v42  ;;  %v2084_v48 = vunpack.c.l.s8.bf16 %v869_v43 }
 0x1c9   : > { %3788 = vmatprep.subr.bf16.mxu0 %v2042_v49  ;;  %4813 = vmatprep.subr.bf16.mxu1 %v2044_v36  ;;  %v866_v49 = vld [vmem:[%s8002_s21 + $0x758] sm:$0xff]  ;;  %v868_v36 = vld [vmem:[%s8002_s21 + $0x768] sm:$0xff] }
 0x1ca   : > { %v2081_v52 = vunpack.c.l.s8.bf16 %v866_v49 }
 0x1cc   : > { %3789 = vmatpush1.bf16.msra.mxu0 %v2041_v53  ;;  %4814 = vmatpush1.bf16.msra.mxu1 %v2043_v54  ;;  %v2083_v53 = vunpack.c.l.s8.bf16 %v868_v36  ;;  %v2087_v54 = vunpack.c.h.s8.bf16 %v867_v42 }
 0x1cd   : > { %3790 = vmatprep.subr.bf16.mxu0 %v2047_v56  ;;  %4815 = vmatprep.subr.bf16.mxu1 %v2049_v57  ;;  %v2089_v56 = vunpack.c.h.s8.bf16 %v869_v43  ;;  %v872_v57 = vld [vmem:[%s8002_s21 + $0x788] sm:$0xff] }
 0x1ce   : > { %v2097_v9 = vunpack.c.h.s8.bf16 %v872_v57 }
 0x1d0   : > { %3791 = vmatpush1.bf16.msra.mxu0 %v2046_v61  ;;  %4816 = vmatpush1.bf16.msra.mxu1 %v2048_v63  ;;  %v2086_v61 = vunpack.c.h.s8.bf16 %v866_v49  ;;  %v2088_v63 = vunpack.c.h.s8.bf16 %v868_v36 }
 0x1d1   : > { %3792 = vmatprep.subr.bf16.mxu0 %v2052_v0  ;;  %4817 = vmatprep.subr.bf16.mxu1 %v2054_v59  ;;  %v2092_v0 = vunpack.c.l.s8.bf16 %v872_v57  ;;  %v2094_v59 = vunpack.c.l.s8.bf16 %v874_v58 }
 0x1d4   : > { %3793 = vmatpush1.bf16.msra.mxu0 %v2051_v4  ;;  %4818 = vmatpush1.bf16.msra.mxu1 %v2053_v5  ;;  %v388_v4 = vcombine.high %v8332_v60, %v8332_v60  ;;  %v8340_v5 = vpack.c.bf16 %v8279_v41, %v8279_v41  ;;  %v2096_v41 = vunpack.c.h.s8.bf16 %v871_v1 }
 0x1d5   : > { %3794 = vmatprep.subr.bf16.mxu0 %v2057_v7  ;;  %4819 = vmatprep.subr.bf16.mxu1 %v2059_v8  ;;  %v2091_v7 = vunpack.c.l.s8.bf16 %v871_v1  ;;  %v2093_v8 = vunpack.c.l.s8.bf16 %v873_v3 }
 0x1d8   : > { %3795 = vmatpush1.bf16.msra.mxu0 %v2056_v13  ;;  %4820 = vmatpush1.bf16.msra.mxu1 %v2058_v14  ;;  %v877_v13 = vld [vmem:[%s8002_s21 + $0x7b0] sm:$0xff]  ;;  %v879_v14 = vld [vmem:[%s8002_s21 + $0x7c0] sm:$0xff] }
 0x1d9   : > { %3796 = vmatprep.subr.bf16.mxu0 %v2062_v2  ;;  %4821 = vmatprep.subr.bf16.mxu1 %v2064_v15  ;;  %v8344_v2 = vpack.c.bf16 %v388_v4, %v388_v4  ;;  %v2098_v15 = vunpack.c.h.s8.bf16 %v873_v3  ;;  %v2102_v16 = vunpack.c.l.s8.bf16 %v877_v13  ;;  %v2104_v12 = vunpack.c.l.s8.bf16 %v879_v14  ;;  %v891_v4 = vld [vmem:[%s8002_s21 + $0x820] sm:$0xff] }
 0x1da   : > { %v2107_v24 = vunpack.c.h.s8.bf16 %v877_v13  ;;  %v2109_v27 = vunpack.c.h.s8.bf16 %v879_v14  ;;  %v897_v14 = vld [vmem:[%s8002_s21 + $0x850] sm:$0xff] }
 0x1dc   : > { %3797 = vmatpush1.bf16.msra.mxu0 %v2061_v19  ;;  %4822 = vmatpush1.bf16.msra.mxu1 %v2063_v21  ;;  %v876_v19 = vld [vmem:[%s8002_s21 + $0x7a8] sm:$0xff]  ;;  %v878_v21 = vld [vmem:[%s8002_s21 + $0x7b8] sm:$0xff] }
 0x1dd   : > { %3798 = vmatprep.subr.bf16.mxu0 %v2067_v22  ;;  %4823 = vmatprep.subr.bf16.mxu1 %v2069_v23  ;;  %v2101_v22 = vunpack.c.l.s8.bf16 %v876_v19  ;;  %v2103_v23 = vunpack.c.l.s8.bf16 %v878_v21 }
 0x1e0   : > { %3799 = vmatpush1.bf16.msra.mxu0 %v2066_v28  ;;  %4824 = vmatpush1.bf16.msra.mxu1 %v2068_v25  ;;  %v882_v28 = vld [vmem:[%s8002_s21 + $0x7d8] sm:$0xff]  ;;  %v884_v25 = vld [vmem:[%s8002_s21 + $0x7e8] sm:$0xff] }
 0x1e1   : > { %3800 = vmatprep.subr.bf16.mxu0 %v2072_v30  ;;  %4825 = vmatprep.subr.bf16.mxu1 %v2074_v31  ;;  %v2106_v30 = vunpack.c.h.s8.bf16 %v876_v19  ;;  %v2108_v31 = vunpack.c.h.s8.bf16 %v878_v21  ;;  %v2112_v32 = vunpack.c.l.s8.bf16 %v882_v28  ;;  %v2114_v33 = vunpack.c.l.s8.bf16 %v884_v25  ;;  %v896_v21 = vld [vmem:[%s8002_s21 + $0x848] sm:$0xff] }
 0x1e2   : > { %v2117_v42 = vunpack.c.h.s8.bf16 %v882_v28  ;;  %v2119_v43 = vunpack.c.h.s8.bf16 %v884_v25  ;;  %v902_v25 = vld [vmem:[%s8002_s21 + $0x878] sm:$0xff] }
 0x1e4   : > { %3801 = vmatpush1.bf16.msra.mxu0 %v2071_v37  ;;  %4826 = vmatpush1.bf16.msra.mxu1 %v2073_v38  ;;  %v881_v37 = vld [vmem:[%s8002_s21 + $0x7d0] sm:$0xff]  ;;  %v883_v38 = vld [vmem:[%s8002_s21 + $0x7e0] sm:$0xff] }
 0x1e5   : > { %3802 = vmatprep.subr.bf16.mxu0 %v2077_v39  ;;  %4827 = vmatprep.subr.bf16.mxu1 %v2079_v40  ;;  %v2111_v39 = vunpack.c.l.s8.bf16 %v881_v37  ;;  %v2113_v40 = vunpack.c.l.s8.bf16 %v883_v38 }
 0x1e8   : > { %3803 = vmatpush1.bf16.msra.mxu0 %v2076_v47  ;;  %4828 = vmatpush1.bf16.msra.mxu1 %v2078_v45  ;;  %v887_v47 = vld [vmem:[%s8002_s21 + $0x800] sm:$0xff]  ;;  %v889_v45 = vld [vmem:[%s8002_s21 + $0x810] sm:$0xff] }
 0x1e9   : > { %3804 = vmatprep.subr.bf16.mxu0 %v2082_v46  ;;  %4829 = vmatprep.subr.bf16.mxu1 %v2084_v48  ;;  %v2116_v46 = vunpack.c.h.s8.bf16 %v881_v37  ;;  %v2118_v48 = vunpack.c.h.s8.bf16 %v883_v38  ;;  %v2122_v49 = vunpack.c.l.s8.bf16 %v887_v47  ;;  %v2124_v36 = vunpack.c.l.s8.bf16 %v889_v45  ;;  %v901_v38 = vld [vmem:[%s8002_s21 + $0x870] sm:$0xff] }
 0x1ea   : > { %v2127_v57 = vunpack.c.h.s8.bf16 %v887_v47  ;;  %v2129_v58 = vunpack.c.h.s8.bf16 %v889_v45  ;;  %v907_v45 = vld [vmem:[%s8002_s21 + $0x8a0] sm:$0xff] }
 0x1ec   : > { %3805 = vmatpush1.bf16.msra.mxu0 %v2081_v52  ;;  %4830 = vmatpush1.bf16.msra.mxu1 %v2083_v53  ;;  %v886_v52 = vld [vmem:[%s8002_s21 + $0x7f8] sm:$0xff]  ;;  %v888_v53 = vld [vmem:[%s8002_s21 + $0x808] sm:$0xff] }
 0x1ed   : > { %3806 = vmatprep.subr.bf16.mxu0 %v2087_v54  ;;  %4831 = vmatprep.subr.bf16.mxu1 %v2089_v56  ;;  %v2121_v54 = vunpack.c.l.s8.bf16 %v886_v52  ;;  %v2123_v56 = vunpack.c.l.s8.bf16 %v888_v53 }
 0x1f0   : > { %3807 = vmatpush1.bf16.msra.mxu0 %v2086_v61  ;;  %4832 = vmatpush1.bf16.msra.mxu1 %v2088_v63  ;;  %v892_v61 = vld [vmem:[%s8002_s21 + $0x828] sm:$0xff]  ;;  %v894_v63 = vld [vmem:[%s8002_s21 + $0x838] sm:$0xff] }
 0x1f1   : > { %3817 = vmatprep.subr.bf16.mxu0 %v2092_v0  ;;  %4842 = vmatprep.subr.bf16.mxu1 %v2094_v59  ;;  %v2126_v0 = vunpack.c.h.s8.bf16 %v886_v52  ;;  %v2128_v59 = vunpack.c.h.s8.bf16 %v888_v53  ;;  %v2132_v1 = vunpack.c.l.s8.bf16 %v892_v61  ;;  %v2134_v3 = vunpack.c.l.s8.bf16 %v894_v63  ;;  %v906_v53 = vld [vmem:[%s8002_s21 + $0x898] sm:$0xff] }
 0x1f2   : > { %v2139_v13 = vunpack.c.h.s8.bf16 %v894_v63 }
 0x1f3   : > { %3809 = vmatmul.mubr.bf16.vlgmr.msra.gmra.mrb[0].mxu0 %v8340_v5  ;;  %4834 = vmatmul.mubr.bf16.vlgmr.msra.gmra.mrb[0].mxu1 %v8340_v5 }
 0x1f4   : > { %3818 = vmatpush1.bf16.msra.mxu0 %v2091_v7  ;;  %4843 = vmatpush1.bf16.msra.mxu1 %v2093_v8  ;;  %v893_v7 = vld [vmem:[%s8002_s21 + $0x830] sm:$0xff]  ;;  %v2131_v8 = vunpack.c.l.s8.bf16 %v891_v4 }
 0x1f5   : > { %3819 = vmatprep.subr.bf16.mxu0 %v2097_v9  ;;  %4844 = vmatprep.subr.bf16.mxu1 %v2099_v11  ;;  %v2133_v9 = vunpack.c.l.s8.bf16 %v893_v7  ;;  %v2137_v11 = vunpack.c.h.s8.bf16 %v892_v61  ;;  %v2167_v61 = vunpack.c.h.s8.bf16 %v907_v45 }
 0x1f6   : > { %3849 = vmatprep.mubr.bf16.mxu0 %v8344_v2  ;;  %4874 = vmatprep.mubr.bf16.mxu1 %v8344_v2 }
 0x1f8   : > { %3820 = vmatpush1.bf16.msra.mxu0 %v2096_v41  ;;  %4845 = vmatpush1.bf16.msra.mxu1 %v2098_v15  ;;  %v899_v41 = vld [vmem:[%s8002_s21 + $0x860] sm:$0xff]  ;;  %v2136_v15 = vunpack.c.h.s8.bf16 %v891_v4 }
 0x1f9   : > { %3821 = vmatprep.subr.bf16.mxu0 %v2102_v16  ;;  %4846 = vmatprep.subr.bf16.mxu1 %v2104_v12  ;;  %v2138_v16 = vunpack.c.h.s8.bf16 %v893_v7  ;;  %v2142_v12 = vunpack.c.l.s8.bf16 %v897_v14  ;;  %v2144_v19 = vunpack.c.l.s8.bf16 %v899_v41  ;;  %v2149_v28 = vunpack.c.h.s8.bf16 %v899_v41 }
 0x1fc   : > { %3822 = vmatpush1.bf16.msra.mxu0 %v2101_v22  ;;  %4847 = vmatpush1.bf16.msra.mxu1 %v2103_v23  ;;  %v898_v22 = vld [vmem:[%s8002_s21 + $0x858] sm:$0xff]  ;;  %v2141_v23 = vunpack.c.l.s8.bf16 %v896_v21 }
 0x1fd   : > { %3823 = vmatprep.subr.bf16.mxu0 %v2107_v24  ;;  %4848 = vmatprep.subr.bf16.mxu1 %v2109_v27  ;;  %v2143_v24 = vunpack.c.l.s8.bf16 %v898_v22  ;;  %v2147_v27 = vunpack.c.h.s8.bf16 %v897_v14 }
 0x200   : > { %3824 = vmatpush1.bf16.msra.mxu0 %v2106_v30  ;;  %4849 = vmatpush1.bf16.msra.mxu1 %v2108_v31  ;;  %v904_v30 = vld [vmem:[%s8002_s21 + $0x888] sm:$0xff]  ;;  %v2146_v31 = vunpack.c.h.s8.bf16 %v896_v21 }
 0x201   : > { %3825 = vmatprep.subr.bf16.mxu0 %v2112_v32  ;;  %4850 = vmatprep.subr.bf16.mxu1 %v2114_v33  ;;  %v2148_v32 = vunpack.c.h.s8.bf16 %v898_v22  ;;  %v2152_v33 = vunpack.c.l.s8.bf16 %v902_v25  ;;  %v2154_v37 = vunpack.c.l.s8.bf16 %v904_v30  ;;  %v2159_v47 = vunpack.c.h.s8.bf16 %v904_v30 }
 0x204   : > { %3826 = vmatpush1.bf16.msra.mxu0 %v2111_v39  ;;  %4851 = vmatpush1.bf16.msra.mxu1 %v2113_v40  ;;  %v903_v39 = vld [vmem:[%s8002_s21 + $0x880] sm:$0xff]  ;;  %v2151_v40 = vunpack.c.l.s8.bf16 %v901_v38 }
 0x205   : > { %3827 = vmatprep.subr.bf16.mxu0 %v2117_v42  ;;  %4852 = vmatprep.subr.bf16.mxu1 %v2119_v43  ;;  %v2153_v42 = vunpack.c.l.s8.bf16 %v903_v39  ;;  %v2157_v43 = vunpack.c.h.s8.bf16 %v902_v25 }
 0x208   : > { %3828 = vmatpush1.bf16.msra.mxu0 %v2116_v46  ;;  %4853 = vmatpush1.bf16.msra.mxu1 %v2118_v48  ;;  %v909_v46 = vld [vmem:[%s8002_s21 + $0x8b0] sm:$0xff]  ;;  %v2156_v48 = vunpack.c.h.s8.bf16 %v901_v38 }
 0x209   : > { %3829 = vmatprep.subr.bf16.mxu0 %v2122_v49  ;;  %4854 = vmatprep.subr.bf16.mxu1 %v2124_v36  ;;  %v2158_v49 = vunpack.c.h.s8.bf16 %v903_v39  ;;  %v2162_v36 = vunpack.c.l.s8.bf16 %v907_v45  ;;  %v2164_v52 = vunpack.c.l.s8.bf16 %v909_v46  ;;  %v2169_v63 = vunpack.c.h.s8.bf16 %v909_v46 }
 0x20c   : > { %3830 = vmatpush1.bf16.msra.mxu0 %v2121_v54  ;;  %4855 = vmatpush1.bf16.msra.mxu1 %v2123_v56  ;;  %v908_v54 = vld [vmem:[%s8002_s21 + $0x8a8] sm:$0xff]  ;;  %v373_v56 = vcombine.high %v8326_v50, %v8326_v50 }
 0x20d   : > { %3831 = vmatprep.subr.bf16.mxu0 %v2127_v57  ;;  %4856 = vmatprep.subr.bf16.mxu1 %v2129_v58  ;;  %v2161_v57 = vunpack.c.l.s8.bf16 %v906_v53  ;;  %v2163_v58 = vunpack.c.l.s8.bf16 %v908_v54  ;;  %v2168_v4 = vunpack.c.h.s8.bf16 %v908_v54 }
 0x210   : > { %3832 = vmatpush1.bf16.msra.mxu0 %v2126_v0  ;;  %4857 = vmatpush1.bf16.msra.mxu1 %v2128_v59  ;;  %v912_v0 = vld [vmem:[%s8002_s21 + $0x8c8] sm:$0xff]  ;;  %v914_v59 = vld [vmem:[%s8002_s21 + $0x8d8] sm:$0xff] }
 0x211   : > { %3833 = vmatprep.subr.bf16.mxu0 %v2132_v1  ;;  %4858 = vmatprep.subr.bf16.mxu1 %v2134_v3  ;;  %v8381_v1 = vrot.slane %v373_v56, %v8033_v35  ;;  %v2166_v3 = vunpack.c.h.s8.bf16 %v906_v53  ;;  %v2172_v50 = vunpack.c.l.s8.bf16 %v912_v0  ;;  %v2174_v7 = vunpack.c.l.s8.bf16 %v914_v59 }
 0x214   : > { %3834 = vmatpush1.bf16.msra.mxu0 %v2131_v8  ;;  %4859 = vmatpush1.bf16.msra.mxu1 %v2133_v9  ;;  %v911_v8 = vld [vmem:[%s8002_s21 + $0x8c0] sm:$0xff]  ;;  %v913_v9 = vld [vmem:[%s8002_s21 + $0x8d0] sm:$0xff] }
 0x215   : > { %3835 = vmatprep.subr.bf16.mxu0 %v2137_v11  ;;  %4860 = vmatprep.subr.bf16.mxu1 %v2139_v13  ;;  %v389_v11 = vcombine.high %v8381_v1, %v8381_v1  ;;  %v8389_v13 = vpack.c.bf16 %v8332_v60, %v8332_v60  ;;  %v2171_v14 = vunpack.c.l.s8.bf16 %v911_v8  ;;  %v2173_v41 = vunpack.c.l.s8.bf16 %v913_v9 }
 0x216   : > { %v2176_v60 = vunpack.c.h.s8.bf16 %v911_v8  ;;  %v2178_v22 = vunpack.c.h.s8.bf16 %v913_v9 }
 0x217   : > { %v8393_v21 = vpack.c.bf16 %v389_v11, %v389_v11 }
 0x218   : > { %3836 = vmatpush1.bf16.msra.mxu0 %v2136_v15  ;;  %4861 = vmatpush1.bf16.msra.mxu1 %v2138_v16  ;;  %v2177_v15 = vunpack.c.h.s8.bf16 %v912_v0  ;;  %v2179_v16 = vunpack.c.h.s8.bf16 %v914_v59 }
 0x219   : > { %3837 = vmatprep.subr.bf16.mxu0 %v2142_v12  ;;  %4862 = vmatprep.subr.bf16.mxu1 %v2144_v19  ;;  %v917_v12 = vld [vmem:[%s8002_s21 + $0x8f0] sm:$0xff]  ;;  %v919_v19 = vld [vmem:[%s8002_s21 + $0x900] sm:$0xff] }
 0x21c   : > { %3838 = vmatpush1.bf16.msra.mxu0 %v2141_v23  ;;  %4863 = vmatpush1.bf16.msra.mxu1 %v2143_v24  ;;  %v2182_v23 = vunpack.c.l.s8.bf16 %v917_v12  ;;  %v2184_v24 = vunpack.c.l.s8.bf16 %v919_v19 }
 0x21d   : > { %3839 = vmatprep.subr.bf16.mxu0 %v2147_v27  ;;  %4864 = vmatprep.subr.bf16.mxu1 %v2149_v28  ;;  %v916_v27 = vld [vmem:[%s8002_s21 + $0x8e8] sm:$0xff]  ;;  %v918_v28 = vld [vmem:[%s8002_s21 + $0x8f8] sm:$0xff] }
 0x21e   : > { %v2181_v25 = vunpack.c.l.s8.bf16 %v916_v27  ;;  %v2183_v30 = vunpack.c.l.s8.bf16 %v918_v28  ;;  %v2186_v38 = vunpack.c.h.s8.bf16 %v916_v27  ;;  %v2188_v39 = vunpack.c.h.s8.bf16 %v918_v28 }
 0x220   : > { %3840 = vmatpush1.bf16.msra.mxu0 %v2146_v31  ;;  %4865 = vmatpush1.bf16.msra.mxu1 %v2148_v32  ;;  %v2187_v31 = vunpack.c.h.s8.bf16 %v917_v12  ;;  %v2189_v32 = vunpack.c.h.s8.bf16 %v919_v19 }
 0x221   : > { %3841 = vmatprep.subr.bf16.mxu0 %v2152_v33  ;;  %4866 = vmatprep.subr.bf16.mxu1 %v2154_v37  ;;  %v922_v33 = vld [vmem:[%s8002_s21 + $0x918] sm:$0xff]  ;;  %v924_v37 = vld [vmem:[%s8002_s21 + $0x928] sm:$0xff] }
 0x224   : > { %3842 = vmatpush1.bf16.msra.mxu0 %v2151_v40  ;;  %4867 = vmatpush1.bf16.msra.mxu1 %v2153_v42  ;;  %v2192_v40 = vunpack.c.l.s8.bf16 %v922_v33  ;;  %v2194_v42 = vunpack.c.l.s8.bf16 %v924_v37 }
 0x225   : > { %3843 = vmatprep.subr.bf16.mxu0 %v2157_v43  ;;  %4868 = vmatprep.subr.bf16.mxu1 %v2159_v47  ;;  %v921_v43 = vld [vmem:[%s8002_s21 + $0x910] sm:$0xff]  ;;  %v923_v47 = vld [vmem:[%s8002_s21 + $0x920] sm:$0xff] }
 0x226   : > { %v2191_v45 = vunpack.c.l.s8.bf16 %v921_v43  ;;  %v2193_v46 = vunpack.c.l.s8.bf16 %v923_v47  ;;  %v2196_v53 = vunpack.c.h.s8.bf16 %v921_v43  ;;  %v2198_v54 = vunpack.c.h.s8.bf16 %v923_v47 }
 0x228   : > { %3844 = vmatpush1.bf16.msra.mxu0 %v2156_v48  ;;  %4869 = vmatpush1.bf16.msra.mxu1 %v2158_v49  ;;  %v2197_v48 = vunpack.c.h.s8.bf16 %v922_v33  ;;  %v2199_v49 = vunpack.c.h.s8.bf16 %v924_v37 }
 0x229   : > { %3845 = vmatprep.subr.bf16.mxu0 %v2162_v36  ;;  %4870 = vmatprep.subr.bf16.mxu1 %v2164_v52  ;;  %v927_v36 = vld [vmem:[%s8002_s21 + $0x940] sm:$0xff]  ;;  %v929_v52 = vld [vmem:[%s8002_s21 + $0x950] sm:$0xff] }
 0x22a   : > { %v2202_v56 = vunpack.c.l.s8.bf16 %v927_v36  ;;  %v2207_v59 = vunpack.c.h.s8.bf16 %v927_v36 }
 0x22c   : > { %3846 = vmatpush1.bf16.msra.mxu0 %v2161_v57  ;;  %4871 = vmatpush1.bf16.msra.mxu1 %v2163_v58  ;;  %v2204_v57 = vunpack.c.l.s8.bf16 %v929_v52  ;;  %v926_v58 = vld [vmem:[%s8002_s21 + $0x938] sm:$0xff] }
 0x22d   : > { %3847 = vmatprep.subr.bf16.mxu0 %v2167_v61  ;;  %4872 = vmatprep.subr.bf16.mxu1 %v2169_v63  ;;  %v928_v61 = vld [vmem:[%s8002_s21 + $0x948] sm:$0xff]  ;;  %v2201_v63 = vunpack.c.l.s8.bf16 %v926_v58 }
 0x22e   : > { %v2203_v0 = vunpack.c.l.s8.bf16 %v928_v61  ;;  %v2208_v8 = vunpack.c.h.s8.bf16 %v928_v61 }
 0x230   : > { %3848 = vmatpush1.bf16.msra.mxu0 %v2166_v3  ;;  %4873 = vmatpush1.bf16.msra.mxu1 %v2168_v4  ;;  %v2209_v3 = vunpack.c.h.s8.bf16 %v929_v52  ;;  %v932_v4 = vld [vmem:[%s8002_s21 + $0x968] sm:$0xff] }
 0x231   : > { %3858 = vmatprep.subr.bf16.mxu0 %v2172_v50  ;;  %4883 = vmatprep.subr.bf16.mxu1 %v2174_v7  ;;  %v934_v50 = vld [vmem:[%s8002_s21 + $0x978] sm:$0xff]  ;;  %v2206_v7 = vunpack.c.h.s8.bf16 %v926_v58  ;;  %v2212_v9 = vunpack.c.l.s8.bf16 %v932_v4  ;;  %v2217_v12 = vunpack.c.h.s8.bf16 %v932_v4 }
 0x232   : > { %v2214_v11 = vunpack.c.l.s8.bf16 %v934_v50  ;;  %v2219_v19 = vunpack.c.h.s8.bf16 %v934_v50 }
 0x233   : > { %3850 = vmatmul.mubr.bf16.vlgmr.msra.gmra.mrb[0].mxu0 %v8389_v13  ;;  %4875 = vmatmul.mubr.bf16.vlgmr.msra.gmra.mrb[0].mxu1 %v8389_v13 }
 0x234   : > { %3859 = vmatpush1.bf16.msra.mxu0 %v2171_v14  ;;  %4884 = vmatpush1.bf16.msra.mxu1 %v2173_v41  ;;  %v931_v14 = vld [vmem:[%s8002_s21 + $0x960] sm:$0xff]  ;;  %v933_v41 = vld [vmem:[%s8002_s21 + $0x970] sm:$0xff] }
 0x235   : > { %3860 = vmatprep.subr.bf16.mxu0 %v2177_v15  ;;  %4885 = vmatprep.subr.bf16.mxu1 %v2179_v16  ;;  %v2211_v15 = vunpack.c.l.s8.bf16 %v931_v14  ;;  %v2213_v16 = vunpack.c.l.s8.bf16 %v933_v41 }
 0x236   : > { %3890 = vmatprep.mubr.bf16.mxu0 %v8393_v21  ;;  %4915 = vmatprep.mubr.bf16.mxu1 %v8393_v21 }
 0x238   : > { %3861 = vmatpush1.bf16.msra.mxu0 %v2176_v60  ;;  %4886 = vmatpush1.bf16.msra.mxu1 %v2178_v22  ;;  %v937_v60 = vld [vmem:[%s8002_s21 + $0x990] sm:$0xff]  ;;  %v939_v22 = vld [vmem:[%s8002_s21 + $0x9a0] sm:$0xff] }
 0x239   : > { %3862 = vmatprep.subr.bf16.mxu0 %v2182_v23  ;;  %4887 = vmatprep.subr.bf16.mxu1 %v2184_v24  ;;  %v2216_v23 = vunpack.c.h.s8.bf16 %v931_v14  ;;  %v2218_v24 = vunpack.c.h.s8.bf16 %v933_v41  ;;  %v2222_v27 = vunpack.c.l.s8.bf16 %v937_v60  ;;  %v2224_v28 = vunpack.c.l.s8.bf16 %v939_v22 }
 0x23a   : > { %v2227_v33 = vunpack.c.h.s8.bf16 %v937_v60  ;;  %v2229_v37 = vunpack.c.h.s8.bf16 %v939_v22  ;;  %v8442_v22 = vpack.c.bf16 %v8381_v1, %v8381_v1 }
 0x23c   : > { %3863 = vmatpush1.bf16.msra.mxu0 %v2181_v25  ;;  %4888 = vmatpush1.bf16.msra.mxu1 %v2183_v30  ;;  %v936_v25 = vld [vmem:[%s8002_s21 + $0x988] sm:$0xff]  ;;  %v938_v30 = vld [vmem:[%s8002_s21 + $0x998] sm:$0xff] }
 0x23d   : > { %3864 = vmatprep.subr.bf16.mxu0 %v2187_v31  ;;  %4889 = vmatprep.subr.bf16.mxu1 %v2189_v32  ;;  %v2221_v31 = vunpack.c.l.s8.bf16 %v936_v25  ;;  %v2223_v32 = vunpack.c.l.s8.bf16 %v938_v30 }
 0x240   : > { %3865 = vmatpush1.bf16.msra.mxu0 %v2186_v38  ;;  %4890 = vmatpush1.bf16.msra.mxu1 %v2188_v39  ;;  %v942_v38 = vld [vmem:[%s8002_s21 + $0x9b8] sm:$0xff]  ;;  %v944_v39 = vld [vmem:[%s8002_s21 + $0x9c8] sm:$0xff] }
 0x241   : > { %3866 = vmatprep.subr.bf16.mxu0 %v2192_v40  ;;  %4891 = vmatprep.subr.bf16.mxu1 %v2194_v42  ;;  %v2226_v40 = vunpack.c.h.s8.bf16 %v936_v25  ;;  %v2228_v42 = vunpack.c.h.s8.bf16 %v938_v30  ;;  %v2232_v43 = vunpack.c.l.s8.bf16 %v942_v38  ;;  %v2234_v47 = vunpack.c.l.s8.bf16 %v944_v39  ;;  %v957_v25 = vld [vmem:[%s8002_s21 + $0xa30] sm:$0xff]  ;;  %v959_v30 = vld [vmem:[%s8002_s21 + $0xa40] sm:$0xff] }
 0x242   : > { %v2237_v36 = vunpack.c.h.s8.bf16 %v942_v38  ;;  %v2239_v52 = vunpack.c.h.s8.bf16 %v944_v39  ;;  %v956_v38 = vld [vmem:[%s8002_s21 + $0xa28] sm:$0xff]  ;;  %v958_v39 = vld [vmem:[%s8002_s21 + $0xa38] sm:$0xff] }
 0x244   : > { %3867 = vmatpush1.bf16.msra.mxu0 %v2191_v45  ;;  %4892 = vmatpush1.bf16.msra.mxu1 %v2193_v46  ;;  %v941_v45 = vld [vmem:[%s8002_s21 + $0x9b0] sm:$0xff]  ;;  %v943_v46 = vld [vmem:[%s8002_s21 + $0x9c0] sm:$0xff] }
 0x245   : > { %3868 = vmatprep.subr.bf16.mxu0 %v2197_v48  ;;  %4893 = vmatprep.subr.bf16.mxu1 %v2199_v49  ;;  %v2231_v48 = vunpack.c.l.s8.bf16 %v941_v45  ;;  %v2233_v49 = vunpack.c.l.s8.bf16 %v943_v46 }
 0x248   : > { %3869 = vmatpush1.bf16.msra.mxu0 %v2196_v53  ;;  %4894 = vmatpush1.bf16.msra.mxu1 %v2198_v54  ;;  %v947_v53 = vld [vmem:[%s8002_s21 + $0x9e0] sm:$0xff]  ;;  %v949_v54 = vld [vmem:[%s8002_s21 + $0x9f0] sm:$0xff] }
 0x249   : > { %3870 = vmatprep.subr.bf16.mxu0 %v2202_v56  ;;  %4895 = vmatprep.subr.bf16.mxu1 %v2204_v57  ;;  %v2236_v56 = vunpack.c.h.s8.bf16 %v941_v45  ;;  %v2238_v57 = vunpack.c.h.s8.bf16 %v943_v46  ;;  %v2242_v58 = vunpack.c.l.s8.bf16 %v947_v53  ;;  %v2244_v61 = vunpack.c.l.s8.bf16 %v949_v54  ;;  %v962_v45 = vld [vmem:[%s8002_s21 + $0xa58] sm:$0xff]  ;;  %v964_v46 = vld [vmem:[%s8002_s21 + $0xa68] sm:$0xff] }
 0x24a   : > { %v2247_v50 = vunpack.c.h.s8.bf16 %v947_v53  ;;  %v961_v53 = vld [vmem:[%s8002_s21 + $0xa50] sm:$0xff] }
 0x24c   : > { %3871 = vmatpush1.bf16.msra.mxu0 %v2201_v63  ;;  %4896 = vmatpush1.bf16.msra.mxu1 %v2203_v0  ;;  %v946_v63 = vld [vmem:[%s8002_s21 + $0x9d8] sm:$0xff]  ;;  %v948_v0 = vld [vmem:[%s8002_s21 + $0x9e8] sm:$0xff] }
 0x24d   : > { %3872 = vmatprep.subr.bf16.mxu0 %v2207_v59  ;;  %4897 = vmatprep.subr.bf16.mxu1 %v2209_v3  ;;  %v8428_v59 = vld [vmem:[%s9576_s0 + $0x20] sm:$0xff]  ;;  %v2241_v3 = vunpack.c.l.s8.bf16 %v946_v63  ;;  %v2243_v4 = vunpack.c.l.s8.bf16 %v948_v0  ;;  %v2246_v14 = vunpack.c.h.s8.bf16 %v946_v63  ;;  %v2248_v41 = vunpack.c.h.s8.bf16 %v948_v0  ;;  %v969_v0 = vld [vmem:[%s8002_s21 + $0xa90] sm:$0xff] }
 0x24e   : > { %v967_v63 = vld [vmem:[%s8002_s21 + $0xa80] sm:$0xff] }
 0x250   : > { %3873 = vmatpush1.bf16.msra.mxu0 %v2206_v7  ;;  %4898 = vmatpush1.bf16.msra.mxu1 %v2208_v8  ;;  %v2249_v7 = vunpack.c.h.s8.bf16 %v949_v54  ;;  %v952_v8 = vld [vmem:[%s8002_s21 + $0xa08] sm:$0xff]  ;;  %v963_v54 = vld [vmem:[%s8002_s21 + $0xa60] sm:$0xff] }
 0x251   : > { %3874 = vmatprep.subr.bf16.mxu0 %v2212_v9  ;;  %4899 = vmatprep.subr.bf16.mxu1 %v2214_v11  ;;  %v954_v9 = vld [vmem:[%s8002_s21 + $0xa18] sm:$0xff]  ;;  %v8434_v11 = vrot.slane %v8428_v59, %v8033_v35 }
 0x253   : > { %v405_v60 = vcombine.high %v8434_v11, %v8434_v11 }
 0x254   : > { %3875 = vmatpush1.bf16.msra.mxu0 %v2211_v15  ;;  %4900 = vmatpush1.bf16.msra.mxu1 %v2213_v16  ;;  %v2252_v15 = vunpack.c.l.s8.bf16 %v952_v8  ;;  %v2254_v16 = vunpack.c.l.s8.bf16 %v954_v9 }
 0x255   : > { %3876 = vmatprep.subr.bf16.mxu0 %v2217_v12  ;;  %4901 = vmatprep.subr.bf16.mxu1 %v2219_v19  ;;  %v951_v12 = vld [vmem:[%s8002_s21 + $0xa00] sm:$0xff]  ;;  %v953_v19 = vld [vmem:[%s8002_s21 + $0xa10] sm:$0xff] }
 0x256   : > { %v2256_v1 = vunpack.c.h.s8.bf16 %v951_v12 }
 0x258   : > { %3877 = vmatpush1.bf16.msra.mxu0 %v2216_v23  ;;  %4902 = vmatpush1.bf16.msra.mxu1 %v2218_v24  ;;  %v2251_v23 = vunpack.c.l.s8.bf16 %v951_v12  ;;  %v2253_v24 = vunpack.c.l.s8.bf16 %v953_v19  ;;  %v972_v12 = vld [vmem:[%s8002_s21 + $0xaa8] sm:$0xff] }
 0x259   : > { %3878 = vmatprep.subr.bf16.mxu0 %v2222_v27  ;;  %4903 = vmatprep.subr.bf16.mxu1 %v2224_v28  ;;  %v2257_v27 = vunpack.c.h.s8.bf16 %v952_v8  ;;  %v2259_v28 = vunpack.c.h.s8.bf16 %v954_v9  ;;  %v966_v8 = vld [vmem:[%s8002_s21 + $0xa78] sm:$0xff]  ;;  %v968_v9 = vld [vmem:[%s8002_s21 + $0xa88] sm:$0xff] }
 0x25c   : > { %3879 = vmatpush1.bf16.msra.mxu0 %v2221_v31  ;;  %4904 = vmatpush1.bf16.msra.mxu1 %v2223_v32  ;;  %v8446_v31 = vpack.c.bf16 %v405_v60, %v405_v60  ;;  %v2258_v32 = vunpack.c.h.s8.bf16 %v953_v19  ;;  %v974_v19 = vld [vmem:[%s8002_s21 + $0xab8] sm:$0xff]  ;;  %v2286_v60 = vunpack.c.h.s8.bf16 %v966_v8 }
 0x25d   : > { %3880 = vmatprep.subr.bf16.mxu0 %v2227_v33  ;;  %4905 = vmatprep.subr.bf16.mxu1 %v2229_v37  ;;  %v2262_v33 = vunpack.c.l.s8.bf16 %v957_v25  ;;  %v2264_v37 = vunpack.c.l.s8.bf16 %v959_v30 }
 0x260   : > { %3881 = vmatpush1.bf16.msra.mxu0 %v2226_v40  ;;  %4906 = vmatpush1.bf16.msra.mxu1 %v2228_v42  ;;  %v2261_v40 = vunpack.c.l.s8.bf16 %v956_v38  ;;  %v2263_v42 = vunpack.c.l.s8.bf16 %v958_v39 }
 0x261   : > { %3882 = vmatprep.subr.bf16.mxu0 %v2232_v43  ;;  %4907 = vmatprep.subr.bf16.mxu1 %v2234_v47  ;;  %v2267_v43 = vunpack.c.h.s8.bf16 %v957_v25  ;;  %v2269_v47 = vunpack.c.h.s8.bf16 %v959_v30  ;;  %v973_v25 = vld [vmem:[%s8002_s21 + $0xab0] sm:$0xff] }
 0x264   : > { %3883 = vmatpush1.bf16.msra.mxu0 %v2231_v48  ;;  %4908 = vmatpush1.bf16.msra.mxu1 %v2233_v49  ;;  %v2266_v48 = vunpack.c.h.s8.bf16 %v956_v38  ;;  %v2268_v49 = vunpack.c.h.s8.bf16 %v958_v39  ;;  %v979_v38 = vld [vmem:[%s8002_s21 + $0xae0] sm:$0xff] }
 0x265   : > { %3884 = vmatprep.subr.bf16.mxu0 %v2237_v36  ;;  %4909 = vmatprep.subr.bf16.mxu1 %v2239_v52  ;;  %v2272_v36 = vunpack.c.l.s8.bf16 %v962_v45  ;;  %v2274_v52 = vunpack.c.l.s8.bf16 %v964_v46 }
 0x268   : > { %3885 = vmatpush1.bf16.msra.mxu0 %v2236_v56  ;;  %4910 = vmatpush1.bf16.msra.mxu1 %v2238_v57  ;;  %v2271_v56 = vunpack.c.l.s8.bf16 %v961_v53  ;;  %v2273_v57 = vunpack.c.l.s8.bf16 %v963_v54 }
 0x269   : > { %3886 = vmatprep.subr.bf16.mxu0 %v2242_v58  ;;  %4911 = vmatprep.subr.bf16.mxu1 %v2244_v61  ;;  %v2277_v58 = vunpack.c.h.s8.bf16 %v962_v45  ;;  %v2279_v61 = vunpack.c.h.s8.bf16 %v964_v46  ;;  %v978_v45 = vld [vmem:[%s8002_s21 + $0xad8] sm:$0xff] }
 0x26c   : > { %3887 = vmatpush1.bf16.msra.mxu0 %v2241_v3  ;;  %4912 = vmatpush1.bf16.msra.mxu1 %v2243_v4  ;;  %v2276_v3 = vunpack.c.h.s8.bf16 %v961_v53  ;;  %v2278_v4 = vunpack.c.h.s8.bf16 %v963_v54  ;;  %v984_v53 = vld [vmem:[%s8002_s21 + $0xb08] sm:$0xff] }
 0x26d   : > { %3888 = vmatprep.subr.bf16.mxu0 %v2247_v50  ;;  %4913 = vmatprep.subr.bf16.mxu1 %v2249_v7  ;;  %v2282_v50 = vunpack.c.l.s8.bf16 %v967_v63  ;;  %v2284_v7 = vunpack.c.l.s8.bf16 %v969_v0 }
 0x270   : > { %3889 = vmatpush1.bf16.msra.mxu0 %v2246_v14  ;;  %4914 = vmatpush1.bf16.msra.mxu1 %v2248_v41  ;;  %v2281_v14 = vunpack.c.l.s8.bf16 %v966_v8  ;;  %v2283_v41 = vunpack.c.l.s8.bf16 %v968_v9  ;;  %v989_v8 = vld [vmem:[%s8002_s21 + $0xb30] sm:$0xff] }
 0x271   : > { %3899 = vmatprep.subr.bf16.mxu0 %v2252_v15  ;;  %4924 = vmatprep.subr.bf16.mxu1 %v2254_v16  ;;  %v2287_v15 = vunpack.c.h.s8.bf16 %v967_v63  ;;  %v2289_v16 = vunpack.c.h.s8.bf16 %v969_v0  ;;  %v983_v63 = vld [vmem:[%s8002_s21 + $0xb00] sm:$0xff] }
 0x273   : > { %3891 = vmatmul.mubr.bf16.vlgmr.msra.gmra.mrb[0].mxu0 %v8442_v22  ;;  %4916 = vmatmul.mubr.bf16.vlgmr.msra.gmra.mrb[0].mxu1 %v8442_v22 }
 0x274   : > { %3900 = vmatpush1.bf16.msra.mxu0 %v2251_v23  ;;  %4925 = vmatpush1.bf16.msra.mxu1 %v2253_v24  ;;  %v2288_v23 = vunpack.c.h.s8.bf16 %v968_v9  ;;  %v2292_v24 = vunpack.c.l.s8.bf16 %v972_v12 }
 0x275   : > { %3901 = vmatprep.subr.bf16.mxu0 %v2257_v27  ;;  %4926 = vmatprep.subr.bf16.mxu1 %v2259_v28  ;;  %v2294_v27 = vunpack.c.l.s8.bf16 %v974_v19  ;;  %v971_v28 = vld [vmem:[%s8002_s21 + $0xaa0] sm:$0xff] }
 0x276   : > { %3931 = vmatprep.mubr.bf16.mxu0 %v8446_v31  ;;  %4956 = vmatprep.mubr.bf16.mxu1 %v8446_v31  ;;  %v2291_v30 = vunpack.c.l.s8.bf16 %v971_v28  ;;  %v2296_v39 = vunpack.c.h.s8.bf16 %v971_v28  ;;  %v992_v28 = vld [vmem:[%s8002_s21 + $0xb48] sm:$0xff] }
 0x278   : > { %3902 = vmatpush1.bf16.msra.mxu0 %v2256_v1  ;;  %4927 = vmatpush1.bf16.msra.mxu1 %v2258_v32  ;;  %v2293_v1 = vunpack.c.l.s8.bf16 %v973_v25  ;;  %v2297_v32 = vunpack.c.h.s8.bf16 %v972_v12  ;;  %v988_v12 = vld [vmem:[%s8002_s21 + $0xb28] sm:$0xff] }
 0x279   : > { %3903 = vmatprep.subr.bf16.mxu0 %v2262_v33  ;;  %4928 = vmatprep.subr.bf16.mxu1 %v2264_v37  ;;  %v2299_v33 = vunpack.c.h.s8.bf16 %v974_v19  ;;  %v977_v37 = vld [vmem:[%s8002_s21 + $0xad0] sm:$0xff]  ;;  %v390_v19 = vcombine.high %v8428_v59, %v8428_v59  ;;  %v2332_v59 = vunpack.c.l.s8.bf16 %v992_v28 }
 0x27c   : > { %3904 = vmatpush1.bf16.msra.mxu0 %v2261_v40  ;;  %4929 = vmatpush1.bf16.msra.mxu1 %v2263_v42  ;;  %v2298_v40 = vunpack.c.h.s8.bf16 %v973_v25  ;;  %v2302_v42 = vunpack.c.l.s8.bf16 %v977_v37  ;;  %v994_v25 = vld [vmem:[%s8002_s21 + $0xb58] sm:$0xff] }
 0x27d   : > { %3905 = vmatprep.subr.bf16.mxu0 %v2267_v43  ;;  %4930 = vmatprep.subr.bf16.mxu1 %v2269_v47  ;;  %v2304_v43 = vunpack.c.l.s8.bf16 %v979_v38  ;;  %v976_v47 = vld [vmem:[%s8002_s21 + $0xac8] sm:$0xff] }
 0x27e   : > { %v2301_v46 = vunpack.c.l.s8.bf16 %v976_v47  ;;  %v2306_v54 = vunpack.c.h.s8.bf16 %v976_v47  ;;  %v2337_v47 = vunpack.c.h.s8.bf16 %v992_v28 }
 0x280   : > { %3906 = vmatpush1.bf16.msra.mxu0 %v2266_v48  ;;  %4931 = vmatpush1.bf16.msra.mxu1 %v2268_v49  ;;  %v2303_v48 = vunpack.c.l.s8.bf16 %v978_v45  ;;  %v2307_v49 = vunpack.c.h.s8.bf16 %v977_v37  ;;  %v991_v37 = vld [vmem:[%s8002_s21 + $0xb40] sm:$0xff] }
 0x281   : > { %3907 = vmatprep.subr.bf16.mxu0 %v2272_v36  ;;  %4932 = vmatprep.subr.bf16.mxu1 %v2274_v52  ;;  %v2309_v36 = vunpack.c.h.s8.bf16 %v979_v38  ;;  %v982_v52 = vld [vmem:[%s8002_s21 + $0xaf8] sm:$0xff]  ;;  %v993_v38 = vld [vmem:[%s8002_s21 + $0xb50] sm:$0xff] }
 0x284   : > { %3908 = vmatpush1.bf16.msra.mxu0 %v2271_v56  ;;  %4933 = vmatpush1.bf16.msra.mxu1 %v2273_v57  ;;  %v2308_v56 = vunpack.c.h.s8.bf16 %v978_v45  ;;  %v2312_v57 = vunpack.c.l.s8.bf16 %v982_v52  ;;  %v2339_v45 = vunpack.c.h.s8.bf16 %v994_v25 }
 0x285   : > { %3909 = vmatprep.subr.bf16.mxu0 %v2277_v58  ;;  %4934 = vmatprep.subr.bf16.mxu1 %v2279_v61  ;;  %v2314_v58 = vunpack.c.l.s8.bf16 %v984_v53  ;;  %v981_v61 = vld [vmem:[%s8002_s21 + $0xaf0] sm:$0xff] }
 0x286   : > { %v2311_v0 = vunpack.c.l.s8.bf16 %v981_v61  ;;  %v2316_v9 = vunpack.c.h.s8.bf16 %v981_v61 }
 0x288   : > { %3910 = vmatpush1.bf16.msra.mxu0 %v2276_v3  ;;  %4935 = vmatpush1.bf16.msra.mxu1 %v2278_v4  ;;  %v2313_v3 = vunpack.c.l.s8.bf16 %v983_v63  ;;  %v2317_v4 = vunpack.c.h.s8.bf16 %v982_v52 }
 0x289   : > { %3911 = vmatprep.subr.bf16.mxu0 %v2282_v50  ;;  %4936 = vmatprep.subr.bf16.mxu1 %v2284_v7  ;;  %v2319_v50 = vunpack.c.h.s8.bf16 %v984_v53  ;;  %v987_v7 = vld [vmem:[%s8002_s21 + $0xb20] sm:$0xff] }
 0x28c   : > { %3912 = vmatpush1.bf16.msra.mxu0 %v2281_v14  ;;  %4937 = vmatpush1.bf16.msra.mxu1 %v2283_v41  ;;  %v2318_v14 = vunpack.c.h.s8.bf16 %v983_v63  ;;  %v2322_v41 = vunpack.c.l.s8.bf16 %v987_v7 }
 0x28d   : > { %3913 = vmatprep.subr.bf16.mxu0 %v2287_v15  ;;  %4938 = vmatprep.subr.bf16.mxu1 %v2289_v16  ;;  %v2324_v15 = vunpack.c.l.s8.bf16 %v989_v8  ;;  %v986_v16 = vld [vmem:[%s8002_s21 + $0xb18] sm:$0xff] }
 0x290   : > { %3914 = vmatpush1.bf16.msra.mxu0 %v2286_v60  ;;  %4939 = vmatpush1.bf16.msra.mxu1 %v2288_v23  ;;  %v2321_v60 = vunpack.c.l.s8.bf16 %v986_v16  ;;  %v2323_v23 = vunpack.c.l.s8.bf16 %v988_v12 }
 0x291   : > { %3915 = vmatprep.subr.bf16.mxu0 %v2292_v24  ;;  %4940 = vmatprep.subr.bf16.mxu1 %v2294_v27  ;;  %v2327_v24 = vunpack.c.h.s8.bf16 %v987_v7  ;;  %v2329_v27 = vunpack.c.h.s8.bf16 %v989_v8 }
 0x294   : > { %3916 = vmatpush1.bf16.msra.mxu0 %v2291_v30  ;;  %4941 = vmatpush1.bf16.msra.mxu1 %v2293_v1  ;;  %v8483_v30 = vrot.slane %v390_v19, %v8033_v35  ;;  %v2326_v1 = vunpack.c.h.s8.bf16 %v986_v16  ;;  %v1007_v19 = vld [vmem:[%s8002_s21 + $0xbc0] sm:$0xff] }
 0x295   : > { %3917 = vmatprep.subr.bf16.mxu0 %v2297_v32  ;;  %4942 = vmatprep.subr.bf16.mxu1 %v2299_v33  ;;  %v2328_v32 = vunpack.c.h.s8.bf16 %v988_v12  ;;  %v2334_v33 = vunpack.c.l.s8.bf16 %v994_v25  ;;  %v1006_v25 = vld [vmem:[%s8002_s21 + $0xbb8] sm:$0xff] }
 0x298   : > { %3918 = vmatpush1.bf16.msra.mxu0 %v2296_v39  ;;  %4943 = vmatpush1.bf16.msra.mxu1 %v2298_v40  ;;  %v406_v39 = vcombine.high %v8483_v30, %v8483_v30  ;;  %v8491_v40 = vpack.c.bf16 %v8434_v11, %v8434_v11  ;;  %v2336_v11 = vunpack.c.h.s8.bf16 %v991_v37 }
 0x299   : > { %3919 = vmatprep.subr.bf16.mxu0 %v2302_v42  ;;  %4944 = vmatprep.subr.bf16.mxu1 %v2304_v43  ;;  %v2331_v42 = vunpack.c.l.s8.bf16 %v991_v37  ;;  %v2333_v43 = vunpack.c.l.s8.bf16 %v993_v38 }
 0x29c   : > { %3920 = vmatpush1.bf16.msra.mxu0 %v2301_v46  ;;  %4945 = vmatpush1.bf16.msra.mxu1 %v2303_v48  ;;  %v997_v46 = vld [vmem:[%s8002_s21 + $0xb70] sm:$0xff]  ;;  %v999_v48 = vld [vmem:[%s8002_s21 + $0xb80] sm:$0xff] }
 0x29d   : > { %3921 = vmatprep.subr.bf16.mxu0 %v2307_v49  ;;  %4946 = vmatprep.subr.bf16.mxu1 %v2309_v36  ;;  %v8495_v49 = vpack.c.bf16 %v406_v39, %v406_v39  ;;  %v2338_v36 = vunpack.c.h.s8.bf16 %v993_v38  ;;  %v2342_v52 = vunpack.c.l.s8.bf16 %v997_v46  ;;  %v2344_v53 = vunpack.c.l.s8.bf16 %v999_v48  ;;  %v1012_v38 = vld [vmem:[%s8002_s21 + $0xbe8] sm:$0xff]  ;;  %v1014_v39 = vld [vmem:[%s8002_s21 + $0xbf8] sm:$0xff] }
 0x29e   : > { %v2347_v61 = vunpack.c.h.s8.bf16 %v997_v46  ;;  %v2349_v63 = vunpack.c.h.s8.bf16 %v999_v48  ;;  %v1011_v46 = vld [vmem:[%s8002_s21 + $0xbe0] sm:$0xff]  ;;  %v1013_v48 = vld [vmem:[%s8002_s21 + $0xbf0] sm:$0xff] }
 0x2a0   : > { %3922 = vmatpush1.bf16.msra.mxu0 %v2306_v54  ;;  %4947 = vmatpush1.bf16.msra.mxu1 %v2308_v56  ;;  %v996_v54 = vld [vmem:[%s8002_s21 + $0xb68] sm:$0xff]  ;;  %v998_v56 = vld [vmem:[%s8002_s21 + $0xb78] sm:$0xff] }
 0x2a1   : > { %3923 = vmatprep.subr.bf16.mxu0 %v2312_v57  ;;  %4948 = vmatprep.subr.bf16.mxu1 %v2314_v58  ;;  %v2341_v57 = vunpack.c.l.s8.bf16 %v996_v54  ;;  %v2343_v58 = vunpack.c.l.s8.bf16 %v998_v56 }
 0x2a4   : > { %3924 = vmatpush1.bf16.msra.mxu0 %v2311_v0  ;;  %4949 = vmatpush1.bf16.msra.mxu1 %v2313_v3  ;;  %v1002_v0 = vld [vmem:[%s8002_s21 + $0xb98] sm:$0xff]  ;;  %v1004_v3 = vld [vmem:[%s8002_s21 + $0xba8] sm:$0xff] }
 0x2a5   : > { %3925 = vmatprep.subr.bf16.mxu0 %v2317_v4  ;;  %4950 = vmatprep.subr.bf16.mxu1 %v2319_v50  ;;  %v2346_v4 = vunpack.c.h.s8.bf16 %v996_v54  ;;  %v2348_v50 = vunpack.c.h.s8.bf16 %v998_v56  ;;  %v2352_v7 = vunpack.c.l.s8.bf16 %v1002_v0  ;;  %v2354_v8 = vunpack.c.l.s8.bf16 %v1004_v3  ;;  %v1017_v54 = vld [vmem:[%s8002_s21 + $0xc10] sm:$0xff]  ;;  %v1019_v56 = vld [vmem:[%s8002_s21 + $0xc20] sm:$0xff] }
 0x2a6   : > { %v2357_v16 = vunpack.c.h.s8.bf16 %v1002_v0  ;;  %v2359_v12 = vunpack.c.h.s8.bf16 %v1004_v3  ;;  %v1016_v0 = vld [vmem:[%s8002_s21 + $0xc08] sm:$0xff]  ;;  %v1018_v3 = vld [vmem:[%s8002_s21 + $0xc18] sm:$0xff] }
 0x2a8   : > { %3926 = vmatpush1.bf16.msra.mxu0 %v2316_v9  ;;  %4951 = vmatpush1.bf16.msra.mxu1 %v2318_v14  ;;  %v1001_v9 = vld [vmem:[%s8002_s21 + $0xb90] sm:$0xff]  ;;  %v1003_v14 = vld [vmem:[%s8002_s21 + $0xba0] sm:$0xff] }
 0x2a9   : > { %3927 = vmatprep.subr.bf16.mxu0 %v2322_v41  ;;  %4952 = vmatprep.subr.bf16.mxu1 %v2324_v15  ;;  %v2351_v41 = vunpack.c.l.s8.bf16 %v1001_v9  ;;  %v2353_v15 = vunpack.c.l.s8.bf16 %v1003_v14 }
 0x2ac   : > { %3928 = vmatpush1.bf16.msra.mxu0 %v2321_v60  ;;  %4953 = vmatpush1.bf16.msra.mxu1 %v2323_v23  ;;  %v1009_v60 = vld [vmem:[%s8002_s21 + $0xbd0] sm:$0xff]  ;;  %v2356_v23 = vunpack.c.h.s8.bf16 %v1001_v9  ;;  %v1022_v9 = vld [vmem:[%s8002_s21 + $0xc38] sm:$0xff] }
 0x2ad   : > { %3929 = vmatprep.subr.bf16.mxu0 %v2327_v24  ;;  %4954 = vmatprep.subr.bf16.mxu1 %v2329_v27  ;;  %v2358_v24 = vunpack.c.h.s8.bf16 %v1003_v14  ;;  %v2362_v27 = vunpack.c.l.s8.bf16 %v1007_v19  ;;  %v2364_v28 = vunpack.c.l.s8.bf16 %v1009_v60  ;;  %v2369_v37 = vunpack.c.h.s8.bf16 %v1009_v60  ;;  %v1024_v14 = vld [vmem:[%s8002_s21 + $0xc48] sm:$0xff]  ;;  %v1023_v60 = vld [vmem:[%s8002_s21 + $0xc40] sm:$0xff] }
 0x2b0   : > { %3930 = vmatpush1.bf16.msra.mxu0 %v2326_v1  ;;  %4955 = vmatpush1.bf16.msra.mxu1 %v2328_v32  ;;  %v1008_v1 = vld [vmem:[%s8002_s21 + $0xbc8] sm:$0xff]  ;;  %v2361_v32 = vunpack.c.l.s8.bf16 %v1006_v25 }
 0x2b1   : > { %3940 = vmatprep.subr.bf16.mxu0 %v2332_v59  ;;  %4965 = vmatprep.subr.bf16.mxu1 %v2334_v33  ;;  %v2363_v59 = vunpack.c.l.s8.bf16 %v1008_v1  ;;  %v2367_v33 = vunpack.c.h.s8.bf16 %v1007_v19  ;;  %v1021_v19 = vld [vmem:[%s8002_s21 + $0xc30] sm:$0xff] }
 0x2b3   : > { %3932 = vmatmul.mubr.bf16.vlgmr.msra.gmra.mrb[0].mxu0 %v8491_v40  ;;  %4957 = vmatmul.mubr.bf16.vlgmr.msra.gmra.mrb[0].mxu1 %v8491_v40 }
 0x2b4   : > { %3941 = vmatpush1.bf16.msra.mxu0 %v2331_v42  ;;  %4966 = vmatpush1.bf16.msra.mxu1 %v2333_v43  ;;  %v2366_v42 = vunpack.c.h.s8.bf16 %v1006_v25  ;;  %v2368_v43 = vunpack.c.h.s8.bf16 %v1008_v1  ;;  %v1027_v25 = vld [vmem:[%s8002_s21 + $0xc60] sm:$0xff]  ;;  %v1029_v1 = vld [vmem:[%s8002_s21 + $0xc70] sm:$0xff] }
 0x2b5   : > { %3942 = vmatprep.subr.bf16.mxu0 %v2337_v47  ;;  %4967 = vmatprep.subr.bf16.mxu1 %v2339_v45  ;;  %v2372_v47 = vunpack.c.l.s8.bf16 %v1012_v38  ;;  %v2374_v45 = vunpack.c.l.s8.bf16 %v1014_v39 }
 0x2b6   : > { %3972 = vmatprep.mubr.bf16.mxu0 %v8495_v49  ;;  %4997 = vmatprep.mubr.bf16.mxu1 %v8495_v49 }
 0x2b8   : > { %3943 = vmatpush1.bf16.msra.mxu0 %v2336_v11  ;;  %4968 = vmatpush1.bf16.msra.mxu1 %v2338_v36  ;;  %v2371_v11 = vunpack.c.l.s8.bf16 %v1011_v46  ;;  %v2373_v36 = vunpack.c.l.s8.bf16 %v1013_v48 }
 0x2b9   : > { %3944 = vmatprep.subr.bf16.mxu0 %v2342_v52  ;;  %4969 = vmatprep.subr.bf16.mxu1 %v2344_v53  ;;  %v2377_v52 = vunpack.c.h.s8.bf16 %v1012_v38  ;;  %v2379_v53 = vunpack.c.h.s8.bf16 %v1014_v39  ;;  %v1026_v38 = vld [vmem:[%s8002_s21 + $0xc58] sm:$0xff]  ;;  %v1028_v39 = vld [vmem:[%s8002_s21 + $0xc68] sm:$0xff] }
 0x2bc   : > { %3945 = vmatpush1.bf16.msra.mxu0 %v2341_v57  ;;  %4970 = vmatpush1.bf16.msra.mxu1 %v2343_v58  ;;  %v2376_v57 = vunpack.c.h.s8.bf16 %v1011_v46  ;;  %v2378_v58 = vunpack.c.h.s8.bf16 %v1013_v48  ;;  %v2409_v46 = vunpack.c.h.s8.bf16 %v1029_v1  ;;  %v1032_v48 = vld [vmem:[%s8002_s21 + $0xc88] sm:$0xff] }
 0x2bd   : > { %3946 = vmatprep.subr.bf16.mxu0 %v2347_v61  ;;  %4971 = vmatprep.subr.bf16.mxu1 %v2349_v63  ;;  %v2382_v61 = vunpack.c.l.s8.bf16 %v1017_v54  ;;  %v2384_v63 = vunpack.c.l.s8.bf16 %v1019_v56 }
 0x2c0   : > { %3947 = vmatpush1.bf16.msra.mxu0 %v2346_v4  ;;  %4972 = vmatpush1.bf16.msra.mxu1 %v2348_v50  ;;  %v2381_v4 = vunpack.c.l.s8.bf16 %v1016_v0  ;;  %v2383_v50 = vunpack.c.l.s8.bf16 %v1018_v3 }
 0x2c1   : > { %3948 = vmatprep.subr.bf16.mxu0 %v2352_v7  ;;  %4973 = vmatprep.subr.bf16.mxu1 %v2354_v8  ;;  %v2387_v7 = vunpack.c.h.s8.bf16 %v1017_v54  ;;  %v2389_v8 = vunpack.c.h.s8.bf16 %v1019_v56  ;;  %v2412_v54 = vunpack.c.l.s8.bf16 %v1032_v48 }
 0x2c4   : > { %3949 = vmatpush1.bf16.msra.mxu0 %v2351_v41  ;;  %4974 = vmatpush1.bf16.msra.mxu1 %v2353_v15  ;;  %v2386_v41 = vunpack.c.h.s8.bf16 %v1016_v0  ;;  %v2388_v15 = vunpack.c.h.s8.bf16 %v1018_v3 }
 0x2c5   : > { %3950 = vmatprep.subr.bf16.mxu0 %v2357_v16  ;;  %4975 = vmatprep.subr.bf16.mxu1 %v2359_v12  ;;  %v2392_v16 = vunpack.c.l.s8.bf16 %v1022_v9  ;;  %v2394_v12 = vunpack.c.l.s8.bf16 %v1024_v14 }
 0x2c8   : > { %3951 = vmatpush1.bf16.msra.mxu0 %v2356_v23  ;;  %4976 = vmatpush1.bf16.msra.mxu1 %v2358_v24  ;;  %v2391_v23 = vunpack.c.l.s8.bf16 %v1021_v19  ;;  %v2393_v24 = vunpack.c.l.s8.bf16 %v1023_v60 }
 0x2c9   : > { %3952 = vmatprep.subr.bf16.mxu0 %v2362_v27  ;;  %4977 = vmatprep.subr.bf16.mxu1 %v2364_v28  ;;  %v2397_v27 = vunpack.c.h.s8.bf16 %v1022_v9  ;;  %v2399_v28 = vunpack.c.h.s8.bf16 %v1024_v14 }
 0x2cc   : > { %3953 = vmatpush1.bf16.msra.mxu0 %v2361_v32  ;;  %4978 = vmatpush1.bf16.msra.mxu1 %v2363_v59  ;;  %v2396_v32 = vunpack.c.h.s8.bf16 %v1021_v19  ;;  %v2398_v59 = vunpack.c.h.s8.bf16 %v1023_v60 }
 0x2cd   : > { %3954 = vmatprep.subr.bf16.mxu0 %v2367_v33  ;;  %4979 = vmatprep.subr.bf16.mxu1 %v2369_v37  ;;  %v2402_v33 = vunpack.c.l.s8.bf16 %v1027_v25  ;;  %v2404_v37 = vunpack.c.l.s8.bf16 %v1029_v1 }
 0x2d0   : > { %3955 = vmatpush1.bf16.msra.mxu0 %v2366_v42  ;;  %4980 = vmatpush1.bf16.msra.mxu1 %v2368_v43  ;;  %v8530_v42 = vld [vmem:[%s9576_s0 + $0x28] sm:$0xff]  ;;  %v2401_v43 = vunpack.c.l.s8.bf16 %v1026_v38 }
 0x2d1   : > { %3956 = vmatprep.subr.bf16.mxu0 %v2372_v47  ;;  %4981 = vmatprep.subr.bf16.mxu1 %v2374_v45  ;;  %v2403_v47 = vunpack.c.l.s8.bf16 %v1028_v39  ;;  %v2407_v45 = vunpack.c.h.s8.bf16 %v1027_v25 }
 0x2d4   : > { %3957 = vmatpush1.bf16.msra.mxu0 %v2371_v11  ;;  %4982 = vmatpush1.bf16.msra.mxu1 %v2373_v36  ;;  %v1034_v11 = vld [vmem:[%s8002_s21 + $0xc98] sm:$0xff]  ;;  %v8536_v36 = vrot.slane %v8530_v42, %v8033_v35 }
 0x2d5   : > { %3958 = vmatprep.subr.bf16.mxu0 %v2377_v52  ;;  %4983 = vmatprep.subr.bf16.mxu1 %v2379_v53  ;;  %v2406_v52 = vunpack.c.h.s8.bf16 %v1026_v38  ;;  %v2408_v53 = vunpack.c.h.s8.bf16 %v1028_v39  ;;  %v2414_v56 = vunpack.c.l.s8.bf16 %v1034_v11 }
 0x2d8   : > { %3959 = vmatpush1.bf16.msra.mxu0 %v2376_v57  ;;  %4984 = vmatpush1.bf16.msra.mxu1 %v2378_v58  ;;  %v1031_v57 = vld [vmem:[%s8002_s21 + $0xc80] sm:$0xff]  ;;  %v1033_v58 = vld [vmem:[%s8002_s21 + $0xc90] sm:$0xff] }
 0x2d9   : > { %3960 = vmatprep.subr.bf16.mxu0 %v2382_v61  ;;  %4985 = vmatprep.subr.bf16.mxu1 %v2384_v63  ;;  %v422_v61 = vcombine.high %v8536_v36, %v8536_v36  ;;  %v8544_v63 = vpack.c.bf16 %v8483_v30, %v8483_v30  ;;  %v2411_v0 = vunpack.c.l.s8.bf16 %v1031_v57  ;;  %v2413_v3 = vunpack.c.l.s8.bf16 %v1033_v58 }
 0x2da   : > { %v2416_v30 = vunpack.c.h.s8.bf16 %v1031_v57  ;;  %v2418_v14 = vunpack.c.h.s8.bf16 %v1033_v58 }
 0x2db   : > { %v8548_v9 = vpack.c.bf16 %v422_v61, %v422_v61 }
 0x2dc   : > { %3961 = vmatpush1.bf16.msra.mxu0 %v2381_v4  ;;  %4986 = vmatpush1.bf16.msra.mxu1 %v2383_v50  ;;  %v2417_v4 = vunpack.c.h.s8.bf16 %v1032_v48  ;;  %v2419_v50 = vunpack.c.h.s8.bf16 %v1034_v11 }
 0x2dd   : > { %3962 = vmatprep.subr.bf16.mxu0 %v2387_v7  ;;  %4987 = vmatprep.subr.bf16.mxu1 %v2389_v8  ;;  %v1037_v7 = vld [vmem:[%s8002_s21 + $0xcb0] sm:$0xff]  ;;  %v1039_v8 = vld [vmem:[%s8002_s21 + $0xcc0] sm:$0xff] }
 0x2e0   : > { %3963 = vmatpush1.bf16.msra.mxu0 %v2386_v41  ;;  %4988 = vmatpush1.bf16.msra.mxu1 %v2388_v15  ;;  %v2422_v41 = vunpack.c.l.s8.bf16 %v1037_v7  ;;  %v2424_v15 = vunpack.c.l.s8.bf16 %v1039_v8 }
 0x2e1   : > { %3964 = vmatprep.subr.bf16.mxu0 %v2392_v16  ;;  %4989 = vmatprep.subr.bf16.mxu1 %v2394_v12  ;;  %v1036_v16 = vld [vmem:[%s8002_s21 + $0xca8] sm:$0xff]  ;;  %v1038_v12 = vld [vmem:[%s8002_s21 + $0xcb8] sm:$0xff] }
 0x2e2   : > { %v2421_v19 = vunpack.c.l.s8.bf16 %v1036_v16  ;;  %v2423_v60 = vunpack.c.l.s8.bf16 %v1038_v12  ;;  %v2426_v25 = vunpack.c.h.s8.bf16 %v1036_v16  ;;  %v2428_v1 = vunpack.c.h.s8.bf16 %v1038_v12 }
 0x2e4   : > { %3965 = vmatpush1.bf16.msra.mxu0 %v2391_v23  ;;  %4990 = vmatpush1.bf16.msra.mxu1 %v2393_v24  ;;  %v2427_v23 = vunpack.c.h.s8.bf16 %v1037_v7  ;;  %v2429_v24 = vunpack.c.h.s8.bf16 %v1039_v8 }
 0x2e5   : > { %3966 = vmatprep.subr.bf16.mxu0 %v2397_v27  ;;  %4991 = vmatprep.subr.bf16.mxu1 %v2399_v28  ;;  %v1042_v27 = vld [vmem:[%s8002_s21 + $0xcd8] sm:$0xff]  ;;  %v1044_v28 = vld [vmem:[%s8002_s21 + $0xce8] sm:$0xff] }
 0x2e8   : > { %3967 = vmatpush1.bf16.msra.mxu0 %v2396_v32  ;;  %4992 = vmatpush1.bf16.msra.mxu1 %v2398_v59  ;;  %v2432_v32 = vunpack.c.l.s8.bf16 %v1042_v27  ;;  %v2434_v59 = vunpack.c.l.s8.bf16 %v1044_v28 }
 0x2e9   : > { %3968 = vmatprep.subr.bf16.mxu0 %v2402_v33  ;;  %4993 = vmatprep.subr.bf16.mxu1 %v2404_v37  ;;  %v1041_v33 = vld [vmem:[%s8002_s21 + $0xcd0] sm:$0xff]  ;;  %v1043_v37 = vld [vmem:[%s8002_s21 + $0xce0] sm:$0xff] }
 0x2ea   : > { %v2431_v38 = vunpack.c.l.s8.bf16 %v1041_v33  ;;  %v2433_v39 = vunpack.c.l.s8.bf16 %v1043_v37  ;;  %v2436_v48 = vunpack.c.h.s8.bf16 %v1041_v33  ;;  %v2438_v11 = vunpack.c.h.s8.bf16 %v1043_v37 }
 0x2ec   : > { %3969 = vmatpush1.bf16.msra.mxu0 %v2401_v43  ;;  %4994 = vmatpush1.bf16.msra.mxu1 %v2403_v47  ;;  %v2437_v43 = vunpack.c.h.s8.bf16 %v1042_v27  ;;  %v2439_v47 = vunpack.c.h.s8.bf16 %v1044_v28 }
 0x2ed   : > { %3970 = vmatprep.subr.bf16.mxu0 %v2407_v45  ;;  %4995 = vmatprep.subr.bf16.mxu1 %v2409_v46  ;;  %v1047_v45 = vld [vmem:[%s8002_s21 + $0xd00] sm:$0xff]  ;;  %v1049_v46 = vld [vmem:[%s8002_s21 + $0xd10] sm:$0xff] }
 0x2ee   : > { %v2447_v61 = vunpack.c.h.s8.bf16 %v1047_v45 }
 0x2f0   : > { %3971 = vmatpush1.bf16.msra.mxu0 %v2406_v52  ;;  %4996 = vmatpush1.bf16.msra.mxu1 %v2408_v53  ;;  %v2442_v52 = vunpack.c.l.s8.bf16 %v1047_v45  ;;  %v2444_v53 = vunpack.c.l.s8.bf16 %v1049_v46 }
 0x2f1   : > { %3981 = vmatprep.subr.bf16.mxu0 %v2412_v54  ;;  %5006 = vmatprep.subr.bf16.mxu1 %v2414_v56  ;;  %v1046_v54 = vld [vmem:[%s8002_s21 + $0xcf8] sm:$0xff]  ;;  %v1048_v56 = vld [vmem:[%s8002_s21 + $0xd08] sm:$0xff] }
 0x2f2   : > { %v2441_v57 = vunpack.c.l.s8.bf16 %v1046_v54  ;;  %v2443_v58 = vunpack.c.l.s8.bf16 %v1048_v56  ;;  %v2448_v7 = vunpack.c.h.s8.bf16 %v1048_v56 }
 0x2f3   : > { %3973 = vmatmul.mubr.bf16.vlgmr.msra.gmra.mrb[0].mxu0 %v8544_v63  ;;  %4998 = vmatmul.mubr.bf16.vlgmr.msra.gmra.mrb[0].mxu1 %v8544_v63 }
 0x2f4   : > { %3982 = vmatpush1.bf16.msra.mxu0 %v2411_v0  ;;  %5007 = vmatpush1.bf16.msra.mxu1 %v2413_v3  ;;  %v2449_v0 = vunpack.c.h.s8.bf16 %v1049_v46  ;;  %v1052_v3 = vld [vmem:[%s8002_s21 + $0xd28] sm:$0xff] }
 0x2f5   : > { %3983 = vmatprep.subr.bf16.mxu0 %v2417_v4  ;;  %5008 = vmatprep.subr.bf16.mxu1 %v2419_v50  ;;  %v1054_v4 = vld [vmem:[%s8002_s21 + $0xd38] sm:$0xff]  ;;  %v2446_v50 = vunpack.c.h.s8.bf16 %v1046_v54  ;;  %v2452_v8 = vunpack.c.l.s8.bf16 %v1052_v3  ;;  %v2457_v12 = vunpack.c.h.s8.bf16 %v1052_v3 }
 0x2f6   : > { %4013 = vmatprep.mubr.bf16.mxu0 %v8548_v9  ;;  %5038 = vmatprep.mubr.bf16.mxu1 %v8548_v9 }
 0x2f8   : > { %3984 = vmatpush1.bf16.msra.mxu0 %v2416_v30  ;;  %5009 = vmatpush1.bf16.msra.mxu1 %v2418_v14  ;;  %v2454_v30 = vunpack.c.l.s8.bf16 %v1054_v4  ;;  %v1051_v14 = vld [vmem:[%s8002_s21 + $0xd20] sm:$0xff] }
 0x2f9   : > { %3985 = vmatprep.subr.bf16.mxu0 %v2422_v41  ;;  %5010 = vmatprep.subr.bf16.mxu1 %v2424_v15  ;;  %v1053_v41 = vld [vmem:[%s8002_s21 + $0xd30] sm:$0xff]  ;;  %v2451_v15 = vunpack.c.l.s8.bf16 %v1051_v14 }
 0x2fa   : > { %v2453_v16 = vunpack.c.l.s8.bf16 %v1053_v41  ;;  %v2458_v27 = vunpack.c.h.s8.bf16 %v1053_v41 }
 0x2fc   : > { %3986 = vmatpush1.bf16.msra.mxu0 %v2421_v19  ;;  %5011 = vmatpush1.bf16.msra.mxu1 %v2423_v60  ;;  %v2459_v19 = vunpack.c.h.s8.bf16 %v1054_v4  ;;  %v1057_v60 = vld [vmem:[%s8002_s21 + $0xd50] sm:$0xff] }
 0x2fd   : > { %3987 = vmatprep.subr.bf16.mxu0 %v2427_v23  ;;  %5012 = vmatprep.subr.bf16.mxu1 %v2429_v24  ;;  %v1059_v23 = vld [vmem:[%s8002_s21 + $0xd60] sm:$0xff]  ;;  %v2456_v24 = vunpack.c.h.s8.bf16 %v1051_v14  ;;  %v2462_v28 = vunpack.c.l.s8.bf16 %v1057_v60  ;;  %v2467_v37 = vunpack.c.h.s8.bf16 %v1057_v60 }
 0x300   : > { %3988 = vmatpush1.bf16.msra.mxu0 %v2426_v25  ;;  %5013 = vmatpush1.bf16.msra.mxu1 %v2428_v1  ;;  %v2464_v25 = vunpack.c.l.s8.bf16 %v1059_v23  ;;  %v1056_v1 = vld [vmem:[%s8002_s21 + $0xd48] sm:$0xff] }
 0x301   : > { %3989 = vmatprep.subr.bf16.mxu0 %v2432_v32  ;;  %5014 = vmatprep.subr.bf16.mxu1 %v2434_v59  ;;  %v1058_v32 = vld [vmem:[%s8002_s21 + $0xd58] sm:$0xff]  ;;  %v2461_v59 = vunpack.c.l.s8.bf16 %v1056_v1 }
 0x302   : > { %v2463_v33 = vunpack.c.l.s8.bf16 %v1058_v32  ;;  %v2468_v45 = vunpack.c.h.s8.bf16 %v1058_v32  ;;  %v8593_v32 = vpack.c.bf16 %v8536_v36, %v8536_v36 }
 0x304   : > { %3990 = vmatpush1.bf16.msra.mxu0 %v2431_v38  ;;  %5015 = vmatpush1.bf16.msra.mxu1 %v2433_v39  ;;  %v2469_v38 = vunpack.c.h.s8.bf16 %v1059_v23  ;;  %v1062_v39 = vld [vmem:[%s8002_s21 + $0xd78] sm:$0xff] }
 0x305   : > { %3991 = vmatprep.subr.bf16.mxu0 %v2437_v43  ;;  %5016 = vmatprep.subr.bf16.mxu1 %v2439_v47  ;;  %v1064_v43 = vld [vmem:[%s8002_s21 + $0xd88] sm:$0xff]  ;;  %v2466_v47 = vunpack.c.h.s8.bf16 %v1056_v1  ;;  %v2472_v46 = vunpack.c.l.s8.bf16 %v1062_v39  ;;  %v2477_v56 = vunpack.c.h.s8.bf16 %v1062_v39  ;;  %v1077_v39 = vld [vmem:[%s8002_s21 + $0xdf0] sm:$0xff] }
 0x308   : > { %3992 = vmatpush1.bf16.msra.mxu0 %v2436_v48  ;;  %5017 = vmatpush1.bf16.msra.mxu1 %v2438_v11  ;;  %v2474_v48 = vunpack.c.l.s8.bf16 %v1064_v43  ;;  %v1061_v11 = vld [vmem:[%s8002_s21 + $0xd70] sm:$0xff] }
 0x309   : > { %3993 = vmatprep.subr.bf16.mxu0 %v2442_v52  ;;  %5018 = vmatprep.subr.bf16.mxu1 %v2444_v53  ;;  %v1063_v52 = vld [vmem:[%s8002_s21 + $0xd80] sm:$0xff]  ;;  %v2471_v53 = vunpack.c.l.s8.bf16 %v1061_v11 }
 0x30a   : > { %v2473_v54 = vunpack.c.l.s8.bf16 %v1063_v52  ;;  %v2478_v3 = vunpack.c.h.s8.bf16 %v1063_v52  ;;  %v1078_v52 = vld [vmem:[%s8002_s21 + $0xdf8] sm:$0xff] }
 0x30c   : > { %3994 = vmatpush1.bf16.msra.mxu0 %v2441_v57  ;;  %5019 = vmatpush1.bf16.msra.mxu1 %v2443_v58  ;;  %v2479_v57 = vunpack.c.h.s8.bf16 %v1064_v43  ;;  %v1067_v58 = vld [vmem:[%s8002_s21 + $0xda0] sm:$0xff] }
 0x30d   : > { %3995 = vmatprep.subr.bf16.mxu0 %v2447_v61  ;;  %5020 = vmatprep.subr.bf16.mxu1 %v2449_v0  ;;  %v1069_v61 = vld [vmem:[%s8002_s21 + $0xdb0] sm:$0xff]  ;;  %v2476_v0 = vunpack.c.h.s8.bf16 %v1061_v11  ;;  %v2482_v4 = vunpack.c.l.s8.bf16 %v1067_v58  ;;  %v1079_v43 = vld [vmem:[%s8002_s21 + $0xe00] sm:$0xff]  ;;  %v1076_v11 = vld [vmem:[%s8002_s21 + $0xde8] sm:$0xff] }
 0x310   : > { %3996 = vmatpush1.bf16.msra.mxu0 %v2446_v50  ;;  %5021 = vmatpush1.bf16.msra.mxu1 %v2448_v7  ;;  %v2484_v50 = vunpack.c.l.s8.bf16 %v1069_v61  ;;  %v1066_v7 = vld [vmem:[%s8002_s21 + $0xd98] sm:$0xff] }
 0x311   : > { %3997 = vmatprep.subr.bf16.mxu0 %v2452_v8  ;;  %5022 = vmatprep.subr.bf16.mxu1 %v2454_v30  ;;  %v1068_v8 = vld [vmem:[%s8002_s21 + $0xda8] sm:$0xff]  ;;  %v407_v30 = vcombine.high %v8530_v42, %v8530_v42  ;;  %v2481_v14 = vunpack.c.l.s8.bf16 %v1066_v7  ;;  %v2486_v23 = vunpack.c.h.s8.bf16 %v1066_v7  ;;  %v1081_v7 = vld [vmem:[%s8002_s21 + $0xe10] sm:$0xff] }
 0x312   : > { %v2483_v41 = vunpack.c.l.s8.bf16 %v1068_v8 }
 0x313   : > { %v8585_v60 = vrot.slane %v407_v30, %v8033_v35  ;;  %v2511_v30 = vunpack.c.l.s8.bf16 %v1081_v7 }
 0x314   : > { %3998 = vmatpush1.bf16.msra.mxu0 %v2451_v15  ;;  %5023 = vmatpush1.bf16.msra.mxu1 %v2453_v16  ;;  %v2487_v15 = vunpack.c.h.s8.bf16 %v1067_v58  ;;  %v2489_v16 = vunpack.c.h.s8.bf16 %v1069_v61  ;;  %v1082_v58 = vld [vmem:[%s8002_s21 + $0xe18] sm:$0xff]  ;;  %v1084_v61 = vld [vmem:[%s8002_s21 + $0xe28] sm:$0xff] }
 0x315   : > { %3999 = vmatprep.subr.bf16.mxu0 %v2457_v12  ;;  %5024 = vmatprep.subr.bf16.mxu1 %v2459_v19  ;;  %v1072_v12 = vld [vmem:[%s8002_s21 + $0xdc8] sm:$0xff]  ;;  %v1074_v19 = vld [vmem:[%s8002_s21 + $0xdd8] sm:$0xff]  ;;  %v423_v1 = vcombine.high %v8585_v60, %v8585_v60 }
 0x316   : > { %v2492_v42 = vunpack.c.l.s8.bf16 %v1072_v12 }
 0x318   : > { %4000 = vmatpush1.bf16.msra.mxu0 %v2456_v24  ;;  %5025 = vmatpush1.bf16.msra.mxu1 %v2458_v27  ;;  %v2488_v24 = vunpack.c.h.s8.bf16 %v1068_v8  ;;  %v2494_v27 = vunpack.c.l.s8.bf16 %v1074_v19  ;;  %v1083_v8 = vld [vmem:[%s8002_s21 + $0xe20] sm:$0xff] }
 0x319   : > { %4001 = vmatprep.subr.bf16.mxu0 %v2462_v28  ;;  %5026 = vmatprep.subr.bf16.mxu1 %v2464_v25  ;;  %v1071_v28 = vld [vmem:[%s8002_s21 + $0xdc0] sm:$0xff]  ;;  %v1073_v25 = vld [vmem:[%s8002_s21 + $0xdd0] sm:$0xff] }
 0x31a   : > { %v2496_v36 = vunpack.c.h.s8.bf16 %v1071_v28 }
 0x31c   : > { %4002 = vmatpush1.bf16.msra.mxu0 %v2461_v59  ;;  %5027 = vmatpush1.bf16.msra.mxu1 %v2463_v33  ;;  %v2491_v59 = vunpack.c.l.s8.bf16 %v1071_v28  ;;  %v2493_v33 = vunpack.c.l.s8.bf16 %v1073_v25  ;;  %v1088_v28 = vld [vmem:[%s8002_s21 + $0xe48] sm:$0xff] }
 0x31d   : > { %4003 = vmatprep.subr.bf16.mxu0 %v2467_v37  ;;  %5028 = vmatprep.subr.bf16.mxu1 %v2469_v38  ;;  %v2497_v37 = vunpack.c.h.s8.bf16 %v1072_v12  ;;  %v2499_v38 = vunpack.c.h.s8.bf16 %v1074_v19  ;;  %v1089_v12 = vld [vmem:[%s8002_s21 + $0xe50] sm:$0xff]  ;;  %v2516_v19 = vunpack.c.h.s8.bf16 %v1081_v7 }
 0x320   : > { %4004 = vmatpush1.bf16.msra.mxu0 %v2466_v47  ;;  %5029 = vmatpush1.bf16.msra.mxu1 %v2468_v45  ;;  %v8597_v47 = vpack.c.bf16 %v423_v1, %v423_v1  ;;  %v2498_v45 = vunpack.c.h.s8.bf16 %v1073_v25  ;;  %v2523_v1 = vunpack.c.l.s8.bf16 %v1088_v28 }
 0x321   : > { %4005 = vmatprep.subr.bf16.mxu0 %v2472_v46  ;;  %5030 = vmatprep.subr.bf16.mxu1 %v2474_v48  ;;  %v2502_v46 = vunpack.c.l.s8.bf16 %v1077_v39  ;;  %v2504_v48 = vunpack.c.l.s8.bf16 %v1079_v43 }
 0x324   : > { %4006 = vmatpush1.bf16.msra.mxu0 %v2471_v53  ;;  %5031 = vmatpush1.bf16.msra.mxu1 %v2473_v54  ;;  %v2501_v53 = vunpack.c.l.s8.bf16 %v1076_v11  ;;  %v2503_v54 = vunpack.c.l.s8.bf16 %v1078_v52 }
 0x325   : > { %4007 = vmatprep.subr.bf16.mxu0 %v2477_v56  ;;  %5032 = vmatprep.subr.bf16.mxu1 %v2479_v57  ;;  %v2507_v56 = vunpack.c.h.s8.bf16 %v1077_v39  ;;  %v2509_v57 = vunpack.c.h.s8.bf16 %v1079_v43  ;;  %v2528_v43 = vunpack.c.h.s8.bf16 %v1088_v28 }
 0x328   : > { %4008 = vmatpush1.bf16.msra.mxu0 %v2476_v0  ;;  %5033 = vmatpush1.bf16.msra.mxu1 %v2478_v3  ;;  %v2506_v0 = vunpack.c.h.s8.bf16 %v1076_v11  ;;  %v2508_v3 = vunpack.c.h.s8.bf16 %v1078_v52 }
 0x329   : > { %4009 = vmatprep.subr.bf16.mxu0 %v2482_v4  ;;  %5034 = vmatprep.subr.bf16.mxu1 %v2484_v50  ;;  %v2512_v4 = vunpack.c.l.s8.bf16 %v1082_v58  ;;  %v2514_v50 = vunpack.c.l.s8.bf16 %v1084_v61 }
 0x32c   : > { %4010 = vmatpush1.bf16.msra.mxu0 %v2481_v14  ;;  %5035 = vmatpush1.bf16.msra.mxu1 %v2483_v41  ;;  %v2513_v14 = vunpack.c.l.s8.bf16 %v1083_v8  ;;  %v2517_v41 = vunpack.c.h.s8.bf16 %v1082_v58 }
 0x32d   : > { %4011 = vmatprep.subr.bf16.mxu0 %v2487_v15  ;;  %5036 = vmatprep.subr.bf16.mxu1 %v2489_v16  ;;  %v2519_v15 = vunpack.c.h.s8.bf16 %v1084_v61  ;;  %v1087_v16 = vld [vmem:[%s8002_s21 + $0xe40] sm:$0xff] }
 0x330   : > { %4012 = vmatpush1.bf16.msra.mxu0 %v2486_v23  ;;  %5037 = vmatpush1.bf16.msra.mxu1 %v2488_v24  ;;  %v2518_v23 = vunpack.c.h.s8.bf16 %v1083_v8  ;;  %v2522_v24 = vunpack.c.l.s8.bf16 %v1087_v16 }
 0x331   : > { %4022 = vmatprep.subr.bf16.mxu0 %v2492_v42  ;;  %5047 = vmatprep.subr.bf16.mxu1 %v2494_v27  ;;  %v2524_v42 = vunpack.c.l.s8.bf16 %v1089_v12  ;;  %v1086_v27 = vld [vmem:[%s8002_s21 + $0xe38] sm:$0xff] }
 0x332   : > { %v2521_v25 = vunpack.c.l.s8.bf16 %v1086_v27  ;;  %v2526_v39 = vunpack.c.h.s8.bf16 %v1086_v27 }
 0x333   : > { %4014 = vmatmul.mubr.bf16.vlgmr.msra.gmra.mrb[0].mxu0 %v8593_v32  ;;  %5039 = vmatmul.mubr.bf16.vlgmr.msra.gmra.mrb[0].mxu1 %v8593_v32 }
 0x334   : > { %4023 = vmatpush1.bf16.msra.mxu0 %v2491_v59  ;;  %5048 = vmatpush1.bf16.msra.mxu1 %v2493_v33  ;;  %v2527_v59 = vunpack.c.h.s8.bf16 %v1087_v16  ;;  %v2529_v33 = vunpack.c.h.s8.bf16 %v1089_v12 }
 0x335   : > { %4024 = vmatprep.subr.bf16.mxu0 %v2497_v37  ;;  %5049 = vmatprep.subr.bf16.mxu1 %v2499_v38  ;;  %v1092_v37 = vld [vmem:[%s8002_s21 + $0xe68] sm:$0xff]  ;;  %v1094_v38 = vld [vmem:[%s8002_s21 + $0xe78] sm:$0xff] }
 0x336   : > { %4054 = vmatprep.mubr.bf16.mxu0 %v8597_v47  ;;  %5079 = vmatprep.mubr.bf16.mxu1 %v8597_v47 }
 0x338   : > { %4025 = vmatpush1.bf16.msra.mxu0 %v2496_v36  ;;  %5050 = vmatpush1.bf16.msra.mxu1 %v2498_v45  ;;  %v2532_v36 = vunpack.c.l.s8.bf16 %v1092_v37  ;;  %v2534_v45 = vunpack.c.l.s8.bf16 %v1094_v38 }
 0x339   : > { %4026 = vmatprep.subr.bf16.mxu0 %v2502_v46  ;;  %5051 = vmatprep.subr.bf16.mxu1 %v2504_v48  ;;  %v1091_v46 = vld [vmem:[%s8002_s21 + $0xe60] sm:$0xff]  ;;  %v1093_v48 = vld [vmem:[%s8002_s21 + $0xe70] sm:$0xff] }
 0x33a   : > { %v2531_v11 = vunpack.c.l.s8.bf16 %v1091_v46  ;;  %v2533_v52 = vunpack.c.l.s8.bf16 %v1093_v48  ;;  %v2536_v58 = vunpack.c.h.s8.bf16 %v1091_v46  ;;  %v2538_v61 = vunpack.c.h.s8.bf16 %v1093_v48  ;;  %v8632_v46 = vld [vmem:[%s9576_s0 + $0x30] sm:$0xff] }
 0x33c   : > { %4027 = vmatpush1.bf16.msra.mxu0 %v2501_v53  ;;  %5052 = vmatpush1.bf16.msra.mxu1 %v2503_v54  ;;  %v2537_v53 = vunpack.c.h.s8.bf16 %v1092_v37  ;;  %v2539_v54 = vunpack.c.h.s8.bf16 %v1094_v38 }
 0x33d   : > { %4028 = vmatprep.subr.bf16.mxu0 %v2507_v56  ;;  %5053 = vmatprep.subr.bf16.mxu1 %v2509_v57  ;;  %v1097_v56 = vld [vmem:[%s8002_s21 + $0xe90] sm:$0xff]  ;;  %v1099_v57 = vld [vmem:[%s8002_s21 + $0xea0] sm:$0xff] }
 0x340   : > { %4029 = vmatpush1.bf16.msra.mxu0 %v2506_v0  ;;  %5054 = vmatpush1.bf16.msra.mxu1 %v2508_v3  ;;  %v2542_v0 = vunpack.c.l.s8.bf16 %v1097_v56  ;;  %v2544_v3 = vunpack.c.l.s8.bf16 %v1099_v57 }
 0x341   : > { %4030 = vmatprep.subr.bf16.mxu0 %v2512_v4  ;;  %5055 = vmatprep.subr.bf16.mxu1 %v2514_v50  ;;  %v1096_v4 = vld [vmem:[%s8002_s21 + $0xe88] sm:$0xff]  ;;  %v1098_v50 = vld [vmem:[%s8002_s21 + $0xe98] sm:$0xff] }
 0x342   : > { %v2541_v7 = vunpack.c.l.s8.bf16 %v1096_v4  ;;  %v2543_v8 = vunpack.c.l.s8.bf16 %v1098_v50  ;;  %v2546_v16 = vunpack.c.h.s8.bf16 %v1096_v4  ;;  %v2548_v12 = vunpack.c.h.s8.bf16 %v1098_v50  ;;  %v1111_v4 = vld [vmem:[%s8002_s21 + $0xf00] sm:$0xff]  ;;  %v1113_v50 = vld [vmem:[%s8002_s21 + $0xf10] sm:$0xff] }
 0x344   : > { %4031 = vmatpush1.bf16.msra.mxu0 %v2511_v30  ;;  %5056 = vmatpush1.bf16.msra.mxu1 %v2513_v14  ;;  %v2547_v30 = vunpack.c.h.s8.bf16 %v1097_v56  ;;  %v2549_v14 = vunpack.c.h.s8.bf16 %v1099_v57  ;;  %v1114_v56 = vld [vmem:[%s8002_s21 + $0xf18] sm:$0xff]  ;;  %v8638_v57 = vrot.slane %v8632_v46, %v8033_v35 }
 0x345   : > { %4032 = vmatprep.subr.bf16.mxu0 %v2517_v41  ;;  %5057 = vmatprep.subr.bf16.mxu1 %v2519_v15  ;;  %v1102_v41 = vld [vmem:[%s8002_s21 + $0xeb8] sm:$0xff]  ;;  %v1104_v15 = vld [vmem:[%s8002_s21 + $0xec8] sm:$0xff] }
 0x348   : > { %4033 = vmatpush1.bf16.msra.mxu0 %v2516_v19  ;;  %5058 = vmatpush1.bf16.msra.mxu1 %v2518_v23  ;;  %v2552_v19 = vunpack.c.l.s8.bf16 %v1102_v41  ;;  %v2554_v23 = vunpack.c.l.s8.bf16 %v1104_v15 }
 0x349   : > { %4034 = vmatprep.subr.bf16.mxu0 %v2522_v24  ;;  %5059 = vmatprep.subr.bf16.mxu1 %v2524_v42  ;;  %v1101_v24 = vld [vmem:[%s8002_s21 + $0xeb0] sm:$0xff]  ;;  %v1103_v42 = vld [vmem:[%s8002_s21 + $0xec0] sm:$0xff] }
 0x34a   : > { %v2551_v27 = vunpack.c.l.s8.bf16 %v1101_v24  ;;  %v2553_v28 = vunpack.c.l.s8.bf16 %v1103_v42  ;;  %v2556_v37 = vunpack.c.h.s8.bf16 %v1101_v24  ;;  %v2558_v38 = vunpack.c.h.s8.bf16 %v1103_v42 }
 0x34c   : > { %4035 = vmatpush1.bf16.msra.mxu0 %v2521_v25  ;;  %5060 = vmatpush1.bf16.msra.mxu1 %v2523_v1  ;;  %v2557_v25 = vunpack.c.h.s8.bf16 %v1102_v41  ;;  %v2559_v1 = vunpack.c.h.s8.bf16 %v1104_v15  ;;  %v2579_v15 = vunpack.c.h.s8.bf16 %v1114_v56 }
 0x34d   : > { %4036 = vmatprep.subr.bf16.mxu0 %v2527_v59  ;;  %5061 = vmatprep.subr.bf16.mxu1 %v2529_v33  ;;  %v1107_v59 = vld [vmem:[%s8002_s21 + $0xee0] sm:$0xff]  ;;  %v1109_v33 = vld [vmem:[%s8002_s21 + $0xef0] sm:$0xff] }
 0x350   : > { %4037 = vmatpush1.bf16.msra.mxu0 %v2526_v39  ;;  %5062 = vmatpush1.bf16.msra.mxu1 %v2528_v43  ;;  %v2562_v39 = vunpack.c.l.s8.bf16 %v1107_v59  ;;  %v2564_v43 = vunpack.c.l.s8.bf16 %v1109_v33 }
 0x351   : > { %4038 = vmatprep.subr.bf16.mxu0 %v2532_v36  ;;  %5063 = vmatprep.subr.bf16.mxu1 %v2534_v45  ;;  %v1106_v36 = vld [vmem:[%s8002_s21 + $0xed8] sm:$0xff]  ;;  %v1108_v45 = vld [vmem:[%s8002_s21 + $0xee8] sm:$0xff] }
 0x352   : > { %v2561_v48 = vunpack.c.l.s8.bf16 %v1106_v36 }
 0x354   : > { %4039 = vmatpush1.bf16.msra.mxu0 %v2531_v11  ;;  %5064 = vmatpush1.bf16.msra.mxu1 %v2533_v52  ;;  %v2563_v11 = vunpack.c.l.s8.bf16 %v1108_v45  ;;  %v2567_v52 = vunpack.c.h.s8.bf16 %v1107_v59 }
 0x355   : > { %4040 = vmatprep.subr.bf16.mxu0 %v2537_v53  ;;  %5065 = vmatprep.subr.bf16.mxu1 %v2539_v54  ;;  %v2569_v53 = vunpack.c.h.s8.bf16 %v1109_v33  ;;  %v1112_v54 = vld [vmem:[%s8002_s21 + $0xf08] sm:$0xff] }
 0x356   : > { %v2577_v41 = vunpack.c.h.s8.bf16 %v1112_v54 }
 0x358   : > { %4041 = vmatpush1.bf16.msra.mxu0 %v2536_v58  ;;  %5066 = vmatpush1.bf16.msra.mxu1 %v2538_v61  ;;  %v2566_v58 = vunpack.c.h.s8.bf16 %v1106_v36  ;;  %v2568_v61 = vunpack.c.h.s8.bf16 %v1108_v45 }
 0x359   : > { %4042 = vmatprep.subr.bf16.mxu0 %v2542_v0  ;;  %5067 = vmatprep.subr.bf16.mxu1 %v2544_v3  ;;  %v2572_v0 = vunpack.c.l.s8.bf16 %v1112_v54  ;;  %v2574_v3 = vunpack.c.l.s8.bf16 %v1114_v56 }
 0x35c   : > { %4043 = vmatpush1.bf16.msra.mxu0 %v2541_v7  ;;  %5068 = vmatpush1.bf16.msra.mxu1 %v2543_v8  ;;  %v439_v7 = vcombine.high %v8638_v57, %v8638_v57  ;;  %v8646_v8 = vpack.c.bf16 %v8585_v60, %v8585_v60  ;;  %v2576_v60 = vunpack.c.h.s8.bf16 %v1111_v4 }
 0x35d   : > { %4044 = vmatprep.subr.bf16.mxu0 %v2547_v30  ;;  %5069 = vmatprep.subr.bf16.mxu1 %v2549_v14  ;;  %v2571_v30 = vunpack.c.l.s8.bf16 %v1111_v4  ;;  %v2573_v14 = vunpack.c.l.s8.bf16 %v1113_v50 }
 0x360   : > { %4045 = vmatpush1.bf16.msra.mxu0 %v2546_v16  ;;  %5070 = vmatpush1.bf16.msra.mxu1 %v2548_v12  ;;  %v1117_v16 = vld [vmem:[%s8002_s21 + $0xf30] sm:$0xff]  ;;  %v1119_v12 = vld [vmem:[%s8002_s21 + $0xf40] sm:$0xff] }
 0x361   : > { %4046 = vmatprep.subr.bf16.mxu0 %v2552_v19  ;;  %5071 = vmatprep.subr.bf16.mxu1 %v2554_v23  ;;  %v8650_v19 = vpack.c.bf16 %v439_v7, %v439_v7  ;;  %v2578_v23 = vunpack.c.h.s8.bf16 %v1113_v50  ;;  %v2582_v24 = vunpack.c.l.s8.bf16 %v1117_v16  ;;  %v2584_v42 = vunpack.c.l.s8.bf16 %v1119_v12  ;;  %v1126_v7 = vld [vmem:[%s8002_s21 + $0xf78] sm:$0xff] }
 0x362   : > { %v2587_v59 = vunpack.c.h.s8.bf16 %v1117_v16  ;;  %v2589_v33 = vunpack.c.h.s8.bf16 %v1119_v12  ;;  %v1132_v12 = vld [vmem:[%s8002_s21 + $0xfa8] sm:$0xff] }
 0x364   : > { %4047 = vmatpush1.bf16.msra.mxu0 %v2551_v27  ;;  %5072 = vmatpush1.bf16.msra.mxu1 %v2553_v28  ;;  %v1116_v27 = vld [vmem:[%s8002_s21 + $0xf28] sm:$0xff]  ;;  %v1118_v28 = vld [vmem:[%s8002_s21 + $0xf38] sm:$0xff] }
 0x365   : > { %4048 = vmatprep.subr.bf16.mxu0 %v2557_v25  ;;  %5073 = vmatprep.subr.bf16.mxu1 %v2559_v1  ;;  %v2581_v25 = vunpack.c.l.s8.bf16 %v1116_v27  ;;  %v2583_v1 = vunpack.c.l.s8.bf16 %v1118_v28 }
 0x368   : > { %4049 = vmatpush1.bf16.msra.mxu0 %v2556_v37  ;;  %5074 = vmatpush1.bf16.msra.mxu1 %v2558_v38  ;;  %v1122_v37 = vld [vmem:[%s8002_s21 + $0xf58] sm:$0xff]  ;;  %v1124_v38 = vld [vmem:[%s8002_s21 + $0xf68] sm:$0xff] }
 0x369   : > { %4050 = vmatprep.subr.bf16.mxu0 %v2562_v39  ;;  %5075 = vmatprep.subr.bf16.mxu1 %v2564_v43  ;;  %v2586_v39 = vunpack.c.h.s8.bf16 %v1116_v27  ;;  %v2588_v43 = vunpack.c.h.s8.bf16 %v1118_v28  ;;  %v2592_v36 = vunpack.c.l.s8.bf16 %v1122_v37  ;;  %v2594_v45 = vunpack.c.l.s8.bf16 %v1124_v38  ;;  %v1131_v28 = vld [vmem:[%s8002_s21 + $0xfa0] sm:$0xff] }
 0x36a   : > { %v2597_v54 = vunpack.c.h.s8.bf16 %v1122_v37  ;;  %v2599_v56 = vunpack.c.h.s8.bf16 %v1124_v38  ;;  %v1137_v38 = vld [vmem:[%s8002_s21 + $0xfd0] sm:$0xff] }
 0x36c   : > { %4051 = vmatpush1.bf16.msra.mxu0 %v2561_v48  ;;  %5076 = vmatpush1.bf16.msra.mxu1 %v2563_v11  ;;  %v1121_v48 = vld [vmem:[%s8002_s21 + $0xf50] sm:$0xff]  ;;  %v1123_v11 = vld [vmem:[%s8002_s21 + $0xf60] sm:$0xff] }
 0x36d   : > { %4052 = vmatprep.subr.bf16.mxu0 %v2567_v52  ;;  %5077 = vmatprep.subr.bf16.mxu1 %v2569_v53  ;;  %v2591_v52 = vunpack.c.l.s8.bf16 %v1121_v48  ;;  %v2593_v53 = vunpack.c.l.s8.bf16 %v1123_v11 }
 0x370   : > { %4053 = vmatpush1.bf16.msra.mxu0 %v2566_v58  ;;  %5078 = vmatpush1.bf16.msra.mxu1 %v2568_v61  ;;  %v1127_v58 = vld [vmem:[%s8002_s21 + $0xf80] sm:$0xff]  ;;  %v1129_v61 = vld [vmem:[%s8002_s21 + $0xf90] sm:$0xff] }
 0x371   : > { %4063 = vmatprep.subr.bf16.mxu0 %v2572_v0  ;;  %5088 = vmatprep.subr.bf16.mxu1 %v2574_v3  ;;  %v2596_v0 = vunpack.c.h.s8.bf16 %v1121_v48  ;;  %v2598_v3 = vunpack.c.h.s8.bf16 %v1123_v11  ;;  %v2602_v4 = vunpack.c.l.s8.bf16 %v1127_v58  ;;  %v2604_v50 = vunpack.c.l.s8.bf16 %v1129_v61  ;;  %v1136_v11 = vld [vmem:[%s8002_s21 + $0xfc8] sm:$0xff] }
 0x372   : > { %v2609_v16 = vunpack.c.h.s8.bf16 %v1129_v61  ;;  %v1142_v61 = vld [vmem:[%s8002_s21 + $0xff8] sm:$0xff] }
 0x373   : > { %4055 = vmatmul.mubr.bf16.vlgmr.msra.gmra.mrb[0].mxu0 %v8646_v8  ;;  %5080 = vmatmul.mubr.bf16.vlgmr.msra.gmra.mrb[0].mxu1 %v8646_v8 }
 0x374   : > { %4064 = vmatpush1.bf16.msra.mxu0 %v2571_v30  ;;  %5089 = vmatpush1.bf16.msra.mxu1 %v2573_v14  ;;  %v1128_v30 = vld [vmem:[%s8002_s21 + $0xf88] sm:$0xff]  ;;  %v2601_v14 = vunpack.c.l.s8.bf16 %v1126_v7 }
 0x375   : > { %4065 = vmatprep.subr.bf16.mxu0 %v2577_v41  ;;  %5090 = vmatprep.subr.bf16.mxu1 %v2579_v15  ;;  %v2603_v41 = vunpack.c.l.s8.bf16 %v1128_v30  ;;  %v2607_v15 = vunpack.c.h.s8.bf16 %v1127_v58 }
 0x376   : > { %4095 = vmatprep.mubr.bf16.mxu0 %v8650_v19  ;;  %5120 = vmatprep.mubr.bf16.mxu1 %v8650_v19 }
 0x378   : > { %4066 = vmatpush1.bf16.msra.mxu0 %v2576_v60  ;;  %5091 = vmatpush1.bf16.msra.mxu1 %v2578_v23  ;;  %v1134_v60 = vld [vmem:[%s8002_s21 + $0xfb8] sm:$0xff]  ;;  %v2606_v23 = vunpack.c.h.s8.bf16 %v1126_v7 }
 0x379   : > { %4067 = vmatprep.subr.bf16.mxu0 %v2582_v24  ;;  %5092 = vmatprep.subr.bf16.mxu1 %v2584_v42  ;;  %v2608_v24 = vunpack.c.h.s8.bf16 %v1128_v30  ;;  %v2612_v42 = vunpack.c.l.s8.bf16 %v1132_v12  ;;  %v2614_v27 = vunpack.c.l.s8.bf16 %v1134_v60  ;;  %v2619_v37 = vunpack.c.h.s8.bf16 %v1134_v60  ;;  %v1141_v30 = vld [vmem:[%s8002_s21 + $0xff0] sm:$0xff]  ;;  %v1147_v60 = vld [vmem:[%s8002_s21 + $0x1020] sm:$0xff] }
 0x37c   : > { %4068 = vmatpush1.bf16.msra.mxu0 %v2581_v25  ;;  %5093 = vmatpush1.bf16.msra.mxu1 %v2583_v1  ;;  %v1133_v25 = vld [vmem:[%s8002_s21 + $0xfb0] sm:$0xff]  ;;  %v2611_v1 = vunpack.c.l.s8.bf16 %v1131_v28 }
 0x37d   : > { %4069 = vmatprep.subr.bf16.mxu0 %v2587_v59  ;;  %5094 = vmatprep.subr.bf16.mxu1 %v2589_v33  ;;  %v2613_v59 = vunpack.c.l.s8.bf16 %v1133_v25  ;;  %v2617_v33 = vunpack.c.h.s8.bf16 %v1132_v12 }
 0x380   : > { %4070 = vmatpush1.bf16.msra.mxu0 %v2586_v39  ;;  %5095 = vmatpush1.bf16.msra.mxu1 %v2588_v43  ;;  %v1139_v39 = vld [vmem:[%s8002_s21 + $0xfe0] sm:$0xff]  ;;  %v2616_v43 = vunpack.c.h.s8.bf16 %v1131_v28 }
 0x381   : > { %4071 = vmatprep.subr.bf16.mxu0 %v2592_v36  ;;  %5096 = vmatprep.subr.bf16.mxu1 %v2594_v45  ;;  %v2618_v36 = vunpack.c.h.s8.bf16 %v1133_v25  ;;  %v2622_v45 = vunpack.c.l.s8.bf16 %v1137_v38  ;;  %v2624_v48 = vunpack.c.l.s8.bf16 %v1139_v39  ;;  %v2629_v58 = vunpack.c.h.s8.bf16 %v1139_v39  ;;  %v1146_v25 = vld [vmem:[%s8002_s21 + $0x1018] sm:$0xff] }
 0x384   : > { %4072 = vmatpush1.bf16.msra.mxu0 %v2591_v52  ;;  %5097 = vmatpush1.bf16.msra.mxu1 %v2593_v53  ;;  %v1138_v52 = vld [vmem:[%s8002_s21 + $0xfd8] sm:$0xff]  ;;  %v2621_v53 = vunpack.c.l.s8.bf16 %v1136_v11 }
 0x385   : > { %4073 = vmatprep.subr.bf16.mxu0 %v2597_v54  ;;  %5098 = vmatprep.subr.bf16.mxu1 %v2599_v56  ;;  %v2623_v54 = vunpack.c.l.s8.bf16 %v1138_v52  ;;  %v2627_v56 = vunpack.c.h.s8.bf16 %v1137_v38  ;;  %v2647_v38 = vunpack.c.h.s8.bf16 %v1147_v60 }
 0x388   : > { %4074 = vmatpush1.bf16.msra.mxu0 %v2596_v0  ;;  %5099 = vmatpush1.bf16.msra.mxu1 %v2598_v3  ;;  %v1144_v0 = vld [vmem:[%s8002_s21 + $0x1008] sm:$0xff]  ;;  %v2626_v3 = vunpack.c.h.s8.bf16 %v1136_v11 }
 0x389   : > { %4075 = vmatprep.subr.bf16.mxu0 %v2602_v4  ;;  %5100 = vmatprep.subr.bf16.mxu1 %v2604_v50  ;;  %v2628_v4 = vunpack.c.h.s8.bf16 %v1138_v52  ;;  %v2632_v50 = vunpack.c.l.s8.bf16 %v1142_v61  ;;  %v2634_v7 = vunpack.c.l.s8.bf16 %v1144_v0  ;;  %v2639_v12 = vunpack.c.h.s8.bf16 %v1144_v0 }
 0x38c   : > { %4076 = vmatpush1.bf16.msra.mxu0 %v2601_v14  ;;  %5101 = vmatpush1.bf16.msra.mxu1 %v2603_v41  ;;  %v1143_v14 = vld [vmem:[%s8002_s21 + $0x1000] sm:$0xff]  ;;  %v2631_v41 = vunpack.c.l.s8.bf16 %v1141_v30 }
 0x38d   : > { %4077 = vmatprep.subr.bf16.mxu0 %v2607_v15  ;;  %5102 = vmatprep.subr.bf16.mxu1 %v2609_v16  ;;  %v2633_v15 = vunpack.c.l.s8.bf16 %v1143_v14  ;;  %v2637_v16 = vunpack.c.h.s8.bf16 %v1142_v61 }
 0x390   : > { %4078 = vmatpush1.bf16.msra.mxu0 %v2606_v23  ;;  %5103 = vmatpush1.bf16.msra.mxu1 %v2608_v24  ;;  %v1149_v23 = vld [vmem:[%s8002_s21 + $0x1030] sm:$0xff]  ;;  %v2636_v24 = vunpack.c.h.s8.bf16 %v1141_v30 }
 0x391   : > { %4079 = vmatprep.subr.bf16.mxu0 %v2612_v42  ;;  %5104 = vmatprep.subr.bf16.mxu1 %v2614_v27  ;;  %v2638_v42 = vunpack.c.h.s8.bf16 %v1143_v14  ;;  %v2642_v27 = vunpack.c.l.s8.bf16 %v1147_v60  ;;  %v2644_v28 = vunpack.c.l.s8.bf16 %v1149_v23  ;;  %v2649_v39 = vunpack.c.h.s8.bf16 %v1149_v23 }
 0x394   : > { %4080 = vmatpush1.bf16.msra.mxu0 %v2611_v1  ;;  %5105 = vmatpush1.bf16.msra.mxu1 %v2613_v59  ;;  %v1148_v1 = vld [vmem:[%s8002_s21 + $0x1028] sm:$0xff]  ;;  %v424_v59 = vcombine.high %v8632_v46, %v8632_v46 }
 0x395   : > { %4081 = vmatprep.subr.bf16.mxu0 %v2617_v33  ;;  %5106 = vmatprep.subr.bf16.mxu1 %v2619_v37  ;;  %v2641_v33 = vunpack.c.l.s8.bf16 %v1146_v25  ;;  %v2643_v37 = vunpack.c.l.s8.bf16 %v1148_v1  ;;  %v2648_v11 = vunpack.c.h.s8.bf16 %v1148_v1 }
 0x398   : > { %4082 = vmatpush1.bf16.msra.mxu0 %v2616_v43  ;;  %5107 = vmatpush1.bf16.msra.mxu1 %v2618_v36  ;;  %v1152_v43 = vld [vmem:[%s8002_s21 + $0x1048] sm:$0xff]  ;;  %v1154_v36 = vld [vmem:[%s8002_s21 + $0x1058] sm:$0xff] }
 0x399   : > { %4083 = vmatprep.subr.bf16.mxu0 %v2622_v45  ;;  %5108 = vmatprep.subr.bf16.mxu1 %v2624_v48  ;;  %v8687_v45 = vrot.slane %v424_v59, %v8033_v35  ;;  %v2646_v48 = vunpack.c.h.s8.bf16 %v1146_v25  ;;  %v2652_v46 = vunpack.c.l.s8.bf16 %v1152_v43  ;;  %v2654_v52 = vunpack.c.l.s8.bf16 %v1154_v36 }
 0x39c   : > { %4084 = vmatpush1.bf16.msra.mxu0 %v2621_v53  ;;  %5109 = vmatpush1.bf16.msra.mxu1 %v2623_v54  ;;  %v1151_v53 = vld [vmem:[%s8002_s21 + $0x1040] sm:$0xff]  ;;  %v1153_v54 = vld [vmem:[%s8002_s21 + $0x1050] sm:$0xff] }
 0x39d   : > { %4085 = vmatprep.subr.bf16.mxu0 %v2627_v56  ;;  %5110 = vmatprep.subr.bf16.mxu1 %v2629_v58  ;;  %v440_v56 = vcombine.high %v8687_v45, %v8687_v45  ;;  %v8695_v58 = vpack.c.bf16 %v8638_v57, %v8638_v57  ;;  %v2651_v61 = vunpack.c.l.s8.bf16 %v1151_v53  ;;  %v2653_v0 = vunpack.c.l.s8.bf16 %v1153_v54 }
 0x39e   : > { %v2656_v57 = vunpack.c.h.s8.bf16 %v1151_v53  ;;  %v2658_v14 = vunpack.c.h.s8.bf16 %v1153_v54 }
 0x39f   : > { %v8699_v30 = vpack.c.bf16 %v440_v56, %v440_v56 }
 0x3a0   : > { %4086 = vmatpush1.bf16.msra.mxu0 %v2626_v3  ;;  %5111 = vmatpush1.bf16.msra.mxu1 %v2628_v4  ;;  %v2657_v3 = vunpack.c.h.s8.bf16 %v1152_v43  ;;  %v2659_v4 = vunpack.c.h.s8.bf16 %v1154_v36 }
 0x3a1   : > { %4087 = vmatprep.subr.bf16.mxu0 %v2632_v50  ;;  %5112 = vmatprep.subr.bf16.mxu1 %v2634_v7  ;;  %v1157_v50 = vld [vmem:[%s8002_s21 + $0x1070] sm:$0xff]  ;;  %v1159_v7 = vld [vmem:[%s8002_s21 + $0x1080] sm:$0xff] }
 0x3a4   : > { %4088 = vmatpush1.bf16.msra.mxu0 %v2631_v41  ;;  %5113 = vmatpush1.bf16.msra.mxu1 %v2633_v15  ;;  %v2662_v41 = vunpack.c.l.s8.bf16 %v1157_v50  ;;  %v2664_v15 = vunpack.c.l.s8.bf16 %v1159_v7 }
 0x3a5   : > { %4089 = vmatprep.subr.bf16.mxu0 %v2637_v16  ;;  %5114 = vmatprep.subr.bf16.mxu1 %v2639_v12  ;;  %v1156_v16 = vld [vmem:[%s8002_s21 + $0x1068] sm:$0xff]  ;;  %v1158_v12 = vld [vmem:[%s8002_s21 + $0x1078] sm:$0xff] }
 0x3a6   : > { %v2661_v60 = vunpack.c.l.s8.bf16 %v1156_v16  ;;  %v2663_v23 = vunpack.c.l.s8.bf16 %v1158_v12  ;;  %v2666_v25 = vunpack.c.h.s8.bf16 %v1156_v16  ;;  %v2668_v1 = vunpack.c.h.s8.bf16 %v1158_v12 }
 0x3a8   : > { %4090 = vmatpush1.bf16.msra.mxu0 %v2636_v24  ;;  %5115 = vmatpush1.bf16.msra.mxu1 %v2638_v42  ;;  %v2667_v24 = vunpack.c.h.s8.bf16 %v1157_v50  ;;  %v2669_v42 = vunpack.c.h.s8.bf16 %v1159_v7 }
 0x3a9   : > { %4091 = vmatprep.subr.bf16.mxu0 %v2642_v27  ;;  %5116 = vmatprep.subr.bf16.mxu1 %v2644_v28  ;;  %v1162_v27 = vld [vmem:[%s8002_s21 + $0x1098] sm:$0xff]  ;;  %v1164_v28 = vld [vmem:[%s8002_s21 + $0x10a8] sm:$0xff] }
 0x3aa   : > { %v2672_v59 = vunpack.c.l.s8.bf16 %v1162_v27  ;;  %v2677_v36 = vunpack.c.h.s8.bf16 %v1162_v27 }
 0x3ac   : > { %4092 = vmatpush1.bf16.msra.mxu0 %v2641_v33  ;;  %5117 = vmatpush1.bf16.msra.mxu1 %v2643_v37  ;;  %v2674_v33 = vunpack.c.l.s8.bf16 %v1164_v28  ;;  %v1161_v37 = vld [vmem:[%s8002_s21 + $0x1090] sm:$0xff] }
 0x3ad   : > { %4093 = vmatprep.subr.bf16.mxu0 %v2647_v38  ;;  %5118 = vmatprep.subr.bf16.mxu1 %v2649_v39  ;;  %v1163_v38 = vld [vmem:[%s8002_s21 + $0x10a0] sm:$0xff]  ;;  %v2671_v39 = vunpack.c.l.s8.bf16 %v1161_v37 }
 0x3ae   : > { %v2673_v43 = vunpack.c.l.s8.bf16 %v1163_v38  ;;  %v2678_v53 = vunpack.c.h.s8.bf16 %v1163_v38 }
 0x3b0   : > { %4094 = vmatpush1.bf16.msra.mxu0 %v2646_v48  ;;  %5119 = vmatpush1.bf16.msra.mxu1 %v2648_v11  ;;  %v2679_v48 = vunpack.c.h.s8.bf16 %v1164_v28  ;;  %v1167_v11 = vld [vmem:[%s8002_s21 + $0x10c0] sm:$0xff] }
 0x3b1   : > { %4104 = vmatprep.subr.bf16.mxu0 %v2652_v46  ;;  %5129 = vmatprep.subr.bf16.mxu1 %v2654_v52  ;;  %v1169_v46 = vld [vmem:[%s8002_s21 + $0x10d0] sm:$0xff]  ;;  %v2676_v52 = vunpack.c.h.s8.bf16 %v1161_v37  ;;  %v2682_v54 = vunpack.c.l.s8.bf16 %v1167_v11  ;;  %v2687_v50 = vunpack.c.h.s8.bf16 %v1167_v11 }
 0x3b2   : > { %v2684_v56 = vunpack.c.l.s8.bf16 %v1169_v46  ;;  %v2689_v7 = vunpack.c.h.s8.bf16 %v1169_v46 }
 0x3b3   : > { %4096 = vmatmul.mubr.bf16.vlgmr.msra.gmra.mrb[0].mxu0 %v8695_v58  ;;  %5121 = vmatmul.mubr.bf16.vlgmr.msra.gmra.mrb[0].mxu1 %v8695_v58 }
 0x3b4   : > { %4105 = vmatpush1.bf16.msra.mxu0 %v2651_v61  ;;  %5130 = vmatpush1.bf16.msra.mxu1 %v2653_v0  ;;  %v1166_v61 = vld [vmem:[%s8002_s21 + $0x10b8] sm:$0xff]  ;;  %v1168_v0 = vld [vmem:[%s8002_s21 + $0x10c8] sm:$0xff] }
 0x3b5   : > { %4106 = vmatprep.subr.bf16.mxu0 %v2657_v3  ;;  %5131 = vmatprep.subr.bf16.mxu1 %v2659_v4  ;;  %v2681_v3 = vunpack.c.l.s8.bf16 %v1166_v61  ;;  %v2683_v4 = vunpack.c.l.s8.bf16 %v1168_v0 }
 0x3b6   : > { %4136 = vmatprep.mubr.bf16.mxu0 %v8699_v30  ;;  %5161 = vmatprep.mubr.bf16.mxu1 %v8699_v30 }
 0x3b8   : > { %4107 = vmatpush1.bf16.msra.mxu0 %v2656_v57  ;;  %5132 = vmatpush1.bf16.msra.mxu1 %v2658_v14  ;;  %v1172_v57 = vld [vmem:[%s8002_s21 + $0x10e8] sm:$0xff]  ;;  %v1174_v14 = vld [vmem:[%s8002_s21 + $0x10f8] sm:$0xff] }
 0x3b9   : > { %4108 = vmatprep.subr.bf16.mxu0 %v2662_v41  ;;  %5133 = vmatprep.subr.bf16.mxu1 %v2664_v15  ;;  %v2686_v41 = vunpack.c.h.s8.bf16 %v1166_v61  ;;  %v2688_v15 = vunpack.c.h.s8.bf16 %v1168_v0  ;;  %v2692_v16 = vunpack.c.l.s8.bf16 %v1172_v57  ;;  %v2694_v12 = vunpack.c.l.s8.bf16 %v1174_v14 }
 0x3ba   : > { %v2697_v27 = vunpack.c.h.s8.bf16 %v1172_v57  ;;  %v2699_v28 = vunpack.c.h.s8.bf16 %v1174_v14 }
 0x3bc   : > { %4109 = vmatpush1.bf16.msra.mxu0 %v2661_v60  ;;  %5134 = vmatpush1.bf16.msra.mxu1 %v2663_v23  ;;  %v1171_v60 = vld [vmem:[%s8002_s21 + $0x10e0] sm:$0xff]  ;;  %v1173_v23 = vld [vmem:[%s8002_s21 + $0x10f0] sm:$0xff] }
 0x3bd   : > { %4110 = vmatprep.subr.bf16.mxu0 %v2667_v24  ;;  %5135 = vmatprep.subr.bf16.mxu1 %v2669_v42  ;;  %v2691_v24 = vunpack.c.l.s8.bf16 %v1171_v60  ;;  %v2693_v42 = vunpack.c.l.s8.bf16 %v1173_v23 }
 0x3c0   : > { %4111 = vmatpush1.bf16.msra.mxu0 %v2666_v25  ;;  %5136 = vmatpush1.bf16.msra.mxu1 %v2668_v1  ;;  %v1177_v25 = vld [vmem:[%s8002_s21 + $0x1110] sm:$0xff]  ;;  %v1179_v1 = vld [vmem:[%s8002_s21 + $0x1120] sm:$0xff] }
 0x3c1   : > { %4112 = vmatprep.subr.bf16.mxu0 %v2672_v59  ;;  %5137 = vmatprep.subr.bf16.mxu1 %v2674_v33  ;;  %v2696_v59 = vunpack.c.h.s8.bf16 %v1171_v60  ;;  %v2698_v33 = vunpack.c.h.s8.bf16 %v1173_v23  ;;  %v2702_v37 = vunpack.c.l.s8.bf16 %v1177_v25  ;;  %v2704_v38 = vunpack.c.l.s8.bf16 %v1179_v1 }
 0x3c2   : > { %v2707_v11 = vunpack.c.h.s8.bf16 %v1177_v25  ;;  %v2709_v46 = vunpack.c.h.s8.bf16 %v1179_v1 }
 0x3c4   : > { %4113 = vmatpush1.bf16.msra.mxu0 %v2671_v39  ;;  %5138 = vmatpush1.bf16.msra.mxu1 %v2673_v43  ;;  %v1176_v39 = vld [vmem:[%s8002_s21 + $0x1108] sm:$0xff]  ;;  %v1178_v43 = vld [vmem:[%s8002_s21 + $0x1118] sm:$0xff] }
 0x3c5   : > { %4114 = vmatprep.subr.bf16.mxu0 %v2677_v36  ;;  %5139 = vmatprep.subr.bf16.mxu1 %v2679_v48  ;;  %v2701_v36 = vunpack.c.l.s8.bf16 %v1176_v39  ;;  %v2703_v48 = vunpack.c.l.s8.bf16 %v1178_v43 }
 0x3c8   : > { %4115 = vmatpush1.bf16.msra.mxu0 %v2676_v52  ;;  %5140 = vmatpush1.bf16.msra.mxu1 %v2678_v53  ;;  %v1182_v52 = vld [vmem:[%s8002_s21 + $0x1138] sm:$0xff]  ;;  %v1184_v53 = vld [vmem:[%s8002_s21 + $0x1148] sm:$0xff] }
 0x3c9   : > { %4116 = vmatprep.subr.bf16.mxu0 %v2682_v54  ;;  %5141 = vmatprep.subr.bf16.mxu1 %v2684_v56  ;;  %v2706_v54 = vunpack.c.h.s8.bf16 %v1176_v39  ;;  %v2708_v56 = vunpack.c.h.s8.bf16 %v1178_v43  ;;  %v2712_v61 = vunpack.c.l.s8.bf16 %v1182_v52  ;;  %v2714_v0 = vunpack.c.l.s8.bf16 %v1184_v53 }
 0x3ca   : > { %v2717_v57 = vunpack.c.h.s8.bf16 %v1182_v52  ;;  %v2719_v14 = vunpack.c.h.s8.bf16 %v1184_v53  ;;  %v8748_v53 = vpack.c.bf16 %v8687_v45, %v8687_v45 }
 0x3cc   : > { %4117 = vmatpush1.bf16.msra.mxu0 %v2681_v3  ;;  %5142 = vmatpush1.bf16.msra.mxu1 %v2683_v4  ;;  %v1181_v3 = vld [vmem:[%s8002_s21 + $0x1130] sm:$0xff]  ;;  %v1183_v4 = vld [vmem:[%s8002_s21 + $0x1140] sm:$0xff] }
 0x3cd   : > { %4118 = vmatprep.subr.bf16.mxu0 %v2687_v50  ;;  %5143 = vmatprep.subr.bf16.mxu1 %v2689_v7  ;;  %v2711_v50 = vunpack.c.l.s8.bf16 %v1181_v3  ;;  %v2713_v7 = vunpack.c.l.s8.bf16 %v1183_v4 }
 0x3d0   : > { %4119 = vmatpush1.bf16.msra.mxu0 %v2686_v41  ;;  %5144 = vmatpush1.bf16.msra.mxu1 %v2688_v15  ;;  %v1187_v41 = vld [vmem:[%s8002_s21 + $0x1160] sm:$0xff]  ;;  %v1189_v15 = vld [vmem:[%s8002_s21 + $0x1170] sm:$0xff] }
 0x3d1   : > { %4120 = vmatprep.subr.bf16.mxu0 %v2692_v16  ;;  %5145 = vmatprep.subr.bf16.mxu1 %v2694_v12  ;;  %v2716_v16 = vunpack.c.h.s8.bf16 %v1181_v3  ;;  %v2718_v12 = vunpack.c.h.s8.bf16 %v1183_v4  ;;  %v2722_v60 = vunpack.c.l.s8.bf16 %v1187_v41  ;;  %v2724_v23 = vunpack.c.l.s8.bf16 %v1189_v15  ;;  %v1197_v3 = vld [vmem:[%s8002_s21 + $0x11b0] sm:$0xff]  ;;  %v1199_v4 = vld [vmem:[%s8002_s21 + $0x11c0] sm:$0xff] }
 0x3d2   : > { %v2727_v1 = vunpack.c.h.s8.bf16 %v1187_v41  ;;  %v1196_v41 = vld [vmem:[%s8002_s21 + $0x11a8] sm:$0xff] }
 0x3d4   : > { %4121 = vmatpush1.bf16.msra.mxu0 %v2691_v24  ;;  %5146 = vmatpush1.bf16.msra.mxu1 %v2693_v42  ;;  %v1186_v24 = vld [vmem:[%s8002_s21 + $0x1158] sm:$0xff]  ;;  %v1188_v42 = vld [vmem:[%s8002_s21 + $0x1168] sm:$0xff] }
 0x3d5   : > { %4122 = vmatprep.subr.bf16.mxu0 %v2697_v27  ;;  %5147 = vmatprep.subr.bf16.mxu1 %v2699_v28  ;;  %v8734_v27 = vld [vmem:[%s9576_s0 + $0x38] sm:$0xff]  ;;  %v2721_v28 = vunpack.c.l.s8.bf16 %v1186_v24  ;;  %v2723_v25 = vunpack.c.l.s8.bf16 %v1188_v42  ;;  %v2726_v39 = vunpack.c.h.s8.bf16 %v1186_v24  ;;  %v2728_v43 = vunpack.c.h.s8.bf16 %v1188_v42  ;;  %v1204_v42 = vld [vmem:[%s8002_s21 + $0x11e8] sm:$0xff] }
 0x3d6   : > { %v1202_v24 = vld [vmem:[%s8002_s21 + $0x11d8] sm:$0xff] }
 0x3d8   : > { %4123 = vmatpush1.bf16.msra.mxu0 %v2696_v59  ;;  %5148 = vmatpush1.bf16.msra.mxu1 %v2698_v33  ;;  %v2729_v59 = vunpack.c.h.s8.bf16 %v1189_v15  ;;  %v1192_v33 = vld [vmem:[%s8002_s21 + $0x1188] sm:$0xff]  ;;  %v1198_v15 = vld [vmem:[%s8002_s21 + $0x11b8] sm:$0xff] }
 0x3d9   : > { %4124 = vmatprep.subr.bf16.mxu0 %v2702_v37  ;;  %5149 = vmatprep.subr.bf16.mxu1 %v2704_v38  ;;  %v1194_v37 = vld [vmem:[%s8002_s21 + $0x1198] sm:$0xff]  ;;  %v8740_v38 = vrot.slane %v8734_v27, %v8033_v35 }
 0x3db   : > { %v456_v52 = vcombine.high %v8740_v38, %v8740_v38 }
 0x3dc   : > { %4125 = vmatpush1.bf16.msra.mxu0 %v2701_v36  ;;  %5150 = vmatpush1.bf16.msra.mxu1 %v2703_v48  ;;  %v2732_v36 = vunpack.c.l.s8.bf16 %v1192_v33  ;;  %v2734_v48 = vunpack.c.l.s8.bf16 %v1194_v37 }
 0x3dd   : > { %4126 = vmatprep.subr.bf16.mxu0 %v2707_v11  ;;  %5151 = vmatprep.subr.bf16.mxu1 %v2709_v46  ;;  %v1191_v11 = vld [vmem:[%s8002_s21 + $0x1180] sm:$0xff]  ;;  %v1193_v46 = vld [vmem:[%s8002_s21 + $0x1190] sm:$0xff] }
 0x3de   : > { %v2736_v45 = vunpack.c.h.s8.bf16 %v1191_v11 }
 0x3e0   : > { %4127 = vmatpush1.bf16.msra.mxu0 %v2706_v54  ;;  %5152 = vmatpush1.bf16.msra.mxu1 %v2708_v56  ;;  %v2731_v54 = vunpack.c.l.s8.bf16 %v1191_v11  ;;  %v2733_v56 = vunpack.c.l.s8.bf16 %v1193_v46  ;;  %v1207_v11 = vld [vmem:[%s8002_s21 + $0x1200] sm:$0xff] }
 0x3e1   : > { %4128 = vmatprep.subr.bf16.mxu0 %v2712_v61  ;;  %5153 = vmatprep.subr.bf16.mxu1 %v2714_v0  ;;  %v2737_v61 = vunpack.c.h.s8.bf16 %v1192_v33  ;;  %v2739_v0 = vunpack.c.h.s8.bf16 %v1194_v37  ;;  %v1201_v33 = vld [vmem:[%s8002_s21 + $0x11d0] sm:$0xff]  ;;  %v1203_v37 = vld [vmem:[%s8002_s21 + $0x11e0] sm:$0xff] }
 0x3e4   : > { %4129 = vmatpush1.bf16.msra.mxu0 %v2711_v50  ;;  %5154 = vmatpush1.bf16.msra.mxu1 %v2713_v7  ;;  %v8752_v50 = vpack.c.bf16 %v456_v52, %v456_v52  ;;  %v2738_v7 = vunpack.c.h.s8.bf16 %v1193_v46  ;;  %v1209_v46 = vld [vmem:[%s8002_s21 + $0x1210] sm:$0xff]  ;;  %v2756_v52 = vunpack.c.h.s8.bf16 %v1201_v33 }
 0x3e5   : > { %4130 = vmatprep.subr.bf16.mxu0 %v2717_v57  ;;  %5155 = vmatprep.subr.bf16.mxu1 %v2719_v14  ;;  %v2742_v57 = vunpack.c.l.s8.bf16 %v1197_v3  ;;  %v2744_v14 = vunpack.c.l.s8.bf16 %v1199_v4 }
 0x3e8   : > { %4131 = vmatpush1.bf16.msra.mxu0 %v2716_v16  ;;  %5156 = vmatpush1.bf16.msra.mxu1 %v2718_v12  ;;  %v2741_v16 = vunpack.c.l.s8.bf16 %v1196_v41  ;;  %v2743_v12 = vunpack.c.l.s8.bf16 %v1198_v15 }
 0x3e9   : > { %4132 = vmatprep.subr.bf16.mxu0 %v2722_v60  ;;  %5157 = vmatprep.subr.bf16.mxu1 %v2724_v23  ;;  %v2747_v60 = vunpack.c.h.s8.bf16 %v1197_v3  ;;  %v2749_v23 = vunpack.c.h.s8.bf16 %v1199_v4  ;;  %v1208_v3 = vld [vmem:[%s8002_s21 + $0x1208] sm:$0xff] }
 0x3ec   : > { %4133 = vmatpush1.bf16.msra.mxu0 %v2721_v28  ;;  %5158 = vmatpush1.bf16.msra.mxu1 %v2723_v25  ;;  %v2746_v28 = vunpack.c.h.s8.bf16 %v1196_v41  ;;  %v2748_v25 = vunpack.c.h.s8.bf16 %v1198_v15  ;;  %v1214_v41 = vld [vmem:[%s8002_s21 + $0x1238] sm:$0xff] }
 0x3ed   : > { %4134 = vmatprep.subr.bf16.mxu0 %v2727_v1  ;;  %5159 = vmatprep.subr.bf16.mxu1 %v2729_v59  ;;  %v2752_v1 = vunpack.c.l.s8.bf16 %v1202_v24  ;;  %v2754_v59 = vunpack.c.l.s8.bf16 %v1204_v42 }
 0x3f0   : > { %4135 = vmatpush1.bf16.msra.mxu0 %v2726_v39  ;;  %5160 = vmatpush1.bf16.msra.mxu1 %v2728_v43  ;;  %v2751_v39 = vunpack.c.l.s8.bf16 %v1201_v33  ;;  %v2753_v43 = vunpack.c.l.s8.bf16 %v1203_v37  ;;  %v1219_v33 = vld [vmem:[%s8002_s21 + $0x1260] sm:$0xff] }
 0x3f1   : > { %4145 = vmatprep.subr.bf16.mxu0 %v2732_v36  ;;  %5170 = vmatprep.subr.bf16.mxu1 %v2734_v48  ;;  %v2757_v36 = vunpack.c.h.s8.bf16 %v1202_v24  ;;  %v2759_v48 = vunpack.c.h.s8.bf16 %v1204_v42  ;;  %v1213_v24 = vld [vmem:[%s8002_s21 + $0x1230] sm:$0xff] }
 0x3f3   : > { %4137 = vmatmul.mubr.bf16.vlgmr.msra.gmra.mrb[0].mxu0 %v8748_v53  ;;  %5162 = vmatmul.mubr.bf16.vlgmr.msra.gmra.mrb[0].mxu1 %v8748_v53 }
 0x3f4   : > { %4146 = vmatpush1.bf16.msra.mxu0 %v2731_v54  ;;  %5171 = vmatpush1.bf16.msra.mxu1 %v2733_v56  ;;  %v2758_v54 = vunpack.c.h.s8.bf16 %v1203_v37  ;;  %v2762_v56 = vunpack.c.l.s8.bf16 %v1207_v11 }
 0x3f5   : > { %4147 = vmatprep.subr.bf16.mxu0 %v2737_v61  ;;  %5172 = vmatprep.subr.bf16.mxu1 %v2739_v0  ;;  %v2764_v61 = vunpack.c.l.s8.bf16 %v1209_v46  ;;  %v1206_v0 = vld [vmem:[%s8002_s21 + $0x11f8] sm:$0xff] }
 0x3f6   : > { %4177 = vmatprep.mubr.bf16.mxu0 %v8752_v50  ;;  %5202 = vmatprep.mubr.bf16.mxu1 %v8752_v50  ;;  %v2761_v4 = vunpack.c.l.s8.bf16 %v1206_v0  ;;  %v2766_v15 = vunpack.c.h.s8.bf16 %v1206_v0  ;;  %v1224_v0 = vld [vmem:[%s8002_s21 + $0x1288] sm:$0xff] }
 0x3f8   : > { %4148 = vmatpush1.bf16.msra.mxu0 %v2736_v45  ;;  %5173 = vmatpush1.bf16.msra.mxu1 %v2738_v7  ;;  %v2763_v45 = vunpack.c.l.s8.bf16 %v1208_v3  ;;  %v2767_v7 = vunpack.c.h.s8.bf16 %v1207_v11  ;;  %v1218_v11 = vld [vmem:[%s8002_s21 + $0x1258] sm:$0xff] }
 0x3f9   : > { %4149 = vmatprep.subr.bf16.mxu0 %v2742_v57  ;;  %5174 = vmatprep.subr.bf16.mxu1 %v2744_v14  ;;  %v2769_v57 = vunpack.c.h.s8.bf16 %v1209_v46  ;;  %v1212_v14 = vld [vmem:[%s8002_s21 + $0x1228] sm:$0xff] }
 0x3fc   : > { %4150 = vmatpush1.bf16.msra.mxu0 %v2741_v16  ;;  %5175 = vmatpush1.bf16.msra.mxu1 %v2743_v12  ;;  %v2768_v16 = vunpack.c.h.s8.bf16 %v1208_v3  ;;  %v2772_v12 = vunpack.c.l.s8.bf16 %v1212_v14 }
 0x3fd   : > { %4151 = vmatprep.subr.bf16.mxu0 %v2747_v60  ;;  %5176 = vmatprep.subr.bf16.mxu1 %v2749_v23  ;;  %v2774_v60 = vunpack.c.l.s8.bf16 %v1214_v41  ;;  %v1211_v23 = vld [vmem:[%s8002_s21 + $0x1220] sm:$0xff] }
 0x3fe   : > { %v2771_v42 = vunpack.c.l.s8.bf16 %v1211_v23  ;;  %v2776_v37 = vunpack.c.h.s8.bf16 %v1211_v23  ;;  %v1229_v23 = vld [vmem:[%s8002_s21 + $0x12b0] sm:$0xff] }
 0x400   : > { %4152 = vmatpush1.bf16.msra.mxu0 %v2746_v28  ;;  %5177 = vmatpush1.bf16.msra.mxu1 %v2748_v25  ;;  %v2773_v28 = vunpack.c.l.s8.bf16 %v1213_v24  ;;  %v2777_v25 = vunpack.c.h.s8.bf16 %v1212_v14  ;;  %v1223_v14 = vld [vmem:[%s8002_s21 + $0x1280] sm:$0xff] }
 0x401   : > { %4153 = vmatprep.subr.bf16.mxu0 %v2752_v1  ;;  %5178 = vmatprep.subr.bf16.mxu1 %v2754_v59  ;;  %v2779_v1 = vunpack.c.h.s8.bf16 %v1214_v41  ;;  %v1217_v59 = vld [vmem:[%s8002_s21 + $0x1250] sm:$0xff] }
 0x404   : > { %4154 = vmatpush1.bf16.msra.mxu0 %v2751_v39  ;;  %5179 = vmatpush1.bf16.msra.mxu1 %v2753_v43  ;;  %v2778_v39 = vunpack.c.h.s8.bf16 %v1213_v24  ;;  %v2782_v43 = vunpack.c.l.s8.bf16 %v1217_v59 }
 0x405   : > { %4155 = vmatprep.subr.bf16.mxu0 %v2757_v36  ;;  %5180 = vmatprep.subr.bf16.mxu1 %v2759_v48  ;;  %v2784_v36 = vunpack.c.l.s8.bf16 %v1219_v33  ;;  %v1216_v48 = vld [vmem:[%s8002_s21 + $0x1248] sm:$0xff] }
 0x406   : > { %v2781_v46 = vunpack.c.l.s8.bf16 %v1216_v48  ;;  %v2786_v3 = vunpack.c.h.s8.bf16 %v1216_v48  ;;  %v1232_v48 = vld [vmem:[%s8002_s21 + $0x12c8] sm:$0xff] }
 0x408   : > { %4156 = vmatpush1.bf16.msra.mxu0 %v2756_v52  ;;  %5181 = vmatpush1.bf16.msra.mxu1 %v2758_v54  ;;  %v2783_v52 = vunpack.c.l.s8.bf16 %v1218_v11  ;;  %v2787_v54 = vunpack.c.h.s8.bf16 %v1217_v59  ;;  %v1228_v59 = vld [vmem:[%s8002_s21 + $0x12a8] sm:$0xff] }
 0x409   : > { %4157 = vmatprep.subr.bf16.mxu0 %v2762_v56  ;;  %5182 = vmatprep.subr.bf16.mxu1 %v2764_v61  ;;  %v2789_v56 = vunpack.c.h.s8.bf16 %v1219_v33  ;;  %v1222_v61 = vld [vmem:[%s8002_s21 + $0x1278] sm:$0xff]  ;;  %v441_v33 = vcombine.high %v8734_v27, %v8734_v27  ;;  %v2812_v27 = vunpack.c.l.s8.bf16 %v1232_v48 }
 0x40c   : > { %4158 = vmatpush1.bf16.msra.mxu0 %v2761_v4  ;;  %5183 = vmatpush1.bf16.msra.mxu1 %v2763_v45  ;;  %v2788_v4 = vunpack.c.h.s8.bf16 %v1218_v11  ;;  %v2792_v45 = vunpack.c.l.s8.bf16 %v1222_v61  ;;  %v1234_v11 = vld [vmem:[%s8002_s21 + $0x12d8] sm:$0xff] }
 0x40d   : > { %4159 = vmatprep.subr.bf16.mxu0 %v2767_v7  ;;  %5184 = vmatprep.subr.bf16.mxu1 %v2769_v57  ;;  %v2794_v7 = vunpack.c.l.s8.bf16 %v1224_v0  ;;  %v1221_v57 = vld [vmem:[%s8002_s21 + $0x1270] sm:$0xff] }
 0x40e   : > { %v2791_v41 = vunpack.c.l.s8.bf16 %v1221_v57  ;;  %v2796_v24 = vunpack.c.h.s8.bf16 %v1221_v57  ;;  %v2817_v57 = vunpack.c.h.s8.bf16 %v1232_v48 }
 0x410   : > { %4160 = vmatpush1.bf16.msra.mxu0 %v2766_v15  ;;  %5185 = vmatpush1.bf16.msra.mxu1 %v2768_v16  ;;  %v2793_v15 = vunpack.c.l.s8.bf16 %v1223_v14  ;;  %v2797_v16 = vunpack.c.h.s8.bf16 %v1222_v61  ;;  %v1231_v61 = vld [vmem:[%s8002_s21 + $0x12c0] sm:$0xff] }
 0x411   : > { %4161 = vmatprep.subr.bf16.mxu0 %v2772_v12  ;;  %5186 = vmatprep.subr.bf16.mxu1 %v2774_v60  ;;  %v2799_v12 = vunpack.c.h.s8.bf16 %v1224_v0  ;;  %v1227_v60 = vld [vmem:[%s8002_s21 + $0x12a0] sm:$0xff]  ;;  %v1233_v0 = vld [vmem:[%s8002_s21 + $0x12d0] sm:$0xff] }
 0x414   : > { %4162 = vmatpush1.bf16.msra.mxu0 %v2771_v42  ;;  %5187 = vmatpush1.bf16.msra.mxu1 %v2773_v28  ;;  %v2798_v42 = vunpack.c.h.s8.bf16 %v1223_v14  ;;  %v2802_v28 = vunpack.c.l.s8.bf16 %v1227_v60  ;;  %v2819_v14 = vunpack.c.h.s8.bf16 %v1234_v11 }
 0x415   : > { %4163 = vmatprep.subr.bf16.mxu0 %v2777_v25  ;;  %5188 = vmatprep.subr.bf16.mxu1 %v2779_v1  ;;  %v2804_v25 = vunpack.c.l.s8.bf16 %v1229_v23  ;;  %v1226_v1 = vld [vmem:[%s8002_s21 + $0x1298] sm:$0xff] }
 0x418   : > { %4164 = vmatpush1.bf16.msra.mxu0 %v2776_v37  ;;  %5189 = vmatpush1.bf16.msra.mxu1 %v2778_v39  ;;  %v2801_v37 = vunpack.c.l.s8.bf16 %v1226_v1  ;;  %v2803_v39 = vunpack.c.l.s8.bf16 %v1228_v59 }
 0x419   : > { %4165 = vmatprep.subr.bf16.mxu0 %v2782_v43  ;;  %5190 = vmatprep.subr.bf16.mxu1 %v2784_v36  ;;  %v2807_v43 = vunpack.c.h.s8.bf16 %v1227_v60  ;;  %v2809_v36 = vunpack.c.h.s8.bf16 %v1229_v23 }
 0x41c   : > { %4166 = vmatpush1.bf16.msra.mxu0 %v2781_v46  ;;  %5191 = vmatpush1.bf16.msra.mxu1 %v2783_v52  ;;  %v8789_v46 = vrot.slane %v441_v33, %v8033_v35  ;;  %v2806_v52 = vunpack.c.h.s8.bf16 %v1226_v1  ;;  %v1242_v33 = vld [vmem:[%s8002_s21 + $0x1318] sm:$0xff] }
 0x41d   : > { %4167 = vmatprep.subr.bf16.mxu0 %v2787_v54  ;;  %5192 = vmatprep.subr.bf16.mxu1 %v2789_v56  ;;  %v2808_v54 = vunpack.c.h.s8.bf16 %v1228_v59  ;;  %v2814_v56 = vunpack.c.l.s8.bf16 %v1234_v11  ;;  %v1241_v11 = vld [vmem:[%s8002_s21 + $0x1310] sm:$0xff] }
 0x420   : > { %4168 = vmatpush1.bf16.msra.mxu0 %v2786_v3  ;;  %5193 = vmatpush1.bf16.msra.mxu1 %v2788_v4  ;;  %v457_v3 = vcombine.high %v8789_v46, %v8789_v46  ;;  %v8797_v4 = vpack.c.bf16 %v8740_v38, %v8740_v38  ;;  %v2816_v38 = vunpack.c.h.s8.bf16 %v1231_v61 }
 0x421   : > { %4169 = vmatprep.subr.bf16.mxu0 %v2792_v45  ;;  %5194 = vmatprep.subr.bf16.mxu1 %v2794_v7  ;;  %v2811_v45 = vunpack.c.l.s8.bf16 %v1231_v61  ;;  %v2813_v7 = vunpack.c.l.s8.bf16 %v1233_v0 }
 0x424   : > { %4170 = vmatpush1.bf16.msra.mxu0 %v2791_v41  ;;  %5195 = vmatpush1.bf16.msra.mxu1 %v2793_v15  ;;  %v1237_v41 = vld [vmem:[%s8002_s21 + $0x12f0] sm:$0xff]  ;;  %v1239_v15 = vld [vmem:[%s8002_s21 + $0x1300] sm:$0xff] }
 0x425   : > { %4171 = vmatprep.subr.bf16.mxu0 %v2797_v16  ;;  %5196 = vmatprep.subr.bf16.mxu1 %v2799_v12  ;;  %v8801_v16 = vpack.c.bf16 %v457_v3, %v457_v3  ;;  %v2818_v12 = vunpack.c.h.s8.bf16 %v1233_v0  ;;  %v2822_v60 = vunpack.c.l.s8.bf16 %v1237_v41  ;;  %v2824_v23 = vunpack.c.l.s8.bf16 %v1239_v15  ;;  %v1247_v0 = vld [vmem:[%s8002_s21 + $0x1340] sm:$0xff]  ;;  %v1249_v3 = vld [vmem:[%s8002_s21 + $0x1350] sm:$0xff] }
 0x426   : > { %v2827_v1 = vunpack.c.h.s8.bf16 %v1237_v41  ;;  %v2829_v59 = vunpack.c.h.s8.bf16 %v1239_v15  ;;  %v1246_v41 = vld [vmem:[%s8002_s21 + $0x1338] sm:$0xff]  ;;  %v1248_v15 = vld [vmem:[%s8002_s21 + $0x1348] sm:$0xff] }
 0x428   : > { %4172 = vmatpush1.bf16.msra.mxu0 %v2796_v24  ;;  %5197 = vmatpush1.bf16.msra.mxu1 %v2798_v42  ;;  %v1236_v24 = vld [vmem:[%s8002_s21 + $0x12e8] sm:$0xff]  ;;  %v1238_v42 = vld [vmem:[%s8002_s21 + $0x12f8] sm:$0xff] }
 0x429   : > { %4173 = vmatprep.subr.bf16.mxu0 %v2802_v28  ;;  %5198 = vmatprep.subr.bf16.mxu1 %v2804_v25  ;;  %v2821_v28 = vunpack.c.l.s8.bf16 %v1236_v24  ;;  %v2823_v25 = vunpack.c.l.s8.bf16 %v1238_v42 }
 0x42c   : > { %4174 = vmatpush1.bf16.msra.mxu0 %v2801_v37  ;;  %5199 = vmatpush1.bf16.msra.mxu1 %v2803_v39  ;;  %v1244_v37 = vld [vmem:[%s8002_s21 + $0x1328] sm:$0xff]  ;;  %v2826_v39 = vunpack.c.h.s8.bf16 %v1236_v24 }
 0x42d   : > { %4175 = vmatprep.subr.bf16.mxu0 %v2807_v43  ;;  %5200 = vmatprep.subr.bf16.mxu1 %v2809_v36  ;;  %v2828_v43 = vunpack.c.h.s8.bf16 %v1238_v42  ;;  %v2832_v36 = vunpack.c.l.s8.bf16 %v1242_v33  ;;  %v2834_v48 = vunpack.c.l.s8.bf16 %v1244_v37  ;;  %v2839_v61 = vunpack.c.h.s8.bf16 %v1244_v37  ;;  %v1252_v24 = vld [vmem:[%s8002_s21 + $0x1368] sm:$0xff]  ;;  %v1254_v42 = vld [vmem:[%s8002_s21 + $0x1378] sm:$0xff]  ;;  %v1253_v37 = vld [vmem:[%s8002_s21 + $0x1370] sm:$0xff] }
 0x430   : > { %4176 = vmatpush1.bf16.msra.mxu0 %v2806_v52  ;;  %5201 = vmatpush1.bf16.msra.mxu1 %v2808_v54  ;;  %v1243_v52 = vld [vmem:[%s8002_s21 + $0x1320] sm:$0xff]  ;;  %v2831_v54 = vunpack.c.l.s8.bf16 %v1241_v11 }
 0x431   : > { %4186 = vmatprep.subr.bf16.mxu0 %v2812_v27  ;;  %5211 = vmatprep.subr.bf16.mxu1 %v2814_v56  ;;  %v2833_v27 = vunpack.c.l.s8.bf16 %v1243_v52  ;;  %v2837_v56 = vunpack.c.h.s8.bf16 %v1242_v33  ;;  %v1251_v33 = vld [vmem:[%s8002_s21 + $0x1360] sm:$0xff] }
 0x433   : > { %4178 = vmatmul.mubr.bf16.vlgmr.msra.gmra.mrb[0].mxu0 %v8797_v4  ;;  %5203 = vmatmul.mubr.bf16.vlgmr.msra.gmra.mrb[0].mxu1 %v8797_v4 }
 0x434   : > { %4187 = vmatpush1.bf16.msra.mxu0 %v2811_v45  ;;  %5212 = vmatpush1.bf16.msra.mxu1 %v2813_v7  ;;  %v2836_v45 = vunpack.c.h.s8.bf16 %v1241_v11  ;;  %v2838_v7 = vunpack.c.h.s8.bf16 %v1243_v52  ;;  %v1257_v11 = vld [vmem:[%s8002_s21 + $0x1390] sm:$0xff]  ;;  %v1259_v52 = vld [vmem:[%s8002_s21 + $0x13a0] sm:$0xff] }
 0x435   : > { %4188 = vmatprep.subr.bf16.mxu0 %v2817_v57  ;;  %5213 = vmatprep.subr.bf16.mxu1 %v2819_v14  ;;  %v2842_v57 = vunpack.c.l.s8.bf16 %v1247_v0  ;;  %v2844_v14 = vunpack.c.l.s8.bf16 %v1249_v3 }
 0x436   : > { %4218 = vmatprep.mubr.bf16.mxu0 %v8801_v16  ;;  %5243 = vmatprep.mubr.bf16.mxu1 %v8801_v16 }
 0x438   : > { %4189 = vmatpush1.bf16.msra.mxu0 %v2816_v38  ;;  %5214 = vmatpush1.bf16.msra.mxu1 %v2818_v12  ;;  %v2841_v38 = vunpack.c.l.s8.bf16 %v1246_v41  ;;  %v2843_v12 = vunpack.c.l.s8.bf16 %v1248_v15 }
 0x439   : > { %4190 = vmatprep.subr.bf16.mxu0 %v2822_v60  ;;  %5215 = vmatprep.subr.bf16.mxu1 %v2824_v23  ;;  %v2847_v60 = vunpack.c.h.s8.bf16 %v1247_v0  ;;  %v2849_v23 = vunpack.c.h.s8.bf16 %v1249_v3  ;;  %v1256_v0 = vld [vmem:[%s8002_s21 + $0x1388] sm:$0xff]  ;;  %v1258_v3 = vld [vmem:[%s8002_s21 + $0x1398] sm:$0xff] }
 0x43c   : > { %4191 = vmatpush1.bf16.msra.mxu0 %v2821_v28  ;;  %5216 = vmatpush1.bf16.msra.mxu1 %v2823_v25  ;;  %v2846_v28 = vunpack.c.h.s8.bf16 %v1246_v41  ;;  %v2848_v25 = vunpack.c.h.s8.bf16 %v1248_v15  ;;  %v1262_v41 = vld [vmem:[%s8002_s21 + $0x13b8] sm:$0xff]  ;;  %v1264_v15 = vld [vmem:[%s8002_s21 + $0x13c8] sm:$0xff] }
 0x43d   : > { %4192 = vmatprep.subr.bf16.mxu0 %v2827_v1  ;;  %5217 = vmatprep.subr.bf16.mxu1 %v2829_v59  ;;  %v2852_v1 = vunpack.c.l.s8.bf16 %v1252_v24  ;;  %v2854_v59 = vunpack.c.l.s8.bf16 %v1254_v42 }
 0x440   : > { %4193 = vmatpush1.bf16.msra.mxu0 %v2826_v39  ;;  %5218 = vmatpush1.bf16.msra.mxu1 %v2828_v43  ;;  %v2851_v39 = vunpack.c.l.s8.bf16 %v1251_v33  ;;  %v2853_v43 = vunpack.c.l.s8.bf16 %v1253_v37 }
 0x441   : > { %4194 = vmatprep.subr.bf16.mxu0 %v2832_v36  ;;  %5219 = vmatprep.subr.bf16.mxu1 %v2834_v48  ;;  %v2857_v36 = vunpack.c.h.s8.bf16 %v1252_v24  ;;  %v2859_v48 = vunpack.c.h.s8.bf16 %v1254_v42  ;;  %v1261_v24 = vld [vmem:[%s8002_s21 + $0x13b0] sm:$0xff]  ;;  %v1263_v42 = vld [vmem:[%s8002_s21 + $0x13c0] sm:$0xff] }
 0x444   : > { %4195 = vmatpush1.bf16.msra.mxu0 %v2831_v54  ;;  %5220 = vmatpush1.bf16.msra.mxu1 %v2833_v27  ;;  %v2856_v54 = vunpack.c.h.s8.bf16 %v1251_v33  ;;  %v2858_v27 = vunpack.c.h.s8.bf16 %v1253_v37  ;;  %v1267_v33 = vld [vmem:[%s8002_s21 + $0x13e0] sm:$0xff]  ;;  %v1269_v37 = vld [vmem:[%s8002_s21 + $0x13f0] sm:$0xff] }
 0x445   : > { %4196 = vmatprep.subr.bf16.mxu0 %v2837_v56  ;;  %5221 = vmatprep.subr.bf16.mxu1 %v2839_v61  ;;  %v2862_v56 = vunpack.c.l.s8.bf16 %v1257_v11  ;;  %v2864_v61 = vunpack.c.l.s8.bf16 %v1259_v52 }
 0x448   : > { %4197 = vmatpush1.bf16.msra.mxu0 %v2836_v45  ;;  %5222 = vmatpush1.bf16.msra.mxu1 %v2838_v7  ;;  %v2861_v45 = vunpack.c.l.s8.bf16 %v1256_v0  ;;  %v2863_v7 = vunpack.c.l.s8.bf16 %v1258_v3 }
 0x449   : > { %4198 = vmatprep.subr.bf16.mxu0 %v2842_v57  ;;  %5223 = vmatprep.subr.bf16.mxu1 %v2844_v14  ;;  %v2867_v57 = vunpack.c.h.s8.bf16 %v1257_v11  ;;  %v2869_v14 = vunpack.c.h.s8.bf16 %v1259_v52  ;;  %v1266_v11 = vld [vmem:[%s8002_s21 + $0x13d8] sm:$0xff]  ;;  %v1268_v52 = vld [vmem:[%s8002_s21 + $0x13e8] sm:$0xff] }
 0x44c   : > { %4199 = vmatpush1.bf16.msra.mxu0 %v2841_v38  ;;  %5224 = vmatpush1.bf16.msra.mxu1 %v2843_v12  ;;  %v2866_v38 = vunpack.c.h.s8.bf16 %v1256_v0  ;;  %v2868_v12 = vunpack.c.h.s8.bf16 %v1258_v3  ;;  %v2889_v0 = vunpack.c.h.s8.bf16 %v1269_v37  ;;  %v1272_v3 = vld [vmem:[%s8002_s21 + $0x1408] sm:$0xff] }
 0x44d   : > { %4200 = vmatprep.subr.bf16.mxu0 %v2847_v60  ;;  %5225 = vmatprep.subr.bf16.mxu1 %v2849_v23  ;;  %v2872_v60 = vunpack.c.l.s8.bf16 %v1262_v41  ;;  %v2874_v23 = vunpack.c.l.s8.bf16 %v1264_v15 }
 0x450   : > { %4201 = vmatpush1.bf16.msra.mxu0 %v2846_v28  ;;  %5226 = vmatpush1.bf16.msra.mxu1 %v2848_v25  ;;  %v2871_v28 = vunpack.c.l.s8.bf16 %v1261_v24  ;;  %v2873_v25 = vunpack.c.l.s8.bf16 %v1263_v42 }
 0x451   : > { %4202 = vmatprep.subr.bf16.mxu0 %v2852_v1  ;;  %5227 = vmatprep.subr.bf16.mxu1 %v2854_v59  ;;  %v2877_v1 = vunpack.c.h.s8.bf16 %v1262_v41  ;;  %v2879_v59 = vunpack.c.h.s8.bf16 %v1264_v15  ;;  %v2892_v41 = vunpack.c.l.s8.bf16 %v1272_v3 }
 0x454   : > { %4203 = vmatpush1.bf16.msra.mxu0 %v2851_v39  ;;  %5228 = vmatpush1.bf16.msra.mxu1 %v2853_v43  ;;  %v2876_v39 = vunpack.c.h.s8.bf16 %v1261_v24  ;;  %v2878_v43 = vunpack.c.h.s8.bf16 %v1263_v42 }
 0x455   : > { %4204 = vmatprep.subr.bf16.mxu0 %v2857_v36  ;;  %5229 = vmatprep.subr.bf16.mxu1 %v2859_v48  ;;  %v2882_v36 = vunpack.c.l.s8.bf16 %v1267_v33  ;;  %v2884_v48 = vunpack.c.l.s8.bf16 %v1269_v37 }
 0x458   : > { %4205 = vmatpush1.bf16.msra.mxu0 %v2856_v54  ;;  %5230 = vmatpush1.bf16.msra.mxu1 %v2858_v27  ;;  %v8836_v54 = vld [vmem:[%s9576_s0 + $0x40] sm:$0xff]  ;;  %v2881_v27 = vunpack.c.l.s8.bf16 %v1266_v11 }
 0x459   : > { %4206 = vmatprep.subr.bf16.mxu0 %v2862_v56  ;;  %5231 = vmatprep.subr.bf16.mxu1 %v2864_v61  ;;  %v2883_v56 = vunpack.c.l.s8.bf16 %v1268_v52  ;;  %v2887_v61 = vunpack.c.h.s8.bf16 %v1267_v33 }
 0x45c   : > { %4207 = vmatpush1.bf16.msra.mxu0 %v2861_v45  ;;  %5232 = vmatpush1.bf16.msra.mxu1 %v2863_v7  ;;  %v1274_v45 = vld [vmem:[%s8002_s21 + $0x1418] sm:$0xff]  ;;  %v8842_v7 = vrot.slane %v8836_v54, %v8033_v35 }
 0x45d   : > { %4208 = vmatprep.subr.bf16.mxu0 %v2867_v57  ;;  %5233 = vmatprep.subr.bf16.mxu1 %v2869_v14  ;;  %v2886_v57 = vunpack.c.h.s8.bf16 %v1266_v11  ;;  %v2888_v14 = vunpack.c.h.s8.bf16 %v1268_v52  ;;  %v2894_v15 = vunpack.c.l.s8.bf16 %v1274_v45 }
 0x460   : > { %4209 = vmatpush1.bf16.msra.mxu0 %v2866_v38  ;;  %5234 = vmatpush1.bf16.msra.mxu1 %v2868_v12  ;;  %v1271_v38 = vld [vmem:[%s8002_s21 + $0x1400] sm:$0xff]  ;;  %v1273_v12 = vld [vmem:[%s8002_s21 + $0x1410] sm:$0xff] }
 0x461   : > { %4210 = vmatprep.subr.bf16.mxu0 %v2872_v60  ;;  %5235 = vmatprep.subr.bf16.mxu1 %v2874_v23  ;;  %v473_v60 = vcombine.high %v8842_v7, %v8842_v7  ;;  %v8850_v23 = vpack.c.bf16 %v8789_v46, %v8789_v46  ;;  %v2891_v24 = vunpack.c.l.s8.bf16 %v1271_v38  ;;  %v2893_v42 = vunpack.c.l.s8.bf16 %v1273_v12 }
 0x462   : > { %v2896_v46 = vunpack.c.h.s8.bf16 %v1271_v38  ;;  %v2898_v37 = vunpack.c.h.s8.bf16 %v1273_v12 }
 0x463   : > { %v8854_v33 = vpack.c.bf16 %v473_v60, %v473_v60 }
 0x464   : > { %4211 = vmatpush1.bf16.msra.mxu0 %v2871_v28  ;;  %5236 = vmatpush1.bf16.msra.mxu1 %v2873_v25  ;;  %v2897_v28 = vunpack.c.h.s8.bf16 %v1272_v3  ;;  %v2899_v25 = vunpack.c.h.s8.bf16 %v1274_v45 }
 0x465   : > { %4212 = vmatprep.subr.bf16.mxu0 %v2877_v1  ;;  %5237 = vmatprep.subr.bf16.mxu1 %v2879_v59  ;;  %v1277_v1 = vld [vmem:[%s8002_s21 + $0x1430] sm:$0xff]  ;;  %v1279_v59 = vld [vmem:[%s8002_s21 + $0x1440] sm:$0xff] }
 0x468   : > { %4213 = vmatpush1.bf16.msra.mxu0 %v2876_v39  ;;  %5238 = vmatpush1.bf16.msra.mxu1 %v2878_v43  ;;  %v2902_v39 = vunpack.c.l.s8.bf16 %v1277_v1  ;;  %v2904_v43 = vunpack.c.l.s8.bf16 %v1279_v59 }
 0x469   : > { %4214 = vmatprep.subr.bf16.mxu0 %v2882_v36  ;;  %5239 = vmatprep.subr.bf16.mxu1 %v2884_v48  ;;  %v1276_v36 = vld [vmem:[%s8002_s21 + $0x1428] sm:$0xff]  ;;  %v1278_v48 = vld [vmem:[%s8002_s21 + $0x1438] sm:$0xff] }
 0x46a   : > { %v2901_v11 = vunpack.c.l.s8.bf16 %v1276_v36  ;;  %v2903_v52 = vunpack.c.l.s8.bf16 %v1278_v48  ;;  %v2906_v3 = vunpack.c.h.s8.bf16 %v1276_v36  ;;  %v2908_v45 = vunpack.c.h.s8.bf16 %v1278_v48 }
 0x46c   : > { %4215 = vmatpush1.bf16.msra.mxu0 %v2881_v27  ;;  %5240 = vmatpush1.bf16.msra.mxu1 %v2883_v56  ;;  %v2907_v27 = vunpack.c.h.s8.bf16 %v1277_v1  ;;  %v2909_v56 = vunpack.c.h.s8.bf16 %v1279_v59 }
 0x46d   : > { %4216 = vmatprep.subr.bf16.mxu0 %v2887_v61  ;;  %5241 = vmatprep.subr.bf16.mxu1 %v2889_v0  ;;  %v1282_v61 = vld [vmem:[%s8002_s21 + $0x1458] sm:$0xff]  ;;  %v1284_v0 = vld [vmem:[%s8002_s21 + $0x1468] sm:$0xff] }
 0x46e   : > { %v2917_v60 = vunpack.c.h.s8.bf16 %v1282_v61 }
 0x470   : > { %4217 = vmatpush1.bf16.msra.mxu0 %v2886_v57  ;;  %5242 = vmatpush1.bf16.msra.mxu1 %v2888_v14  ;;  %v2912_v57 = vunpack.c.l.s8.bf16 %v1282_v61  ;;  %v2914_v14 = vunpack.c.l.s8.bf16 %v1284_v0 }
 0x471   : > { %4227 = vmatprep.subr.bf16.mxu0 %v2892_v41  ;;  %5252 = vmatprep.subr.bf16.mxu1 %v2894_v15  ;;  %v1281_v41 = vld [vmem:[%s8002_s21 + $0x1450] sm:$0xff]  ;;  %v1283_v15 = vld [vmem:[%s8002_s21 + $0x1460] sm:$0xff] }
 0x472   : > { %v2911_v38 = vunpack.c.l.s8.bf16 %v1281_v41  ;;  %v2913_v12 = vunpack.c.l.s8.bf16 %v1283_v15  ;;  %v2918_v1 = vunpack.c.h.s8.bf16 %v1283_v15 }
 0x473   : > { %4219 = vmatmul.mubr.bf16.vlgmr.msra.gmra.mrb[0].mxu0 %v8850_v23  ;;  %5244 = vmatmul.mubr.bf16.vlgmr.msra.gmra.mrb[0].mxu1 %v8850_v23 }
 0x474   : > { %4228 = vmatpush1.bf16.msra.mxu0 %v2891_v24  ;;  %5253 = vmatpush1.bf16.msra.mxu1 %v2893_v42  ;;  %v2919_v24 = vunpack.c.h.s8.bf16 %v1284_v0  ;;  %v1287_v42 = vld [vmem:[%s8002_s21 + $0x1480] sm:$0xff] }
 0x475   : > { %4229 = vmatprep.subr.bf16.mxu0 %v2897_v28  ;;  %5254 = vmatprep.subr.bf16.mxu1 %v2899_v25  ;;  %v1289_v28 = vld [vmem:[%s8002_s21 + $0x1490] sm:$0xff]  ;;  %v2916_v25 = vunpack.c.h.s8.bf16 %v1281_v41  ;;  %v2922_v59 = vunpack.c.l.s8.bf16 %v1287_v42  ;;  %v2927_v48 = vunpack.c.h.s8.bf16 %v1287_v42 }
 0x476   : > { %4259 = vmatprep.mubr.bf16.mxu0 %v8854_v33  ;;  %5284 = vmatprep.mubr.bf16.mxu1 %v8854_v33 }
 0x478   : > { %4230 = vmatpush1.bf16.msra.mxu0 %v2896_v46  ;;  %5255 = vmatpush1.bf16.msra.mxu1 %v2898_v37  ;;  %v2924_v46 = vunpack.c.l.s8.bf16 %v1289_v28  ;;  %v1286_v37 = vld [vmem:[%s8002_s21 + $0x1478] sm:$0xff] }
 0x479   : > { %4231 = vmatprep.subr.bf16.mxu0 %v2902_v39  ;;  %5256 = vmatprep.subr.bf16.mxu1 %v2904_v43  ;;  %v1288_v39 = vld [vmem:[%s8002_s21 + $0x1488] sm:$0xff]  ;;  %v2921_v43 = vunpack.c.l.s8.bf16 %v1286_v37 }
 0x47a   : > { %v2923_v36 = vunpack.c.l.s8.bf16 %v1288_v39  ;;  %v2928_v61 = vunpack.c.h.s8.bf16 %v1288_v39 }
 0x47c   : > { %4232 = vmatpush1.bf16.msra.mxu0 %v2901_v11  ;;  %5257 = vmatpush1.bf16.msra.mxu1 %v2903_v52  ;;  %v2929_v11 = vunpack.c.h.s8.bf16 %v1289_v28  ;;  %v1292_v52 = vld [vmem:[%s8002_s21 + $0x14a8] sm:$0xff] }
 0x47d   : > { %4233 = vmatprep.subr.bf16.mxu0 %v2907_v27  ;;  %5258 = vmatprep.subr.bf16.mxu1 %v2909_v56  ;;  %v1294_v27 = vld [vmem:[%s8002_s21 + $0x14b8] sm:$0xff]  ;;  %v2926_v56 = vunpack.c.h.s8.bf16 %v1286_v37  ;;  %v2932_v0 = vunpack.c.l.s8.bf16 %v1292_v52  ;;  %v2937_v15 = vunpack.c.h.s8.bf16 %v1292_v52 }
 0x480   : > { %4234 = vmatpush1.bf16.msra.mxu0 %v2906_v3  ;;  %5259 = vmatpush1.bf16.msra.mxu1 %v2908_v45  ;;  %v2934_v3 = vunpack.c.l.s8.bf16 %v1294_v27  ;;  %v1291_v45 = vld [vmem:[%s8002_s21 + $0x14a0] sm:$0xff] }
 0x481   : > { %4235 = vmatprep.subr.bf16.mxu0 %v2912_v57  ;;  %5260 = vmatprep.subr.bf16.mxu1 %v2914_v14  ;;  %v1293_v57 = vld [vmem:[%s8002_s21 + $0x14b0] sm:$0xff]  ;;  %v2931_v14 = vunpack.c.l.s8.bf16 %v1291_v45 }
 0x482   : > { %v2933_v41 = vunpack.c.l.s8.bf16 %v1293_v57  ;;  %v2938_v42 = vunpack.c.h.s8.bf16 %v1293_v57 }
 0x484   : > { %4236 = vmatpush1.bf16.msra.mxu0 %v2911_v38  ;;  %5261 = vmatpush1.bf16.msra.mxu1 %v2913_v12  ;;  %v2939_v38 = vunpack.c.h.s8.bf16 %v1294_v27  ;;  %v1297_v12 = vld [vmem:[%s8002_s21 + $0x14d0] sm:$0xff] }
 0x485   : > { %4237 = vmatprep.subr.bf16.mxu0 %v2917_v60  ;;  %5262 = vmatprep.subr.bf16.mxu1 %v2919_v24  ;;  %v1299_v60 = vld [vmem:[%s8002_s21 + $0x14e0] sm:$0xff]  ;;  %v2936_v24 = vunpack.c.h.s8.bf16 %v1291_v45  ;;  %v2942_v28 = vunpack.c.l.s8.bf16 %v1297_v12  ;;  %v2947_v39 = vunpack.c.h.s8.bf16 %v1297_v12 }
 0x488   : > { %4238 = vmatpush1.bf16.msra.mxu0 %v2916_v25  ;;  %5263 = vmatpush1.bf16.msra.mxu1 %v2918_v1  ;;  %v2944_v25 = vunpack.c.l.s8.bf16 %v1299_v60  ;;  %v1296_v1 = vld [vmem:[%s8002_s21 + $0x14c8] sm:$0xff] }
 0x489   : > { %4239 = vmatprep.subr.bf16.mxu0 %v2922_v59  ;;  %5264 = vmatprep.subr.bf16.mxu1 %v2924_v46  ;;  %v1298_v59 = vld [vmem:[%s8002_s21 + $0x14d8] sm:$0xff]  ;;  %v2941_v46 = vunpack.c.l.s8.bf16 %v1296_v1 }
 0x48a   : > { %v2943_v37 = vunpack.c.l.s8.bf16 %v1298_v59  ;;  %v2948_v52 = vunpack.c.h.s8.bf16 %v1298_v59 }
 0x48c   : > { %4240 = vmatpush1.bf16.msra.mxu0 %v2921_v43  ;;  %5265 = vmatpush1.bf16.msra.mxu1 %v2923_v36  ;;  %v2949_v43 = vunpack.c.h.s8.bf16 %v1299_v60  ;;  %v1302_v36 = vld [vmem:[%s8002_s21 + $0x14f8] sm:$0xff] }
 0x48d   : > { %4241 = vmatprep.subr.bf16.mxu0 %v2927_v48  ;;  %5266 = vmatprep.subr.bf16.mxu1 %v2929_v11  ;;  %v1304_v48 = vld [vmem:[%s8002_s21 + $0x1508] sm:$0xff]  ;;  %v2946_v11 = vunpack.c.h.s8.bf16 %v1296_v1  ;;  %v2952_v27 = vunpack.c.l.s8.bf16 %v1302_v36  ;;  %v2957_v57 = vunpack.c.h.s8.bf16 %v1302_v36 }
 0x490   : > { %4242 = vmatpush1.bf16.msra.mxu0 %v2926_v56  ;;  %5267 = vmatpush1.bf16.msra.mxu1 %v2928_v61  ;;  %v2954_v56 = vunpack.c.l.s8.bf16 %v1304_v48  ;;  %v1301_v61 = vld [vmem:[%s8002_s21 + $0x14f0] sm:$0xff] }
 0x491   : > { %4243 = vmatprep.subr.bf16.mxu0 %v2932_v0  ;;  %5268 = vmatprep.subr.bf16.mxu1 %v2934_v3  ;;  %v1303_v0 = vld [vmem:[%s8002_s21 + $0x1500] sm:$0xff]  ;;  %v2951_v3 = vunpack.c.l.s8.bf16 %v1301_v61 }
 0x492   : > { %v2953_v45 = vunpack.c.l.s8.bf16 %v1303_v0  ;;  %v2958_v12 = vunpack.c.h.s8.bf16 %v1303_v0  ;;  %v8899_v0 = vpack.c.bf16 %v8842_v7, %v8842_v7 }
 0x494   : > { %4244 = vmatpush1.bf16.msra.mxu0 %v2931_v14  ;;  %5269 = vmatpush1.bf16.msra.mxu1 %v2933_v41  ;;  %v2959_v14 = vunpack.c.h.s8.bf16 %v1304_v48  ;;  %v1307_v41 = vld [vmem:[%s8002_s21 + $0x1520] sm:$0xff] }
 0x495   : > { %4245 = vmatprep.subr.bf16.mxu0 %v2937_v15  ;;  %5270 = vmatprep.subr.bf16.mxu1 %v2939_v38  ;;  %v1309_v15 = vld [vmem:[%s8002_s21 + $0x1530] sm:$0xff]  ;;  %v2956_v38 = vunpack.c.h.s8.bf16 %v1301_v61  ;;  %v2962_v60 = vunpack.c.l.s8.bf16 %v1307_v41 }
 0x498   : > { %4246 = vmatpush1.bf16.msra.mxu0 %v2936_v24  ;;  %5271 = vmatpush1.bf16.msra.mxu1 %v2938_v42  ;;  %v2964_v24 = vunpack.c.l.s8.bf16 %v1309_v15  ;;  %v1306_v42 = vld [vmem:[%s8002_s21 + $0x1518] sm:$0xff] }
 0x499   : > { %4247 = vmatprep.subr.bf16.mxu0 %v2942_v28  ;;  %5272 = vmatprep.subr.bf16.mxu1 %v2944_v25  ;;  %v1308_v28 = vld [vmem:[%s8002_s21 + $0x1528] sm:$0xff]  ;;  %v458_v25 = vcombine.high %v8836_v54, %v8836_v54  ;;  %v2961_v1 = vunpack.c.l.s8.bf16 %v1306_v42  ;;  %v2966_v48 = vunpack.c.h.s8.bf16 %v1306_v42 }
 0x49a   : > { %v2963_v59 = vunpack.c.l.s8.bf16 %v1308_v28  ;;  %v1316_v42 = vld [vmem:[%s8002_s21 + $0x1568] sm:$0xff] }
 0x49b   : > { %v8891_v36 = vrot.slane %v458_v25, %v8033_v35  ;;  %v2981_v25 = vunpack.c.l.s8.bf16 %v1316_v42 }
 0x49c   : > { %4248 = vmatpush1.bf16.msra.mxu0 %v2941_v46  ;;  %5273 = vmatpush1.bf16.msra.mxu1 %v2943_v37  ;;  %v2967_v46 = vunpack.c.h.s8.bf16 %v1307_v41  ;;  %v2969_v37 = vunpack.c.h.s8.bf16 %v1309_v15  ;;  %v1317_v41 = vld [vmem:[%s8002_s21 + $0x1570] sm:$0xff]  ;;  %v1319_v15 = vld [vmem:[%s8002_s21 + $0x1580] sm:$0xff] }
 0x49d   : > { %4249 = vmatprep.subr.bf16.mxu0 %v2947_v39  ;;  %5274 = vmatprep.subr.bf16.mxu1 %v2949_v43  ;;  %v1312_v39 = vld [vmem:[%s8002_s21 + $0x1548] sm:$0xff]  ;;  %v1314_v43 = vld [vmem:[%s8002_s21 + $0x1558] sm:$0xff]  ;;  %v474_v61 = vcombine.high %v8891_v36, %v8891_v36 }
 0x49e   : > { %v2972_v54 = vunpack.c.l.s8.bf16 %v1312_v39 }
 0x4a0   : > { %4250 = vmatpush1.bf16.msra.mxu0 %v2946_v11  ;;  %5275 = vmatpush1.bf16.msra.mxu1 %v2948_v52  ;;  %v2968_v11 = vunpack.c.h.s8.bf16 %v1308_v28  ;;  %v2974_v52 = vunpack.c.l.s8.bf16 %v1314_v43  ;;  %v1318_v28 = vld [vmem:[%s8002_s21 + $0x1578] sm:$0xff] }
 0x4a1   : > { %4251 = vmatprep.subr.bf16.mxu0 %v2952_v27  ;;  %5276 = vmatprep.subr.bf16.mxu1 %v2954_v56  ;;  %v1311_v27 = vld [vmem:[%s8002_s21 + $0x1540] sm:$0xff]  ;;  %v1313_v56 = vld [vmem:[%s8002_s21 + $0x1550] sm:$0xff] }
 0x4a2   : > { %v2976_v7 = vunpack.c.h.s8.bf16 %v1311_v27 }
 0x4a4   : > { %4252 = vmatpush1.bf16.msra.mxu0 %v2951_v3  ;;  %5277 = vmatpush1.bf16.msra.mxu1 %v2953_v45  ;;  %v2971_v3 = vunpack.c.l.s8.bf16 %v1311_v27  ;;  %v2973_v45 = vunpack.c.l.s8.bf16 %v1313_v56  ;;  %v1323_v27 = vld [vmem:[%s8002_s21 + $0x15a0] sm:$0xff] }
 0x4a5   : > { %4253 = vmatprep.subr.bf16.mxu0 %v2957_v57  ;;  %5278 = vmatprep.subr.bf16.mxu1 %v2959_v14  ;;  %v2977_v57 = vunpack.c.h.s8.bf16 %v1312_v39  ;;  %v2979_v14 = vunpack.c.h.s8.bf16 %v1314_v43  ;;  %v1324_v39 = vld [vmem:[%s8002_s21 + $0x15a8] sm:$0xff]  ;;  %v2986_v43 = vunpack.c.h.s8.bf16 %v1316_v42 }
 0x4a8   : > { %4254 = vmatpush1.bf16.msra.mxu0 %v2956_v38  ;;  %5279 = vmatpush1.bf16.msra.mxu1 %v2958_v12  ;;  %v8903_v38 = vpack.c.bf16 %v474_v61, %v474_v61  ;;  %v2978_v12 = vunpack.c.h.s8.bf16 %v1313_v56  ;;  %v2993_v61 = vunpack.c.l.s8.bf16 %v1323_v27 }
 0x4a9   : > { %4255 = vmatprep.subr.bf16.mxu0 %v2962_v60  ;;  %5280 = vmatprep.subr.bf16.mxu1 %v2964_v24  ;;  %v2982_v60 = vunpack.c.l.s8.bf16 %v1317_v41  ;;  %v2984_v24 = vunpack.c.l.s8.bf16 %v1319_v15 }
 0x4ac   : > { %4256 = vmatpush1.bf16.msra.mxu0 %v2961_v1  ;;  %5281 = vmatpush1.bf16.msra.mxu1 %v2963_v59  ;;  %v2983_v1 = vunpack.c.l.s8.bf16 %v1318_v28  ;;  %v2987_v59 = vunpack.c.h.s8.bf16 %v1317_v41 }
 0x4ad   : > { %4257 = vmatprep.subr.bf16.mxu0 %v2967_v46  ;;  %5282 = vmatprep.subr.bf16.mxu1 %v2969_v37  ;;  %v2989_v46 = vunpack.c.h.s8.bf16 %v1319_v15  ;;  %v1322_v37 = vld [vmem:[%s8002_s21 + $0x1598] sm:$0xff]  ;;  %v2998_v15 = vunpack.c.h.s8.bf16 %v1323_v27 }
 0x4b0   : > { %4258 = vmatpush1.bf16.msra.mxu0 %v2966_v48  ;;  %5283 = vmatpush1.bf16.msra.mxu1 %v2968_v11  ;;  %v2988_v48 = vunpack.c.h.s8.bf16 %v1318_v28  ;;  %v2992_v11 = vunpack.c.l.s8.bf16 %v1322_v37 }
 0x4b1   : > { %4268 = vmatprep.subr.bf16.mxu0 %v2972_v54  ;;  %5293 = vmatprep.subr.bf16.mxu1 %v2974_v52  ;;  %v2994_v54 = vunpack.c.l.s8.bf16 %v1324_v39  ;;  %v1321_v52 = vld [vmem:[%s8002_s21 + $0x1590] sm:$0xff] }
 0x4b2   : > { %v2991_v56 = vunpack.c.l.s8.bf16 %v1321_v52  ;;  %v2996_v41 = vunpack.c.h.s8.bf16 %v1321_v52 }
 0x4b3   : > { %4260 = vmatmul.mubr.bf16.vlgmr.msra.gmra.mrb[0].mxu0 %v8899_v0  ;;  %5285 = vmatmul.mubr.bf16.vlgmr.msra.gmra.mrb[0].mxu1 %v8899_v0 }
 0x4b4   : > { %4269 = vmatpush1.bf16.msra.mxu0 %v2971_v3  ;;  %5294 = vmatpush1.bf16.msra.mxu1 %v2973_v45  ;;  %v2997_v3 = vunpack.c.h.s8.bf16 %v1322_v37  ;;  %v2999_v45 = vunpack.c.h.s8.bf16 %v1324_v39 }
 0x4b5   : > { %4270 = vmatprep.subr.bf16.mxu0 %v2977_v57  ;;  %5295 = vmatprep.subr.bf16.mxu1 %v2979_v14  ;;  %v1327_v57 = vld [vmem:[%s8002_s21 + $0x15c0] sm:$0xff]  ;;  %v1329_v14 = vld [vmem:[%s8002_s21 + $0x15d0] sm:$0xff] }
 0x4b6   : > { %4300 = vmatprep.mubr.bf16.mxu0 %v8903_v38  ;;  %5325 = vmatprep.mubr.bf16.mxu1 %v8903_v38 }
 0x4b8   : > { %4271 = vmatpush1.bf16.msra.mxu0 %v2976_v7  ;;  %5296 = vmatpush1.bf16.msra.mxu1 %v2978_v12  ;;  %v3002_v7 = vunpack.c.l.s8.bf16 %v1327_v57  ;;  %v3004_v12 = vunpack.c.l.s8.bf16 %v1329_v14 }
 0x4b9   : > { %4272 = vmatprep.subr.bf16.mxu0 %v2982_v60  ;;  %5297 = vmatprep.subr.bf16.mxu1 %v2984_v24  ;;  %v1326_v60 = vld [vmem:[%s8002_s21 + $0x15b8] sm:$0xff]  ;;  %v1328_v24 = vld [vmem:[%s8002_s21 + $0x15c8] sm:$0xff] }
 0x4ba   : > { %v3001_v42 = vunpack.c.l.s8.bf16 %v1326_v60  ;;  %v3003_v28 = vunpack.c.l.s8.bf16 %v1328_v24  ;;  %v3006_v37 = vunpack.c.h.s8.bf16 %v1326_v60  ;;  %v3008_v39 = vunpack.c.h.s8.bf16 %v1328_v24 }
 0x4bc   : > { %4273 = vmatpush1.bf16.msra.mxu0 %v2981_v25  ;;  %5298 = vmatpush1.bf16.msra.mxu1 %v2983_v1  ;;  %v3007_v25 = vunpack.c.h.s8.bf16 %v1327_v57  ;;  %v3009_v1 = vunpack.c.h.s8.bf16 %v1329_v14 }
 0x4bd   : > { %4274 = vmatprep.subr.bf16.mxu0 %v2987_v59  ;;  %5299 = vmatprep.subr.bf16.mxu1 %v2989_v46  ;;  %v1332_v59 = vld [vmem:[%s8002_s21 + $0x15e8] sm:$0xff]  ;;  %v1334_v46 = vld [vmem:[%s8002_s21 + $0x15f8] sm:$0xff] }
 0x4c0   : > { %4275 = vmatpush1.bf16.msra.mxu0 %v2986_v43  ;;  %5300 = vmatpush1.bf16.msra.mxu1 %v2988_v48  ;;  %v3012_v43 = vunpack.c.l.s8.bf16 %v1332_v59  ;;  %v3014_v48 = vunpack.c.l.s8.bf16 %v1334_v46 }
 0x4c1   : > { %4276 = vmatprep.subr.bf16.mxu0 %v2992_v11  ;;  %5301 = vmatprep.subr.bf16.mxu1 %v2994_v54  ;;  %v1331_v11 = vld [vmem:[%s8002_s21 + $0x15e0] sm:$0xff]  ;;  %v1333_v54 = vld [vmem:[%s8002_s21 + $0x15f0] sm:$0xff] }
 0x4c2   : > { %v3011_v52 = vunpack.c.l.s8.bf16 %v1331_v11  ;;  %v3013_v27 = vunpack.c.l.s8.bf16 %v1333_v54  ;;  %v3016_v57 = vunpack.c.h.s8.bf16 %v1331_v11  ;;  %v3018_v14 = vunpack.c.h.s8.bf16 %v1333_v54 }
 0x4c4   : > { %4277 = vmatpush1.bf16.msra.mxu0 %v2991_v56  ;;  %5302 = vmatpush1.bf16.msra.mxu1 %v2993_v61  ;;  %v3017_v56 = vunpack.c.h.s8.bf16 %v1332_v59  ;;  %v3019_v61 = vunpack.c.h.s8.bf16 %v1334_v46 }
 0x4c5   : > { %4278 = vmatprep.subr.bf16.mxu0 %v2997_v3  ;;  %5303 = vmatprep.subr.bf16.mxu1 %v2999_v45  ;;  %v1337_v3 = vld [vmem:[%s8002_s21 + $0x1610] sm:$0xff]  ;;  %v1339_v45 = vld [vmem:[%s8002_s21 + $0x1620] sm:$0xff] }
 0x4c8   : > { %4279 = vmatpush1.bf16.msra.mxu0 %v2996_v41  ;;  %5304 = vmatpush1.bf16.msra.mxu1 %v2998_v15  ;;  %v3022_v41 = vunpack.c.l.s8.bf16 %v1337_v3  ;;  %v3024_v15 = vunpack.c.l.s8.bf16 %v1339_v45 }
 0x4c9   : > { %4280 = vmatprep.subr.bf16.mxu0 %v3002_v7  ;;  %5305 = vmatprep.subr.bf16.mxu1 %v3004_v12  ;;  %v1336_v7 = vld [vmem:[%s8002_s21 + $0x1608] sm:$0xff]  ;;  %v1338_v12 = vld [vmem:[%s8002_s21 + $0x1618] sm:$0xff] }
 0x4ca   : > { %v3021_v60 = vunpack.c.l.s8.bf16 %v1336_v7  ;;  %v3023_v24 = vunpack.c.l.s8.bf16 %v1338_v12  ;;  %v3026_v59 = vunpack.c.h.s8.bf16 %v1336_v7  ;;  %v3028_v46 = vunpack.c.h.s8.bf16 %v1338_v12  ;;  %v8938_v7 = vld [vmem:[%s9576_s0 + $0x48] sm:$0xff] }
 0x4cc   : > { %4281 = vmatpush1.bf16.msra.mxu0 %v3001_v42  ;;  %5306 = vmatpush1.bf16.msra.mxu1 %v3003_v28  ;;  %v3027_v42 = vunpack.c.h.s8.bf16 %v1337_v3  ;;  %v3029_v28 = vunpack.c.h.s8.bf16 %v1339_v45 }
 0x4cd   : > { %4282 = vmatprep.subr.bf16.mxu0 %v3007_v25  ;;  %5307 = vmatprep.subr.bf16.mxu1 %v3009_v1  ;;  %v1342_v25 = vld [vmem:[%s8002_s21 + $0x1638] sm:$0xff]  ;;  %v1344_v1 = vld [vmem:[%s8002_s21 + $0x1648] sm:$0xff] }
 0x4d0   : > { %4283 = vmatpush1.bf16.msra.mxu0 %v3006_v37  ;;  %5308 = vmatpush1.bf16.msra.mxu1 %v3008_v39  ;;  %v3032_v37 = vunpack.c.l.s8.bf16 %v1342_v25  ;;  %v3034_v39 = vunpack.c.l.s8.bf16 %v1344_v1 }
 0x4d1   : > { %4284 = vmatprep.subr.bf16.mxu0 %v3012_v43  ;;  %5309 = vmatprep.subr.bf16.mxu1 %v3014_v48  ;;  %v1341_v43 = vld [vmem:[%s8002_s21 + $0x1630] sm:$0xff]  ;;  %v1343_v48 = vld [vmem:[%s8002_s21 + $0x1640] sm:$0xff] }
 0x4d2   : > { %v3031_v11 = vunpack.c.l.s8.bf16 %v1341_v43  ;;  %v3033_v54 = vunpack.c.l.s8.bf16 %v1343_v48  ;;  %v3036_v3 = vunpack.c.h.s8.bf16 %v1341_v43  ;;  %v3038_v45 = vunpack.c.h.s8.bf16 %v1343_v48  ;;  %v1351_v43 = vld [vmem:[%s8002_s21 + $0x1680] sm:$0xff]  ;;  %v1353_v48 = vld [vmem:[%s8002_s21 + $0x1690] sm:$0xff] }
 0x4d4   : > { %4285 = vmatpush1.bf16.msra.mxu0 %v3011_v52  ;;  %5310 = vmatpush1.bf16.msra.mxu1 %v3013_v27  ;;  %v3037_v52 = vunpack.c.h.s8.bf16 %v1342_v25  ;;  %v3039_v27 = vunpack.c.h.s8.bf16 %v1344_v1  ;;  %v1354_v25 = vld [vmem:[%s8002_s21 + $0x1698] sm:$0xff]  ;;  %v8944_v1 = vrot.slane %v8938_v7, %v8033_v35 }
 0x4d5   : > { %4286 = vmatprep.subr.bf16.mxu0 %v3017_v56  ;;  %5311 = vmatprep.subr.bf16.mxu1 %v3019_v61  ;;  %v1347_v56 = vld [vmem:[%s8002_s21 + $0x1660] sm:$0xff]  ;;  %v1349_v61 = vld [vmem:[%s8002_s21 + $0x1670] sm:$0xff] }
 0x4d8   : > { %4287 = vmatpush1.bf16.msra.mxu0 %v3016_v57  ;;  %5312 = vmatpush1.bf16.msra.mxu1 %v3018_v14  ;;  %v3042_v57 = vunpack.c.l.s8.bf16 %v1347_v56  ;;  %v3044_v14 = vunpack.c.l.s8.bf16 %v1349_v61 }
 0x4d9   : > { %4288 = vmatprep.subr.bf16.mxu0 %v3022_v41  ;;  %5313 = vmatprep.subr.bf16.mxu1 %v3024_v15  ;;  %v1346_v41 = vld [vmem:[%s8002_s21 + $0x1658] sm:$0xff]  ;;  %v1348_v15 = vld [vmem:[%s8002_s21 + $0x1668] sm:$0xff] }
 0x4da   : > { %v3041_v12 = vunpack.c.l.s8.bf16 %v1346_v41 }
 0x4dc   : > { %4289 = vmatpush1.bf16.msra.mxu0 %v3021_v60  ;;  %5314 = vmatpush1.bf16.msra.mxu1 %v3023_v24  ;;  %v3043_v60 = vunpack.c.l.s8.bf16 %v1348_v15  ;;  %v3047_v24 = vunpack.c.h.s8.bf16 %v1347_v56 }
 0x4dd   : > { %4290 = vmatprep.subr.bf16.mxu0 %v3027_v42  ;;  %5315 = vmatprep.subr.bf16.mxu1 %v3029_v28  ;;  %v3049_v42 = vunpack.c.h.s8.bf16 %v1349_v61  ;;  %v1352_v28 = vld [vmem:[%s8002_s21 + $0x1688] sm:$0xff]  ;;  %v3059_v61 = vunpack.c.h.s8.bf16 %v1354_v25 }
 0x4de   : > { %v3057_v56 = vunpack.c.h.s8.bf16 %v1352_v28 }
 0x4e0   : > { %4291 = vmatpush1.bf16.msra.mxu0 %v3026_v59  ;;  %5316 = vmatpush1.bf16.msra.mxu1 %v3028_v46  ;;  %v3046_v59 = vunpack.c.h.s8.bf16 %v1346_v41  ;;  %v3048_v46 = vunpack.c.h.s8.bf16 %v1348_v15 }
 0x4e1   : > { %4292 = vmatprep.subr.bf16.mxu0 %v3032_v37  ;;  %5317 = vmatprep.subr.bf16.mxu1 %v3034_v39  ;;  %v3052_v37 = vunpack.c.l.s8.bf16 %v1352_v28  ;;  %v3054_v39 = vunpack.c.l.s8.bf16 %v1354_v25 }
 0x4e4   : > { %4293 = vmatpush1.bf16.msra.mxu0 %v3031_v11  ;;  %5318 = vmatpush1.bf16.msra.mxu1 %v3033_v54  ;;  %v490_v11 = vcombine.high %v8944_v1, %v8944_v1  ;;  %v8952_v54 = vpack.c.bf16 %v8891_v36, %v8891_v36  ;;  %v3056_v36 = vunpack.c.h.s8.bf16 %v1351_v43 }
 0x4e5   : > { %4294 = vmatprep.subr.bf16.mxu0 %v3037_v52  ;;  %5319 = vmatprep.subr.bf16.mxu1 %v3039_v27  ;;  %v3051_v52 = vunpack.c.l.s8.bf16 %v1351_v43  ;;  %v3053_v27 = vunpack.c.l.s8.bf16 %v1353_v48 }
 0x4e8   : > { %4295 = vmatpush1.bf16.msra.mxu0 %v3036_v3  ;;  %5320 = vmatpush1.bf16.msra.mxu1 %v3038_v45  ;;  %v1357_v3 = vld [vmem:[%s8002_s21 + $0x16b0] sm:$0xff]  ;;  %v1359_v45 = vld [vmem:[%s8002_s21 + $0x16c0] sm:$0xff] }
 0x4e9   : > { %4296 = vmatprep.subr.bf16.mxu0 %v3042_v57  ;;  %5321 = vmatprep.subr.bf16.mxu1 %v3044_v14  ;;  %v8956_v57 = vpack.c.bf16 %v490_v11, %v490_v11  ;;  %v3058_v14 = vunpack.c.h.s8.bf16 %v1353_v48  ;;  %v3062_v41 = vunpack.c.l.s8.bf16 %v1357_v3  ;;  %v3064_v15 = vunpack.c.l.s8.bf16 %v1359_v45  ;;  %v1361_v11 = vld [vmem:[%s8002_s21 + $0x16d0] sm:$0xff] }
 0x4ea   : > { %v3067_v28 = vunpack.c.h.s8.bf16 %v1357_v3  ;;  %v3069_v25 = vunpack.c.h.s8.bf16 %v1359_v45  ;;  %v1367_v45 = vld [vmem:[%s8002_s21 + $0x1700] sm:$0xff] }
 0x4ec   : > { %4297 = vmatpush1.bf16.msra.mxu0 %v3041_v12  ;;  %5322 = vmatpush1.bf16.msra.mxu1 %v3043_v60  ;;  %v1356_v12 = vld [vmem:[%s8002_s21 + $0x16a8] sm:$0xff]  ;;  %v1358_v60 = vld [vmem:[%s8002_s21 + $0x16b8] sm:$0xff] }
 0x4ed   : > { %4298 = vmatprep.subr.bf16.mxu0 %v3047_v24  ;;  %5323 = vmatprep.subr.bf16.mxu1 %v3049_v42  ;;  %v3061_v24 = vunpack.c.l.s8.bf16 %v1356_v12  ;;  %v3063_v42 = vunpack.c.l.s8.bf16 %v1358_v60 }
 0x4f0   : > { %4299 = vmatpush1.bf16.msra.mxu0 %v3046_v59  ;;  %5324 = vmatpush1.bf16.msra.mxu1 %v3048_v46  ;;  %v1362_v59 = vld [vmem:[%s8002_s21 + $0x16d8] sm:$0xff]  ;;  %v1364_v46 = vld [vmem:[%s8002_s21 + $0x16e8] sm:$0xff] }
 0x4f1   : > { %4309 = vmatprep.subr.bf16.mxu0 %v3052_v37  ;;  %5334 = vmatprep.subr.bf16.mxu1 %v3054_v39  ;;  %v3066_v37 = vunpack.c.h.s8.bf16 %v1356_v12  ;;  %v3068_v39 = vunpack.c.h.s8.bf16 %v1358_v60  ;;  %v3072_v43 = vunpack.c.l.s8.bf16 %v1362_v59  ;;  %v3074_v48 = vunpack.c.l.s8.bf16 %v1364_v46  ;;  %v1366_v60 = vld [vmem:[%s8002_s21 + $0x16f8] sm:$0xff] }
 0x4f2   : > { %v3079_v3 = vunpack.c.h.s8.bf16 %v1364_v46  ;;  %v1372_v46 = vld [vmem:[%s8002_s21 + $0x1728] sm:$0xff] }
 0x4f3   : > { %4301 = vmatmul.mubr.bf16.vlgmr.msra.gmra.mrb[0].mxu0 %v8952_v54  ;;  %5326 = vmatmul.mubr.bf16.vlgmr.msra.gmra.mrb[0].mxu1 %v8952_v54 }
 0x4f4   : > { %4310 = vmatpush1.bf16.msra.mxu0 %v3051_v52  ;;  %5335 = vmatpush1.bf16.msra.mxu1 %v3053_v27  ;;  %v1363_v52 = vld [vmem:[%s8002_s21 + $0x16e0] sm:$0xff]  ;;  %v3071_v27 = vunpack.c.l.s8.bf16 %v1361_v11 }
 0x4f5   : > { %4311 = vmatprep.subr.bf16.mxu0 %v3057_v56  ;;  %5336 = vmatprep.subr.bf16.mxu1 %v3059_v61  ;;  %v3073_v56 = vunpack.c.l.s8.bf16 %v1363_v52  ;;  %v3077_v61 = vunpack.c.h.s8.bf16 %v1362_v59 }
 0x4f6   : > { %4341 = vmatprep.mubr.bf16.mxu0 %v8956_v57  ;;  %5366 = vmatprep.mubr.bf16.mxu1 %v8956_v57 }
 0x4f8   : > { %4312 = vmatpush1.bf16.msra.mxu0 %v3056_v36  ;;  %5337 = vmatpush1.bf16.msra.mxu1 %v3058_v14  ;;  %v1369_v36 = vld [vmem:[%s8002_s21 + $0x1710] sm:$0xff]  ;;  %v3076_v14 = vunpack.c.h.s8.bf16 %v1361_v11 }
 0x4f9   : > { %4313 = vmatprep.subr.bf16.mxu0 %v3062_v41  ;;  %5338 = vmatprep.subr.bf16.mxu1 %v3064_v15  ;;  %v3078_v41 = vunpack.c.h.s8.bf16 %v1363_v52  ;;  %v3082_v15 = vunpack.c.l.s8.bf16 %v1367_v45  ;;  %v3084_v12 = vunpack.c.l.s8.bf16 %v1369_v36  ;;  %v3089_v59 = vunpack.c.h.s8.bf16 %v1369_v36  ;;  %v1371_v52 = vld [vmem:[%s8002_s21 + $0x1720] sm:$0xff]  ;;  %v1377_v36 = vld [vmem:[%s8002_s21 + $0x1750] sm:$0xff] }
 0x4fc   : > { %4314 = vmatpush1.bf16.msra.mxu0 %v3061_v24  ;;  %5339 = vmatpush1.bf16.msra.mxu1 %v3063_v42  ;;  %v1368_v24 = vld [vmem:[%s8002_s21 + $0x1708] sm:$0xff]  ;;  %v3081_v42 = vunpack.c.l.s8.bf16 %v1366_v60 }
 0x4fd   : > { %4315 = vmatprep.subr.bf16.mxu0 %v3067_v28  ;;  %5340 = vmatprep.subr.bf16.mxu1 %v3069_v25  ;;  %v3083_v28 = vunpack.c.l.s8.bf16 %v1368_v24  ;;  %v3087_v25 = vunpack.c.h.s8.bf16 %v1367_v45 }
 0x500   : > { %4316 = vmatpush1.bf16.msra.mxu0 %v3066_v37  ;;  %5341 = vmatpush1.bf16.msra.mxu1 %v3068_v39  ;;  %v1374_v37 = vld [vmem:[%s8002_s21 + $0x1738] sm:$0xff]  ;;  %v3086_v39 = vunpack.c.h.s8.bf16 %v1366_v60 }
 0x501   : > { %4317 = vmatprep.subr.bf16.mxu0 %v3072_v43  ;;  %5342 = vmatprep.subr.bf16.mxu1 %v3074_v48  ;;  %v3088_v43 = vunpack.c.h.s8.bf16 %v1368_v24  ;;  %v3092_v48 = vunpack.c.l.s8.bf16 %v1372_v46  ;;  %v3094_v11 = vunpack.c.l.s8.bf16 %v1374_v37  ;;  %v3099_v45 = vunpack.c.h.s8.bf16 %v1374_v37  ;;  %v1376_v24 = vld [vmem:[%s8002_s21 + $0x1748] sm:$0xff]  ;;  %v1382_v37 = vld [vmem:[%s8002_s21 + $0x1778] sm:$0xff] }
 0x504   : > { %4318 = vmatpush1.bf16.msra.mxu0 %v3071_v27  ;;  %5343 = vmatpush1.bf16.msra.mxu1 %v3073_v56  ;;  %v1373_v27 = vld [vmem:[%s8002_s21 + $0x1730] sm:$0xff]  ;;  %v3091_v56 = vunpack.c.l.s8.bf16 %v1371_v52 }
 0x505   : > { %4319 = vmatprep.subr.bf16.mxu0 %v3077_v61  ;;  %5344 = vmatprep.subr.bf16.mxu1 %v3079_v3  ;;  %v3093_v61 = vunpack.c.l.s8.bf16 %v1373_v27  ;;  %v3097_v3 = vunpack.c.h.s8.bf16 %v1372_v46 }
 0x508   : > { %4320 = vmatpush1.bf16.msra.mxu0 %v3076_v14  ;;  %5345 = vmatpush1.bf16.msra.mxu1 %v3078_v41  ;;  %v1379_v14 = vld [vmem:[%s8002_s21 + $0x1760] sm:$0xff]  ;;  %v3096_v41 = vunpack.c.h.s8.bf16 %v1371_v52 }
 0x509   : > { %4321 = vmatprep.subr.bf16.mxu0 %v3082_v15  ;;  %5346 = vmatprep.subr.bf16.mxu1 %v3084_v12  ;;  %v3098_v15 = vunpack.c.h.s8.bf16 %v1373_v27  ;;  %v3102_v12 = vunpack.c.l.s8.bf16 %v1377_v36  ;;  %v3104_v60 = vunpack.c.l.s8.bf16 %v1379_v14  ;;  %v3109_v46 = vunpack.c.h.s8.bf16 %v1379_v14  ;;  %v1381_v27 = vld [vmem:[%s8002_s21 + $0x1770] sm:$0xff]  ;;  %v1387_v14 = vld [vmem:[%s8002_s21 + $0x17a0] sm:$0xff] }
 0x50c   : > { %4322 = vmatpush1.bf16.msra.mxu0 %v3081_v42  ;;  %5347 = vmatpush1.bf16.msra.mxu1 %v3083_v28  ;;  %v1378_v42 = vld [vmem:[%s8002_s21 + $0x1758] sm:$0xff]  ;;  %v3101_v28 = vunpack.c.l.s8.bf16 %v1376_v24 }
 0x50d   : > { %4323 = vmatprep.subr.bf16.mxu0 %v3087_v25  ;;  %5348 = vmatprep.subr.bf16.mxu1 %v3089_v59  ;;  %v3103_v25 = vunpack.c.l.s8.bf16 %v1378_v42  ;;  %v3107_v59 = vunpack.c.h.s8.bf16 %v1377_v36 }
 0x510   : > { %4324 = vmatpush1.bf16.msra.mxu0 %v3086_v39  ;;  %5349 = vmatpush1.bf16.msra.mxu1 %v3088_v43  ;;  %v1384_v39 = vld [vmem:[%s8002_s21 + $0x1788] sm:$0xff]  ;;  %v3106_v43 = vunpack.c.h.s8.bf16 %v1376_v24 }
 0x511   : > { %4325 = vmatprep.subr.bf16.mxu0 %v3092_v48  ;;  %5350 = vmatprep.subr.bf16.mxu1 %v3094_v11  ;;  %v3108_v48 = vunpack.c.h.s8.bf16 %v1378_v42  ;;  %v3112_v11 = vunpack.c.l.s8.bf16 %v1382_v37  ;;  %v3114_v52 = vunpack.c.l.s8.bf16 %v1384_v39  ;;  %v3119_v36 = vunpack.c.h.s8.bf16 %v1384_v39  ;;  %v1386_v42 = vld [vmem:[%s8002_s21 + $0x1798] sm:$0xff] }
 0x514   : > { %4326 = vmatpush1.bf16.msra.mxu0 %v3091_v56  ;;  %5351 = vmatpush1.bf16.msra.mxu1 %v3093_v61  ;;  %v1383_v56 = vld [vmem:[%s8002_s21 + $0x1780] sm:$0xff]  ;;  %v3111_v61 = vunpack.c.l.s8.bf16 %v1381_v27 }
 0x515   : > { %4327 = vmatprep.subr.bf16.mxu0 %v3097_v3  ;;  %5352 = vmatprep.subr.bf16.mxu1 %v3099_v45  ;;  %v3113_v3 = vunpack.c.l.s8.bf16 %v1383_v56  ;;  %v3117_v45 = vunpack.c.h.s8.bf16 %v1382_v37  ;;  %v3127_v37 = vunpack.c.h.s8.bf16 %v1387_v14 }
 0x518   : > { %4328 = vmatpush1.bf16.msra.mxu0 %v3096_v41  ;;  %5353 = vmatpush1.bf16.msra.mxu1 %v3098_v15  ;;  %v1389_v41 = vld [vmem:[%s8002_s21 + $0x17b0] sm:$0xff]  ;;  %v3116_v15 = vunpack.c.h.s8.bf16 %v1381_v27 }
 0x519   : > { %4329 = vmatprep.subr.bf16.mxu0 %v3102_v12  ;;  %5354 = vmatprep.subr.bf16.mxu1 %v3104_v60  ;;  %v3118_v12 = vunpack.c.h.s8.bf16 %v1383_v56  ;;  %v3122_v60 = vunpack.c.l.s8.bf16 %v1387_v14  ;;  %v3124_v24 = vunpack.c.l.s8.bf16 %v1389_v41  ;;  %v3129_v39 = vunpack.c.h.s8.bf16 %v1389_v41 }
 0x51c   : > { %4330 = vmatpush1.bf16.msra.mxu0 %v3101_v28  ;;  %5355 = vmatpush1.bf16.msra.mxu1 %v3103_v25  ;;  %v1388_v28 = vld [vmem:[%s8002_s21 + $0x17a8] sm:$0xff]  ;;  %v475_v25 = vcombine.high %v8938_v7, %v8938_v7 }
 0x51d   : > { %4331 = vmatprep.subr.bf16.mxu0 %v3107_v59  ;;  %5356 = vmatprep.subr.bf16.mxu1 %v3109_v46  ;;  %v3121_v59 = vunpack.c.l.s8.bf16 %v1386_v42  ;;  %v3123_v46 = vunpack.c.l.s8.bf16 %v1388_v28  ;;  %v3128_v27 = vunpack.c.h.s8.bf16 %v1388_v28 }
 0x520   : > { %4332 = vmatpush1.bf16.msra.mxu0 %v3106_v43  ;;  %5357 = vmatpush1.bf16.msra.mxu1 %v3108_v48  ;;  %v1392_v43 = vld [vmem:[%s8002_s21 + $0x17c8] sm:$0xff]  ;;  %v1394_v48 = vld [vmem:[%s8002_s21 + $0x17d8] sm:$0xff] }
 0x521   : > { %4333 = vmatprep.subr.bf16.mxu0 %v3112_v11  ;;  %5358 = vmatprep.subr.bf16.mxu1 %v3114_v52  ;;  %v8993_v11 = vrot.slane %v475_v25, %v8033_v35  ;;  %v3126_v52 = vunpack.c.h.s8.bf16 %v1386_v42  ;;  %v3132_v7 = vunpack.c.l.s8.bf16 %v1392_v43  ;;  %v3134_v56 = vunpack.c.l.s8.bf16 %v1394_v48 }
 0x524   : > { %4334 = vmatpush1.bf16.msra.mxu0 %v3111_v61  ;;  %5359 = vmatpush1.bf16.msra.mxu1 %v3113_v3  ;;  %v1391_v61 = vld [vmem:[%s8002_s21 + $0x17c0] sm:$0xff]  ;;  %v1393_v3 = vld [vmem:[%s8002_s21 + $0x17d0] sm:$0xff] }
 0x525   : > { %4335 = vmatprep.subr.bf16.mxu0 %v3117_v45  ;;  %5360 = vmatprep.subr.bf16.mxu1 %v3119_v36  ;;  %v491_v45 = vcombine.high %v8993_v11, %v8993_v11  ;;  %v9001_v36 = vpack.c.bf16 %v8944_v1, %v8944_v1  ;;  %v3131_v14 = vunpack.c.l.s8.bf16 %v1391_v61  ;;  %v3133_v41 = vunpack.c.l.s8.bf16 %v1393_v3 }
 0x526   : > { %v3136_v1 = vunpack.c.h.s8.bf16 %v1391_v61  ;;  %v3138_v28 = vunpack.c.h.s8.bf16 %v1393_v3 }
 0x527   : > { %v9005_v42 = vpack.c.bf16 %v491_v45, %v491_v45 }
 0x528   : > { %4336 = vmatpush1.bf16.msra.mxu0 %v3116_v15  ;;  %5361 = vmatpush1.bf16.msra.mxu1 %v3118_v12  ;;  %v3137_v15 = vunpack.c.h.s8.bf16 %v1392_v43  ;;  %v3139_v12 = vunpack.c.h.s8.bf16 %v1394_v48 }
 0x529   : > { %4337 = vmatprep.subr.bf16.mxu0 %v3122_v60  ;;  %5362 = vmatprep.subr.bf16.mxu1 %v3124_v24  ;;  %v1397_v60 = vld [vmem:[%s8002_s21 + $0x17f0] sm:$0xff]  ;;  %v1399_v24 = vld [vmem:[%s8002_s21 + $0x1800] sm:$0xff] }
 0x52a   : > { %v3142_v25 = vunpack.c.l.s8.bf16 %v1397_v60  ;;  %v3147_v48 = vunpack.c.h.s8.bf16 %v1397_v60 }
 0x52c   : > { %4338 = vmatpush1.bf16.msra.mxu0 %v3121_v59  ;;  %5363 = vmatpush1.bf16.msra.mxu1 %v3123_v46  ;;  %v3144_v59 = vunpack.c.l.s8.bf16 %v1399_v24  ;;  %v1396_v46 = vld [vmem:[%s8002_s21 + $0x17e8] sm:$0xff] }
 0x52d   : > { %4339 = vmatprep.subr.bf16.mxu0 %v3127_v37  ;;  %5364 = vmatprep.subr.bf16.mxu1 %v3129_v39  ;;  %v1398_v37 = vld [vmem:[%s8002_s21 + $0x17f8] sm:$0xff]  ;;  %v3141_v39 = vunpack.c.l.s8.bf16 %v1396_v46 }
 0x52e   : > { %v3143_v43 = vunpack.c.l.s8.bf16 %v1398_v37  ;;  %v3148_v61 = vunpack.c.h.s8.bf16 %v1398_v37 }
 0x530   : > { %4340 = vmatpush1.bf16.msra.mxu0 %v3126_v52  ;;  %5365 = vmatpush1.bf16.msra.mxu1 %v3128_v27  ;;  %v3149_v52 = vunpack.c.h.s8.bf16 %v1399_v24  ;;  %v1402_v27 = vld [vmem:[%s8002_s21 + $0x1818] sm:$0xff] }
 0x531   : > { %4350 = vmatprep.subr.bf16.mxu0 %v3132_v7  ;;  %5375 = vmatprep.subr.bf16.mxu1 %v3134_v56  ;;  %v1404_v7 = vld [vmem:[%s8002_s21 + $0x1828] sm:$0xff]  ;;  %v3146_v56 = vunpack.c.h.s8.bf16 %v1396_v46  ;;  %v3152_v3 = vunpack.c.l.s8.bf16 %v1402_v27  ;;  %v3157_v60 = vunpack.c.h.s8.bf16 %v1402_v27 }
 0x532   : > { %v3154_v45 = vunpack.c.l.s8.bf16 %v1404_v7  ;;  %v3159_v24 = vunpack.c.h.s8.bf16 %v1404_v7 }
 0x533   : > { %4342 = vmatmul.mubr.bf16.vlgmr.msra.gmra.mrb[0].mxu0 %v9001_v36  ;;  %5367 = vmatmul.mubr.bf16.vlgmr.msra.gmra.mrb[0].mxu1 %v9001_v36 }
 0x534   : > { %4351 = vmatpush1.bf16.msra.mxu0 %v3131_v14  ;;  %5376 = vmatpush1.bf16.msra.mxu1 %v3133_v41  ;;  %v1401_v14 = vld [vmem:[%s8002_s21 + $0x1810] sm:$0xff]  ;;  %v1403_v41 = vld [vmem:[%s8002_s21 + $0x1820] sm:$0xff] }
 0x535   : > { %4352 = vmatprep.subr.bf16.mxu0 %v3137_v15  ;;  %5377 = vmatprep.subr.bf16.mxu1 %v3139_v12  ;;  %v3151_v15 = vunpack.c.l.s8.bf16 %v1401_v14  ;;  %v3153_v12 = vunpack.c.l.s8.bf16 %v1403_v41 }
 0x536   : > { %4382 = vmatprep.mubr.bf16.mxu0 %v9005_v42  ;;  %5407 = vmatprep.mubr.bf16.mxu1 %v9005_v42 }
 0x538   : > { %4353 = vmatpush1.bf16.msra.mxu0 %v3136_v1  ;;  %5378 = vmatpush1.bf16.msra.mxu1 %v3138_v28  ;;  %v1407_v1 = vld [vmem:[%s8002_s21 + $0x1840] sm:$0xff]  ;;  %v1409_v28 = vld [vmem:[%s8002_s21 + $0x1850] sm:$0xff] }
 0x539   : > { %4354 = vmatprep.subr.bf16.mxu0 %v3142_v25  ;;  %5379 = vmatprep.subr.bf16.mxu1 %v3144_v59  ;;  %v3156_v25 = vunpack.c.h.s8.bf16 %v1401_v14  ;;  %v3158_v59 = vunpack.c.h.s8.bf16 %v1403_v41  ;;  %v3162_v46 = vunpack.c.l.s8.bf16 %v1407_v1  ;;  %v3164_v37 = vunpack.c.l.s8.bf16 %v1409_v28 }
 0x53a   : > { %v3167_v27 = vunpack.c.h.s8.bf16 %v1407_v1  ;;  %v3169_v7 = vunpack.c.h.s8.bf16 %v1409_v28 }
 0x53c   : > { %4355 = vmatpush1.bf16.msra.mxu0 %v3141_v39  ;;  %5380 = vmatpush1.bf16.msra.mxu1 %v3143_v43  ;;  %v1406_v39 = vld [vmem:[%s8002_s21 + $0x1838] sm:$0xff]  ;;  %v1408_v43 = vld [vmem:[%s8002_s21 + $0x1848] sm:$0xff] }
 0x53d   : > { %4356 = vmatprep.subr.bf16.mxu0 %v3147_v48  ;;  %5381 = vmatprep.subr.bf16.mxu1 %v3149_v52  ;;  %v3161_v48 = vunpack.c.l.s8.bf16 %v1406_v39  ;;  %v3163_v52 = vunpack.c.l.s8.bf16 %v1408_v43 }
 0x540   : > { %4357 = vmatpush1.bf16.msra.mxu0 %v3146_v56  ;;  %5382 = vmatpush1.bf16.msra.mxu1 %v3148_v61  ;;  %v1412_v56 = vld [vmem:[%s8002_s21 + $0x1868] sm:$0xff]  ;;  %v1414_v61 = vld [vmem:[%s8002_s21 + $0x1878] sm:$0xff] }
 0x541   : > { %4358 = vmatprep.subr.bf16.mxu0 %v3152_v3  ;;  %5383 = vmatprep.subr.bf16.mxu1 %v3154_v45  ;;  %v3166_v3 = vunpack.c.h.s8.bf16 %v1406_v39  ;;  %v3168_v45 = vunpack.c.h.s8.bf16 %v1408_v43  ;;  %v3172_v14 = vunpack.c.l.s8.bf16 %v1412_v56  ;;  %v3174_v41 = vunpack.c.l.s8.bf16 %v1414_v61 }
 0x542   : > { %v3177_v1 = vunpack.c.h.s8.bf16 %v1412_v56  ;;  %v3179_v28 = vunpack.c.h.s8.bf16 %v1414_v61 }
 0x544   : > { %4359 = vmatpush1.bf16.msra.mxu0 %v3151_v15  ;;  %5384 = vmatpush1.bf16.msra.mxu1 %v3153_v12  ;;  %v1411_v15 = vld [vmem:[%s8002_s21 + $0x1860] sm:$0xff]  ;;  %v1413_v12 = vld [vmem:[%s8002_s21 + $0x1870] sm:$0xff] }
 0x545   : > { %4360 = vmatprep.subr.bf16.mxu0 %v3157_v60  ;;  %5385 = vmatprep.subr.bf16.mxu1 %v3159_v24  ;;  %v3171_v60 = vunpack.c.l.s8.bf16 %v1411_v15  ;;  %v3173_v24 = vunpack.c.l.s8.bf16 %v1413_v12 }
 0x548   : > { %4361 = vmatpush1.bf16.msra.mxu0 %v3156_v25  ;;  %5386 = vmatpush1.bf16.msra.mxu1 %v3158_v59  ;;  %v1417_v25 = vld [vmem:[%s8002_s21 + $0x1890] sm:$0xff]  ;;  %v1419_v59 = vld [vmem:[%s8002_s21 + $0x18a0] sm:$0xff] }
 0x549   : > { %4362 = vmatprep.subr.bf16.mxu0 %v3162_v46  ;;  %5387 = vmatprep.subr.bf16.mxu1 %v3164_v37  ;;  %v3176_v46 = vunpack.c.h.s8.bf16 %v1411_v15  ;;  %v3178_v37 = vunpack.c.h.s8.bf16 %v1413_v12  ;;  %v3182_v39 = vunpack.c.l.s8.bf16 %v1417_v25  ;;  %v3184_v43 = vunpack.c.l.s8.bf16 %v1419_v59 }
 0x54a   : > { %v3187_v56 = vunpack.c.h.s8.bf16 %v1417_v25  ;;  %v3189_v61 = vunpack.c.h.s8.bf16 %v1419_v59 }
 0x54c   : > { %4363 = vmatpush1.bf16.msra.mxu0 %v3161_v48  ;;  %5388 = vmatpush1.bf16.msra.mxu1 %v3163_v52  ;;  %v1416_v48 = vld [vmem:[%s8002_s21 + $0x1888] sm:$0xff]  ;;  %v1418_v52 = vld [vmem:[%s8002_s21 + $0x1898] sm:$0xff] }
 0x54d   : > { %4364 = vmatprep.subr.bf16.mxu0 %v3167_v27  ;;  %5389 = vmatprep.subr.bf16.mxu1 %v3169_v7  ;;  %v3181_v27 = vunpack.c.l.s8.bf16 %v1416_v48  ;;  %v3183_v7 = vunpack.c.l.s8.bf16 %v1418_v52 }
 0x550   : > { %4365 = vmatpush1.bf16.msra.mxu0 %v3166_v3  ;;  %5390 = vmatpush1.bf16.msra.mxu1 %v3168_v45  ;;  %v1422_v3 = vld [vmem:[%s8002_s21 + $0x18b8] sm:$0xff]  ;;  %v1424_v45 = vld [vmem:[%s8002_s21 + $0x18c8] sm:$0xff] }
 0x551   : > { %4366 = vmatprep.subr.bf16.mxu0 %v3172_v14  ;;  %5391 = vmatprep.subr.bf16.mxu1 %v3174_v41  ;;  %v3186_v14 = vunpack.c.h.s8.bf16 %v1416_v48  ;;  %v3188_v41 = vunpack.c.h.s8.bf16 %v1418_v52  ;;  %v3192_v15 = vunpack.c.l.s8.bf16 %v1422_v3  ;;  %v3194_v12 = vunpack.c.l.s8.bf16 %v1424_v45 }
 0x552   : > { %v3197_v25 = vunpack.c.h.s8.bf16 %v1422_v3  ;;  %v3199_v59 = vunpack.c.h.s8.bf16 %v1424_v45 }
 0x554   : > { %4367 = vmatpush1.bf16.msra.mxu0 %v3171_v60  ;;  %5392 = vmatpush1.bf16.msra.mxu1 %v3173_v24  ;;  %v1421_v60 = vld [vmem:[%s8002_s21 + $0x18b0] sm:$0xff]  ;;  %v1423_v24 = vld [vmem:[%s8002_s21 + $0x18c0] sm:$0xff] }
 0x555   : > { %4368 = vmatprep.subr.bf16.mxu0 %v3177_v1  ;;  %5393 = vmatprep.subr.bf16.mxu1 %v3179_v28  ;;  %v3191_v1 = vunpack.c.l.s8.bf16 %v1421_v60  ;;  %v3193_v28 = vunpack.c.l.s8.bf16 %v1423_v24 }
 0x558   : > { %4369 = vmatpush1.bf16.msra.mxu0 %v3176_v46  ;;  %5394 = vmatpush1.bf16.msra.mxu1 %v3178_v37  ;;  %v1427_v46 = vld [vmem:[%s8002_s21 + $0x18e0] sm:$0xff]  ;;  %v1429_v37 = vld [vmem:[%s8002_s21 + $0x18f0] sm:$0xff] }
 0x559   : > { %4370 = vmatprep.subr.bf16.mxu0 %v3182_v39  ;;  %5395 = vmatprep.subr.bf16.mxu1 %v3184_v43  ;;  %v3196_v39 = vunpack.c.h.s8.bf16 %v1421_v60  ;;  %v3198_v43 = vunpack.c.h.s8.bf16 %v1423_v24  ;;  %v3202_v48 = vunpack.c.l.s8.bf16 %v1427_v46  ;;  %v3204_v52 = vunpack.c.l.s8.bf16 %v1429_v37 }
 0x55a   : > { %v3207_v45 = vunpack.c.h.s8.bf16 %v1427_v46 }
 0x55c   : > { %4371 = vmatpush1.bf16.msra.mxu0 %v3181_v27  ;;  %5396 = vmatpush1.bf16.msra.mxu1 %v3183_v7  ;;  %v1426_v27 = vld [vmem:[%s8002_s21 + $0x18d8] sm:$0xff]  ;;  %v1428_v7 = vld [vmem:[%s8002_s21 + $0x18e8] sm:$0xff] }
 0x55d   : > { %4372 = vmatprep.subr.bf16.mxu0 %v3187_v56  ;;  %5397 = vmatprep.subr.bf16.mxu1 %v3189_v61  ;;  %v9040_v56 = vld [vmem:[%s9576_s0 + $0x50] sm:$0xff]  ;;  %v3201_v61 = vunpack.c.l.s8.bf16 %v1426_v27  ;;  %v3203_v3 = vunpack.c.l.s8.bf16 %v1428_v7  ;;  %v3206_v60 = vunpack.c.h.s8.bf16 %v1426_v27  ;;  %v3208_v24 = vunpack.c.h.s8.bf16 %v1428_v7  ;;  %v1439_v7 = vld [vmem:[%s8002_s21 + $0x1940] sm:$0xff] }
 0x55e   : > { %v1437_v27 = vld [vmem:[%s8002_s21 + $0x1930] sm:$0xff] }
 0x560   : > { %4373 = vmatpush1.bf16.msra.mxu0 %v3186_v14  ;;  %5398 = vmatpush1.bf16.msra.mxu1 %v3188_v41  ;;  %v3209_v14 = vunpack.c.h.s8.bf16 %v1429_v37  ;;  %v1432_v41 = vld [vmem:[%s8002_s21 + $0x1908] sm:$0xff]  ;;  %v9054_v37 = vpack.c.bf16 %v8993_v11, %v8993_v11 }
 0x561   : > { %4374 = vmatprep.subr.bf16.mxu0 %v3192_v15  ;;  %5399 = vmatprep.subr.bf16.mxu1 %v3194_v12  ;;  %v1434_v15 = vld [vmem:[%s8002_s21 + $0x1918] sm:$0xff]  ;;  %v9046_v12 = vrot.slane %v9040_v56, %v8033_v35 }
 0x563   : > { %v507_v46 = vcombine.high %v9046_v12, %v9046_v12 }
 0x564   : > { %4375 = vmatpush1.bf16.msra.mxu0 %v3191_v1  ;;  %5400 = vmatpush1.bf16.msra.mxu1 %v3193_v28  ;;  %v3212_v1 = vunpack.c.l.s8.bf16 %v1432_v41  ;;  %v3214_v28 = vunpack.c.l.s8.bf16 %v1434_v15 }
 0x565   : > { %4376 = vmatprep.subr.bf16.mxu0 %v3197_v25  ;;  %5401 = vmatprep.subr.bf16.mxu1 %v3199_v59  ;;  %v1431_v25 = vld [vmem:[%s8002_s21 + $0x1900] sm:$0xff]  ;;  %v1433_v59 = vld [vmem:[%s8002_s21 + $0x1910] sm:$0xff] }
 0x566   : > { %v3216_v11 = vunpack.c.h.s8.bf16 %v1431_v25 }
 0x568   : > { %4377 = vmatpush1.bf16.msra.mxu0 %v3196_v39  ;;  %5402 = vmatpush1.bf16.msra.mxu1 %v3198_v43  ;;  %v3211_v39 = vunpack.c.l.s8.bf16 %v1431_v25  ;;  %v3213_v43 = vunpack.c.l.s8.bf16 %v1433_v59  ;;  %v1442_v25 = vld [vmem:[%s8002_s21 + $0x1958] sm:$0xff] }
 0x569   : > { %4378 = vmatprep.subr.bf16.mxu0 %v3202_v48  ;;  %5403 = vmatprep.subr.bf16.mxu1 %v3204_v52  ;;  %v3217_v48 = vunpack.c.h.s8.bf16 %v1432_v41  ;;  %v3219_v52 = vunpack.c.h.s8.bf16 %v1434_v15  ;;  %v1436_v41 = vld [vmem:[%s8002_s21 + $0x1928] sm:$0xff]  ;;  %v1438_v15 = vld [vmem:[%s8002_s21 + $0x1938] sm:$0xff] }
 0x56c   : > { %4379 = vmatpush1.bf16.msra.mxu0 %v3201_v61  ;;  %5404 = vmatpush1.bf16.msra.mxu1 %v3203_v3  ;;  %v9058_v61 = vpack.c.bf16 %v507_v46, %v507_v46  ;;  %v3218_v3 = vunpack.c.h.s8.bf16 %v1433_v59  ;;  %v1444_v59 = vld [vmem:[%s8002_s21 + $0x1968] sm:$0xff]  ;;  %v3226_v46 = vunpack.c.h.s8.bf16 %v1436_v41 }
 0x56d   : > { %4380 = vmatprep.subr.bf16.mxu0 %v3207_v45  ;;  %5405 = vmatprep.subr.bf16.mxu1 %v3209_v14  ;;  %v3222_v45 = vunpack.c.l.s8.bf16 %v1437_v27  ;;  %v3224_v14 = vunpack.c.l.s8.bf16 %v1439_v7 }
 0x570   : > { %4381 = vmatpush1.bf16.msra.mxu0 %v3206_v60  ;;  %5406 = vmatpush1.bf16.msra.mxu1 %v3208_v24  ;;  %v3221_v60 = vunpack.c.l.s8.bf16 %v1436_v41  ;;  %v3223_v24 = vunpack.c.l.s8.bf16 %v1438_v15  ;;  %v1449_v41 = vld [vmem:[%s8002_s21 + $0x1990] sm:$0xff] }
 0x571   : > { %4391 = vmatprep.subr.bf16.mxu0 %v3212_v1  ;;  %5416 = vmatprep.subr.bf16.mxu1 %v3214_v28  ;;  %v3227_v1 = vunpack.c.h.s8.bf16 %v1437_v27  ;;  %v3229_v28 = vunpack.c.h.s8.bf16 %v1439_v7  ;;  %v3237_v7 = vunpack.c.h.s8.bf16 %v1442_v25 }
 0x573   : > { %4383 = vmatmul.mubr.bf16.vlgmr.msra.gmra.mrb[0].mxu0 %v9054_v37  ;;  %5408 = vmatmul.mubr.bf16.vlgmr.msra.gmra.mrb[0].mxu1 %v9054_v37 }
 0x574   : > { %4392 = vmatpush1.bf16.msra.mxu0 %v3211_v39  ;;  %5417 = vmatpush1.bf16.msra.mxu1 %v3213_v43  ;;  %v3228_v39 = vunpack.c.h.s8.bf16 %v1438_v15  ;;  %v3232_v43 = vunpack.c.l.s8.bf16 %v1442_v25 }
 0x575   : > { %4393 = vmatprep.subr.bf16.mxu0 %v3217_v48  ;;  %5418 = vmatprep.subr.bf16.mxu1 %v3219_v52  ;;  %v3234_v48 = vunpack.c.l.s8.bf16 %v1444_v59  ;;  %v1441_v52 = vld [vmem:[%s8002_s21 + $0x1950] sm:$0xff] }
 0x576   : > { %4423 = vmatprep.mubr.bf16.mxu0 %v9058_v61  ;;  %5448 = vmatprep.mubr.bf16.mxu1 %v9058_v61  ;;  %v3236_v15 = vunpack.c.h.s8.bf16 %v1441_v52 }
 0x578   : > { %4394 = vmatpush1.bf16.msra.mxu0 %v3216_v11  ;;  %5419 = vmatpush1.bf16.msra.mxu1 %v3218_v3  ;;  %v1443_v11 = vld [vmem:[%s8002_s21 + $0x1960] sm:$0xff]  ;;  %v3231_v3 = vunpack.c.l.s8.bf16 %v1441_v52  ;;  %v1454_v52 = vld [vmem:[%s8002_s21 + $0x19b8] sm:$0xff] }
 0x579   : > { %4395 = vmatprep.subr.bf16.mxu0 %v3222_v45  ;;  %5420 = vmatprep.subr.bf16.mxu1 %v3224_v14  ;;  %v3233_v27 = vunpack.c.l.s8.bf16 %v1443_v11  ;;  %v3239_v45 = vunpack.c.h.s8.bf16 %v1444_v59  ;;  %v1447_v14 = vld [vmem:[%s8002_s21 + $0x1980] sm:$0xff] }
 0x57a   : > { %v3247_v59 = vunpack.c.h.s8.bf16 %v1447_v14 }
 0x57c   : > { %4396 = vmatpush1.bf16.msra.mxu0 %v3221_v60  ;;  %5421 = vmatpush1.bf16.msra.mxu1 %v3223_v24  ;;  %v3238_v60 = vunpack.c.h.s8.bf16 %v1443_v11  ;;  %v3242_v24 = vunpack.c.l.s8.bf16 %v1447_v14 }
 0x57d   : > { %4397 = vmatprep.subr.bf16.mxu0 %v3227_v1  ;;  %5422 = vmatprep.subr.bf16.mxu1 %v3229_v28  ;;  %v3244_v1 = vunpack.c.l.s8.bf16 %v1449_v41  ;;  %v1446_v28 = vld [vmem:[%s8002_s21 + $0x1978] sm:$0xff] }
 0x57e   : > { %v3246_v11 = vunpack.c.h.s8.bf16 %v1446_v28 }
 0x580   : > { %4398 = vmatpush1.bf16.msra.mxu0 %v3226_v46  ;;  %5423 = vmatpush1.bf16.msra.mxu1 %v3228_v39  ;;  %v1448_v46 = vld [vmem:[%s8002_s21 + $0x1988] sm:$0xff]  ;;  %v3241_v39 = vunpack.c.l.s8.bf16 %v1446_v28  ;;  %v1459_v28 = vld [vmem:[%s8002_s21 + $0x19e0] sm:$0xff] }
 0x581   : > { %4399 = vmatprep.subr.bf16.mxu0 %v3232_v43  ;;  %5424 = vmatprep.subr.bf16.mxu1 %v3234_v48  ;;  %v3243_v25 = vunpack.c.l.s8.bf16 %v1448_v46  ;;  %v3249_v43 = vunpack.c.h.s8.bf16 %v1449_v41  ;;  %v1452_v48 = vld [vmem:[%s8002_s21 + $0x19a8] sm:$0xff] }
 0x582   : > { %v3257_v41 = vunpack.c.h.s8.bf16 %v1452_v48 }
 0x584   : > { %4400 = vmatpush1.bf16.msra.mxu0 %v3231_v3  ;;  %5425 = vmatpush1.bf16.msra.mxu1 %v3233_v27  ;;  %v3248_v3 = vunpack.c.h.s8.bf16 %v1448_v46  ;;  %v3252_v27 = vunpack.c.l.s8.bf16 %v1452_v48 }
 0x585   : > { %4401 = vmatprep.subr.bf16.mxu0 %v3237_v7  ;;  %5426 = vmatprep.subr.bf16.mxu1 %v3239_v45  ;;  %v3254_v7 = vunpack.c.l.s8.bf16 %v1454_v52  ;;  %v1451_v45 = vld [vmem:[%s8002_s21 + $0x19a0] sm:$0xff] }
 0x586   : > { %v3256_v46 = vunpack.c.h.s8.bf16 %v1451_v45 }
 0x588   : > { %4402 = vmatpush1.bf16.msra.mxu0 %v3236_v15  ;;  %5427 = vmatpush1.bf16.msra.mxu1 %v3238_v60  ;;  %v1453_v15 = vld [vmem:[%s8002_s21 + $0x19b0] sm:$0xff]  ;;  %v3251_v60 = vunpack.c.l.s8.bf16 %v1451_v45  ;;  %v1464_v45 = vld [vmem:[%s8002_s21 + $0x1a08] sm:$0xff] }
 0x589   : > { %4403 = vmatprep.subr.bf16.mxu0 %v3242_v24  ;;  %5428 = vmatprep.subr.bf16.mxu1 %v3244_v1  ;;  %v3253_v14 = vunpack.c.l.s8.bf16 %v1453_v15  ;;  %v3259_v24 = vunpack.c.h.s8.bf16 %v1454_v52  ;;  %v1457_v1 = vld [vmem:[%s8002_s21 + $0x19d0] sm:$0xff] }
 0x58a   : > { %v3267_v52 = vunpack.c.h.s8.bf16 %v1457_v1 }
 0x58c   : > { %4404 = vmatpush1.bf16.msra.mxu0 %v3241_v39  ;;  %5429 = vmatpush1.bf16.msra.mxu1 %v3243_v25  ;;  %v3258_v39 = vunpack.c.h.s8.bf16 %v1453_v15  ;;  %v3262_v25 = vunpack.c.l.s8.bf16 %v1457_v1 }
 0x58d   : > { %4405 = vmatprep.subr.bf16.mxu0 %v3247_v59  ;;  %5430 = vmatprep.subr.bf16.mxu1 %v3249_v43  ;;  %v3264_v59 = vunpack.c.l.s8.bf16 %v1459_v28  ;;  %v1456_v43 = vld [vmem:[%s8002_s21 + $0x19c8] sm:$0xff] }
 0x58e   : > { %v3266_v15 = vunpack.c.h.s8.bf16 %v1456_v43 }
 0x590   : > { %4406 = vmatpush1.bf16.msra.mxu0 %v3246_v11  ;;  %5431 = vmatpush1.bf16.msra.mxu1 %v3248_v3  ;;  %v1458_v11 = vld [vmem:[%s8002_s21 + $0x19d8] sm:$0xff]  ;;  %v3261_v3 = vunpack.c.l.s8.bf16 %v1456_v43  ;;  %v1469_v43 = vld [vmem:[%s8002_s21 + $0x1a30] sm:$0xff] }
 0x591   : > { %4407 = vmatprep.subr.bf16.mxu0 %v3252_v27  ;;  %5432 = vmatprep.subr.bf16.mxu1 %v3254_v7  ;;  %v3263_v48 = vunpack.c.l.s8.bf16 %v1458_v11  ;;  %v3269_v27 = vunpack.c.h.s8.bf16 %v1459_v28  ;;  %v1462_v7 = vld [vmem:[%s8002_s21 + $0x19f8] sm:$0xff] }
 0x592   : > { %v3277_v28 = vunpack.c.h.s8.bf16 %v1462_v7 }
 0x594   : > { %4408 = vmatpush1.bf16.msra.mxu0 %v3251_v60  ;;  %5433 = vmatpush1.bf16.msra.mxu1 %v3253_v14  ;;  %v3268_v60 = vunpack.c.h.s8.bf16 %v1458_v11  ;;  %v3272_v14 = vunpack.c.l.s8.bf16 %v1462_v7 }
 0x595   : > { %4409 = vmatprep.subr.bf16.mxu0 %v3257_v41  ;;  %5434 = vmatprep.subr.bf16.mxu1 %v3259_v24  ;;  %v3274_v41 = vunpack.c.l.s8.bf16 %v1464_v45  ;;  %v1461_v24 = vld [vmem:[%s8002_s21 + $0x19f0] sm:$0xff] }
 0x596   : > { %v3276_v11 = vunpack.c.h.s8.bf16 %v1461_v24 }
 0x598   : > { %4410 = vmatpush1.bf16.msra.mxu0 %v3256_v46  ;;  %5435 = vmatpush1.bf16.msra.mxu1 %v3258_v39  ;;  %v1463_v46 = vld [vmem:[%s8002_s21 + $0x1a00] sm:$0xff]  ;;  %v3271_v39 = vunpack.c.l.s8.bf16 %v1461_v24  ;;  %v1472_v24 = vld [vmem:[%s8002_s21 + $0x1a48] sm:$0xff] }
 0x599   : > { %4411 = vmatprep.subr.bf16.mxu0 %v3262_v25  ;;  %5436 = vmatprep.subr.bf16.mxu1 %v3264_v59  ;;  %v3273_v1 = vunpack.c.l.s8.bf16 %v1463_v46  ;;  %v3279_v25 = vunpack.c.h.s8.bf16 %v1464_v45  ;;  %v1467_v59 = vld [vmem:[%s8002_s21 + $0x1a20] sm:$0xff] }
 0x59c   : > { %4412 = vmatpush1.bf16.msra.mxu0 %v3261_v3  ;;  %5437 = vmatpush1.bf16.msra.mxu1 %v3263_v48  ;;  %v3278_v3 = vunpack.c.h.s8.bf16 %v1463_v46  ;;  %v3282_v48 = vunpack.c.l.s8.bf16 %v1467_v59  ;;  %v1474_v46 = vld [vmem:[%s8002_s21 + $0x1a58] sm:$0xff] }
 0x59d   : > { %4413 = vmatprep.subr.bf16.mxu0 %v3267_v52  ;;  %5438 = vmatprep.subr.bf16.mxu1 %v3269_v27  ;;  %v3284_v52 = vunpack.c.l.s8.bf16 %v1469_v43  ;;  %v1466_v27 = vld [vmem:[%s8002_s21 + $0x1a18] sm:$0xff] }
 0x59e   : > { %v3281_v7 = vunpack.c.l.s8.bf16 %v1466_v27 }
 0x5a0   : > { %4414 = vmatpush1.bf16.msra.mxu0 %v3266_v15  ;;  %5439 = vmatpush1.bf16.msra.mxu1 %v3268_v60  ;;  %v1468_v15 = vld [vmem:[%s8002_s21 + $0x1a28] sm:$0xff]  ;;  %v492_v60 = vcombine.high %v9040_v56, %v9040_v56  ;;  %v3292_v56 = vunpack.c.l.s8.bf16 %v1472_v24 }
 0x5a1   : > { %4415 = vmatprep.subr.bf16.mxu0 %v3272_v14  ;;  %5440 = vmatprep.subr.bf16.mxu1 %v3274_v41  ;;  %v3283_v45 = vunpack.c.l.s8.bf16 %v1468_v15  ;;  %v3287_v14 = vunpack.c.h.s8.bf16 %v1467_v59  ;;  %v3289_v41 = vunpack.c.h.s8.bf16 %v1469_v43  ;;  %v9103_v43 = vpack.c.bf16 %v9046_v12, %v9046_v12 }
 0x5a3   : > { %9594 = vst [vmem:[#allocation9_spill] sm:$0xff] %v9103_v43 }
 0x5a4   : > { %4416 = vmatpush1.bf16.msra.mxu0 %v3271_v39  ;;  %5441 = vmatpush1.bf16.msra.mxu1 %v3273_v1  ;;  %v9095_v39 = vrot.slane %v492_v60, %v8033_v35  ;;  %v3286_v1 = vunpack.c.h.s8.bf16 %v1466_v27  ;;  %v3297_v27 = vunpack.c.h.s8.bf16 %v1472_v24  ;;  %v1477_v60 = vld [vmem:[%s8002_s21 + $0x1a70] sm:$0xff] }
 0x5a5   : > { %4417 = vmatprep.subr.bf16.mxu0 %v3277_v28  ;;  %5442 = vmatprep.subr.bf16.mxu1 %v3279_v25  ;;  %v3288_v28 = vunpack.c.h.s8.bf16 %v1468_v15  ;;  %v3294_v25 = vunpack.c.l.s8.bf16 %v1474_v46  ;;  %v3299_v15 = vunpack.c.h.s8.bf16 %v1474_v46  ;;  %v1478_v46 = vld [vmem:[%s8002_s21 + $0x1a78] sm:$0xff] }
 0x5a6   : > { %v508_v59 = vcombine.high %v9095_v39, %v9095_v39 }
 0x5a8   : > { %4418 = vmatpush1.bf16.msra.mxu0 %v3276_v11  ;;  %5443 = vmatpush1.bf16.msra.mxu1 %v3278_v3  ;;  %v1471_v11 = vld [vmem:[%s8002_s21 + $0x1a40] sm:$0xff]  ;;  %v1473_v3 = vld [vmem:[%s8002_s21 + $0x1a50] sm:$0xff] }
 0x5a9   : > { %4419 = vmatprep.subr.bf16.mxu0 %v3282_v48  ;;  %5444 = vmatprep.subr.bf16.mxu1 %v3284_v52  ;;  %v3291_v48 = vunpack.c.l.s8.bf16 %v1471_v11  ;;  %v3293_v52 = vunpack.c.l.s8.bf16 %v1473_v3  ;;  %v3296_v12 = vunpack.c.h.s8.bf16 %v1471_v11 }
 0x5ac   : > { %4420 = vmatpush1.bf16.msra.mxu0 %v3281_v7  ;;  %5445 = vmatpush1.bf16.msra.mxu1 %v3283_v45  ;;  %v1479_v7 = vld [vmem:[%s8002_s21 + $0x1a80] sm:$0xff]  ;;  %v9107_v45 = vpack.c.bf16 %v508_v59, %v508_v59  ;;  %v1484_v59 = vld [vmem:[%s8002_s21 + $0x1aa8] sm:$0xff] }
 0x5ad   : > { %4421 = vmatprep.subr.bf16.mxu0 %v3287_v14  ;;  %5446 = vmatprep.subr.bf16.mxu1 %v3289_v41  ;;  %v3298_v14 = vunpack.c.h.s8.bf16 %v1473_v3  ;;  %v3302_v41 = vunpack.c.l.s8.bf16 %v1477_v60  ;;  %v3304_v24 = vunpack.c.l.s8.bf16 %v1479_v7  ;;  %v3309_v11 = vunpack.c.h.s8.bf16 %v1479_v7  ;;  %v1482_v3 = vld [vmem:[%s8002_s21 + $0x1a98] sm:$0xff] }
 0x5ae   : > { %v3317_v7 = vunpack.c.h.s8.bf16 %v1482_v3 }
 0x5b0   : > { %4422 = vmatpush1.bf16.msra.mxu0 %v3286_v1  ;;  %5447 = vmatpush1.bf16.msra.mxu1 %v3288_v28  ;;  %v1476_v1 = vld [vmem:[%s8002_s21 + $0x1a68] sm:$0xff] }
 0x5b1   : > { %4432 = vmatprep.subr.bf16.mxu0 %v3292_v56  ;;  %5457 = vmatprep.subr.bf16.mxu1 %v3294_v25  ;;  %v3301_v28 = vunpack.c.l.s8.bf16 %v1476_v1  ;;  %v3303_v56 = vunpack.c.l.s8.bf16 %v1478_v46  ;;  %v3307_v25 = vunpack.c.h.s8.bf16 %v1477_v60 }
 0x5b3   : > { %4424 = vmatmul.mubr.bf16.vlgmr.msra.gmra.mrb[0].mxu0 %v9103_v43  ;;  %5449 = vmatmul.mubr.bf16.vlgmr.msra.gmra.mrb[0].mxu1 %v9103_v43 }
 0x5b4   : > { %4433 = vmatpush1.bf16.msra.mxu0 %v3291_v48  ;;  %5458 = vmatpush1.bf16.msra.mxu1 %v3293_v52  ;;  %v3306_v48 = vunpack.c.h.s8.bf16 %v1476_v1  ;;  %v3308_v52 = vunpack.c.h.s8.bf16 %v1478_v46  ;;  %v1487_v1 = vld [vmem:[%s8002_s21 + $0x1ac0] sm:$0xff] }
 0x5b5   : > { %4434 = vmatprep.subr.bf16.mxu0 %v3297_v27  ;;  %5459 = vmatprep.subr.bf16.mxu1 %v3299_v15  ;;  %v3312_v27 = vunpack.c.l.s8.bf16 %v1482_v3  ;;  %v3314_v15 = vunpack.c.l.s8.bf16 %v1484_v59 }
 0x5b6   : > { %4464 = vmatprep.mubr.bf16.mxu0 %v9107_v45  ;;  %5489 = vmatprep.mubr.bf16.mxu1 %v9107_v45 }
 0x5b8   : > { %4435 = vmatpush1.bf16.msra.mxu0 %v3296_v12  ;;  %5460 = vmatpush1.bf16.msra.mxu1 %v3298_v14  ;;  %v1481_v12 = vld [vmem:[%s8002_s21 + $0x1a90] sm:$0xff]  ;;  %v1483_v14 = vld [vmem:[%s8002_s21 + $0x1aa0] sm:$0xff] }
 0x5b9   : > { %4436 = vmatprep.subr.bf16.mxu0 %v3302_v41  ;;  %5461 = vmatprep.subr.bf16.mxu1 %v3304_v24  ;;  %v3311_v41 = vunpack.c.l.s8.bf16 %v1481_v12  ;;  %v3313_v60 = vunpack.c.l.s8.bf16 %v1483_v14  ;;  %v3319_v24 = vunpack.c.h.s8.bf16 %v1484_v59  ;;  %v3316_v46 = vunpack.c.h.s8.bf16 %v1481_v12  ;;  %v1492_v12 = vld [vmem:[%s8002_s21 + $0x1ae8] sm:$0xff] }
 0x5ba   : > { %v3327_v59 = vunpack.c.h.s8.bf16 %v1487_v1 }
 0x5bc   : > { %4437 = vmatpush1.bf16.msra.mxu0 %v3301_v28  ;;  %5462 = vmatpush1.bf16.msra.mxu1 %v3303_v56  ;;  %v1489_v28 = vld [vmem:[%s8002_s21 + $0x1ad0] sm:$0xff]  ;;  %v3318_v56 = vunpack.c.h.s8.bf16 %v1483_v14 }
 0x5bd   : > { %4438 = vmatprep.subr.bf16.mxu0 %v3307_v25  ;;  %5463 = vmatprep.subr.bf16.mxu1 %v3309_v11  ;;  %v3322_v25 = vunpack.c.l.s8.bf16 %v1487_v1  ;;  %v3324_v11 = vunpack.c.l.s8.bf16 %v1489_v28 }
 0x5c0   : > { %4439 = vmatpush1.bf16.msra.mxu0 %v3306_v48  ;;  %5464 = vmatpush1.bf16.msra.mxu1 %v3308_v52  ;;  %v1486_v48 = vld [vmem:[%s8002_s21 + $0x1ab8] sm:$0xff]  ;;  %v1488_v52 = vld [vmem:[%s8002_s21 + $0x1ac8] sm:$0xff] }
 0x5c1   : > { %4440 = vmatprep.subr.bf16.mxu0 %v3312_v27  ;;  %5465 = vmatprep.subr.bf16.mxu1 %v3314_v15  ;;  %v3321_v27 = vunpack.c.l.s8.bf16 %v1486_v48  ;;  %v3323_v3 = vunpack.c.l.s8.bf16 %v1488_v52  ;;  %v3329_v15 = vunpack.c.h.s8.bf16 %v1489_v28  ;;  %v3326_v14 = vunpack.c.h.s8.bf16 %v1486_v48  ;;  %v1497_v48 = vld [vmem:[%s8002_s21 + $0x1b10] sm:$0xff] }
 0x5c2   : > { %v3337_v28 = vunpack.c.h.s8.bf16 %v1492_v12 }
 0x5c4   : > { %4441 = vmatpush1.bf16.msra.mxu0 %v3311_v41  ;;  %5466 = vmatpush1.bf16.msra.mxu1 %v3313_v60  ;;  %v1494_v41 = vld [vmem:[%s8002_s21 + $0x1af8] sm:$0xff]  ;;  %v3328_v60 = vunpack.c.h.s8.bf16 %v1488_v52 }
 0x5c5   : > { %4442 = vmatprep.subr.bf16.mxu0 %v3317_v7  ;;  %5467 = vmatprep.subr.bf16.mxu1 %v3319_v24  ;;  %v3332_v7 = vunpack.c.l.s8.bf16 %v1492_v12  ;;  %v3334_v24 = vunpack.c.l.s8.bf16 %v1494_v41 }
 0x5c8   : > { %4443 = vmatpush1.bf16.msra.mxu0 %v3316_v46  ;;  %5468 = vmatpush1.bf16.msra.mxu1 %v3318_v56  ;;  %v1491_v46 = vld [vmem:[%s8002_s21 + $0x1ae0] sm:$0xff]  ;;  %v1493_v56 = vld [vmem:[%s8002_s21 + $0x1af0] sm:$0xff] }
 0x5c9   : > { %4444 = vmatprep.subr.bf16.mxu0 %v3322_v25  ;;  %5469 = vmatprep.subr.bf16.mxu1 %v3324_v11  ;;  %v3331_v25 = vunpack.c.l.s8.bf16 %v1491_v46  ;;  %v3333_v1 = vunpack.c.l.s8.bf16 %v1493_v56  ;;  %v3339_v11 = vunpack.c.h.s8.bf16 %v1494_v41  ;;  %v3336_v52 = vunpack.c.h.s8.bf16 %v1491_v46  ;;  %v1502_v46 = vld [vmem:[%s8002_s21 + $0x1b38] sm:$0xff] }
 0x5ca   : > { %v3347_v41 = vunpack.c.h.s8.bf16 %v1497_v48 }
 0x5cc   : > { %4445 = vmatpush1.bf16.msra.mxu0 %v3321_v27  ;;  %5470 = vmatpush1.bf16.msra.mxu1 %v3323_v3  ;;  %v1499_v27 = vld [vmem:[%s8002_s21 + $0x1b20] sm:$0xff]  ;;  %v3338_v3 = vunpack.c.h.s8.bf16 %v1493_v56 }
 0x5cd   : > { %4446 = vmatprep.subr.bf16.mxu0 %v3327_v59  ;;  %5471 = vmatprep.subr.bf16.mxu1 %v3329_v15  ;;  %v3342_v59 = vunpack.c.l.s8.bf16 %v1497_v48  ;;  %v3344_v15 = vunpack.c.l.s8.bf16 %v1499_v27 }
 0x5d0   : > { %4447 = vmatpush1.bf16.msra.mxu0 %v3326_v14  ;;  %5472 = vmatpush1.bf16.msra.mxu1 %v3328_v60  ;;  %v1496_v14 = vld [vmem:[%s8002_s21 + $0x1b08] sm:$0xff]  ;;  %v1498_v60 = vld [vmem:[%s8002_s21 + $0x1b18] sm:$0xff] }
 0x5d1   : > { %4448 = vmatprep.subr.bf16.mxu0 %v3332_v7  ;;  %5473 = vmatprep.subr.bf16.mxu1 %v3334_v24  ;;  %v3341_v7 = vunpack.c.l.s8.bf16 %v1496_v14  ;;  %v3343_v12 = vunpack.c.l.s8.bf16 %v1498_v60  ;;  %v3349_v24 = vunpack.c.h.s8.bf16 %v1499_v27  ;;  %v3346_v56 = vunpack.c.h.s8.bf16 %v1496_v14  ;;  %v1507_v14 = vld [vmem:[%s8002_s21 + $0x1b60] sm:$0xff] }
 0x5d2   : > { %v3357_v27 = vunpack.c.h.s8.bf16 %v1502_v46 }
 0x5d4   : > { %4449 = vmatpush1.bf16.msra.mxu0 %v3331_v25  ;;  %5474 = vmatpush1.bf16.msra.mxu1 %v3333_v1  ;;  %v1504_v25 = vld [vmem:[%s8002_s21 + $0x1b48] sm:$0xff]  ;;  %v3348_v1 = vunpack.c.h.s8.bf16 %v1498_v60 }
 0x5d5   : > { %4450 = vmatprep.subr.bf16.mxu0 %v3337_v28  ;;  %5475 = vmatprep.subr.bf16.mxu1 %v3339_v11  ;;  %v3352_v28 = vunpack.c.l.s8.bf16 %v1502_v46  ;;  %v3354_v11 = vunpack.c.l.s8.bf16 %v1504_v25 }
 0x5d8   : > { %4451 = vmatpush1.bf16.msra.mxu0 %v3336_v52  ;;  %5476 = vmatpush1.bf16.msra.mxu1 %v3338_v3  ;;  %v1501_v52 = vld [vmem:[%s8002_s21 + $0x1b30] sm:$0xff]  ;;  %v1503_v3 = vld [vmem:[%s8002_s21 + $0x1b40] sm:$0xff] }
 0x5d9   : > { %4452 = vmatprep.subr.bf16.mxu0 %v3342_v59  ;;  %5477 = vmatprep.subr.bf16.mxu1 %v3344_v15  ;;  %v3351_v59 = vunpack.c.l.s8.bf16 %v1501_v52  ;;  %v3353_v48 = vunpack.c.l.s8.bf16 %v1503_v3  ;;  %v3359_v15 = vunpack.c.h.s8.bf16 %v1504_v25  ;;  %v3356_v60 = vunpack.c.h.s8.bf16 %v1501_v52 }
 0x5dc   : > { %4453 = vmatpush1.bf16.msra.mxu0 %v3341_v7  ;;  %5478 = vmatpush1.bf16.msra.mxu1 %v3343_v12  ;;  %v1509_v7 = vld [vmem:[%s8002_s21 + $0x1b70] sm:$0xff]  ;;  %v3358_v12 = vunpack.c.h.s8.bf16 %v1503_v3  ;;  %v1512_v3 = vld [vmem:[%s8002_s21 + $0x1b88] sm:$0xff] }
 0x5dd   : > { %4454 = vmatprep.subr.bf16.mxu0 %v3347_v41  ;;  %5479 = vmatprep.subr.bf16.mxu1 %v3349_v24  ;;  %v3362_v41 = vunpack.c.l.s8.bf16 %v1507_v14  ;;  %v3364_v24 = vunpack.c.l.s8.bf16 %v1509_v7  ;;  %v3369_v52 = vunpack.c.h.s8.bf16 %v1509_v7  ;;  %v9156_v7 = vpack.c.bf16 %v9095_v39, %v9095_v39 }
 0x5df   : > { %9595 = vst [vmem:[#allocation10_spill] sm:$0xff] %v9156_v7 }
 0x5e0   : > { %4455 = vmatpush1.bf16.msra.mxu0 %v3346_v56  ;;  %5480 = vmatpush1.bf16.msra.mxu1 %v3348_v1  ;;  %v1506_v56 = vld [vmem:[%s8002_s21 + $0x1b58] sm:$0xff]  ;;  %v1508_v1 = vld [vmem:[%s8002_s21 + $0x1b68] sm:$0xff] }
 0x5e1   : > { %4456 = vmatprep.subr.bf16.mxu0 %v3352_v28  ;;  %5481 = vmatprep.subr.bf16.mxu1 %v3354_v11  ;;  %v9142_v28 = vld [vmem:[%s9576_s0 + $0x58] sm:$0xff]  ;;  %v3361_v46 = vunpack.c.l.s8.bf16 %v1506_v56  ;;  %v3363_v25 = vunpack.c.l.s8.bf16 %v1508_v1  ;;  %v3367_v11 = vunpack.c.h.s8.bf16 %v1507_v14 }
 0x5e4   : > { %4457 = vmatpush1.bf16.msra.mxu0 %v3351_v59  ;;  %5482 = vmatpush1.bf16.msra.mxu1 %v3353_v48  ;;  %v1514_v59 = vld [vmem:[%s8002_s21 + $0x1b98] sm:$0xff]  ;;  %v9148_v48 = vrot.slane %v9142_v28, %v8033_v35 }
 0x5e5   : > { %4458 = vmatprep.subr.bf16.mxu0 %v3357_v27  ;;  %5483 = vmatprep.subr.bf16.mxu1 %v3359_v15  ;;  %v3366_v27 = vunpack.c.h.s8.bf16 %v1506_v56  ;;  %v3368_v15 = vunpack.c.h.s8.bf16 %v1508_v1  ;;  %v3377_v1 = vunpack.c.h.s8.bf16 %v1512_v3 }
 0x5e6   : > { %v524_v14 = vcombine.high %v9148_v48, %v9148_v48 }
 0x5e8   : > { %4459 = vmatpush1.bf16.msra.mxu0 %v3356_v60  ;;  %5484 = vmatpush1.bf16.msra.mxu1 %v3358_v12  ;;  %v3372_v60 = vunpack.c.l.s8.bf16 %v1512_v3  ;;  %v3374_v12 = vunpack.c.l.s8.bf16 %v1514_v59  ;;  %v9160_v43 = vpack.c.bf16 %v524_v14, %v524_v14 }
 0x5e9   : > { %4460 = vmatprep.subr.bf16.mxu0 %v3362_v41  ;;  %5485 = vmatprep.subr.bf16.mxu1 %v3364_v24  ;;  %v1511_v41 = vld [vmem:[%s8002_s21 + $0x1b80] sm:$0xff]  ;;  %v1513_v24 = vld [vmem:[%s8002_s21 + $0x1b90] sm:$0xff] }
 0x5ea   : > { %v3373_v56 = vunpack.c.l.s8.bf16 %v1513_v24  ;;  %9596 = vst [vmem:[#allocation11_spill] sm:$0xff] %v9160_v43  ;;  %v3376_v39 = vunpack.c.h.s8.bf16 %v1511_v41 }
 0x5ec   : > { %4461 = vmatpush1.bf16.msra.mxu0 %v3361_v46  ;;  %5486 = vmatpush1.bf16.msra.mxu1 %v3363_v25  ;;  %v3371_v46 = vunpack.c.l.s8.bf16 %v1511_v41  ;;  %v3379_v25 = vunpack.c.h.s8.bf16 %v1514_v59  ;;  %v1518_v59 = vld [vmem:[%s8002_s21 + $0x1bb8] sm:$0xff] }
 0x5ed   : > { %4462 = vmatprep.subr.bf16.mxu0 %v3367_v11  ;;  %5487 = vmatprep.subr.bf16.mxu1 %v3369_v52  ;;  %v1517_v11 = vld [vmem:[%s8002_s21 + $0x1bb0] sm:$0xff]  ;;  %v1519_v52 = vld [vmem:[%s8002_s21 + $0x1bc0] sm:$0xff]  ;;  %v3383_v14 = vunpack.c.l.s8.bf16 %v1518_v59 }
 0x5ee   : > { %v3384_v3 = vunpack.c.l.s8.bf16 %v1519_v52  ;;  %v3387_v41 = vunpack.c.h.s8.bf16 %v1517_v11 }
 0x5f0   : > { %4463 = vmatpush1.bf16.msra.mxu0 %v3366_v27  ;;  %5488 = vmatpush1.bf16.msra.mxu1 %v3368_v15  ;;  %v3378_v27 = vunpack.c.h.s8.bf16 %v1513_v24  ;;  %v3382_v15 = vunpack.c.l.s8.bf16 %v1517_v11  ;;  %v3389_v24 = vunpack.c.h.s8.bf16 %v1519_v52 }
 0x5f1   : > { %4473 = vmatprep.subr.bf16.mxu0 %v3372_v60  ;;  %5498 = vmatprep.subr.bf16.mxu1 %v3374_v12  ;;  %v1516_v60 = vld [vmem:[%s8002_s21 + $0x1ba8] sm:$0xff] }
 0x5f2   : > { %v3381_v12 = vunpack.c.l.s8.bf16 %v1516_v60 }
 0x5f3   : > { %4465 = vmatmul.mubr.bf16.vlgmr.msra.gmra.mrb[0].mxu0 %v9156_v7  ;;  %5490 = vmatmul.mubr.bf16.vlgmr.msra.gmra.mrb[0].mxu1 %v9156_v7  ;;  %v1523_v7 = vld [vmem:[%s8002_s21 + $0x1be0] sm:$0xff] }
 0x5f4   : > { %4474 = vmatpush1.bf16.msra.mxu0 %v3371_v46  ;;  %5499 = vmatpush1.bf16.msra.mxu1 %v3373_v56  ;;  %v1522_v46 = vld [vmem:[%s8002_s21 + $0x1bd8] sm:$0xff]  ;;  %v1524_v56 = vld [vmem:[%s8002_s21 + $0x1be8] sm:$0xff]  ;;  %v3393_v11 = vunpack.c.l.s8.bf16 %v1523_v7 }
 0x5f5   : > { %4475 = vmatprep.subr.bf16.mxu0 %v3377_v1  ;;  %5500 = vmatprep.subr.bf16.mxu1 %v3379_v25  ;;  %v3386_v1 = vunpack.c.h.s8.bf16 %v1516_v60  ;;  %v3388_v25 = vunpack.c.h.s8.bf16 %v1518_v59  ;;  %v3397_v52 = vunpack.c.h.s8.bf16 %v1522_v46  ;;  %v1527_v60 = vld [vmem:[%s8002_s21 + $0x1c00] sm:$0xff] }
 0x5f6   : > { %4505 = vmatprep.mubr.bf16.mxu0 %v9160_v43  ;;  %5530 = vmatprep.mubr.bf16.mxu1 %v9160_v43  ;;  %v1521_v43 = vld [vmem:[%s8002_s21 + $0x1bd0] sm:$0xff] }
 0x5f7   : > { %v3396_v59 = vunpack.c.h.s8.bf16 %v1521_v43 }
 0x5f8   : > { %4476 = vmatpush1.bf16.msra.mxu0 %v3376_v39  ;;  %5501 = vmatpush1.bf16.msra.mxu1 %v3378_v27  ;;  %v3392_v39 = vunpack.c.l.s8.bf16 %v1522_v46  ;;  %v3394_v27 = vunpack.c.l.s8.bf16 %v1524_v56 }
 0x5f9   : > { %4477 = vmatprep.subr.bf16.mxu0 %v3382_v15  ;;  %5502 = vmatprep.subr.bf16.mxu1 %v3384_v3  ;;  %v3391_v15 = vunpack.c.l.s8.bf16 %v1521_v43  ;;  %v3399_v3 = vunpack.c.h.s8.bf16 %v1524_v56  ;;  %v3407_v56 = vunpack.c.h.s8.bf16 %v1527_v60  ;;  %v1532_v43 = vld [vmem:[%s8002_s21 + $0x1c28] sm:$0xff] }
 0x5fc   : > { %4478 = vmatpush1.bf16.msra.mxu0 %v3381_v12  ;;  %5503 = vmatpush1.bf16.msra.mxu1 %v3383_v14  ;;  %v1529_v12 = vld [vmem:[%s8002_s21 + $0x1c10] sm:$0xff]  ;;  %v3398_v14 = vunpack.c.h.s8.bf16 %v1523_v7 }
 0x5fd   : > { %4479 = vmatprep.subr.bf16.mxu0 %v3387_v41  ;;  %5504 = vmatprep.subr.bf16.mxu1 %v3389_v24  ;;  %v3402_v41 = vunpack.c.l.s8.bf16 %v1527_v60  ;;  %v3404_v24 = vunpack.c.l.s8.bf16 %v1529_v12 }
 0x600   : > { %4480 = vmatpush1.bf16.msra.mxu0 %v3386_v1  ;;  %5505 = vmatpush1.bf16.msra.mxu1 %v3388_v25  ;;  %v1526_v1 = vld [vmem:[%s8002_s21 + $0x1bf8] sm:$0xff]  ;;  %v1528_v25 = vld [vmem:[%s8002_s21 + $0x1c08] sm:$0xff] }
 0x601   : > { %4481 = vmatprep.subr.bf16.mxu0 %v3392_v39  ;;  %5506 = vmatprep.subr.bf16.mxu1 %v3394_v27  ;;  %v3401_v39 = vunpack.c.l.s8.bf16 %v1526_v1  ;;  %v3403_v46 = vunpack.c.l.s8.bf16 %v1528_v25  ;;  %v3409_v27 = vunpack.c.h.s8.bf16 %v1529_v12  ;;  %v3406_v7 = vunpack.c.h.s8.bf16 %v1526_v1  ;;  %v1537_v1 = vld [vmem:[%s8002_s21 + $0x1c50] sm:$0xff] }
 0x602   : > { %v3417_v12 = vunpack.c.h.s8.bf16 %v1532_v43 }
 0x604   : > { %4482 = vmatpush1.bf16.msra.mxu0 %v3391_v15  ;;  %5507 = vmatpush1.bf16.msra.mxu1 %v3393_v11  ;;  %v1534_v15 = vld [vmem:[%s8002_s21 + $0x1c38] sm:$0xff]  ;;  %v3408_v11 = vunpack.c.h.s8.bf16 %v1528_v25 }
 0x605   : > { %4483 = vmatprep.subr.bf16.mxu0 %v3397_v52  ;;  %5508 = vmatprep.subr.bf16.mxu1 %v3399_v3  ;;  %v3412_v52 = vunpack.c.l.s8.bf16 %v1532_v43  ;;  %v3414_v3 = vunpack.c.l.s8.bf16 %v1534_v15 }
 0x608   : > { %4484 = vmatpush1.bf16.msra.mxu0 %v3396_v59  ;;  %5509 = vmatpush1.bf16.msra.mxu1 %v3398_v14  ;;  %v1531_v59 = vld [vmem:[%s8002_s21 + $0x1c20] sm:$0xff]  ;;  %v1533_v14 = vld [vmem:[%s8002_s21 + $0x1c30] sm:$0xff] }
 0x609   : > { %4485 = vmatprep.subr.bf16.mxu0 %v3402_v41  ;;  %5510 = vmatprep.subr.bf16.mxu1 %v3404_v24  ;;  %v3411_v41 = vunpack.c.l.s8.bf16 %v1531_v59  ;;  %v3413_v60 = vunpack.c.l.s8.bf16 %v1533_v14  ;;  %v3419_v24 = vunpack.c.h.s8.bf16 %v1534_v15  ;;  %v3416_v25 = vunpack.c.h.s8.bf16 %v1531_v59  ;;  %v1542_v59 = vld [vmem:[%s8002_s21 + $0x1c78] sm:$0xff] }
 0x60a   : > { %v3427_v15 = vunpack.c.h.s8.bf16 %v1537_v1 }
 0x60c   : > { %4486 = vmatpush1.bf16.msra.mxu0 %v3401_v39  ;;  %5511 = vmatpush1.bf16.msra.mxu1 %v3403_v46  ;;  %v1539_v39 = vld [vmem:[%s8002_s21 + $0x1c60] sm:$0xff]  ;;  %v3418_v46 = vunpack.c.h.s8.bf16 %v1533_v14 }
 0x60d   : > { %4487 = vmatprep.subr.bf16.mxu0 %v3407_v56  ;;  %5512 = vmatprep.subr.bf16.mxu1 %v3409_v27  ;;  %v3422_v56 = vunpack.c.l.s8.bf16 %v1537_v1  ;;  %v3424_v27 = vunpack.c.l.s8.bf16 %v1539_v39 }
 0x610   : > { %4488 = vmatpush1.bf16.msra.mxu0 %v3406_v7  ;;  %5513 = vmatpush1.bf16.msra.mxu1 %v3408_v11  ;;  %v1536_v7 = vld [vmem:[%s8002_s21 + $0x1c48] sm:$0xff]  ;;  %v1538_v11 = vld [vmem:[%s8002_s21 + $0x1c58] sm:$0xff] }
 0x611   : > { %4489 = vmatprep.subr.bf16.mxu0 %v3412_v52  ;;  %5514 = vmatprep.subr.bf16.mxu1 %v3414_v3  ;;  %v3421_v52 = vunpack.c.l.s8.bf16 %v1536_v7  ;;  %v3423_v43 = vunpack.c.l.s8.bf16 %v1538_v11  ;;  %v3429_v3 = vunpack.c.h.s8.bf16 %v1539_v39  ;;  %v3426_v14 = vunpack.c.h.s8.bf16 %v1536_v7  ;;  %v1547_v7 = vld [vmem:[%s8002_s21 + $0x1ca0] sm:$0xff] }
 0x612   : > { %v3437_v39 = vunpack.c.h.s8.bf16 %v1542_v59 }
 0x614   : > { %4490 = vmatpush1.bf16.msra.mxu0 %v3411_v41  ;;  %5515 = vmatpush1.bf16.msra.mxu1 %v3413_v60  ;;  %v1544_v41 = vld [vmem:[%s8002_s21 + $0x1c88] sm:$0xff]  ;;  %v3428_v60 = vunpack.c.h.s8.bf16 %v1538_v11 }
 0x615   : > { %4491 = vmatprep.subr.bf16.mxu0 %v3417_v12  ;;  %5516 = vmatprep.subr.bf16.mxu1 %v3419_v24  ;;  %v3432_v12 = vunpack.c.l.s8.bf16 %v1542_v59  ;;  %v3434_v24 = vunpack.c.l.s8.bf16 %v1544_v41 }
 0x618   : > { %4492 = vmatpush1.bf16.msra.mxu0 %v3416_v25  ;;  %5517 = vmatpush1.bf16.msra.mxu1 %v3418_v46  ;;  %v1541_v25 = vld [vmem:[%s8002_s21 + $0x1c70] sm:$0xff]  ;;  %v1543_v46 = vld [vmem:[%s8002_s21 + $0x1c80] sm:$0xff] }
 0x619   : > { %4493 = vmatprep.subr.bf16.mxu0 %v3422_v56  ;;  %5518 = vmatprep.subr.bf16.mxu1 %v3424_v27  ;;  %v3431_v56 = vunpack.c.l.s8.bf16 %v1541_v25  ;;  %v3433_v1 = vunpack.c.l.s8.bf16 %v1543_v46  ;;  %v3439_v27 = vunpack.c.h.s8.bf16 %v1544_v41  ;;  %v3436_v11 = vunpack.c.h.s8.bf16 %v1541_v25 }
 0x61c   : > { %4494 = vmatpush1.bf16.msra.mxu0 %v3421_v52  ;;  %5519 = vmatpush1.bf16.msra.mxu1 %v3423_v43  ;;  %v1549_v52 = vld [vmem:[%s8002_s21 + $0x1cb0] sm:$0xff]  ;;  %v3438_v43 = vunpack.c.h.s8.bf16 %v1543_v46  ;;  %v1552_v46 = vld [vmem:[%s8002_s21 + $0x1cc8] sm:$0xff] }
 0x61d   : > { %4495 = vmatprep.subr.bf16.mxu0 %v3427_v15  ;;  %5520 = vmatprep.subr.bf16.mxu1 %v3429_v3  ;;  %v3442_v15 = vunpack.c.l.s8.bf16 %v1547_v7  ;;  %v3444_v3 = vunpack.c.l.s8.bf16 %v1549_v52  ;;  %v3449_v25 = vunpack.c.h.s8.bf16 %v1549_v52  ;;  %v9205_v52 = vpack.c.bf16 %v9148_v48, %v9148_v48 }
 0x61f   : > { %9597 = vst [vmem:[#allocation12_spill] sm:$0xff] %v9205_v52 }
 0x620   : > { %4496 = vmatpush1.bf16.msra.mxu0 %v3426_v14  ;;  %5521 = vmatpush1.bf16.msra.mxu1 %v3428_v60  ;;  %v1546_v14 = vld [vmem:[%s8002_s21 + $0x1c98] sm:$0xff]  ;;  %v1548_v60 = vld [vmem:[%s8002_s21 + $0x1ca8] sm:$0xff] }
 0x621   : > { %4497 = vmatprep.subr.bf16.mxu0 %v3432_v12  ;;  %5522 = vmatprep.subr.bf16.mxu1 %v3434_v24  ;;  %v509_v12 = vcombine.high %v9142_v28, %v9142_v28  ;;  %v3441_v59 = vunpack.c.l.s8.bf16 %v1546_v14  ;;  %v3443_v41 = vunpack.c.l.s8.bf16 %v1548_v60  ;;  %v3447_v24 = vunpack.c.h.s8.bf16 %v1547_v7 }
 0x622   : > { %v3452_v28 = vunpack.c.l.s8.bf16 %v1552_v46 }
 0x624   : > { %4498 = vmatpush1.bf16.msra.mxu0 %v3431_v56  ;;  %5523 = vmatpush1.bf16.msra.mxu1 %v3433_v1  ;;  %v1554_v56 = vld [vmem:[%s8002_s21 + $0x1cd8] sm:$0xff]  ;;  %v9197_v1 = vrot.slane %v509_v12, %v8033_v35 }
 0x625   : > { %4499 = vmatprep.subr.bf16.mxu0 %v3437_v39  ;;  %5524 = vmatprep.subr.bf16.mxu1 %v3439_v27  ;;  %v3446_v39 = vunpack.c.h.s8.bf16 %v1546_v14  ;;  %v3448_v27 = vunpack.c.h.s8.bf16 %v1548_v60  ;;  %v3457_v60 = vunpack.c.h.s8.bf16 %v1552_v46  ;;  %v3459_v12 = vunpack.c.h.s8.bf16 %v1554_v56 }
 0x626   : > { %v525_v7 = vcombine.high %v9197_v1, %v9197_v1 }
 0x628   : > { %4500 = vmatpush1.bf16.msra.mxu0 %v3436_v11  ;;  %5525 = vmatpush1.bf16.msra.mxu1 %v3438_v43  ;;  %v3454_v11 = vunpack.c.l.s8.bf16 %v1554_v56  ;;  %v1551_v43 = vld [vmem:[%s8002_s21 + $0x1cc0] sm:$0xff]  ;;  %v1558_v56 = vld [vmem:[%s8002_s21 + $0x1cf8] sm:$0xff] }
 0x629   : > { %4501 = vmatprep.subr.bf16.mxu0 %v3442_v15  ;;  %5526 = vmatprep.subr.bf16.mxu1 %v3444_v3  ;;  %v1553_v15 = vld [vmem:[%s8002_s21 + $0x1cd0] sm:$0xff]  ;;  %v3451_v3 = vunpack.c.l.s8.bf16 %v1551_v43  ;;  %v3456_v48 = vunpack.c.h.s8.bf16 %v1551_v43 }
 0x62a   : > { %v3453_v14 = vunpack.c.l.s8.bf16 %v1553_v15 }
 0x62c   : > { %4502 = vmatpush1.bf16.msra.mxu0 %v3441_v59  ;;  %5527 = vmatpush1.bf16.msra.mxu1 %v3443_v41  ;;  %v1557_v59 = vld [vmem:[%s8002_s21 + $0x1cf0] sm:$0xff]  ;;  %v1559_v41 = vld [vmem:[%s8002_s21 + $0x1d00] sm:$0xff] }
 0x62d   : > { %4503 = vmatprep.subr.bf16.mxu0 %v3447_v24  ;;  %5528 = vmatprep.subr.bf16.mxu1 %v3449_v25  ;;  %v9209_v24 = vpack.c.bf16 %v525_v7, %v525_v7  ;;  %v3458_v25 = vunpack.c.h.s8.bf16 %v1553_v15  ;;  %v3464_v46 = vunpack.c.l.s8.bf16 %v1559_v41  ;;  %v3467_v43 = vunpack.c.h.s8.bf16 %v1557_v59  ;;  %v1562_v7 = vld [vmem:[%s8002_s21 + $0x1d18] sm:$0xff] }
 0x62e   : > { %v3469_v15 = vunpack.c.h.s8.bf16 %v1559_v41  ;;  %v3477_v41 = vunpack.c.h.s8.bf16 %v1562_v7 }
 0x630   : > { %4504 = vmatpush1.bf16.msra.mxu0 %v3446_v39  ;;  %5529 = vmatpush1.bf16.msra.mxu1 %v3448_v27  ;;  %v3462_v39 = vunpack.c.l.s8.bf16 %v1557_v59  ;;  %v1556_v27 = vld [vmem:[%s8002_s21 + $0x1ce8] sm:$0xff] }
 0x631   : > { %4514 = vmatprep.subr.bf16.mxu0 %v3452_v28  ;;  %5539 = vmatprep.subr.bf16.mxu1 %v3454_v11  ;;  %v3461_v28 = vunpack.c.l.s8.bf16 %v1556_v27  ;;  %v3463_v11 = vunpack.c.l.s8.bf16 %v1558_v56 }
 0x633   : > { %4506 = vmatmul.mubr.bf16.vlgmr.msra.gmra.mrb[0].mxu0 %v9205_v52  ;;  %5531 = vmatmul.mubr.bf16.vlgmr.msra.gmra.mrb[0].mxu1 %v9205_v52  ;;  %v1563_v52 = vld [vmem:[%s8002_s21 + $0x1d20] sm:$0xff] }
 0x634   : > { %4515 = vmatpush1.bf16.msra.mxu0 %v3451_v3  ;;  %5540 = vmatpush1.bf16.msra.mxu1 %v3453_v14  ;;  %v1564_v3 = vld [vmem:[%s8002_s21 + $0x1d28] sm:$0xff]  ;;  %v3466_v14 = vunpack.c.h.s8.bf16 %v1556_v27  ;;  %v3473_v59 = vunpack.c.l.s8.bf16 %v1563_v52  ;;  %v1567_v27 = vld [vmem:[%s8002_s21 + $0x1d40] sm:$0xff] }
 0x635   : > { %4516 = vmatprep.subr.bf16.mxu0 %v3457_v60  ;;  %5541 = vmatprep.subr.bf16.mxu1 %v3459_v12  ;;  %v3468_v60 = vunpack.c.h.s8.bf16 %v1558_v56  ;;  %v3472_v12 = vunpack.c.l.s8.bf16 %v1562_v7 }
 0x636   : > { %4546 = vmatprep.mubr.bf16.mxu0 %v9209_v24  ;;  %5571 = vmatprep.mubr.bf16.mxu1 %v9209_v24 }
 0x638   : > { %4517 = vmatpush1.bf16.msra.mxu0 %v3456_v48  ;;  %5542 = vmatpush1.bf16.msra.mxu1 %v3458_v25  ;;  %v3474_v48 = vunpack.c.l.s8.bf16 %v1564_v3  ;;  %v1561_v25 = vld [vmem:[%s8002_s21 + $0x1d10] sm:$0xff] }
 0x639   : > { %4518 = vmatprep.subr.bf16.mxu0 %v3462_v39  ;;  %5543 = vmatprep.subr.bf16.mxu1 %v3464_v46  ;;  %v3471_v39 = vunpack.c.l.s8.bf16 %v1561_v25  ;;  %v3479_v46 = vunpack.c.h.s8.bf16 %v1564_v3  ;;  %v3476_v56 = vunpack.c.h.s8.bf16 %v1561_v25  ;;  %v3487_v3 = vunpack.c.h.s8.bf16 %v1567_v27  ;;  %v1572_v25 = vld [vmem:[%s8002_s21 + $0x1d68] sm:$0xff] }
 0x63c   : > { %4519 = vmatpush1.bf16.msra.mxu0 %v3461_v28  ;;  %5544 = vmatpush1.bf16.msra.mxu1 %v3463_v11  ;;  %v1569_v28 = vld [vmem:[%s8002_s21 + $0x1d50] sm:$0xff]  ;;  %v3478_v11 = vunpack.c.h.s8.bf16 %v1563_v52 }
 0x63d   : > { %4520 = vmatprep.subr.bf16.mxu0 %v3467_v43  ;;  %5545 = vmatprep.subr.bf16.mxu1 %v3469_v15  ;;  %v3482_v43 = vunpack.c.l.s8.bf16 %v1567_v27  ;;  %v3484_v15 = vunpack.c.l.s8.bf16 %v1569_v28 }
 0x640   : > { %4521 = vmatpush1.bf16.msra.mxu0 %v3466_v14  ;;  %5546 = vmatpush1.bf16.msra.mxu1 %v3468_v60  ;;  %v1566_v14 = vld [vmem:[%s8002_s21 + $0x1d38] sm:$0xff]  ;;  %v1568_v60 = vld [vmem:[%s8002_s21 + $0x1d48] sm:$0xff] }
 0x641   : > { %4522 = vmatprep.subr.bf16.mxu0 %v3472_v12  ;;  %5547 = vmatprep.subr.bf16.mxu1 %v3474_v48  ;;  %v3481_v12 = vunpack.c.l.s8.bf16 %v1566_v14  ;;  %v3483_v7 = vunpack.c.l.s8.bf16 %v1568_v60  ;;  %v3489_v48 = vunpack.c.h.s8.bf16 %v1569_v28  ;;  %v3486_v52 = vunpack.c.h.s8.bf16 %v1566_v14  ;;  %v1577_v14 = vld [vmem:[%s8002_s21 + $0x1d90] sm:$0xff] }
 0x642   : > { %v3497_v28 = vunpack.c.h.s8.bf16 %v1572_v25 }
 0x644   : > { %4523 = vmatpush1.bf16.msra.mxu0 %v3471_v39  ;;  %5548 = vmatpush1.bf16.msra.mxu1 %v3473_v59  ;;  %v1574_v39 = vld [vmem:[%s8002_s21 + $0x1d78] sm:$0xff]  ;;  %v3488_v59 = vunpack.c.h.s8.bf16 %v1568_v60 }
 0x645   : > { %4524 = vmatprep.subr.bf16.mxu0 %v3477_v41  ;;  %5549 = vmatprep.subr.bf16.mxu1 %v3479_v46  ;;  %v3492_v41 = vunpack.c.l.s8.bf16 %v1572_v25  ;;  %v3494_v46 = vunpack.c.l.s8.bf16 %v1574_v39 }
 0x648   : > { %4525 = vmatpush1.bf16.msra.mxu0 %v3476_v56  ;;  %5550 = vmatpush1.bf16.msra.mxu1 %v3478_v11  ;;  %v1571_v56 = vld [vmem:[%s8002_s21 + $0x1d60] sm:$0xff]  ;;  %v1573_v11 = vld [vmem:[%s8002_s21 + $0x1d70] sm:$0xff] }
 0x649   : > { %4526 = vmatprep.subr.bf16.mxu0 %v3482_v43  ;;  %5551 = vmatprep.subr.bf16.mxu1 %v3484_v15  ;;  %v3491_v43 = vunpack.c.l.s8.bf16 %v1571_v56  ;;  %v3493_v27 = vunpack.c.l.s8.bf16 %v1573_v11  ;;  %v3499_v15 = vunpack.c.h.s8.bf16 %v1574_v39  ;;  %v3496_v60 = vunpack.c.h.s8.bf16 %v1571_v56  ;;  %v1582_v56 = vld [vmem:[%s8002_s21 + $0x1db8] sm:$0xff] }
 0x64a   : > { %v3507_v39 = vunpack.c.h.s8.bf16 %v1577_v14 }
 0x64c   : > { %4527 = vmatpush1.bf16.msra.mxu0 %v3481_v12  ;;  %5552 = vmatpush1.bf16.msra.mxu1 %v3483_v7  ;;  %v1579_v12 = vld [vmem:[%s8002_s21 + $0x1da0] sm:$0xff]  ;;  %v3498_v7 = vunpack.c.h.s8.bf16 %v1573_v11 }
 0x64d   : > { %4528 = vmatprep.subr.bf16.mxu0 %v3487_v3  ;;  %5553 = vmatprep.subr.bf16.mxu1 %v3489_v48  ;;  %v3502_v3 = vunpack.c.l.s8.bf16 %v1577_v14  ;;  %v3504_v48 = vunpack.c.l.s8.bf16 %v1579_v12 }
 0x650   : > { %4529 = vmatpush1.bf16.msra.mxu0 %v3486_v52  ;;  %5554 = vmatpush1.bf16.msra.mxu1 %v3488_v59  ;;  %v1576_v52 = vld [vmem:[%s8002_s21 + $0x1d88] sm:$0xff]  ;;  %v1578_v59 = vld [vmem:[%s8002_s21 + $0x1d98] sm:$0xff] }
 0x651   : > { %4530 = vmatprep.subr.bf16.mxu0 %v3492_v41  ;;  %5555 = vmatprep.subr.bf16.mxu1 %v3494_v46  ;;  %v3501_v41 = vunpack.c.l.s8.bf16 %v1576_v52  ;;  %v3503_v25 = vunpack.c.l.s8.bf16 %v1578_v59  ;;  %v3509_v46 = vunpack.c.h.s8.bf16 %v1579_v12  ;;  %v3506_v11 = vunpack.c.h.s8.bf16 %v1576_v52  ;;  %v1587_v52 = vld [vmem:[%s8002_s21 + $0x1de0] sm:$0xff] }
 0x652   : > { %v3517_v12 = vunpack.c.h.s8.bf16 %v1582_v56 }
 0x654   : > { %4531 = vmatpush1.bf16.msra.mxu0 %v3491_v43  ;;  %5556 = vmatpush1.bf16.msra.mxu1 %v3493_v27  ;;  %v1584_v43 = vld [vmem:[%s8002_s21 + $0x1dc8] sm:$0xff]  ;;  %v3508_v27 = vunpack.c.h.s8.bf16 %v1578_v59 }
 0x655   : > { %4532 = vmatprep.subr.bf16.mxu0 %v3497_v28  ;;  %5557 = vmatprep.subr.bf16.mxu1 %v3499_v15  ;;  %v3512_v28 = vunpack.c.l.s8.bf16 %v1582_v56  ;;  %v3514_v15 = vunpack.c.l.s8.bf16 %v1584_v43 }
 0x658   : > { %4533 = vmatpush1.bf16.msra.mxu0 %v3496_v60  ;;  %5558 = vmatpush1.bf16.msra.mxu1 %v3498_v7  ;;  %v1581_v60 = vld [vmem:[%s8002_s21 + $0x1db0] sm:$0xff]  ;;  %v1583_v7 = vld [vmem:[%s8002_s21 + $0x1dc0] sm:$0xff] }
 0x659   : > { %4534 = vmatprep.subr.bf16.mxu0 %v3502_v3  ;;  %5559 = vmatprep.subr.bf16.mxu1 %v3504_v48  ;;  %v3511_v3 = vunpack.c.l.s8.bf16 %v1581_v60  ;;  %v3513_v14 = vunpack.c.l.s8.bf16 %v1583_v7  ;;  %v3519_v48 = vunpack.c.h.s8.bf16 %v1584_v43  ;;  %v3516_v59 = vunpack.c.h.s8.bf16 %v1581_v60  ;;  %v1592_v60 = vld [vmem:[%s8002_s21 + $0x1e08] sm:$0xff] }
 0x65a   : > { %v3527_v43 = vunpack.c.h.s8.bf16 %v1587_v52 }
 0x65c   : > { %4535 = vmatpush1.bf16.msra.mxu0 %v3501_v41  ;;  %5560 = vmatpush1.bf16.msra.mxu1 %v3503_v25  ;;  %v1589_v41 = vld [vmem:[%s8002_s21 + $0x1df0] sm:$0xff]  ;;  %v3518_v25 = vunpack.c.h.s8.bf16 %v1583_v7 }
 0x65d   : > { %4536 = vmatprep.subr.bf16.mxu0 %v3507_v39  ;;  %5561 = vmatprep.subr.bf16.mxu1 %v3509_v46  ;;  %v3522_v39 = vunpack.c.l.s8.bf16 %v1587_v52  ;;  %v3524_v46 = vunpack.c.l.s8.bf16 %v1589_v41 }
 0x660   : > { %4537 = vmatpush1.bf16.msra.mxu0 %v3506_v11  ;;  %5562 = vmatpush1.bf16.msra.mxu1 %v3508_v27  ;;  %v1586_v11 = vld [vmem:[%s8002_s21 + $0x1dd8] sm:$0xff]  ;;  %v1588_v27 = vld [vmem:[%s8002_s21 + $0x1de8] sm:$0xff] }
 0x661   : > { %4538 = vmatprep.subr.bf16.mxu0 %v3512_v28  ;;  %5563 = vmatprep.subr.bf16.mxu1 %v3514_v15  ;;  %v3521_v28 = vunpack.c.l.s8.bf16 %v1586_v11  ;;  %v3523_v56 = vunpack.c.l.s8.bf16 %v1588_v27  ;;  %v3529_v15 = vunpack.c.h.s8.bf16 %v1589_v41  ;;  %v3526_v7 = vunpack.c.h.s8.bf16 %v1586_v11 }
 0x664   : > { %4539 = vmatpush1.bf16.msra.mxu0 %v3511_v3  ;;  %5564 = vmatpush1.bf16.msra.mxu1 %v3513_v14  ;;  %v1594_v3 = vld [vmem:[%s8002_s21 + $0x1e18] sm:$0xff]  ;;  %v3528_v14 = vunpack.c.h.s8.bf16 %v1588_v27  ;;  %v1597_v27 = vld [vmem:[%s8002_s21 + $0x1e30] sm:$0xff] }
 0x665   : > { %4540 = vmatprep.subr.bf16.mxu0 %v3517_v12  ;;  %5565 = vmatprep.subr.bf16.mxu1 %v3519_v48  ;;  %v3532_v12 = vunpack.c.l.s8.bf16 %v1592_v60  ;;  %v3534_v48 = vunpack.c.l.s8.bf16 %v1594_v3  ;;  %v3539_v11 = vunpack.c.h.s8.bf16 %v1594_v3 }
 0x668   : > { %4541 = vmatpush1.bf16.msra.mxu0 %v3516_v59  ;;  %5566 = vmatpush1.bf16.msra.mxu1 %v3518_v25  ;;  %v1591_v59 = vld [vmem:[%s8002_s21 + $0x1e00] sm:$0xff]  ;;  %v1593_v25 = vld [vmem:[%s8002_s21 + $0x1e10] sm:$0xff] }
 0x669   : > { %4542 = vmatprep.subr.bf16.mxu0 %v3522_v39  ;;  %5567 = vmatprep.subr.bf16.mxu1 %v3524_v46  ;;  %v9247_v39 = vpack.c.bf16 %v9197_v1, %v9197_v1  ;;  %v3531_v52 = vunpack.c.l.s8.bf16 %v1591_v59  ;;  %v3533_v41 = vunpack.c.l.s8.bf16 %v1593_v25  ;;  %v3537_v46 = vunpack.c.h.s8.bf16 %v1592_v60 }
 0x66a   : > { %v3536_v1 = vunpack.c.h.s8.bf16 %v1591_v59  ;;  %v7810_v60 = vmov 0  }
 0x66c   : > { %4543 = vmatpush1.bf16.msra.mxu0 %v3521_v28  ;;  %5568 = vmatpush1.bf16.msra.mxu1 %v3523_v56  ;;  %v1599_v28 = vld [vmem:[%s8002_s21 + $0x1e40] sm:$0xff]  ;;  %v3538_v56 = vunpack.c.h.s8.bf16 %v1593_v25  ;;  %v1602_v25 = vld [vmem:[%s8002_s21 + $0x1e58] sm:$0xff] }
 0x66d   : > { %4544 = vmatprep.subr.bf16.mxu0 %v3527_v43  ;;  %5569 = vmatprep.subr.bf16.mxu1 %v3529_v15  ;;  %v3542_v43 = vunpack.c.l.s8.bf16 %v1597_v27  ;;  %v3544_v15 = vunpack.c.l.s8.bf16 %v1599_v28  ;;  %v3549_v59 = vunpack.c.h.s8.bf16 %v1599_v28  ;;  %v3557_v28 = vunpack.c.h.s8.bf16 %v1602_v25 }
 0x670   : > { %4545 = vmatpush1.bf16.msra.mxu0 %v3526_v7  ;;  %5570 = vmatpush1.bf16.msra.mxu1 %v3528_v14  ;;  %v1596_v7 = vld [vmem:[%s8002_s21 + $0x1e28] sm:$0xff]  ;;  %v1598_v14 = vld [vmem:[%s8002_s21 + $0x1e38] sm:$0xff] }
 0x671   : > { %4555 = vmatprep.subr.bf16.mxu0 %v3532_v12  ;;  %5580 = vmatprep.subr.bf16.mxu1 %v3534_v48  ;;  %v3541_v3 = vunpack.c.l.s8.bf16 %v1596_v7  ;;  %v3543_v12 = vunpack.c.l.s8.bf16 %v1598_v14  ;;  %v3547_v48 = vunpack.c.h.s8.bf16 %v1597_v27 }
 0x673   : > { %4547 = vmatmul.mubr.bf16.vlgmr.msra.gmra.mrb[0].mxu0 %v9247_v39  ;;  %5572 = vmatmul.mubr.bf16.vlgmr.msra.gmra.mrb[0].mxu1 %v9247_v39 }
 0x674   : > { %4556 = vmatpush1.bf16.msra.mxu0 %v3531_v52  ;;  %5581 = vmatpush1.bf16.msra.mxu1 %v3533_v41  ;;  %v1604_v52 = vld [vmem:[%s8002_s21 + $0x1e68] sm:$0xff]  ;;  %v3546_v41 = vunpack.c.h.s8.bf16 %v1596_v7  ;;  %v1607_v7 = vld [vmem:[%s8002_s21 + $0x1e80] sm:$0xff] }
 0x675   : > { %4557 = vmatprep.subr.bf16.mxu0 %v3537_v46  ;;  %5582 = vmatprep.subr.bf16.mxu1 %v3539_v11  ;;  %v3548_v46 = vunpack.c.h.s8.bf16 %v1598_v14  ;;  %v3552_v11 = vunpack.c.l.s8.bf16 %v1602_v25  ;;  %v3567_v25 = vunpack.c.h.s8.bf16 %v1607_v7 }
 0x676   : > { %4587 = vmatprep.mubr.bf16.mxu0 %v7810_v60  ;;  %5612 = vmatprep.mubr.bf16.mxu1 %v7810_v60  ;;  %v1603_v60 = vld [vmem:[%s8002_s21 + $0x1e60] sm:$0xff] }
 0x677   : > { %v3553_v27 = vunpack.c.l.s8.bf16 %v1603_v60 }
 0x678   : > { %4558 = vmatpush1.bf16.msra.mxu0 %v3536_v1  ;;  %5583 = vmatpush1.bf16.msra.mxu1 %v3538_v56  ;;  %v3554_v1 = vunpack.c.l.s8.bf16 %v1604_v52  ;;  %v1601_v56 = vld [vmem:[%s8002_s21 + $0x1e50] sm:$0xff] }
 0x679   : > { %4559 = vmatprep.subr.bf16.mxu0 %v3542_v43  ;;  %5584 = vmatprep.subr.bf16.mxu1 %v3544_v15  ;;  %v3551_v43 = vunpack.c.l.s8.bf16 %v1601_v56  ;;  %v3559_v15 = vunpack.c.h.s8.bf16 %v1604_v52  ;;  %v3556_v14 = vunpack.c.h.s8.bf16 %v1601_v56  ;;  %v655_v56 = vld [vmem:[%s8002_s21 + $0xc0] sm:$0xff] }
 0x67c   : > { %4560 = vmatpush1.bf16.msra.mxu0 %v3541_v3  ;;  %5585 = vmatpush1.bf16.msra.mxu1 %v3543_v12  ;;  %v1609_v3 = vld [vmem:[%s8002_s21 + $0x1e90] sm:$0xff]  ;;  %v3558_v12 = vunpack.c.h.s8.bf16 %v1603_v60 }
 0x67d   : > { %4561 = vmatprep.subr.bf16.mxu0 %v3547_v48  ;;  %5586 = vmatprep.subr.bf16.mxu1 %v3549_v59  ;;  %v3562_v48 = vunpack.c.l.s8.bf16 %v1607_v7  ;;  %v3564_v59 = vunpack.c.l.s8.bf16 %v1609_v3  ;;  %v3569_v52 = vunpack.c.h.s8.bf16 %v1609_v3 }
 0x680   : > { %4562 = vmatpush1.bf16.msra.mxu0 %v3546_v41  ;;  %5587 = vmatpush1.bf16.msra.mxu1 %v3548_v46  ;;  %v1606_v41 = vld [vmem:[%s8002_s21 + $0x1e78] sm:$0xff]  ;;  %v1608_v46 = vld [vmem:[%s8002_s21 + $0x1e88] sm:$0xff] }
 0x681   : > { %4563 = vmatprep.subr.bf16.mxu0 %v3552_v11  ;;  %5588 = vmatprep.subr.bf16.mxu1 %v3554_v1  ;;  %v3561_v11 = vunpack.c.l.s8.bf16 %v1606_v41  ;;  %v3563_v1 = vunpack.c.l.s8.bf16 %v1608_v46  ;;  %v3566_v60 = vunpack.c.h.s8.bf16 %v1606_v41  ;;  %v1660_v41 = vunpack.c.h.s8.bf16 %v655_v56 }
 0x684   : > { %4564 = vmatpush1.bf16.msra.mxu0 %v3551_v43  ;;  %5589 = vmatpush1.bf16.msra.mxu1 %v3553_v27  ;;  %v695_v43 = vld [vmem:[%s8002_s21 + $0x200] sm:$0xff]  ;;  %v3568_v27 = vunpack.c.h.s8.bf16 %v1608_v46 }
 0x685   : > { %4565 = vmatprep.subr.bf16.mxu0 %v3557_v28  ;;  %5590 = vmatprep.subr.bf16.mxu1 %v3559_v15  ;;  %v6842_v28 = vld.sshfl [vmem:[%s9576_s0 + $0x60] sm:$0x3 pattern:$0x76325410]  ;;  %v1655_v15 = vunpack.c.l.s8.bf16 %v655_v56  ;;  %v1740_v46 = vunpack.c.h.s8.bf16 %v695_v43 }
 0x686   : > { %v9270_v7 = vpack.c.bf16 %v6842_v28, %v6842_v28  ;;  %v640_v28 = vld [vmem:[%s8002_s21 + $0x48] sm:$0xff] }
 0x687   : > { %v1625_v56 = vunpack.c.l.s8.bf16 %v640_v28 }
 0x688   : > { %4566 = vmatpush1.bf16.msra.mxu0 %v3556_v14  ;;  %5591 = vmatpush1.bf16.msra.mxu1 %v3558_v12  ;;  %v1735_v14 = vunpack.c.l.s8.bf16 %v695_v43  ;;  %v635_v12 = vld [vmem:[%s8002_s21 + $0x20] sm:$0xff] }
 0x689   : > { %4567 = vmatprep.subr.bf16.mxu0 %v3562_v48  ;;  %5592 = vmatprep.subr.bf16.mxu1 %v3564_v59  ;;  %v675_v48 = vld [vmem:[%s8002_s21 + $0x160] sm:$0xff]  ;;  %v1615_v3 = vunpack.c.l.s8.bf16 %v635_v12 }
 0x68a   : > { %v1695_v59 = vunpack.c.l.s8.bf16 %v675_v48 }
 0x68c   : > { %4568 = vmatpush1.bf16.msra.mxu0 %v3561_v11  ;;  %5593 = vmatpush1.bf16.msra.mxu1 %v3563_v1  ;;  %v660_v11 = vld [vmem:[%s8002_s21 + $0xe8] sm:$0xff] }
 0x68d   : > { %4569 = vmatprep.subr.bf16.mxu0 %v3567_v25  ;;  %5594 = vmatprep.subr.bf16.mxu1 %v3569_v52  ;;  %v700_v1 = vld [vmem:[%s8002_s21 + $0x228] sm:$0xff]  ;;  %v1620_v25 = vunpack.c.h.s8.bf16 %v635_v12  ;;  %v1700_v52 = vunpack.c.h.s8.bf16 %v675_v48  ;;  %v665_v48 = vld [vmem:[%s8002_s21 + $0x110] sm:$0xff] }
 0x68e   : > { %v1750_v12 = vunpack.c.h.s8.bf16 %v700_v1 }
 0x690   : > { %4570 = vmatpush1.bf16.msra.mxu0 %v3566_v60  ;;  %5595 = vmatpush1.bf16.msra.mxu1 %v3568_v27  ;;  %v1665_v60 = vunpack.c.l.s8.bf16 %v660_v11  ;;  %v1745_v27 = vunpack.c.l.s8.bf16 %v700_v1  ;;  %v1680_v1 = vunpack.c.h.s8.bf16 %v665_v48 }
 0x691   : > { %6849 = vmatprep.subr.bf16.mxu0 %v1655_v15  ;;  %6871 = vmatprep.subr.bf16.mxu1 %v1735_v14  ;;  %v680_v15 = vld [vmem:[%s8002_s21 + $0x188] sm:$0xff]  ;;  %v1670_v14 = vunpack.c.h.s8.bf16 %v660_v11 }
 0x692   : > { %v1705_v43 = vunpack.c.l.s8.bf16 %v680_v15 }
 0x693   : > { %4588 = vmatmul.mubr.bf16.vlgmr.msra.gmra.mrb[0].mxu0 %v9270_v7  ;;  %5613 = vmatmul.mubr.bf16.vlgmr.msra.gmra.mrb[0].mxu1 %v9270_v7 }
 0x694   : > { %6850 = vmatpush3.bf16.msra.mxu0 %v1615_v3  ;;  %6872 = vmatpush3.bf16.msra.mxu1 %v1695_v59  ;;  %v705_v3 = vld [vmem:[%s8002_s21 + $0x250] sm:$0xff]  ;;  %v1630_v59 = vunpack.c.h.s8.bf16 %v640_v28  ;;  %v710_v28 = vld [vmem:[%s8002_s21 + $0x278] sm:$0xff] }
 0x695   : > { %6851 = vmatprep.subr.bf16.mxu0 %v1660_v41  ;;  %6873 = vmatprep.subr.bf16.mxu1 %v1740_v46  ;;  %v1710_v41 = vunpack.c.h.s8.bf16 %v680_v15  ;;  %v645_v46 = vld [vmem:[%s8002_s21 + $0x70] sm:$0xff] }
 0x696   : > { %5653 = vmatprep.mubr.bf16.mxu0 %v8050_v51  ;;  %5693 = vmatprep.mubr.bf16.mxu1 %v8087_v62  ;;  %v1675_v51 = vunpack.c.l.s8.bf16 %v665_v48  ;;  %v1755_v62 = vunpack.c.l.s8.bf16 %v705_v3  ;;  %v1640_v15 = vunpack.c.h.s8.bf16 %v645_v46 }
 0x698   : > { %6852 = vmatpush3.bf16.msra.mxu0 %v1620_v25  ;;  %6874 = vmatpush3.bf16.msra.mxu1 %v1700_v52  ;;  %v685_v25 = vld [vmem:[%s8002_s21 + $0x1b0] sm:$0xff]  ;;  %v1635_v52 = vunpack.c.l.s8.bf16 %v645_v46  ;;  %v775_v46 = vld [vmem:[%s8002_s21 + $0x480] sm:$0xff] }
 0x699   : > { %6853 = vmatprep.subr.bf16.mxu0 %v1665_v60  ;;  %6875 = vmatprep.subr.bf16.mxu1 %v1745_v27  ;;  %v1715_v11 = vunpack.c.l.s8.bf16 %v685_v25  ;;  %v1760_v60 = vunpack.c.h.s8.bf16 %v705_v3  ;;  %v670_v27 = vld [vmem:[%s8002_s21 + $0x138] sm:$0xff] }
 0x69a   : > { %v1690_v3 = vunpack.c.h.s8.bf16 %v670_v27 }
 0x69c   : > { %6854 = vmatpush3.bf16.msra.mxu0 %v1625_v56  ;;  %6876 = vmatpush3.bf16.msra.mxu1 %v1705_v43  ;;  %v1720_v56 = vunpack.c.h.s8.bf16 %v685_v25  ;;  %v1685_v43 = vunpack.c.l.s8.bf16 %v670_v27 }
 0x69d   : > { %6855 = vmatprep.subr.bf16.mxu0 %v1670_v14  ;;  %6877 = vmatprep.subr.bf16.mxu1 %v1750_v12  ;;  %v1765_v14 = vunpack.c.l.s8.bf16 %v710_v28  ;;  %v650_v12 = vld [vmem:[%s8002_s21 + $0x98] sm:$0xff] }
 0x69e   : > { %v1650_v25 = vunpack.c.h.s8.bf16 %v650_v12 }
 0x6a0   : > { %6856 = vmatpush3.bf16.msra.mxu0 %v1630_v59  ;;  %6878 = vmatpush3.bf16.msra.mxu1 %v1710_v41  ;;  %v690_v59 = vld [vmem:[%s8002_s21 + $0x1d8] sm:$0xff]  ;;  %v1645_v41 = vunpack.c.l.s8.bf16 %v650_v12  ;;  %v780_v12 = vld [vmem:[%s8002_s21 + $0x4a8] sm:$0xff] }
 0x6a1   : > { %6857 = vmatprep.subr.bf16.mxu0 %v1675_v51  ;;  %6879 = vmatprep.subr.bf16.mxu1 %v1755_v62  ;;  %v1725_v48 = vunpack.c.l.s8.bf16 %v690_v59  ;;  %v1770_v51 = vunpack.c.h.s8.bf16 %v710_v28  ;;  %v735_v62 = vld [vmem:[%s8002_s21 + $0x340] sm:$0xff]  ;;  %v1900_v28 = vunpack.c.h.s8.bf16 %v775_v46 }
 0x6a2   : > { %v1820_v27 = vunpack.c.h.s8.bf16 %v735_v62 }
 0x6a4   : > { %6858 = vmatpush3.bf16.msra.mxu0 %v1635_v52  ;;  %6880 = vmatpush3.bf16.msra.mxu1 %v1715_v11  ;;  %v1730_v52 = vunpack.c.h.s8.bf16 %v690_v59  ;;  %v1815_v11 = vunpack.c.l.s8.bf16 %v735_v62 }
 0x6a5   : > { %6859 = vmatprep.subr.bf16.mxu0 %v1680_v1  ;;  %6881 = vmatprep.subr.bf16.mxu1 %v1760_v60  ;;  %v715_v1 = vld [vmem:[%s8002_s21 + $0x2a0] sm:$0xff]  ;;  %v1895_v60 = vunpack.c.l.s8.bf16 %v775_v46  ;;  %v1910_v46 = vunpack.c.h.s8.bf16 %v780_v12 }
 0x6a6   : > { %v1780_v59 = vunpack.c.h.s8.bf16 %v715_v1 }
 0x6a8   : > { %6860 = vmatpush3.bf16.msra.mxu0 %v1640_v15  ;;  %6882 = vmatpush3.bf16.msra.mxu1 %v1720_v56  ;;  %v755_v15 = vld [vmem:[%s8002_s21 + $0x3e0] sm:$0xff]  ;;  %v1775_v56 = vunpack.c.l.s8.bf16 %v715_v1 }
 0x6a9   : > { %6861 = vmatprep.subr.bf16.mxu0 %v1685_v43  ;;  %6883 = vmatprep.subr.bf16.mxu1 %v1765_v14  ;;  %v1855_v43 = vunpack.c.l.s8.bf16 %v755_v15  ;;  %v740_v14 = vld [vmem:[%s8002_s21 + $0x368] sm:$0xff] }
 0x6aa   : > { %v1830_v62 = vunpack.c.h.s8.bf16 %v740_v14 }
 0x6ac   : > { %6862 = vmatpush3.bf16.msra.mxu0 %v1645_v41  ;;  %6884 = vmatpush3.bf16.msra.mxu1 %v1725_v48  ;;  %v1860_v41 = vunpack.c.h.s8.bf16 %v755_v15  ;;  %v1825_v48 = vunpack.c.l.s8.bf16 %v740_v14 }
 0x6ad   : > { %6863 = vmatprep.subr.bf16.mxu0 %v1690_v3  ;;  %6885 = vmatprep.subr.bf16.mxu1 %v1770_v51  ;;  %v720_v3 = vld [vmem:[%s8002_s21 + $0x2c8] sm:$0xff]  ;;  %v1905_v51 = vunpack.c.l.s8.bf16 %v780_v12  ;;  %v750_v12 = vld [vmem:[%s8002_s21 + $0x3b8] sm:$0xff] }
 0x6ae   : > { %v1790_v1 = vunpack.c.h.s8.bf16 %v720_v3 }
 0x6b0   : > { %6864 = vmatpush3.bf16.msra.mxu0 %v1650_v25  ;;  %6886 = vmatpush3.bf16.msra.mxu1 %v1730_v52  ;;  %v760_v25 = vld [vmem:[%s8002_s21 + $0x408] sm:$0xff]  ;;  %v745_v52 = vld [vmem:[%s8002_s21 + $0x390] sm:$0xff] }
 0x6b1   : > { %6893 = vmatprep.subr.bf16.mxu0 %v1815_v11  ;;  %6915 = vmatprep.subr.bf16.mxu1 %v1895_v60  ;;  %v785_v11 = vld [vmem:[%s8002_s21 + $0x4d0] sm:$0xff]  ;;  %v1870_v60 = vunpack.c.h.s8.bf16 %v760_v25 }
 0x6b2   : > { %v1915_v15 = vunpack.c.l.s8.bf16 %v785_v11  ;;  %v1920_v14 = vunpack.c.h.s8.bf16 %v785_v11  ;;  %v815_v11 = vld [vmem:[%s8002_s21 + $0x5c0] sm:$0xff] }
 0x6b3   : > { %5654 = vmatmul.mubr.bf16.vlgmr.msra.gmra.mrb[4].mxu0 %v8083_v55  ;;  %5694 = vmatmul.mubr.bf16.vlgmr.msra.gmra.mrb[4].mxu1 %v8136_v34  ;;  %v1785_v55 = vunpack.c.l.s8.bf16 %v720_v3  ;;  %v1865_v34 = vunpack.c.l.s8.bf16 %v760_v25  ;;  %v1845_v3 = vunpack.c.l.s8.bf16 %v750_v12 }
 0x6b4   : > { %6894 = vmatpush3.bf16.msra.mxu0 %v1775_v56  ;;  %6916 = vmatpush3.bf16.msra.mxu1 %v1855_v43  ;;  %v765_v56 = vld [vmem:[%s8002_s21 + $0x430] sm:$0xff] }
 0x6b5   : > { %6895 = vmatprep.subr.bf16.mxu0 %v1820_v27  ;;  %6917 = vmatprep.subr.bf16.mxu1 %v1900_v28  ;;  %v1875_v27 = vunpack.c.l.s8.bf16 %v765_v56  ;;  %v1840_v28 = vunpack.c.h.s8.bf16 %v745_v52 }
 0x6b6   : > { %5733 = vmatprep.mubr.bf16.mxu0 %v8140_v44  ;;  %5773 = vmatprep.mubr.bf16.mxu1 %v8189_v29  ;;  %v1835_v44 = vunpack.c.l.s8.bf16 %v745_v52  ;;  %v725_v29 = vld [vmem:[%s8002_s21 + $0x2f0] sm:$0xff] }
 0x6b7   : > { %v1795_v43 = vunpack.c.l.s8.bf16 %v725_v29 }
 0x6b8   : > { %6896 = vmatpush3.bf16.msra.mxu0 %v1780_v59  ;;  %6918 = vmatpush3.bf16.msra.mxu1 %v1860_v41  ;;  %v790_v59 = vld [vmem:[%s8002_s21 + $0x4f8] sm:$0xff]  ;;  %v1800_v41 = vunpack.c.h.s8.bf16 %v725_v29  ;;  %v1975_v29 = vunpack.c.l.s8.bf16 %v815_v11 }
 0x6b9   : > { %6897 = vmatprep.subr.bf16.mxu0 %v1825_v48  ;;  %6919 = vmatprep.subr.bf16.mxu1 %v1905_v51  ;;  %v1880_v48 = vunpack.c.h.s8.bf16 %v765_v56  ;;  %v730_v51 = vld [vmem:[%s8002_s21 + $0x318] sm:$0xff]  ;;  %v1925_v25 = vunpack.c.l.s8.bf16 %v790_v59  ;;  %v1930_v52 = vunpack.c.h.s8.bf16 %v790_v59  ;;  %v820_v59 = vld [vmem:[%s8002_s21 + $0x5e8] sm:$0xff] }
 0x6bc   : > { %6898 = vmatpush3.bf16.msra.mxu0 %v1785_v55  ;;  %6920 = vmatpush3.bf16.msra.mxu1 %v1865_v34  ;;  %v770_v55 = vld [vmem:[%s8002_s21 + $0x458] sm:$0xff]  ;;  %v1805_v34 = vunpack.c.l.s8.bf16 %v730_v51 }
 0x6bd   : > { %6899 = vmatprep.subr.bf16.mxu0 %v1830_v62  ;;  %6921 = vmatprep.subr.bf16.mxu1 %v1910_v46  ;;  %v1885_v62 = vunpack.c.l.s8.bf16 %v770_v55  ;;  %v1850_v46 = vunpack.c.h.s8.bf16 %v750_v12 }
 0x6c0   : > { %6900 = vmatpush3.bf16.msra.mxu0 %v1790_v1  ;;  %6922 = vmatpush3.bf16.msra.mxu1 %v1870_v60  ;;  %v855_v1 = vld [vmem:[%s8002_s21 + $0x700] sm:$0xff]  ;;  %v1810_v60 = vunpack.c.h.s8.bf16 %v730_v51  ;;  %v1985_v51 = vunpack.c.l.s8.bf16 %v820_v59 }
 0x6c1   : > { %6901 = vmatprep.subr.bf16.mxu0 %v1835_v44  ;;  %6923 = vmatprep.subr.bf16.mxu1 %v1915_v15  ;;  %v1890_v44 = vunpack.c.h.s8.bf16 %v770_v55  ;;  %v795_v15 = vld [vmem:[%s8002_s21 + $0x520] sm:$0xff]  ;;  %v2055_v56 = vunpack.c.l.s8.bf16 %v855_v1  ;;  %v2060_v12 = vunpack.c.h.s8.bf16 %v855_v1 }
 0x6c4   : > { %6902 = vmatpush3.bf16.msra.mxu0 %v1795_v43  ;;  %6924 = vmatpush3.bf16.msra.mxu1 %v1875_v27  ;;  %v835_v43 = vld [vmem:[%s8002_s21 + $0x660] sm:$0xff]  ;;  %v1935_v27 = vunpack.c.l.s8.bf16 %v795_v15 }
 0x6c5   : > { %6903 = vmatprep.subr.bf16.mxu0 %v1840_v28  ;;  %6925 = vmatprep.subr.bf16.mxu1 %v1920_v14  ;;  %v2015_v28 = vunpack.c.l.s8.bf16 %v835_v43  ;;  %v1980_v14 = vunpack.c.h.s8.bf16 %v815_v11  ;;  %v865_v11 = vld [vmem:[%s8002_s21 + $0x750] sm:$0xff] }
 0x6c8   : > { %6904 = vmatpush3.bf16.msra.mxu0 %v1800_v41  ;;  %6926 = vmatpush3.bf16.msra.mxu1 %v1880_v48  ;;  %v860_v41 = vld [vmem:[%s8002_s21 + $0x728] sm:$0xff]  ;;  %v1940_v48 = vunpack.c.h.s8.bf16 %v795_v15 }
 0x6c9   : > { %6905 = vmatprep.subr.bf16.mxu0 %v1845_v3  ;;  %6927 = vmatprep.subr.bf16.mxu1 %v1925_v25  ;;  %v2020_v3 = vunpack.c.h.s8.bf16 %v835_v43  ;;  %v800_v25 = vld [vmem:[%s8002_s21 + $0x548] sm:$0xff]  ;;  %v2065_v55 = vunpack.c.l.s8.bf16 %v860_v41 }
 0x6ca   : > { %v1950_v1 = vunpack.c.h.s8.bf16 %v800_v25 }
 0x6cc   : > { %6906 = vmatpush3.bf16.msra.mxu0 %v1805_v34  ;;  %6928 = vmatpush3.bf16.msra.mxu1 %v1885_v62  ;;  %v840_v34 = vld [vmem:[%s8002_s21 + $0x688] sm:$0xff]  ;;  %v1990_v62 = vunpack.c.h.s8.bf16 %v820_v59 }
 0x6cd   : > { %6907 = vmatprep.subr.bf16.mxu0 %v1850_v46  ;;  %6929 = vmatprep.subr.bf16.mxu1 %v1930_v52  ;;  %v2070_v46 = vunpack.c.h.s8.bf16 %v860_v41  ;;  %v825_v52 = vld [vmem:[%s8002_s21 + $0x610] sm:$0xff] }
 0x6ce   : > { %v2000_v43 = vunpack.c.h.s8.bf16 %v825_v52 }
 0x6d0   : > { %6908 = vmatpush3.bf16.msra.mxu0 %v1810_v60  ;;  %6930 = vmatpush3.bf16.msra.mxu1 %v1890_v44  ;;  %v2030_v60 = vunpack.c.h.s8.bf16 %v840_v34  ;;  %v2075_v44 = vunpack.c.l.s8.bf16 %v865_v11 }
 0x6d1   : > { %6937 = vmatprep.subr.bf16.mxu0 %v1975_v29  ;;  %6959 = vmatprep.subr.bf16.mxu1 %v2055_v56  ;;  %v845_v29 = vld [vmem:[%s8002_s21 + $0x6b0] sm:$0xff] }
 0x6d2   : > { %v2035_v56 = vunpack.c.l.s8.bf16 %v845_v29  ;;  %v2040_v59 = vunpack.c.h.s8.bf16 %v845_v29 }
 0x6d3   : > { %5734 = vmatmul.mubr.bf16.vlgmr.msra.gmra.mrb[8].mxu0 %v8185_v20  ;;  %5774 = vmatmul.mubr.bf16.vlgmr.msra.gmra.mrb[8].mxu1 %v8238_v10  ;;  %v1945_v20 = vunpack.c.l.s8.bf16 %v800_v25  ;;  %v2025_v10 = vunpack.c.l.s8.bf16 %v840_v34 }
 0x6d4   : > { %6938 = vmatpush3.bf16.msra.mxu0 %v1935_v27  ;;  %6960 = vmatpush3.bf16.msra.mxu1 %v2015_v28  ;;  %v2080_v27 = vunpack.c.h.s8.bf16 %v865_v11  ;;  %v830_v28 = vld [vmem:[%s8002_s21 + $0x638] sm:$0xff] }
 0x6d5   : > { %6939 = vmatprep.subr.bf16.mxu0 %v1980_v14  ;;  %6961 = vmatprep.subr.bf16.mxu1 %v2060_v12  ;;  %v870_v14 = vld [vmem:[%s8002_s21 + $0x778] sm:$0xff]  ;;  %v2005_v41 = vunpack.c.l.s8.bf16 %v830_v28  ;;  %v2010_v34 = vunpack.c.h.s8.bf16 %v830_v28 }
 0x6d6   : > { %5813 = vmatprep.mubr.bf16.mxu0 %v8242_v17  ;;  %5853 = vmatprep.mubr.bf16.mxu1 %v8291_v18  ;;  %v1995_v17 = vunpack.c.l.s8.bf16 %v825_v52  ;;  %v805_v18 = vld [vmem:[%s8002_s21 + $0x570] sm:$0xff] }
 0x6d7   : > { %v1955_v15 = vunpack.c.l.s8.bf16 %v805_v18  ;;  %v1960_v12 = vunpack.c.h.s8.bf16 %v805_v18 }
 0x6d8   : > { %6940 = vmatpush3.bf16.msra.mxu0 %v1940_v48  ;;  %6962 = vmatpush3.bf16.msra.mxu1 %v2020_v3  ;;  %v810_v48 = vld [vmem:[%s8002_s21 + $0x598] sm:$0xff]  ;;  %v2085_v3 = vunpack.c.l.s8.bf16 %v870_v14 }
 0x6d9   : > { %6941 = vmatprep.subr.bf16.mxu0 %v1985_v51  ;;  %6963 = vmatprep.subr.bf16.mxu1 %v2065_v55  ;;  %v850_v51 = vld [vmem:[%s8002_s21 + $0x6d8] sm:$0xff]  ;;  %v1965_v25 = vunpack.c.l.s8.bf16 %v810_v48 }
 0x6da   : > { %v2045_v55 = vunpack.c.l.s8.bf16 %v850_v51  ;;  %v2050_v52 = vunpack.c.h.s8.bf16 %v850_v51  ;;  %v905_v51 = vld [vmem:[%s8002_s21 + $0x890] sm:$0xff] }
 0x6dc   : > { %6942 = vmatpush3.bf16.msra.mxu0 %v1945_v20  ;;  %6964 = vmatpush3.bf16.msra.mxu1 %v2025_v10  ;;  %v2090_v20 = vunpack.c.h.s8.bf16 %v870_v14  ;;  %v895_v10 = vld [vmem:[%s8002_s21 + $0x840] sm:$0xff] }
 0x6dd   : > { %6943 = vmatprep.subr.bf16.mxu0 %v1990_v62  ;;  %6965 = vmatprep.subr.bf16.mxu1 %v2070_v46  ;;  %v935_v62 = vld [vmem:[%s8002_s21 + $0x980] sm:$0xff]  ;;  %v1970_v46 = vunpack.c.h.s8.bf16 %v810_v48  ;;  %v2135_v11 = vunpack.c.l.s8.bf16 %v895_v10  ;;  %v2140_v29 = vunpack.c.h.s8.bf16 %v895_v10  ;;  %v925_v10 = vld [vmem:[%s8002_s21 + $0x930] sm:$0xff] }
 0x6e0   : > { %6944 = vmatpush3.bf16.msra.mxu0 %v1950_v1  ;;  %6966 = vmatpush3.bf16.msra.mxu1 %v2030_v60  ;;  %v875_v1 = vld [vmem:[%s8002_s21 + $0x7a0] sm:$0xff]  ;;  %v2215_v60 = vunpack.c.l.s8.bf16 %v935_v62 }
 0x6e1   : > { %6945 = vmatprep.subr.bf16.mxu0 %v1995_v17  ;;  %6967 = vmatprep.subr.bf16.mxu1 %v2075_v44  ;;  %v915_v17 = vld [vmem:[%s8002_s21 + $0x8e0] sm:$0xff]  ;;  %v2095_v18 = vunpack.c.l.s8.bf16 %v875_v1 }
 0x6e2   : > { %v2175_v44 = vunpack.c.l.s8.bf16 %v915_v17  ;;  %v2180_v28 = vunpack.c.h.s8.bf16 %v915_v17 }
 0x6e4   : > { %6946 = vmatpush3.bf16.msra.mxu0 %v1955_v15  ;;  %6968 = vmatpush3.bf16.msra.mxu1 %v2035_v56  ;;  %v2220_v15 = vunpack.c.h.s8.bf16 %v935_v62  ;;  %v900_v56 = vld [vmem:[%s8002_s21 + $0x868] sm:$0xff] }
 0x6e5   : > { %6947 = vmatprep.subr.bf16.mxu0 %v2000_v43  ;;  %6969 = vmatprep.subr.bf16.mxu1 %v2080_v27  ;;  %v940_v43 = vld [vmem:[%s8002_s21 + $0x9a8] sm:$0xff]  ;;  %v2100_v27 = vunpack.c.h.s8.bf16 %v875_v1  ;;  %v2145_v14 = vunpack.c.l.s8.bf16 %v900_v56  ;;  %v2150_v48 = vunpack.c.h.s8.bf16 %v900_v56  ;;  %v910_v1 = vld [vmem:[%s8002_s21 + $0x8b8] sm:$0xff] }
 0x6e6   : > { %v930_v56 = vld [vmem:[%s8002_s21 + $0x958] sm:$0xff] }
 0x6e8   : > { %6948 = vmatpush3.bf16.msra.mxu0 %v1960_v12  ;;  %6970 = vmatpush3.bf16.msra.mxu1 %v2040_v59  ;;  %v880_v12 = vld [vmem:[%s8002_s21 + $0x7c8] sm:$0xff]  ;;  %v2225_v59 = vunpack.c.l.s8.bf16 %v940_v43 }
 0x6e9   : > { %6949 = vmatprep.subr.bf16.mxu0 %v2005_v41  ;;  %6971 = vmatprep.subr.bf16.mxu1 %v2085_v3  ;;  %v920_v41 = vld [vmem:[%s8002_s21 + $0x908] sm:$0xff]  ;;  %v2230_v3 = vunpack.c.h.s8.bf16 %v940_v43 }
 0x6ec   : > { %6950 = vmatpush3.bf16.msra.mxu0 %v1965_v25  ;;  %6972 = vmatpush3.bf16.msra.mxu1 %v2045_v55  ;;  %v945_v25 = vld [vmem:[%s8002_s21 + $0x9d0] sm:$0xff]  ;;  %v2110_v55 = vunpack.c.h.s8.bf16 %v880_v12 }
 0x6ed   : > { %6951 = vmatprep.subr.bf16.mxu0 %v2010_v34  ;;  %6973 = vmatprep.subr.bf16.mxu1 %v2090_v20  ;;  %v2190_v34 = vunpack.c.h.s8.bf16 %v920_v41  ;;  %v2235_v20 = vunpack.c.l.s8.bf16 %v945_v25 }
 0x6f0   : > { %6952 = vmatpush3.bf16.msra.mxu0 %v1970_v46  ;;  %6974 = vmatpush3.bf16.msra.mxu1 %v2050_v52  ;;  %v2195_v46 = vunpack.c.l.s8.bf16 %v925_v10  ;;  %v2160_v52 = vunpack.c.h.s8.bf16 %v905_v51 }
 0x6f1   : > { %6981 = vmatprep.subr.bf16.mxu0 %v2135_v11  ;;  %7003 = vmatprep.subr.bf16.mxu1 %v2215_v60  ;;  %v2240_v11 = vunpack.c.h.s8.bf16 %v945_v25  ;;  %v950_v60 = vld [vmem:[%s8002_s21 + $0x9f8] sm:$0xff] }
 0x6f3   : > { %5814 = vmatmul.mubr.bf16.vlgmr.msra.gmra.mrb[12].mxu0 %v8287_v6  ;;  %5854 = vmatmul.mubr.bf16.vlgmr.msra.gmra.mrb[12].mxu1 %v8340_v5  ;;  %v2105_v6 = vunpack.c.l.s8.bf16 %v880_v12  ;;  %v2185_v5 = vunpack.c.l.s8.bf16 %v920_v41  ;;  %v975_v12 = vld [vmem:[%s8002_s21 + $0xac0] sm:$0xff] }
 0x6f4   : > { %6982 = vmatpush3.bf16.msra.mxu0 %v2095_v18  ;;  %7004 = vmatpush3.bf16.msra.mxu1 %v2175_v44  ;;  %v2200_v18 = vunpack.c.h.s8.bf16 %v925_v10  ;;  %v2165_v44 = vunpack.c.l.s8.bf16 %v910_v1 }
 0x6f5   : > { %6983 = vmatprep.subr.bf16.mxu0 %v2140_v29  ;;  %7005 = vmatprep.subr.bf16.mxu1 %v2220_v15  ;;  %v890_v29 = vld [vmem:[%s8002_s21 + $0x818] sm:$0xff]  ;;  %v2245_v15 = vunpack.c.l.s8.bf16 %v950_v60 }
 0x6f6   : > { %5893 = vmatprep.mubr.bf16.mxu0 %v8344_v2  ;;  %5933 = vmatprep.mubr.bf16.mxu1 %v8393_v21  ;;  %v2155_v2 = vunpack.c.l.s8.bf16 %v905_v51  ;;  %v885_v21 = vld [vmem:[%s8002_s21 + $0x7f0] sm:$0xff]  ;;  %v2125_v43 = vunpack.c.l.s8.bf16 %v890_v29  ;;  %v2130_v41 = vunpack.c.h.s8.bf16 %v890_v29  ;;  %v995_v51 = vld [vmem:[%s8002_s21 + $0xb60] sm:$0xff] }
 0x6f7   : > { %v2115_v62 = vunpack.c.l.s8.bf16 %v885_v21  ;;  %v2120_v17 = vunpack.c.h.s8.bf16 %v885_v21  ;;  %v980_v21 = vld [vmem:[%s8002_s21 + $0xae8] sm:$0xff] }
 0x6f8   : > { %6984 = vmatpush3.bf16.msra.mxu0 %v2100_v27  ;;  %7006 = vmatpush3.bf16.msra.mxu1 %v2180_v28  ;;  %v2205_v27 = vunpack.c.l.s8.bf16 %v930_v56  ;;  %v2170_v28 = vunpack.c.h.s8.bf16 %v910_v1  ;;  %v1000_v1 = vld [vmem:[%s8002_s21 + $0xb88] sm:$0xff] }
 0x6f9   : > { %6985 = vmatprep.subr.bf16.mxu0 %v2145_v14  ;;  %7007 = vmatprep.subr.bf16.mxu1 %v2225_v59  ;;  %v2250_v14 = vunpack.c.h.s8.bf16 %v950_v60  ;;  %v1015_v59 = vld [vmem:[%s8002_s21 + $0xc00] sm:$0xff]  ;;  %v2310_v60 = vunpack.c.h.s8.bf16 %v980_v21 }
 0x6fc   : > { %6986 = vmatpush3.bf16.msra.mxu0 %v2105_v6  ;;  %7008 = vmatpush3.bf16.msra.mxu1 %v2185_v5  ;;  %v2210_v6 = vunpack.c.h.s8.bf16 %v930_v56  ;;  %v2295_v5 = vunpack.c.l.s8.bf16 %v975_v12 }
 0x6fd   : > { %6987 = vmatprep.subr.bf16.mxu0 %v2150_v48  ;;  %7009 = vmatprep.subr.bf16.mxu1 %v2230_v3  ;;  %v955_v48 = vld [vmem:[%s8002_s21 + $0xa20] sm:$0xff]  ;;  %v2375_v3 = vunpack.c.l.s8.bf16 %v1015_v59 }
 0x6fe   : > { %v2255_v25 = vunpack.c.l.s8.bf16 %v955_v48  ;;  %v2260_v10 = vunpack.c.h.s8.bf16 %v955_v48 }
 0x700   : > { %6988 = vmatpush3.bf16.msra.mxu0 %v2110_v55  ;;  %7010 = vmatpush3.bf16.msra.mxu1 %v2190_v34  ;;  %v2335_v55 = vunpack.c.l.s8.bf16 %v995_v51  ;;  %v2300_v34 = vunpack.c.h.s8.bf16 %v975_v12 }
 0x701   : > { %6989 = vmatprep.subr.bf16.mxu0 %v2155_v2  ;;  %7011 = vmatprep.subr.bf16.mxu1 %v2235_v20  ;;  %v2380_v2 = vunpack.c.h.s8.bf16 %v1015_v59  ;;  %v1020_v20 = vld [vmem:[%s8002_s21 + $0xc28] sm:$0xff]  ;;  %v990_v59 = vld [vmem:[%s8002_s21 + $0xb38] sm:$0xff] }
 0x702   : > { %v2325_v48 = vunpack.c.l.s8.bf16 %v990_v59 }
 0x704   : > { %6990 = vmatpush3.bf16.msra.mxu0 %v2115_v62  ;;  %7012 = vmatpush3.bf16.msra.mxu1 %v2195_v46  ;;  %v2340_v62 = vunpack.c.h.s8.bf16 %v995_v51  ;;  %v2305_v46 = vunpack.c.l.s8.bf16 %v980_v21 }
 0x705   : > { %6991 = vmatprep.subr.bf16.mxu0 %v2160_v52  ;;  %7013 = vmatprep.subr.bf16.mxu1 %v2240_v11  ;;  %v960_v52 = vld [vmem:[%s8002_s21 + $0xa48] sm:$0xff]  ;;  %v2385_v11 = vunpack.c.l.s8.bf16 %v1020_v20 }
 0x706   : > { %v2270_v29 = vunpack.c.h.s8.bf16 %v960_v52 }
 0x708   : > { %6992 = vmatpush3.bf16.msra.mxu0 %v2120_v17  ;;  %7014 = vmatpush3.bf16.msra.mxu1 %v2200_v18  ;;  %v2390_v17 = vunpack.c.h.s8.bf16 %v1020_v20  ;;  %v985_v18 = vld [vmem:[%s8002_s21 + $0xb10] sm:$0xff]  ;;  %v1055_v20 = vld [vmem:[%s8002_s21 + $0xd40] sm:$0xff] }
 0x709   : > { %6993 = vmatprep.subr.bf16.mxu0 %v2165_v44  ;;  %7015 = vmatprep.subr.bf16.mxu1 %v2245_v15  ;;  %v1025_v44 = vld [vmem:[%s8002_s21 + $0xc50] sm:$0xff]  ;;  %v2350_v15 = vunpack.c.h.s8.bf16 %v1000_v1 }
 0x70a   : > { %v2395_v56 = vunpack.c.l.s8.bf16 %v1025_v44  ;;  %v2400_v12 = vunpack.c.h.s8.bf16 %v1025_v44  ;;  %v1060_v44 = vld [vmem:[%s8002_s21 + $0xd68] sm:$0xff] }
 0x70c   : > { %6994 = vmatpush3.bf16.msra.mxu0 %v2125_v43  ;;  %7016 = vmatpush3.bf16.msra.mxu1 %v2205_v27  ;;  %v1005_v43 = vld [vmem:[%s8002_s21 + $0xbb0] sm:$0xff] }
 0x70d   : > { %6995 = vmatprep.subr.bf16.mxu0 %v2170_v28  ;;  %7017 = vmatprep.subr.bf16.mxu1 %v2250_v14  ;;  %v2355_v28 = vunpack.c.l.s8.bf16 %v1005_v43  ;;  %v2320_v14 = vunpack.c.h.s8.bf16 %v985_v18 }
 0x710   : > { %6996 = vmatpush3.bf16.msra.mxu0 %v2130_v41  ;;  %7018 = vmatpush3.bf16.msra.mxu1 %v2210_v6  ;;  %v1030_v41 = vld [vmem:[%s8002_s21 + $0xc78] sm:$0xff] }
 0x711   : > { %7025 = vmatprep.subr.bf16.mxu0 %v2295_v5  ;;  %7047 = vmatprep.subr.bf16.mxu1 %v2375_v3  ;;  %v2360_v5 = vunpack.c.h.s8.bf16 %v1005_v43  ;;  %v970_v3 = vld [vmem:[%s8002_s21 + $0xa98] sm:$0xff]  ;;  %v2405_v51 = vunpack.c.l.s8.bf16 %v1030_v41  ;;  %v2410_v21 = vunpack.c.h.s8.bf16 %v1030_v41 }
 0x713   : > { %5894 = vmatmul.mubr.bf16.vlgmr.msra.gmra.mrb[16].mxu0 %v8389_v13  ;;  %5934 = vmatmul.mubr.bf16.vlgmr.msra.gmra.mrb[16].mxu1 %v8442_v22  ;;  %v2265_v13 = vunpack.c.l.s8.bf16 %v960_v52  ;;  %v2345_v22 = vunpack.c.l.s8.bf16 %v1000_v1  ;;  %v2455_v52 = vunpack.c.l.s8.bf16 %v1055_v20 }
 0x714   : > { %7026 = vmatpush3.bf16.msra.mxu0 %v2255_v25  ;;  %7048 = vmatpush3.bf16.msra.mxu1 %v2335_v55  ;;  %v1010_v25 = vld [vmem:[%s8002_s21 + $0xbd8] sm:$0xff]  ;;  %v2285_v55 = vunpack.c.l.s8.bf16 %v970_v3 }
 0x715   : > { %7027 = vmatprep.subr.bf16.mxu0 %v2300_v34  ;;  %7049 = vmatprep.subr.bf16.mxu1 %v2380_v2  ;;  %v2365_v34 = vunpack.c.l.s8.bf16 %v1010_v25  ;;  %v2330_v2 = vunpack.c.h.s8.bf16 %v990_v59  ;;  %v1105_v59 = vld [vmem:[%s8002_s21 + $0xed0] sm:$0xff] }
 0x716   : > { %5973 = vmatprep.mubr.bf16.mxu0 %v8446_v31  ;;  %6013 = vmatprep.mubr.bf16.mxu1 %v8495_v49  ;;  %v2315_v31 = vunpack.c.l.s8.bf16 %v985_v18  ;;  %v965_v49 = vld [vmem:[%s8002_s21 + $0xa70] sm:$0xff] }
 0x717   : > { %v2275_v27 = vunpack.c.l.s8.bf16 %v965_v49  ;;  %v2280_v6 = vunpack.c.h.s8.bf16 %v965_v49  ;;  %v2465_v49 = vunpack.c.l.s8.bf16 %v1060_v44 }
 0x718   : > { %7028 = vmatpush3.bf16.msra.mxu0 %v2260_v10  ;;  %7050 = vmatpush3.bf16.msra.mxu1 %v2340_v62  ;;  %v1095_v10 = vld [vmem:[%s8002_s21 + $0xe80] sm:$0xff]  ;;  %v2290_v62 = vunpack.c.h.s8.bf16 %v970_v3 }
 0x719   : > { %7029 = vmatprep.subr.bf16.mxu0 %v2305_v46  ;;  %7051 = vmatprep.subr.bf16.mxu1 %v2385_v11  ;;  %v2370_v46 = vunpack.c.h.s8.bf16 %v1010_v25  ;;  %v1035_v11 = vld [vmem:[%s8002_s21 + $0xca0] sm:$0xff]  ;;  %v2535_v1 = vunpack.c.l.s8.bf16 %v1095_v10  ;;  %v2540_v18 = vunpack.c.h.s8.bf16 %v1095_v10 }
 0x71c   : > { %7030 = vmatpush3.bf16.msra.mxu0 %v2265_v13  ;;  %7052 = vmatpush3.bf16.msra.mxu1 %v2345_v22  ;;  %v1075_v13 = vld [vmem:[%s8002_s21 + $0xde0] sm:$0xff]  ;;  %v2415_v22 = vunpack.c.l.s8.bf16 %v1035_v11 }
 0x71d   : > { %7031 = vmatprep.subr.bf16.mxu0 %v2310_v60  ;;  %7053 = vmatprep.subr.bf16.mxu1 %v2390_v17  ;;  %v2495_v60 = vunpack.c.l.s8.bf16 %v1075_v13  ;;  %v2460_v17 = vunpack.c.h.s8.bf16 %v1055_v20 }
 0x720   : > { %7032 = vmatpush3.bf16.msra.mxu0 %v2270_v29  ;;  %7054 = vmatpush3.bf16.msra.mxu1 %v2350_v15  ;;  %v1100_v29 = vld [vmem:[%s8002_s21 + $0xea8] sm:$0xff]  ;;  %v2420_v15 = vunpack.c.h.s8.bf16 %v1035_v11 }
 0x721   : > { %7033 = vmatprep.subr.bf16.mxu0 %v2315_v31  ;;  %7055 = vmatprep.subr.bf16.mxu1 %v2395_v56  ;;  %v2500_v31 = vunpack.c.h.s8.bf16 %v1075_v13  ;;  %v1040_v56 = vld [vmem:[%s8002_s21 + $0xcc8] sm:$0xff]  ;;  %v2545_v43 = vunpack.c.l.s8.bf16 %v1100_v29 }
 0x722   : > { %v2430_v41 = vunpack.c.h.s8.bf16 %v1040_v56 }
 0x724   : > { %7034 = vmatpush3.bf16.msra.mxu0 %v2275_v27  ;;  %7056 = vmatpush3.bf16.msra.mxu1 %v2355_v28  ;;  %v1080_v27 = vld [vmem:[%s8002_s21 + $0xe08] sm:$0xff]  ;;  %v2470_v28 = vunpack.c.h.s8.bf16 %v1060_v44 }
 0x725   : > { %7035 = vmatprep.subr.bf16.mxu0 %v2320_v14  ;;  %7057 = vmatprep.subr.bf16.mxu1 %v2400_v12  ;;  %v2550_v14 = vunpack.c.h.s8.bf16 %v1100_v29  ;;  %v1065_v12 = vld [vmem:[%s8002_s21 + $0xd90] sm:$0xff] }
 0x726   : > { %v2480_v25 = vunpack.c.h.s8.bf16 %v1065_v12 }
 0x728   : > { %7036 = vmatpush3.bf16.msra.mxu0 %v2280_v6  ;;  %7058 = vmatpush3.bf16.msra.mxu1 %v2360_v5  ;;  %v2510_v6 = vunpack.c.h.s8.bf16 %v1080_v27  ;;  %v2555_v5 = vunpack.c.l.s8.bf16 %v1105_v59 }
 0x729   : > { %7037 = vmatprep.subr.bf16.mxu0 %v2325_v48  ;;  %7059 = vmatprep.subr.bf16.mxu1 %v2405_v51  ;;  %v1085_v48 = vld [vmem:[%s8002_s21 + $0xe30] sm:$0xff] }
 0x72a   : > { %v2515_v51 = vunpack.c.l.s8.bf16 %v1085_v48  ;;  %v2520_v20 = vunpack.c.h.s8.bf16 %v1085_v48  ;;  %v1145_v48 = vld [vmem:[%s8002_s21 + $0x1010] sm:$0xff] }
 0x72c   : > { %7038 = vmatpush3.bf16.msra.mxu0 %v2285_v55  ;;  %7060 = vmatpush3.bf16.msra.mxu1 %v2365_v34  ;;  %v2560_v55 = vunpack.c.h.s8.bf16 %v1105_v59  ;;  %v1070_v34 = vld [vmem:[%s8002_s21 + $0xdb8] sm:$0xff] }
 0x72d   : > { %7039 = vmatprep.subr.bf16.mxu0 %v2330_v2  ;;  %7061 = vmatprep.subr.bf16.mxu1 %v2410_v21  ;;  %v1110_v2 = vld [vmem:[%s8002_s21 + $0xef8] sm:$0xff]  ;;  %v2485_v10 = vunpack.c.l.s8.bf16 %v1070_v34  ;;  %v2490_v13 = vunpack.c.h.s8.bf16 %v1070_v34  ;;  %v1165_v34 = vld [vmem:[%s8002_s21 + $0x10b0] sm:$0xff] }
 0x730   : > { %7040 = vmatpush3.bf16.msra.mxu0 %v2290_v62  ;;  %7062 = vmatpush3.bf16.msra.mxu1 %v2370_v46  ;;  %v1050_v62 = vld [vmem:[%s8002_s21 + $0xd18] sm:$0xff]  ;;  %v2565_v46 = vunpack.c.l.s8.bf16 %v1110_v2 }
 0x731   : > { %7069 = vmatprep.subr.bf16.mxu0 %v2455_v52  ;;  %7091 = vmatprep.subr.bf16.mxu1 %v2535_v1  ;;  %v1090_v52 = vld [vmem:[%s8002_s21 + $0xe58] sm:$0xff]  ;;  %v2445_v11 = vunpack.c.l.s8.bf16 %v1050_v62 }
 0x732   : > { %v2525_v1 = vunpack.c.l.s8.bf16 %v1090_v52  ;;  %v2530_v44 = vunpack.c.h.s8.bf16 %v1090_v52  ;;  %v6637_v52 = vsub.s32 3, %v8026_v26 }
 0x733   : > { %5974 = vmatmul.mubr.bf16.vlgmr.msra.gmra.mrb[20].mxu0 %v8491_v40  ;;  %6014 = vmatmul.mubr.bf16.vlgmr.msra.gmra.mrb[20].mxu1 %v8544_v63  ;;  %v2425_v40 = vunpack.c.l.s8.bf16 %v1040_v56  ;;  %v2505_v63 = vunpack.c.l.s8.bf16 %v1080_v27 }
 0x734   : > { %7070 = vmatpush3.bf16.msra.mxu0 %v2415_v22  ;;  %7092 = vmatpush3.bf16.msra.mxu1 %v2495_v60  ;;  %v2570_v22 = vunpack.c.h.s8.bf16 %v1110_v2  ;;  %v1135_v60 = vld [vmem:[%s8002_s21 + $0xfc0] sm:$0xff]  ;;  %v6625_v2 = vsub.s32 0, %v8026_v26 }
 0x735   : > { %7071 = vmatprep.subr.bf16.mxu0 %v2460_v17  ;;  %7093 = vmatprep.subr.bf16.mxu1 %v2540_v18  ;;  %v1175_v17 = vld [vmem:[%s8002_s21 + $0x1100] sm:$0xff]  ;;  %v2450_v18 = vunpack.c.h.s8.bf16 %v1050_v62  ;;  %v2615_v29 = vunpack.c.l.s8.bf16 %v1135_v60  ;;  %v2620_v27 = vunpack.c.h.s8.bf16 %v1135_v60  ;;  %v2675_v62 = vunpack.c.l.s8.bf16 %v1165_v34  ;;  %v1190_v60 = vld [vmem:[%s8002_s21 + $0x1178] sm:$0xff] }
 0x736   : > { %6053 = vmatprep.mubr.bf16.mxu0 %v8548_v9  ;;  %6093 = vmatprep.mubr.bf16.mxu1 %v8597_v47  ;;  %v2475_v9 = vunpack.c.l.s8.bf16 %v1065_v12  ;;  %v1045_v47 = vld [vmem:[%s8002_s21 + $0xcf0] sm:$0xff] }
 0x737   : > { %v2435_v3 = vunpack.c.l.s8.bf16 %v1045_v47  ;;  %v2440_v21 = vunpack.c.h.s8.bf16 %v1045_v47 }
 0x738   : > { %7072 = vmatpush3.bf16.msra.mxu0 %v2420_v15  ;;  %7094 = vmatpush3.bf16.msra.mxu1 %v2500_v31  ;;  %v1115_v15 = vld [vmem:[%s8002_s21 + $0xf20] sm:$0xff]  ;;  %v2695_v31 = vunpack.c.l.s8.bf16 %v1175_v17 }
 0x739   : > { %7073 = vmatprep.subr.bf16.mxu0 %v2465_v49  ;;  %7095 = vmatprep.subr.bf16.mxu1 %v2545_v43  ;;  %v1155_v49 = vld [vmem:[%s8002_s21 + $0x1060] sm:$0xff]  ;;  %v2575_v56 = vunpack.c.l.s8.bf16 %v1115_v15 }
 0x73a   : > { %v2655_v43 = vunpack.c.l.s8.bf16 %v1155_v49  ;;  %v2660_v12 = vunpack.c.h.s8.bf16 %v1155_v49 }
 0x73c   : > { %7074 = vmatpush3.bf16.msra.mxu0 %v2425_v40  ;;  %7096 = vmatpush3.bf16.msra.mxu1 %v2505_v63  ;;  %v2700_v40 = vunpack.c.h.s8.bf16 %v1175_v17  ;;  %v1140_v63 = vld [vmem:[%s8002_s21 + $0xfe8] sm:$0xff] }
 0x73d   : > { %7075 = vmatprep.subr.bf16.mxu0 %v2470_v28  ;;  %7097 = vmatprep.subr.bf16.mxu1 %v2550_v14  ;;  %v1180_v28 = vld [vmem:[%s8002_s21 + $0x1128] sm:$0xff]  ;;  %v2580_v14 = vunpack.c.h.s8.bf16 %v1115_v15  ;;  %v2625_v59 = vunpack.c.l.s8.bf16 %v1140_v63  ;;  %v2630_v47 = vunpack.c.h.s8.bf16 %v1140_v63  ;;  %v1170_v63 = vld [vmem:[%s8002_s21 + $0x10d8] sm:$0xff] }
 0x740   : > { %7076 = vmatpush3.bf16.msra.mxu0 %v2430_v41  ;;  %7098 = vmatpush3.bf16.msra.mxu1 %v2510_v6  ;;  %v1120_v41 = vld [vmem:[%s8002_s21 + $0xf48] sm:$0xff]  ;;  %v2705_v6 = vunpack.c.l.s8.bf16 %v1180_v28 }
 0x741   : > { %7077 = vmatprep.subr.bf16.mxu0 %v2475_v9  ;;  %7099 = vmatprep.subr.bf16.mxu1 %v2555_v5  ;;  %v1160_v9 = vld [vmem:[%s8002_s21 + $0x1088] sm:$0xff]  ;;  %v2710_v5 = vunpack.c.h.s8.bf16 %v1180_v28 }
 0x744   : > { %7078 = vmatpush3.bf16.msra.mxu0 %v2435_v3  ;;  %7100 = vmatpush3.bf16.msra.mxu1 %v2515_v51  ;;  %v1185_v3 = vld [vmem:[%s8002_s21 + $0x1150] sm:$0xff]  ;;  %v2590_v51 = vunpack.c.h.s8.bf16 %v1120_v41 }
 0x745   : > { %7079 = vmatprep.subr.bf16.mxu0 %v2480_v25  ;;  %7101 = vmatprep.subr.bf16.mxu1 %v2560_v55  ;;  %v2670_v25 = vunpack.c.h.s8.bf16 %v1160_v9  ;;  %v2715_v55 = vunpack.c.l.s8.bf16 %v1185_v3 }
 0x748   : > { %7080 = vmatpush3.bf16.msra.mxu0 %v2440_v21  ;;  %7102 = vmatpush3.bf16.msra.mxu1 %v2520_v20  ;;  %v6633_v21 = vsub.s32 2, %v8026_v26 }
 0x749   : > { %7081 = vmatprep.subr.bf16.mxu0 %v2485_v10  ;;  %7103 = vmatprep.subr.bf16.mxu1 %v2565_v46  ;;  %v6621_v10 = vld [vmem:[%s8012_s14] sm:$0x1f]  ;;  %v6629_v46 = vsub.s32 1, %v8026_v26 }
 0x74a   : > { %v6626_v17 = vrot.slane %v6621_v10, %v6625_v2 }
 0x74c   : > { %7082 = vmatpush3.bf16.msra.mxu0 %v2445_v11  ;;  %7104 = vmatpush3.bf16.msra.mxu1 %v2525_v1  ;;  %v2640_v11 = vunpack.c.h.s8.bf16 %v1145_v48  ;;  %v2720_v1 = vunpack.c.h.s8.bf16 %v1185_v3 }
 0x74d   : > { %7083 = vmatprep.subr.bf16.mxu0 %v2490_v13  ;;  %7105 = vmatprep.subr.bf16.mxu1 %v2570_v22  ;;  %v6653_v13 = vld [vmem:[%s9411_s25] sm:$0x1f]  ;;  %v1150_v22 = vld [vmem:[%s8002_s21 + $0x1038] sm:$0xff] }
 0x74e   : > { %v6658_v49 = vrot.slane %v6653_v13, %v6625_v2  ;;  %v2730_v2 = vunpack.c.h.s8.bf16 %v1190_v60 }
 0x750   : > { %7084 = vmatpush3.bf16.msra.mxu0 %v2450_v18  ;;  %7106 = vmatpush3.bf16.msra.mxu1 %v2530_v44  ;;  %v6634_v18 = vrot.slane %v6621_v10, %v6633_v21  ;;  %v6630_v44 = vrot.slane %v6621_v10, %v6629_v46 }
 0x751   : > { %7113 = vmatprep.subr.bf16.mxu0 %v2615_v29  ;;  %7135 = vmatprep.subr.bf16.mxu1 %v2695_v31  ;;  %v6638_v29 = vrot.slane %v6621_v10, %v6637_v52  ;;  %v2680_v31 = vunpack.c.h.s8.bf16 %v1165_v34  ;;  %v2650_v34 = vunpack.c.h.s8.bf16 %v1150_v22  ;;  %v1215_v10 = vld [vmem:[%s8002_s21 + $0x1240] sm:$0xff] }
 0x753   : > { %6054 = vmatmul.mubr.bf16.vlgmr.msra.gmra.mrb[24].mxu0 %v8593_v32  ;;  %6094 = vmatmul.mubr.bf16.vlgmr.msra.gmra.mrb[24].mxu1 %v8646_v8  ;;  %v2585_v32 = vunpack.c.l.s8.bf16 %v1120_v41  ;;  %v2665_v8 = vunpack.c.l.s8.bf16 %v1160_v9 }
 0x754   : > { %7114 = vmatpush3.bf16.msra.mxu0 %v2575_v56  ;;  %7136 = vmatpush3.bf16.msra.mxu1 %v2655_v43  ;;  %v6666_v56 = vrot.slane %v6653_v13, %v6633_v21  ;;  %v2645_v43 = vunpack.c.l.s8.bf16 %v1150_v22  ;;  %v2690_v22 = vunpack.c.h.s8.bf16 %v1170_v63 }
 0x755   : > { %7115 = vmatprep.subr.bf16.mxu0 %v2620_v27  ;;  %7137 = vmatprep.subr.bf16.mxu1 %v2700_v40  ;;  %v1130_v27 = vld [vmem:[%s8002_s21 + $0xf98] sm:$0xff]  ;;  %v2725_v40 = vunpack.c.l.s8.bf16 %v1190_v60  ;;  %v2775_v60 = vunpack.c.l.s8.bf16 %v1215_v10 }
 0x756   : > { %6133 = vmatprep.mubr.bf16.mxu0 %v8650_v19  ;;  %6173 = vmatprep.mubr.bf16.mxu1 %v8699_v30  ;;  %v2635_v19 = vunpack.c.l.s8.bf16 %v1145_v48  ;;  %v1125_v30 = vld [vmem:[%s8002_s21 + $0xf70] sm:$0xff]  ;;  %v2605_v3 = vunpack.c.l.s8.bf16 %v1130_v27 }
 0x757   : > { %v2595_v20 = vunpack.c.l.s8.bf16 %v1125_v30  ;;  %v2600_v15 = vunpack.c.h.s8.bf16 %v1125_v30 }
 0x758   : > { %7116 = vmatpush3.bf16.msra.mxu0 %v2580_v14  ;;  %7138 = vmatpush3.bf16.msra.mxu1 %v2660_v12  ;;  %v6662_v12 = vrot.slane %v6653_v13, %v6629_v46 }
 0x759   : > { %7117 = vmatprep.subr.bf16.mxu0 %v2625_v59  ;;  %7139 = vmatprep.subr.bf16.mxu1 %v2705_v6  ;;  %v6670_v59 = vrot.slane %v6653_v13, %v6637_v52  ;;  %v2610_v13 = vunpack.c.h.s8.bf16 %v1130_v27  ;;  %v2780_v27 = vunpack.c.h.s8.bf16 %v1215_v10 }
 0x75c   : > { %7118 = vmatpush3.bf16.msra.mxu0 %v2585_v32  ;;  %7140 = vmatpush3.bf16.msra.mxu1 %v2665_v8 }
 0x75d   : > { %7119 = vmatprep.subr.bf16.mxu0 %v2630_v47  ;;  %7141 = vmatprep.subr.bf16.mxu1 %v2710_v5 }
 0x760   : > { %7120 = vmatpush3.bf16.msra.mxu0 %v2590_v51  ;;  %7142 = vmatpush3.bf16.msra.mxu1 %v2670_v25  ;;  %v2685_v51 = vunpack.c.l.s8.bf16 %v1170_v63 }
 0x761   : > { %7121 = vmatprep.subr.bf16.mxu0 %v2635_v19  ;;  %7143 = vmatprep.subr.bf16.mxu1 %v2715_v55 }
 0x764   : > { %7122 = vmatpush3.bf16.msra.mxu0 %v2595_v20  ;;  %7144 = vmatpush3.bf16.msra.mxu1 %v2675_v62  ;;  %v1255_v62 = vld [vmem:[%s8002_s21 + $0x1380] sm:$0xff] }
 0x765   : > { %7123 = vmatprep.subr.bf16.mxu0 %v2640_v11  ;;  %7145 = vmatprep.subr.bf16.mxu1 %v2720_v1 }
 0x766   : > { %v4589_v28 = vpop.f32.mrb[0].mxu0  ;;  %v5614_v14 = vpop.f32.mrb[0].mxu1 }
 0x767   : > { %v6648_v41 = vmul.f32 %v6626_v17, %v4589_v28  ;;  %v6650_v6 = vmul.f32 %v6634_v18, %v5614_v14  ;;  %v4591_v9 = vpop.f32.mrb[1].mxu0  ;;  %v5616_v32 = vpop.f32.mrb[1].mxu1  ;;  %v1195_v17 = vld [vmem:[%s8002_s21 + $0x11a0] sm:$0xff]  ;;  %v2855_v18 = vunpack.c.l.s8.bf16 %v1255_v62  ;;  %v1220_v28 = vld [vmem:[%s8002_s21 + $0x1268] sm:$0xff] }
 0x768   : > { %v6649_v8 = vmul.f32 %v6630_v44, %v4591_v9  ;;  %v6651_v47 = vmul.f32 %v6638_v29, %v5616_v32  ;;  %v4593_v5 = vpop.f32.mrb[2].mxu0  ;;  %v5618_v48 = vpop.f32.mrb[2].mxu1  ;;  %7124 = vmatpush3.bf16.msra.mxu0 %v2600_v15  ;;  %7146 = vmatpush3.bf16.msra.mxu1 %v2680_v31  ;;  %v1235_v44 = vld [vmem:[%s8002_s21 + $0x12e0] sm:$0xff]  ;;  %v1260_v14 = vld [vmem:[%s8002_s21 + $0x13a8] sm:$0xff]  ;;  %v2790_v32 = vunpack.c.h.s8.bf16 %v1220_v28 }
 0x769   : > { %v6680_v25 = vadd.f32 %v6658_v49, %v6648_v41  ;;  %v6682_v19 = vadd.f32 %v6666_v56, %v6650_v6  ;;  %v4594_v30 = vpop.f32.mrb[3].mxu0  ;;  %v5619_v55 = vpop.f32.mrb[3].mxu1  ;;  %7125 = vmatprep.subr.bf16.mxu0 %v2645_v43  ;;  %7147 = vmatprep.subr.bf16.mxu1 %v2725_v40  ;;  %v2735_v56 = vunpack.c.l.s8.bf16 %v1195_v17  ;;  %v2815_v43 = vunpack.c.l.s8.bf16 %v1235_v44  ;;  %v1200_v41 = vld [vmem:[%s8002_s21 + $0x11c8] sm:$0xff]  ;;  %v1265_v5 = vld [vmem:[%s8002_s21 + $0x13d0] sm:$0xff] }
 0x76a   : > { %v6681_v21 = vadd.f32 %v6662_v12, %v6649_v8  ;;  %v6683_v20 = vadd.f32 %v6670_v59, %v6651_v47  ;;  %v2860_v40 = vunpack.c.h.s8.bf16 %v1255_v62  ;;  %v2820_v12 = vunpack.c.h.s8.bf16 %v1235_v44  ;;  %v1240_v9 = vld [vmem:[%s8002_s21 + $0x1308] sm:$0xff]  ;;  %v1225_v47 = vld [vmem:[%s8002_s21 + $0x1290] sm:$0xff] }
 0x76b   : > { %v6685_v46 = vmax.f32 %v6680_v25, 0.0  ;;  %v6687_v52 = vmax.f32 %v6682_v19, 0.0  ;;  %v2785_v59 = vunpack.c.l.s8.bf16 %v1220_v28  ;;  %v2865_v6 = vunpack.c.l.s8.bf16 %v1260_v14  ;;  %v1245_v25 = vld [vmem:[%s8002_s21 + $0x1330] sm:$0xff]  ;;  %v1335_v28 = vld [vmem:[%s8002_s21 + $0x1600] sm:$0xff] }
 0x76c   : > { %v6686_v11 = vmax.f32 %v6681_v21, 0.0  ;;  %v6688_v1 = vmax.f32 %v6683_v20, 0.0  ;;  %7126 = vmatpush3.bf16.msra.mxu0 %v2605_v3  ;;  %7148 = vmatpush3.bf16.msra.mxu1 %v2685_v51  ;;  %v2870_v8 = vunpack.c.h.s8.bf16 %v1260_v14  ;;  %v2750_v48 = vunpack.c.h.s8.bf16 %v1200_v41  ;;  %v1270_v21 = vld [vmem:[%s8002_s21 + $0x13f8] sm:$0xff] }
 0x76d   : > { %7127 = vmatprep.subr.bf16.mxu0 %v2650_v34  ;;  %7149 = vmatprep.subr.bf16.mxu1 %v2730_v2  ;;  %v2830_v3 = vunpack.c.h.s8.bf16 %v1240_v9  ;;  %v2875_v51 = vunpack.c.l.s8.bf16 %v1265_v5  ;;  %v2835_v30 = vunpack.c.l.s8.bf16 %v1245_v25  ;;  %v2800_v55 = vunpack.c.h.s8.bf16 %v1225_v47  ;;  %v1230_v2 = vld [vmem:[%s8002_s21 + $0x12b8] sm:$0xff] }
 0x76e   : > { %v6695_v29 = vcombine.low %v6685_v46, %v6686_v11  ;;  %v6696_v15 = vcombine.low %v6687_v52, %v6688_v1  ;;  %v2880_v34 = vunpack.c.h.s8.bf16 %v1265_v5  ;;  %v2840_v10 = vunpack.c.h.s8.bf16 %v1245_v25  ;;  %v1210_v46 = vld [vmem:[%s8002_s21 + $0x1218] sm:$0xff] }
 0x76f   : > { %v2805_v62 = vunpack.c.l.s8.bf16 %v1230_v2  ;;  %v2885_v52 = vunpack.c.l.s8.bf16 %v1270_v21  ;;  %v1250_v11 = vld [vmem:[%s8002_s21 + $0x1358] sm:$0xff]  ;;  %v2770_v14 = vunpack.c.h.s8.bf16 %v1210_v46 }
 0x770   : > { %v6703_v31 = vrot.slane %v6695_v29, %v8033_v35  ;;  %v6710_v49 = vrot.slane %v6696_v15, %v8033_v35  ;;  %7128 = vmatpush3.bf16.msra.mxu0 %v2610_v13  ;;  %7150 = vmatpush3.bf16.msra.mxu1 %v2690_v22  ;;  %v2740_v35 = vunpack.c.h.s8.bf16 %v1195_v17  ;;  %v2765_v29 = vunpack.c.l.s8.bf16 %v1210_v46 }
 0x771   : > { %7157 = vmatprep.subr.bf16.mxu0 %v2775_v60  ;;  %7179 = vmatprep.subr.bf16.mxu1 %v2855_v18  ;;  %v2845_v15 = vunpack.c.l.s8.bf16 %v1250_v11 }
 0x772   : > { %v6711_v63 = vcombine.low %v6703_v31, %v6710_v49 }
 0x773   : > { %6134 = vmatmul.mubr.bf16.vlgmr.msra.gmra.mrb[28].mxu0 %v8695_v58  ;;  %6174 = vmatmul.mubr.bf16.vlgmr.msra.gmra.mrb[28].mxu1 %v8748_v53  ;;  %v2745_v58 = vunpack.c.l.s8.bf16 %v1200_v41  ;;  %v2825_v53 = vunpack.c.l.s8.bf16 %v1240_v9  ;;  %v3015_v41 = vunpack.c.l.s8.bf16 %v1335_v28 }
 0x774   : > { %7158 = vmatpush3.bf16.msra.mxu0 %v2735_v56  ;;  %7180 = vmatpush3.bf16.msra.mxu1 %v2815_v43  ;;  %6721 = vst [vmem:[%s9441_s10] sm:$0xff] %v6711_v63  ;;  %v2810_v56 = vunpack.c.h.s8.bf16 %v1230_v2  ;;  %v2890_v43 = vunpack.c.h.s8.bf16 %v1270_v21  ;;  %v1295_v63 = vld [vmem:[%s8002_s21 + $0x14c0] sm:$0xff] }
 0x775   : > { %7159 = vmatprep.subr.bf16.mxu0 %v2780_v27  ;;  %7181 = vmatprep.subr.bf16.mxu1 %v2860_v40 }
 0x776   : > { %6213 = vmatprep.mubr.bf16.mxu0 %v8752_v50  ;;  %6253 = vmatprep.mubr.bf16.mxu1 %v8801_v16  ;;  %v2795_v50 = vunpack.c.l.s8.bf16 %v1225_v47  ;;  %v1205_v16 = vld [vmem:[%s8002_s21 + $0x11f0] sm:$0xff]  ;;  %v1340_v47 = vld [vmem:[%s8002_s21 + $0x1628] sm:$0xff] }
 0x777   : > { %v2755_v19 = vunpack.c.l.s8.bf16 %v1205_v16  ;;  %v2760_v20 = vunpack.c.h.s8.bf16 %v1205_v16  ;;  %v3025_v16 = vunpack.c.l.s8.bf16 %v1340_v47 }
 0x778   : > { %7160 = vmatpush3.bf16.msra.mxu0 %v2740_v35  ;;  %7182 = vmatpush3.bf16.msra.mxu1 %v2820_v12  ;;  %v2850_v35 = vunpack.c.h.s8.bf16 %v1250_v11  ;;  %v2935_v12 = vunpack.c.l.s8.bf16 %v1295_v63  ;;  %v1310_v11 = vld [vmem:[%s8002_s21 + $0x1538] sm:$0xff] }
 0x779   : > { %7161 = vmatprep.subr.bf16.mxu0 %v2785_v59  ;;  %7183 = vmatprep.subr.bf16.mxu1 %v2865_v6  ;;  %v1275_v59 = vld [vmem:[%s8002_s21 + $0x1420] sm:$0xff] }
 0x77a   : > { %v1315_v6 = vld [vmem:[%s8002_s21 + $0x1560] sm:$0xff]  ;;  %v2895_v9 = vunpack.c.l.s8.bf16 %v1275_v59  ;;  %v2900_v5 = vunpack.c.h.s8.bf16 %v1275_v59 }
 0x77c   : > { %7162 = vmatpush3.bf16.msra.mxu0 %v2745_v58  ;;  %7184 = vmatpush3.bf16.msra.mxu1 %v2825_v53  ;;  %v2975_v58 = vunpack.c.l.s8.bf16 %v1315_v6  ;;  %v2940_v53 = vunpack.c.h.s8.bf16 %v1295_v63 }
 0x77d   : > { %7163 = vmatprep.subr.bf16.mxu0 %v2790_v32  ;;  %7185 = vmatprep.subr.bf16.mxu1 %v2870_v8  ;;  %v3020_v32 = vunpack.c.h.s8.bf16 %v1335_v28  ;;  %v1300_v8 = vld [vmem:[%s8002_s21 + $0x14e8] sm:$0xff] }
 0x77e   : > { %v2950_v25 = vunpack.c.h.s8.bf16 %v1300_v8 }
 0x780   : > { %7164 = vmatpush3.bf16.msra.mxu0 %v2750_v48  ;;  %7186 = vmatpush3.bf16.msra.mxu1 %v2830_v3  ;;  %v2980_v48 = vunpack.c.h.s8.bf16 %v1315_v6  ;;  %v2945_v3 = vunpack.c.l.s8.bf16 %v1300_v8 }
 0x781   : > { %7165 = vmatprep.subr.bf16.mxu0 %v2795_v50  ;;  %7187 = vmatprep.subr.bf16.mxu1 %v2875_v51  ;;  %v1280_v50 = vld [vmem:[%s8002_s21 + $0x1448] sm:$0xff] }
 0x782   : > { %v1320_v51 = vld [vmem:[%s8002_s21 + $0x1588] sm:$0xff] }
 0x783   : > { %v2990_v2 = vunpack.c.h.s8.bf16 %v1320_v51 }
 0x784   : > { %7166 = vmatpush3.bf16.msra.mxu0 %v2755_v19  ;;  %7188 = vmatpush3.bf16.msra.mxu1 %v2835_v30  ;;  %v3030_v19 = vunpack.c.h.s8.bf16 %v1340_v47  ;;  %v1305_v30 = vld [vmem:[%s8002_s21 + $0x1510] sm:$0xff] }
 0x785   : > { %7167 = vmatprep.subr.bf16.mxu0 %v2800_v55  ;;  %7189 = vmatprep.subr.bf16.mxu1 %v2880_v34  ;;  %v1345_v55 = vld [vmem:[%s8002_s21 + $0x1650] sm:$0xff]  ;;  %v2910_v34 = vunpack.c.h.s8.bf16 %v1280_v50  ;;  %v2960_v46 = vunpack.c.h.s8.bf16 %v1305_v30 }
 0x786   : > { %v6865_v1 = vpop.f32.mrb[4].mxu0  ;;  %v6887_v13 = vpop.f32.mrb[4].mxu1  ;;  %v3035_v21 = vunpack.c.l.s8.bf16 %v1345_v55 }
 0x787   : > { %v6866_v22 = vpop.f32.mrb[5].mxu0  ;;  %v6888_v60 = vpop.f32.mrb[5].mxu1 }
 0x788   : > { %v6867_v17 = vadd.f32 %v6866_v22, %v6865_v1  ;;  %v6889_v18 = vadd.f32 %v6888_v60, %v6887_v13  ;;  %v6868_v44 = vpop.f32.mrb[6].mxu0  ;;  %7168 = vmatpush3.bf16.msra.mxu0 %v2760_v20  ;;  %7190 = vmatpush3.bf16.msra.mxu1 %v2840_v10  ;;  %v6890_v31 = vpop.f32.mrb[6].mxu1  ;;  %v1325_v20 = vld [vmem:[%s8002_s21 + $0x15b0] sm:$0xff]  ;;  %v1350_v1 = vld [vmem:[%s8002_s21 + $0x1678] sm:$0xff]  ;;  %v2965_v60 = vunpack.c.l.s8.bf16 %v1310_v11 }
 0x789   : > { %v6869_v49 = vpop.f32.mrb[7].mxu0  ;;  %7169 = vmatprep.subr.bf16.mxu0 %v2805_v62  ;;  %7191 = vmatprep.subr.bf16.mxu1 %v2885_v52  ;;  %v6891_v27 = vpop.f32.mrb[7].mxu1  ;;  %v2995_v62 = vunpack.c.l.s8.bf16 %v1325_v20  ;;  %v3040_v52 = vunpack.c.h.s8.bf16 %v1345_v55  ;;  %v3000_v22 = vunpack.c.h.s8.bf16 %v1325_v20  ;;  %v1330_v44 = vld [vmem:[%s8002_s21 + $0x15d8] sm:$0xff]  ;;  %v3050_v59 = vunpack.c.h.s8.bf16 %v1350_v1  ;;  %v1360_v55 = vld [vmem:[%s8002_s21 + $0x16c8] sm:$0xff]  ;;  %v1425_v20 = vld [vmem:[%s8002_s21 + $0x18d0] sm:$0xff] }
 0x78a   : > { %v9460_v40 = vadd.f32 %v6889_v18, %v6867_v17  ;;  %v1290_v17 = vld [vmem:[%s8002_s21 + $0x1498] sm:$0xff]  ;;  %v3045_v18 = vunpack.c.l.s8.bf16 %v1350_v1  ;;  %v3005_v28 = vunpack.c.l.s8.bf16 %v1330_v44  ;;  %v3010_v8 = vunpack.c.h.s8.bf16 %v1330_v44 }
 0x78b   : > { %v2925_v63 = vunpack.c.l.s8.bf16 %v1290_v17 }
 0x78c   : > { %7170 = vmatpush3.bf16.msra.mxu0 %v2765_v29  ;;  %7192 = vmatpush3.bf16.msra.mxu1 %v2845_v15 }
 0x78d   : > { %7171 = vmatprep.subr.bf16.mxu0 %v2810_v56  ;;  %7193 = vmatprep.subr.bf16.mxu1 %v2890_v43 }
 0x790   : > { %7172 = vmatpush3.bf16.msra.mxu0 %v2770_v14  ;;  %7194 = vmatpush3.bf16.msra.mxu1 %v2850_v35 }
 0x791   : > { %7201 = vmatprep.subr.bf16.mxu0 %v2935_v12  ;;  %7223 = vmatprep.subr.bf16.mxu1 %v3015_v41  ;;  %v2970_v12 = vunpack.c.h.s8.bf16 %v1310_v11 }
 0x793   : > { %6214 = vmatmul.mubr.bf16.vlgmr.msra.gmra.mrb[32].mxu0 %v8797_v4  ;;  %6254 = vmatmul.mubr.bf16.vlgmr.msra.gmra.mrb[32].mxu1 %v8850_v23  ;;  %v2905_v4 = vunpack.c.l.s8.bf16 %v1280_v50  ;;  %v2985_v23 = vunpack.c.l.s8.bf16 %v1320_v51 }
 0x794   : > { %7202 = vmatpush3.bf16.msra.mxu0 %v2895_v9  ;;  %7224 = vmatpush3.bf16.msra.mxu1 %v2975_v58  ;;  %v1375_v9 = vld [vmem:[%s8002_s21 + $0x1740] sm:$0xff] }
 0x795   : > { %7203 = vmatprep.subr.bf16.mxu0 %v2940_v53  ;;  %7225 = vmatprep.subr.bf16.mxu1 %v3020_v32  ;;  %v1415_v58 = vld [vmem:[%s8002_s21 + $0x1880] sm:$0xff]  ;;  %v2930_v32 = vunpack.c.h.s8.bf16 %v1290_v17  ;;  %v3095_v47 = vunpack.c.l.s8.bf16 %v1375_v9  ;;  %v1430_v17 = vld [vmem:[%s8002_s21 + $0x18f8] sm:$0xff] }
 0x796   : > { %6293 = vmatprep.mubr.bf16.mxu0 %v8854_v33  ;;  %6333 = vmatprep.mubr.bf16.mxu1 %v8903_v38  ;;  %v2955_v33 = vunpack.c.l.s8.bf16 %v1305_v30  ;;  %v1285_v38 = vld [vmem:[%s8002_s21 + $0x1470] sm:$0xff]  ;;  %v3180_v51 = vunpack.c.h.s8.bf16 %v1415_v58 }
 0x797   : > { %v2915_v10 = vunpack.c.l.s8.bf16 %v1285_v38  ;;  %v2920_v13 = vunpack.c.h.s8.bf16 %v1285_v38 }
 0x798   : > { %7204 = vmatpush3.bf16.msra.mxu0 %v2900_v5  ;;  %7226 = vmatpush3.bf16.msra.mxu1 %v2980_v48  ;;  %v1355_v5 = vld [vmem:[%s8002_s21 + $0x16a0] sm:$0xff]  ;;  %v3175_v48 = vunpack.c.l.s8.bf16 %v1415_v58  ;;  %v3210_v58 = vunpack.c.h.s8.bf16 %v1430_v17 }
 0x799   : > { %7205 = vmatprep.subr.bf16.mxu0 %v2945_v3  ;;  %7227 = vmatprep.subr.bf16.mxu1 %v3025_v16  ;;  %v1395_v3 = vld [vmem:[%s8002_s21 + $0x17e0] sm:$0xff]  ;;  %v3055_v50 = vunpack.c.l.s8.bf16 %v1355_v5  ;;  %v3100_v16 = vunpack.c.h.s8.bf16 %v1375_v9 }
 0x79c   : > { %7206 = vmatpush3.bf16.msra.mxu0 %v2905_v4  ;;  %7228 = vmatpush3.bf16.msra.mxu1 %v2985_v23  ;;  %v1380_v4 = vld [vmem:[%s8002_s21 + $0x1768] sm:$0xff] }
 0x79d   : > { %7207 = vmatprep.subr.bf16.mxu0 %v2950_v25  ;;  %7229 = vmatprep.subr.bf16.mxu1 %v3030_v19  ;;  %v1420_v23 = vld [vmem:[%s8002_s21 + $0x18a8] sm:$0xff]  ;;  %v3060_v25 = vunpack.c.h.s8.bf16 %v1355_v5  ;;  %v3140_v19 = vunpack.c.h.s8.bf16 %v1395_v3  ;;  %v3105_v30 = vunpack.c.l.s8.bf16 %v1380_v4  ;;  %v1495_v5 = vld [vmem:[%s8002_s21 + $0x1b00] sm:$0xff] }
 0x79e   : > { %v3190_v38 = vunpack.c.h.s8.bf16 %v1420_v23 }
 0x7a0   : > { %7208 = vmatpush3.bf16.msra.mxu0 %v2910_v34  ;;  %7230 = vmatpush3.bf16.msra.mxu1 %v2990_v2  ;;  %v3185_v34 = vunpack.c.l.s8.bf16 %v1420_v23  ;;  %v1400_v2 = vld [vmem:[%s8002_s21 + $0x1808] sm:$0xff] }
 0x7a1   : > { %7209 = vmatprep.subr.bf16.mxu0 %v2955_v33  ;;  %7231 = vmatprep.subr.bf16.mxu1 %v3035_v21  ;;  %v3110_v33 = vunpack.c.h.s8.bf16 %v1380_v4  ;;  %v1385_v21 = vld [vmem:[%s8002_s21 + $0x1790] sm:$0xff]  ;;  %v1475_v4 = vld [vmem:[%s8002_s21 + $0x1a60] sm:$0xff] }
 0x7a4   : > { %7210 = vmatpush3.bf16.msra.mxu0 %v2915_v10  ;;  %7232 = vmatpush3.bf16.msra.mxu1 %v2995_v62  ;;  %v3070_v10 = vunpack.c.h.s8.bf16 %v1360_v55  ;;  %v3150_v62 = vunpack.c.h.s8.bf16 %v1400_v2 }
 0x7a5   : > { %7211 = vmatprep.subr.bf16.mxu0 %v2960_v46  ;;  %7233 = vmatprep.subr.bf16.mxu1 %v3040_v52  ;;  %v3195_v46 = vunpack.c.l.s8.bf16 %v1425_v20  ;;  %v1405_v52 = vld [vmem:[%s8002_s21 + $0x1830] sm:$0xff] }
 0x7a6   : > { %v6909_v29 = vpop.f32.mrb[8].mxu0  ;;  %v6931_v15 = vpop.f32.mrb[8].mxu1  ;;  %v3155_v1 = vunpack.c.l.s8.bf16 %v1405_v52  ;;  %v3160_v44 = vunpack.c.h.s8.bf16 %v1405_v52  ;;  %v1485_v52 = vld [vmem:[%s8002_s21 + $0x1ab0] sm:$0xff] }
 0x7a7   : > { %v6910_v31 = vpop.f32.mrb[9].mxu0  ;;  %v6932_v49 = vpop.f32.mrb[9].mxu1 }
 0x7a8   : > { %v6911_v56 = vadd.f32 %v6910_v31, %v6909_v29  ;;  %v6912_v43 = vpop.f32.mrb[10].mxu0  ;;  %7212 = vmatpush3.bf16.msra.mxu0 %v2920_v13  ;;  %v6933_v27 = vadd.f32 %v6932_v49, %v6931_v15  ;;  %7234 = vmatpush3.bf16.msra.mxu1 %v3000_v22  ;;  %v6934_v14 = vpop.f32.mrb[10].mxu1  ;;  %v3120_v13 = vunpack.c.h.s8.bf16 %v1385_v21  ;;  %v3200_v22 = vunpack.c.h.s8.bf16 %v1425_v20  ;;  %v1370_v15 = vld [vmem:[%s8002_s21 + $0x1718] sm:$0xff] }
 0x7a9   : > { %v6913_v35 = vpop.f32.mrb[11].mxu0  ;;  %7213 = vmatprep.subr.bf16.mxu0 %v2965_v60  ;;  %7235 = vmatprep.subr.bf16.mxu1 %v3045_v18  ;;  %v6935_v41 = vpop.f32.mrb[11].mxu1  ;;  %v1390_v60 = vld [vmem:[%s8002_s21 + $0x17b8] sm:$0xff]  ;;  %v3205_v31 = vunpack.c.l.s8.bf16 %v1430_v17 }
 0x7aa   : > { %v5736_v6 = vadd.f32 %v6911_v56, %v9460_v40  ;;  %v3135_v40 = vunpack.c.l.s8.bf16 %v1395_v3  ;;  %v3125_v29 = vunpack.c.l.s8.bf16 %v1390_v60  ;;  %v1410_v49 = vld [vmem:[%s8002_s21 + $0x1858] sm:$0xff]  ;;  %v3130_v9 = vunpack.c.h.s8.bf16 %v1390_v60 }
 0x7ab   : > { %v3090_v3 = vunpack.c.h.s8.bf16 %v1370_v15  ;;  %v1470_v60 = vld [vmem:[%s8002_s21 + $0x1a38] sm:$0xff] }
 0x7ac   : > { %v9485_v53 = vadd.f32 %v6933_v27, %v5736_v6  ;;  %7214 = vmatpush3.bf16.msra.mxu0 %v2925_v63  ;;  %7236 = vmatpush3.bf16.msra.mxu1 %v3005_v28  ;;  %v1510_v17 = vld [vmem:[%s8002_s21 + $0x1b78] sm:$0xff] }
 0x7ad   : > { %7215 = vmatprep.subr.bf16.mxu0 %v2970_v12  ;;  %7237 = vmatprep.subr.bf16.mxu1 %v3050_v59  ;;  %v3085_v12 = vunpack.c.l.s8.bf16 %v1370_v15  ;;  %v3165_v59 = vunpack.c.l.s8.bf16 %v1410_v49  ;;  %v1450_v15 = vld [vmem:[%s8002_s21 + $0x1998] sm:$0xff] }
 0x7b0   : > { %7216 = vmatpush3.bf16.msra.mxu0 %v2930_v32  ;;  %7238 = vmatpush3.bf16.msra.mxu1 %v3010_v8 }
 0x7b1   : > { %7245 = vmatprep.subr.bf16.mxu0 %v3095_v47  ;;  %7267 = vmatprep.subr.bf16.mxu1 %v3175_v48  ;;  %v1455_v47 = vld [vmem:[%s8002_s21 + $0x19c0] sm:$0xff] }
 0x7b3   : > { %6294 = vmatmul.mubr.bf16.vlgmr.msra.gmra.mrb[36].mxu0 %v8899_v0  ;;  %6334 = vmatmul.mubr.bf16.vlgmr.msra.gmra.mrb[36].mxu1 %v8952_v54  ;;  %v3065_v0 = vunpack.c.l.s8.bf16 %v1360_v55  ;;  %v3145_v54 = vunpack.c.l.s8.bf16 %v1400_v2  ;;  %v1500_v55 = vld [vmem:[%s8002_s21 + $0x1b28] sm:$0xff]  ;;  %v3300_v2 = vunpack.c.h.s8.bf16 %v1475_v4 }
 0x7b4   : > { %7246 = vmatpush3.bf16.msra.mxu0 %v3055_v50  ;;  %7268 = vmatpush3.bf16.msra.mxu1 %v3135_v40  ;;  %v3170_v50 = vunpack.c.h.s8.bf16 %v1410_v49  ;;  %v3255_v40 = vunpack.c.l.s8.bf16 %v1455_v47  ;;  %v3350_v20 = vunpack.c.h.s8.bf16 %v1500_v55  ;;  %v1490_v49 = vld [vmem:[%s8002_s21 + $0x1ad8] sm:$0xff] }
 0x7b5   : > { %7247 = vmatprep.subr.bf16.mxu0 %v3100_v16  ;;  %7269 = vmatprep.subr.bf16.mxu1 %v3180_v51  ;;  %v1435_v16 = vld [vmem:[%s8002_s21 + $0x1920] sm:$0xff]  ;;  %v3335_v51 = vunpack.c.l.s8.bf16 %v1495_v5 }
 0x7b6   : > { %6373 = vmatprep.mubr.bf16.mxu0 %v8956_v57  ;;  %6413 = vmatprep.mubr.bf16.mxu1 %v9005_v42  ;;  %v3115_v57 = vunpack.c.l.s8.bf16 %v1385_v21  ;;  %v1365_v42 = vld [vmem:[%s8002_s21 + $0x16f0] sm:$0xff]  ;;  %v3215_v23 = vunpack.c.l.s8.bf16 %v1435_v16 }
 0x7b7   : > { %v3075_v11 = vunpack.c.l.s8.bf16 %v1365_v42  ;;  %v3080_v18 = vunpack.c.h.s8.bf16 %v1365_v42 }
 0x7b8   : > { %7248 = vmatpush3.bf16.msra.mxu0 %v3060_v25  ;;  %7270 = vmatpush3.bf16.msra.mxu1 %v3140_v19  ;;  %v3260_v25 = vunpack.c.h.s8.bf16 %v1455_v47  ;;  %v3340_v19 = vunpack.c.h.s8.bf16 %v1495_v5  ;;  %v1535_v47 = vld [vmem:[%s8002_s21 + $0x1c40] sm:$0xff] }
 0x7b9   : > { %7249 = vmatprep.subr.bf16.mxu0 %v3105_v30  ;;  %7271 = vmatprep.subr.bf16.mxu1 %v3185_v34  ;;  %v1460_v30 = vld [vmem:[%s8002_s21 + $0x19e8] sm:$0xff]  ;;  %v3220_v34 = vunpack.c.h.s8.bf16 %v1435_v16  ;;  %v1575_v5 = vld [vmem:[%s8002_s21 + $0x1d80] sm:$0xff]  ;;  %v3415_v16 = vunpack.c.l.s8.bf16 %v1535_v47 }
 0x7ba   : > { %v3270_v21 = vunpack.c.h.s8.bf16 %v1460_v30 }
 0x7bc   : > { %7250 = vmatpush3.bf16.msra.mxu0 %v3065_v0  ;;  %7272 = vmatpush3.bf16.msra.mxu1 %v3145_v54  ;;  %v3265_v0 = vunpack.c.l.s8.bf16 %v1460_v30  ;;  %v1440_v54 = vld [vmem:[%s8002_s21 + $0x1948] sm:$0xff] }
 0x7bd   : > { %7251 = vmatprep.subr.bf16.mxu0 %v3110_v33  ;;  %7273 = vmatprep.subr.bf16.mxu1 %v3190_v38  ;;  %v3345_v33 = vunpack.c.l.s8.bf16 %v1500_v55  ;;  %v1480_v38 = vld [vmem:[%s8002_s21 + $0x1a88] sm:$0xff] }
 0x7be   : > { %v3310_v42 = vunpack.c.h.s8.bf16 %v1480_v38  ;;  %v1540_v30 = vld [vmem:[%s8002_s21 + $0x1c68] sm:$0xff] }
 0x7bf   : > { %v1580_v55 = vld [vmem:[%s8002_s21 + $0x1da8] sm:$0xff] }
 0x7c0   : > { %7252 = vmatpush3.bf16.msra.mxu0 %v3070_v10  ;;  %7274 = vmatpush3.bf16.msra.mxu1 %v3150_v62  ;;  %v1465_v10 = vld [vmem:[%s8002_s21 + $0x1a10] sm:$0xff] }
 0x7c1   : > { %7253 = vmatprep.subr.bf16.mxu0 %v3115_v57  ;;  %7275 = vmatprep.subr.bf16.mxu1 %v3195_v46  ;;  %v1505_v62 = vld [vmem:[%s8002_s21 + $0x1b50] sm:$0xff]  ;;  %v3230_v57 = vunpack.c.h.s8.bf16 %v1440_v54 }
 0x7c2   : > { %v3355_v46 = vunpack.c.l.s8.bf16 %v1505_v62 }
 0x7c4   : > { %7254 = vmatpush3.bf16.msra.mxu0 %v3075_v11  ;;  %7276 = vmatpush3.bf16.msra.mxu1 %v3155_v1  ;;  %v3315_v1 = vunpack.c.l.s8.bf16 %v1485_v52 }
 0x7c5   : > { %7255 = vmatprep.subr.bf16.mxu0 %v3120_v13  ;;  %7277 = vmatprep.subr.bf16.mxu1 %v3200_v22  ;;  %v3280_v13 = vunpack.c.h.s8.bf16 %v1465_v10  ;;  %v3360_v22 = vunpack.c.h.s8.bf16 %v1505_v62  ;;  %v3430_v62 = vunpack.c.h.s8.bf16 %v1540_v30 }
 0x7c6   : > { %v6953_v56 = vpop.f32.mrb[12].mxu0  ;;  %v6975_v43 = vpop.f32.mrb[12].mxu1 }
 0x7c7   : > { %v6954_v27 = vpop.f32.mrb[13].mxu0  ;;  %v6976_v63 = vpop.f32.mrb[13].mxu1 }
 0x7c8   : > { %v6955_v28 = vadd.f32 %v6954_v27, %v6953_v56  ;;  %v6956_v14 = vpop.f32.mrb[14].mxu0  ;;  %7256 = vmatpush3.bf16.msra.mxu0 %v3080_v18  ;;  %v6977_v35 = vadd.f32 %v6976_v63, %v6975_v43  ;;  %7278 = vmatpush3.bf16.msra.mxu1 %v3160_v44  ;;  %v6978_v41 = vpop.f32.mrb[14].mxu1  ;;  %v3320_v44 = vunpack.c.h.s8.bf16 %v1485_v52  ;;  %v1525_v52 = vld [vmem:[%s8002_s21 + $0x1bf0] sm:$0xff] }
 0x7c9   : > { %v6957_v6 = vpop.f32.mrb[15].mxu0  ;;  %7257 = vmatprep.subr.bf16.mxu0 %v3125_v29  ;;  %7279 = vmatprep.subr.bf16.mxu1 %v3205_v31  ;;  %v6979_v32 = vpop.f32.mrb[15].mxu1  ;;  %v3285_v29 = vunpack.c.l.s8.bf16 %v1470_v60  ;;  %v3365_v31 = vunpack.c.l.s8.bf16 %v1510_v17 }
 0x7ca   : > { %v5816_v8 = vadd.f32 %v6955_v28, %v9485_v53  ;;  %v3295_v53 = vunpack.c.l.s8.bf16 %v1475_v4  ;;  %v3495_v4 = vunpack.c.l.s8.bf16 %v1575_v5 }
 0x7cc   : > { %v9508_v48 = vadd.f32 %v6977_v35, %v5816_v8  ;;  %7258 = vmatpush3.bf16.msra.mxu0 %v3085_v12  ;;  %7280 = vmatpush3.bf16.msra.mxu1 %v3165_v59  ;;  %v3245_v12 = vunpack.c.l.s8.bf16 %v1450_v15  ;;  %v3325_v59 = vunpack.c.l.s8.bf16 %v1490_v49 }
 0x7cd   : > { %7259 = vmatprep.subr.bf16.mxu0 %v3130_v9  ;;  %7281 = vmatprep.subr.bf16.mxu1 %v3210_v58  ;;  %v3290_v9 = vunpack.c.h.s8.bf16 %v1470_v60  ;;  %v3370_v58 = vunpack.c.h.s8.bf16 %v1510_v17 }
 0x7d0   : > { %7260 = vmatpush3.bf16.msra.mxu0 %v3090_v3  ;;  %7282 = vmatpush3.bf16.msra.mxu1 %v3170_v50  ;;  %v3250_v50 = vunpack.c.h.s8.bf16 %v1450_v15 }
 0x7d1   : > { %7289 = vmatprep.subr.bf16.mxu0 %v3255_v40  ;;  %7311 = vmatprep.subr.bf16.mxu1 %v3335_v51  ;;  %v3330_v40 = vunpack.c.h.s8.bf16 %v1490_v49  ;;  %v1515_v51 = vld [vmem:[%s8002_s21 + $0x1ba0] sm:$0xff]  ;;  %v1530_v49 = vld [vmem:[%s8002_s21 + $0x1c18] sm:$0xff] }
 0x7d3   : > { %6374 = vmatmul.mubr.bf16.vlgmr.msra.gmra.mrb[40].mxu0 %v9001_v36  ;;  %6414 = vmatmul.mubr.bf16.vlgmr.msra.gmra.mrb[40].mxu1 %v9054_v37  ;;  %v3225_v36 = vunpack.c.l.s8.bf16 %v1440_v54  ;;  %v3305_v37 = vunpack.c.l.s8.bf16 %v1480_v38  ;;  %v1520_v38 = vld [vmem:[%s8002_s21 + $0x1bc8] sm:$0xff] }
 0x7d4   : > { %7290 = vmatpush3.bf16.msra.mxu0 %v3215_v23  ;;  %7312 = vmatpush3.bf16.msra.mxu1 %v3295_v53  ;;  %v1555_v23 = vld [vmem:[%s8002_s21 + $0x1ce0] sm:$0xff]  ;;  %v3375_v53 = vunpack.c.l.s8.bf16 %v1515_v51 }
 0x7d5   : > { %7291 = vmatprep.subr.bf16.mxu0 %v3260_v25  ;;  %7313 = vmatprep.subr.bf16.mxu1 %v3340_v19  ;;  %v3420_v25 = vunpack.c.h.s8.bf16 %v1535_v47  ;;  %v3500_v19 = vunpack.c.h.s8.bf16 %v1575_v5  ;;  %v3460_v54 = vunpack.c.h.s8.bf16 %v1555_v23 }
 0x7d6   : > { %6453 = vmatprep.mubr.bf16.mxu0 %v9058_v61  ;;  %6493 = vmatprep.mubr.bf16.mxu1 %v9107_v45  ;;  %v3275_v61 = vunpack.c.l.s8.bf16 %v1465_v10  ;;  %v1445_v45 = vld [vmem:[%s8002_s21 + $0x1970] sm:$0xff] }
 0x7d7   : > { %v3235_v11 = vunpack.c.l.s8.bf16 %v1445_v45  ;;  %v3240_v18 = vunpack.c.h.s8.bf16 %v1445_v45  ;;  %v3390_v45 = vunpack.c.h.s8.bf16 %v1520_v38 }
 0x7d8   : > { %7292 = vmatpush3.bf16.msra.mxu0 %v3220_v34  ;;  %7314 = vmatpush3.bf16.msra.mxu1 %v3300_v2  ;;  %v9599_v34 = vld [vmem:[#allocation9_spill] sm:$0xff]  ;;  %v9600_v2 = vld [vmem:[#allocation10_spill] sm:$0xff] }
 0x7d9   : > { %7293 = vmatprep.subr.bf16.mxu0 %v3265_v0  ;;  %7315 = vmatprep.subr.bf16.mxu1 %v3345_v33  ;;  %v3380_v0 = vunpack.c.h.s8.bf16 %v1515_v51  ;;  %v3425_v33 = vunpack.c.l.s8.bf16 %v1540_v30  ;;  %v1595_v51 = vld [vmem:[%s8002_s21 + $0x1e20] sm:$0xff]  ;;  %v1605_v30 = vld [vmem:[%s8002_s21 + $0x1e70] sm:$0xff] }
 0x7dc   : > { %7294 = vmatpush3.bf16.msra.mxu0 %v3225_v36  ;;  %7316 = vmatpush3.bf16.msra.mxu1 %v3305_v37  ;;  %v3505_v36 = vunpack.c.l.s8.bf16 %v1580_v55  ;;  %v1560_v37 = vld [vmem:[%s8002_s21 + $0x1d08] sm:$0xff] }
 0x7dd   : > { %7295 = vmatprep.subr.bf16.mxu0 %v3270_v21  ;;  %7317 = vmatprep.subr.bf16.mxu1 %v3350_v20  ;;  %v9601_v21 = vld [vmem:[#allocation11_spill] sm:$0xff]  ;;  %v3385_v20 = vunpack.c.l.s8.bf16 %v1520_v38  ;;  %v3465_v10 = vunpack.c.l.s8.bf16 %v1560_v37 }
 0x7e0   : > { %7296 = vmatpush3.bf16.msra.mxu0 %v3230_v57  ;;  %7318 = vmatpush3.bf16.msra.mxu1 %v3310_v42  ;;  %v3510_v57 = vunpack.c.h.s8.bf16 %v1580_v55  ;;  %v1545_v42 = vld [vmem:[%s8002_s21 + $0x1c90] sm:$0xff]  ;;  %v3555_v55 = vunpack.c.l.s8.bf16 %v1605_v30 }
 0x7e1   : > { %7297 = vmatprep.subr.bf16.mxu0 %v3275_v61  ;;  %7319 = vmatprep.subr.bf16.mxu1 %v3355_v46  ;;  %v1585_v61 = vld [vmem:[%s8002_s21 + $0x1dd0] sm:$0xff]  ;;  %v3470_v46 = vunpack.c.h.s8.bf16 %v1560_v37  ;;  %v3440_v60 = vunpack.c.h.s8.bf16 %v1545_v42 }
 0x7e2   : > { %v3520_v17 = vunpack.c.h.s8.bf16 %v1585_v61 }
 0x7e4   : > { %7298 = vmatpush3.bf16.msra.mxu0 %v3235_v11  ;;  %7320 = vmatpush3.bf16.msra.mxu1 %v3315_v1  ;;  %v3515_v11 = vunpack.c.l.s8.bf16 %v1585_v61  ;;  %v1565_v1 = vld [vmem:[%s8002_s21 + $0x1d30] sm:$0xff] }
 0x7e5   : > { %7299 = vmatprep.subr.bf16.mxu0 %v3280_v13  ;;  %7321 = vmatprep.subr.bf16.mxu1 %v3360_v22  ;;  %v3395_v13 = vunpack.c.l.s8.bf16 %v1525_v52  ;;  %v3475_v22 = vunpack.c.l.s8.bf16 %v1565_v1  ;;  %v3480_v15 = vunpack.c.h.s8.bf16 %v1565_v1 }
 0x7e6   : > { %v6997_v56 = vpop.f32.mrb[16].mxu0  ;;  %v7019_v43 = vpop.f32.mrb[16].mxu1 }
 0x7e7   : > { %v6998_v27 = vpop.f32.mrb[17].mxu0  ;;  %v7020_v63 = vpop.f32.mrb[17].mxu1 }
 0x7e8   : > { %v6999_v28 = vadd.f32 %v6998_v27, %v6997_v56  ;;  %v7000_v14 = vpop.f32.mrb[18].mxu0  ;;  %7300 = vmatpush3.bf16.msra.mxu0 %v3240_v18  ;;  %v7021_v35 = vadd.f32 %v7020_v63, %v7019_v43  ;;  %7322 = vmatpush3.bf16.msra.mxu1 %v3320_v44  ;;  %v7022_v41 = vpop.f32.mrb[18].mxu1  ;;  %v1550_v18 = vld [vmem:[%s8002_s21 + $0x1cb8] sm:$0xff] }
 0x7e9   : > { %v7001_v6 = vpop.f32.mrb[19].mxu0  ;;  %7301 = vmatprep.subr.bf16.mxu0 %v3285_v29  ;;  %7323 = vmatprep.subr.bf16.mxu1 %v3365_v31  ;;  %v7023_v32 = vpop.f32.mrb[19].mxu1  ;;  %v1590_v44 = vld [vmem:[%s8002_s21 + $0x1df8] sm:$0xff]  ;;  %v3400_v29 = vunpack.c.h.s8.bf16 %v1525_v52  ;;  %v3445_v31 = vunpack.c.l.s8.bf16 %v1550_v18  ;;  %v3405_v41 = vunpack.c.l.s8.bf16 %v1530_v49 }
 0x7ea   : > { %v5896_v8 = vadd.f32 %v6999_v28, %v9508_v48  ;;  %v3455_v48 = vunpack.c.l.s8.bf16 %v1555_v23  ;;  %v3525_v56 = vunpack.c.l.s8.bf16 %v1590_v44  ;;  %v1570_v43 = vld [vmem:[%s8002_s21 + $0x1d58] sm:$0xff]  ;;  %v3450_v32 = vunpack.c.h.s8.bf16 %v1550_v18 }
 0x7eb   : > { %v3485_v6 = vunpack.c.l.s8.bf16 %v1570_v43  ;;  %v7811_v23 = vmov 0.0  }
 0x7ec   : > { %v9531_v3 = vadd.f32 %v7021_v35, %v5896_v8  ;;  %7302 = vmatpush3.bf16.msra.mxu0 %v3245_v12  ;;  %7324 = vmatpush3.bf16.msra.mxu1 %v3325_v59  ;;  %v3530_v8 = vunpack.c.h.s8.bf16 %v1590_v44 }
 0x7ed   : > { %7303 = vmatprep.subr.bf16.mxu0 %v3290_v9  ;;  %7325 = vmatprep.subr.bf16.mxu1 %v3370_v58 }
 0x7f0   : > { %7304 = vmatpush3.bf16.msra.mxu0 %v3250_v50  ;;  %7326 = vmatpush3.bf16.msra.mxu1 %v3330_v40  ;;  %v3410_v40 = vunpack.c.h.s8.bf16 %v1530_v49 }
 0x7f1   : > { %7333 = vmatprep.subr.bf16.mxu0 %v3415_v16  ;;  %7355 = vmatprep.subr.bf16.mxu1 %v3495_v4  ;;  %v3490_v16 = vunpack.c.h.s8.bf16 %v1570_v43  ;;  %v3535_v4 = vunpack.c.l.s8.bf16 %v1595_v51 }
 0x7f3   : > { %6454 = vmatmul.mubr.bf16.vlgmr.msra.gmra.mrb[44].mxu0 %v9599_v34  ;;  %6494 = vmatmul.mubr.bf16.vlgmr.msra.gmra.mrb[44].mxu1 %v9600_v2  ;;  %v3560_v34 = vunpack.c.h.s8.bf16 %v1605_v30 }
 0x7f4   : > { %7334 = vmatpush3.bf16.msra.mxu0 %v3375_v53  ;;  %7356 = vmatpush3.bf16.msra.mxu1 %v3455_v48  ;;  %v9602_v53 = vld [vmem:[#allocation12_spill] sm:$0xff] }
 0x7f5   : > { %7335 = vmatprep.subr.bf16.mxu0 %v3420_v25  ;;  %7357 = vmatprep.subr.bf16.mxu1 %v3500_v19  ;;  %v1600_v48 = vld [vmem:[%s8002_s21 + $0x1e48] sm:$0xff] }
 0x7f6   : > { %6533 = vmatprep.mubr.bf16.mxu0 %v9601_v21  ;;  %6573 = vmatprep.mubr.bf16.mxu1 %v9209_v24  ;;  %v3435_v24 = vunpack.c.l.s8.bf16 %v1545_v42  ;;  %v3545_v25 = vunpack.c.l.s8.bf16 %v1600_v48  ;;  %v3550_v19 = vunpack.c.h.s8.bf16 %v1600_v48 }
 0x7f8   : > { %7336 = vmatpush3.bf16.msra.mxu0 %v3380_v0  ;;  %7358 = vmatpush3.bf16.msra.mxu1 %v3460_v54 }
 0x7f9   : > { %7337 = vmatprep.subr.bf16.mxu0 %v3425_v33  ;;  %7359 = vmatprep.subr.bf16.mxu1 %v3505_v36 }
 0x7fc   : > { %7338 = vmatpush3.bf16.msra.mxu0 %v3385_v20  ;;  %7360 = vmatpush3.bf16.msra.mxu1 %v3465_v10 }
 0x7fd   : > { %7339 = vmatprep.subr.bf16.mxu0 %v3430_v62  ;;  %7361 = vmatprep.subr.bf16.mxu1 %v3510_v57 }
 0x800   : > { %7340 = vmatpush3.bf16.msra.mxu0 %v3390_v45  ;;  %7362 = vmatpush3.bf16.msra.mxu1 %v3470_v46 }
 0x801   : > { %7341 = vmatprep.subr.bf16.mxu0 %v3435_v24  ;;  %7363 = vmatprep.subr.bf16.mxu1 %v3515_v11 }
 0x804   : > { %7342 = vmatpush3.bf16.msra.mxu0 %v3395_v13  ;;  %7364 = vmatpush3.bf16.msra.mxu1 %v3475_v22 }
 0x805   : > { %7343 = vmatprep.subr.bf16.mxu0 %v3440_v60  ;;  %7365 = vmatprep.subr.bf16.mxu1 %v3520_v17 }
 0x806   : > { %v7041_v27 = vpop.f32.mrb[20].mxu0  ;;  %v7063_v63 = vpop.f32.mrb[20].mxu1 }
 0x807   : > { %v7042_v28 = vpop.f32.mrb[21].mxu0  ;;  %v7064_v14 = vpop.f32.mrb[21].mxu1 }
 0x808   : > { %v7043_v35 = vadd.f32 %v7042_v28, %v7041_v27  ;;  %v7044_v12 = vpop.f32.mrb[22].mxu0  ;;  %7344 = vmatpush3.bf16.msra.mxu0 %v3400_v29  ;;  %v7065_v59 = vadd.f32 %v7064_v14, %v7063_v63  ;;  %7366 = vmatpush3.bf16.msra.mxu1 %v3480_v15  ;;  %v7066_v9 = vpop.f32.mrb[22].mxu1 }
 0x809   : > { %v7045_v58 = vpop.f32.mrb[23].mxu0  ;;  %7345 = vmatprep.subr.bf16.mxu0 %v3445_v31  ;;  %7367 = vmatprep.subr.bf16.mxu1 %v3525_v56  ;;  %v7067_v47 = vpop.f32.mrb[23].mxu1 }
 0x80a   : > { %v5976_v5 = vadd.f32 %v7043_v35, %v9531_v3  ;;  %v3540_v3 = vunpack.c.h.s8.bf16 %v1595_v51 }
 0x80c   : > { %v6016_v50 = vadd.f32 %v7065_v59, %v5976_v5  ;;  %7346 = vmatpush3.bf16.msra.mxu0 %v3405_v41  ;;  %7368 = vmatpush3.bf16.msra.mxu1 %v3485_v6 }
 0x80d   : > { %7347 = vmatprep.subr.bf16.mxu0 %v3450_v32  ;;  %7369 = vmatprep.subr.bf16.mxu1 %v3530_v8 }
 0x810   : > { %7348 = vmatpush3.bf16.msra.mxu0 %v3410_v40  ;;  %7370 = vmatpush3.bf16.msra.mxu1 %v3490_v16 }
 0x811   : > { %7386 = vmatprep.subr.bf16.mxu0 %v7811_v23 }
 0x813   : > { %6534 = vmatmul.mubr.bf16.vlgmr.msra.gmra.mrb[48].mxu0 %v9602_v53  ;;  %6574 = vmatmul.mubr.bf16.vlgmr.msra.gmra.mrb[48].mxu1 %v9247_v39  ;;  %v1610_v39 = vld [vmem:[%s8002_s21 + $0x1e98] sm:$0xff] }
 0x814   : > { %7387 = vmatpush3.bf16.msra.mxu0 %v3535_v4  ;;  %7402 = vmatprep.mubr.msk.bf16.mxu0 %vm7812_vm0, %v7811_v23  ;;  %v3565_v21 = vunpack.c.l.s8.bf16 %v1610_v39  ;;  %v3570_v61 = vunpack.c.h.s8.bf16 %v1610_v39 }
 0x815   : > { %7388 = vmatprep.subr.bf16.mxu0 %v7811_v23 }
 0x818   : > { %7389 = vmatpush3.bf16.msra.mxu0 %v3540_v3 }
 0x819   : > { %7390 = vmatprep.subr.bf16.mxu0 %v7811_v23 }
 0x81c   : > { %7391 = vmatpush3.bf16.msra.mxu0 %v3545_v25 }
 0x81d   : > { %7392 = vmatprep.subr.bf16.mxu0 %v7811_v23 }
 0x820   : > { %7393 = vmatpush3.bf16.msra.mxu0 %v3550_v19 }
 0x821   : > { %7394 = vmatprep.subr.bf16.mxu0 %v7811_v23 }
 0x824   : > { %7395 = vmatpush3.bf16.msra.mxu0 %v3555_v55 }
 0x825   : > { %7396 = vmatprep.subr.bf16.mxu0 %v7811_v23 }
 0x826   : > { %v7085_v2 = vpop.f32.mrb[24].mxu0  ;;  %v7107_v0 = vpop.f32.mrb[24].mxu1 }
 0x827   : > { %v7086_v54 = vpop.f32.mrb[25].mxu0  ;;  %v7108_v33 = vpop.f32.mrb[25].mxu1 }
 0x828   : > { %v7087_v38 = vadd.f32 %v7086_v54, %v7085_v2  ;;  %v7088_v36 = vpop.f32.mrb[26].mxu0  ;;  %7397 = vmatpush3.bf16.msra.mxu0 %v3560_v34  ;;  %v7109_v37 = vadd.f32 %v7108_v33, %v7107_v0  ;;  %v7110_v20 = vpop.f32.mrb[26].mxu1 }
 0x829   : > { %v7089_v10 = vpop.f32.mrb[27].mxu0  ;;  %7398 = vmatprep.subr.bf16.mxu0 %v7811_v23  ;;  %v7111_v62 = vpop.f32.mrb[27].mxu1 }
 0x82a   : > { %v6056_v57 = vadd.f32 %v7087_v38, %v6016_v50 }
 0x82c   : > { %v6096_v42 = vadd.f32 %v7109_v37, %v6056_v57  ;;  %7399 = vmatpush3.bf16.msra.mxu0 %v3565_v21 }
 0x82d   : > { %7400 = vmatprep.subr.bf16.mxu0 %v7811_v23 }
 0x830   : > { %7401 = vmatpush3.bf16.msra.mxu0 %v3570_v61 }
 0x833   : > { %7403 = vmatmul.mubr.bf16.vlgmr.msra.gmra.mrb[52].mxu0 %v9270_v7 }
 0x846   : > { %v7129_v45 = vpop.f32.mrb[28].mxu0  ;;  %v7151_v46 = vpop.f32.mrb[28].mxu1 }
 0x847   : > { %v7130_v24 = vpop.f32.mrb[29].mxu0  ;;  %v7152_v52 = vpop.f32.mrb[29].mxu1 }
 0x848   : > { %v7131_v11 = vadd.f32 %v7130_v24, %v7129_v45  ;;  %v7132_v1 = vpop.f32.mrb[30].mxu0  ;;  %v7153_v13 = vadd.f32 %v7152_v52, %v7151_v46  ;;  %v7154_v22 = vpop.f32.mrb[30].mxu1 }
 0x849   : > { %v7133_v60 = vpop.f32.mrb[31].mxu0  ;;  %v7155_v17 = vpop.f32.mrb[31].mxu1 }
 0x84a   : > { %v6136_v18 = vadd.f32 %v7131_v11, %v6096_v42  ;;  %v6641_v17 = vsub.s32 4, %v8026_v26 }
 0x84c   : > { %v6176_v44 = vadd.f32 %v7153_v13, %v6136_v18  ;;  %v7671_v18 = vld [vmem:[%s8012_s14] sm:$0x1f] }
 0x866   : > { %v7173_v29 = vpop.f32.mrb[32].mxu0  ;;  %v7195_v15 = vpop.f32.mrb[32].mxu1 }
 0x867   : > { %v7174_v31 = vpop.f32.mrb[33].mxu0  ;;  %v7196_v49 = vpop.f32.mrb[33].mxu1 }
 0x868   : > { %v7175_v56 = vadd.f32 %v7174_v31, %v7173_v29  ;;  %v7176_v43 = vpop.f32.mrb[34].mxu0  ;;  %v7197_v27 = vadd.f32 %v7196_v49, %v7195_v15  ;;  %v7198_v7 = vpop.f32.mrb[34].mxu1  ;;  %v7672_v31 = vld [vmem:[%s9411_s25] sm:$0x1f] }
 0x869   : > { %v7177_v63 = vpop.f32.mrb[35].mxu0  ;;  %v7199_v28 = vpop.f32.mrb[35].mxu1  ;;  %v6674_v49 = vrot.slane %v7672_v31, %v6641_v17 }
 0x86a   : > { %v6216_v14 = vadd.f32 %v7175_v56, %v6176_v44  ;;  %v6642_v44 = vrot.slane %v7671_v18, %v6641_v17 }
 0x86c   : > { %v6256_v35 = vadd.f32 %v7197_v27, %v6216_v14 }
 0x886   : > { %v7217_v12 = vpop.f32.mrb[36].mxu0  ;;  %v7239_v59 = vpop.f32.mrb[36].mxu1 }
 0x887   : > { %v7218_v41 = vpop.f32.mrb[37].mxu0  ;;  %v7240_v6 = vpop.f32.mrb[37].mxu1 }
 0x888   : > { %v7219_v9 = vadd.f32 %v7218_v41, %v7217_v12  ;;  %v7220_v58 = vpop.f32.mrb[38].mxu0  ;;  %v7241_v32 = vadd.f32 %v7240_v6, %v7239_v59  ;;  %v7242_v8 = vpop.f32.mrb[38].mxu1 }
 0x889   : > { %v7221_v47 = vpop.f32.mrb[39].mxu0  ;;  %v7243_v5 = vpop.f32.mrb[39].mxu1 }
 0x88a   : > { %v6296_v50 = vadd.f32 %v7219_v9, %v6256_v35 }
 0x88c   : > { %v6336_v40 = vadd.f32 %v7241_v32, %v6296_v50 }
 0x8a6   : > { %v7261_v16 = vpop.f32.mrb[40].mxu0  ;;  %v7283_v51 = vpop.f32.mrb[40].mxu1 }
 0x8a7   : > { %v7262_v4 = vpop.f32.mrb[41].mxu0  ;;  %v7284_v23 = vpop.f32.mrb[41].mxu1 }
 0x8a8   : > { %v7263_v53 = vadd.f32 %v7262_v4, %v7261_v16  ;;  %v7264_v3 = vpop.f32.mrb[42].mxu0  ;;  %v7285_v48 = vadd.f32 %v7284_v23, %v7283_v51  ;;  %v7286_v25 = vpop.f32.mrb[42].mxu1 }
 0x8a9   : > { %v7265_v19 = vpop.f32.mrb[43].mxu0  ;;  %v7287_v30 = vpop.f32.mrb[43].mxu1 }
 0x8aa   : > { %v6376_v55 = vadd.f32 %v7263_v53, %v6336_v40 }
 0x8ac   : > { %v6416_v34 = vadd.f32 %v7285_v48, %v6376_v55 }
 0x8c6   : > { %v7305_v39 = vpop.f32.mrb[44].mxu0  ;;  %v7327_v2 = vpop.f32.mrb[44].mxu1 }
 0x8c7   : > { %v7306_v0 = vpop.f32.mrb[45].mxu0  ;;  %v7328_v54 = vpop.f32.mrb[45].mxu1 }
 0x8c8   : > { %v7307_v33 = vadd.f32 %v7306_v0, %v7305_v39  ;;  %v7308_v38 = vpop.f32.mrb[46].mxu0  ;;  %v7329_v36 = vadd.f32 %v7328_v54, %v7327_v2  ;;  %v7330_v37 = vpop.f32.mrb[46].mxu1 }
 0x8c9   : > { %v7309_v21 = vpop.f32.mrb[47].mxu0  ;;  %v7331_v20 = vpop.f32.mrb[47].mxu1 }
 0x8ca   : > { %v6456_v10 = vadd.f32 %v7307_v33, %v6416_v34 }
 0x8cc   : > { %v6496_v62 = vadd.f32 %v7329_v36, %v6456_v10 }
 0x8e6   : > { %v7349_v57 = vpop.f32.mrb[48].mxu0  ;;  %v7371_v42 = vpop.f32.mrb[48].mxu1 }
 0x8e7   : > { %v7350_v61 = vpop.f32.mrb[49].mxu0  ;;  %v7372_v45 = vpop.f32.mrb[49].mxu1 }
 0x8e8   : > { %v7351_v46 = vadd.f32 %v7350_v61, %v7349_v57  ;;  %v7352_v24 = vpop.f32.mrb[50].mxu0  ;;  %v7373_v52 = vadd.f32 %v7372_v45, %v7371_v42  ;;  %v7374_v11 = vpop.f32.mrb[50].mxu1 }
 0x8e9   : > { %v7353_v1 = vpop.f32.mrb[51].mxu0  ;;  %v7375_v13 = vpop.f32.mrb[51].mxu1 }
 0x8ea   : > { %v6536_v22 = vadd.f32 %v7351_v46, %v6496_v62 }
 0x8ec   : > { %v6576_v60 = vadd.f32 %v7373_v52, %v6536_v22 }
 0x906   : > { %v6615_v29 = vpop.f32.mrb[52].mxu0 }
 0x907   : > { %v6616_v15 = vadd.f32 %v6615_v29, %v6576_v60  ;;  %v7404_v56 = vpop.f32.mrb[53].mxu0 }
 0x908   : > { %v6618_v43 = vpop.f32.mrb[54].mxu0 }
 0x909   : > { %v6652_v27 = vmul.f32 %v6642_v44, %v6616_v15  ;;  %v7405_v7 = vpop.f32.mrb[55].mxu0 }
 0x90b   : > { %v6684_v63 = vadd.f32 %v6674_v49, %v6652_v27 }
 0x90d   : > { %v6689_v28 = vmax.f32 %v6684_v63, 0.0 }
 0x90f   : > { %6843 = vst.sshfl [vmem:[%s9441_s10 + $0x8] sm:$0x3 pattern:$0x76325410] %v6689_v28 }
 0x910 PF: > { %p17_p0 = scmp.ge.s32.totalorder %s7860_s20, 7   ;;  %s9603_s15 = smov %s7793_s16 }
 0x911   : > { %s9604_s16 = smov %s7797_s17  ;;  %s9605_s17 = smov %s7870_s23 }
 0x912   : > { %s9606_s18 = smov %s7860_s20  ;;  %19 = sbr.rel (!%p17_p0) target bundleno = 5 (0x5), region = 100 }
 0x919   :  { %6745 = vsyncpa [#allocation3], 1 }
 0x91a   :  { %6747 = vsyncpa [#allocation3 + $0x1], 1 }
 0x91b   :  { %6748 = vsyncpa [#allocation5], 1 }
 0x91c   :  { %6750 = vsyncpa [#allocation5 + $0x1], 1 }

</bundles_post_ra>
